<compile_context>
chip_gen: v6e
topology: v6e:2x2x1
jax: 0.10.0
libtpu: 0.0.40
codegen_flags: <defaults>
</compile_context>

<pallas_src>
import functools
import math

import jax
import jax.numpy as jnp
from jax.experimental import pallas as pl
from jax.experimental.pallas import tpu as pltpu


# ----------------------------------------------------------------------------
# helpers
# ----------------------------------------------------------------------------
def _round_up(x, m):
    return (x + m - 1) // m * m


def _node_tiling(n, max_tile=128):
    """Pick a sublane-aligned node tile and the padded node count."""
    npad8 = _round_up(max(n, 8), 8)
    if npad8 <= max_tile:
        if npad8 >= 16 and (npad8 // 2) % 8 == 0:
            bt = npad8 // 2          # >=2 node tiles when possible (megacore)
        else:
            bt = npad8
    else:
        bt = max_tile
    npad = _round_up(n, bt)
    return bt, npad


def _divisor_tile(n, cap):
    """Largest tile <= cap (from a sublane-aligned set) dividing n."""
    for t in (512, 256, 128, 64, 32, 16, 8):
        if t <= cap and n % t == 0:
            return t
    return n


def _vmem_limit_bytes():
    """Explicit scoped-VMEM budget; ~75% of physical, generation-aware."""
    try:
        cap = int(pltpu.get_tpu_info().vmem_capacity_bytes)
    except Exception:
        cap = 64 * 1024 * 1024
    return max(32 * 1024 * 1024, cap * 3 // 4)


# ----------------------------------------------------------------------------
# Fused encoder kernel: embed -> n_layers x (pre-LN MHA + pre-LN FFN) ->
# final LN -> hop attention + readout -> [node|pooled] slab + semantic-score
# partial sums.  One metapath x one node tile per grid step; everything VMEM.
# ----------------------------------------------------------------------------
def _fused_encoder_kernel(
        x_ref, ew_ref, eb_ref,
        ln1g_ref, ln1b_ref, wqkv_ref, bqkv_ref, wo_ref, bo_ref,
        ln2g_ref, ln2b_ref, fw1_ref, fb1_ref, fw2_ref, fb2_ref,
        flng_ref, flnb_ref, hopw_ref,
        semw1_ref, semb1_ref, semw2_ref,
        slab_ref, score_ref,
        *, n_layers, n_heads, hidden, seq, bt, n_true, n_mp, readout):
    eps = 1e-5
    f32 = jnp.float32
    bf16 = jnp.bfloat16
    H, S = hidden, seq
    dh = H // n_heads
    scale = 1.0 / math.sqrt(dh)
    R = bt * S

    def ln(x2, g, b):
        # one-pass stats: var = E[x^2] - E[x]^2 (halves cross-lane reductions)
        mu = jnp.mean(x2, axis=-1, keepdims=True)
        ms = jnp.mean(x2 * x2, axis=-1, keepdims=True)
        var = ms - mu * mu
        return (x2 - mu) * jax.lax.rsqrt(var + eps) * g + b

    def softmax_last(s):
        # explicit softmax: exp + EUP reciprocal keeps VALU slots free
        m = jnp.max(s, axis=-1, keepdims=True)
        e = jnp.exp(s - m)
        return e * pl.reciprocal(jnp.sum(e, axis=-1, keepdims=True), approx=True)

    # ---------------- token embedding (rows = (node, hop) tokens) -----------
    x2 = x_ref[...].astype(bf16)                                     # [R, D]
    h2 = (jnp.dot(x2, ew_ref[...], preferred_element_type=f32)
          + eb_ref[...])                                             # [R, H] f32

    for l in range(n_layers):
        # ---------------- pre-LN multi-head self-attention ------------------
        y2 = ln(h2, ln1g_ref[l], ln1b_ref[l])
        qkv = (jnp.dot(y2.astype(bf16), wqkv_ref[l],
                       preferred_element_type=f32) + bqkv_ref[l])    # [R, 3H]
        qkv3 = qkv.reshape(bt, S, 3 * H)
        # batch heads along the leading axis -> single score einsum, single
        # softmax and single value einsum per layer
        q_all = jnp.concatenate(
            [qkv3[..., h * dh:(h + 1) * dh] for h in range(n_heads)], axis=0)
        k_all = jnp.concatenate(
            [qkv3[..., H + h * dh:H + (h + 1) * dh] for h in range(n_heads)],
            axis=0)
        v_all = jnp.concatenate(
            [qkv3[..., 2 * H + h * dh:2 * H + (h + 1) * dh]
             for h in range(n_heads)], axis=0)                       # [nH*bt,S,dh]
        s = jnp.einsum('bqd,bkd->bqk', (q_all * scale).astype(bf16),
                       k_all.astype(bf16),
                       preferred_element_type=f32)                   # [nH*bt,S,S]
        p = softmax_last(s)
        o_all = jnp.einsum('bqk,bkd->bqd', p.astype(bf16), v_all.astype(bf16),
                           preferred_element_type=f32)               # [nH*bt,S,dh]
        o = jnp.concatenate(
            [o_all[h * bt:(h + 1) * bt] for h in range(n_heads)], axis=-1)
        # ONE [R,H] @ [H,H] projection against the full Wo
        h2 = h2 + (jnp.dot(o.reshape(R, H).astype(bf16), wo_ref[l],
                           preferred_element_type=f32) + bo_ref[l])

        # ---------------- pre-LN feed-forward --------------------------------
        y2 = ln(h2, ln2g_ref[l], ln2b_ref[l])
        f = (jnp.dot(y2.astype(bf16), fw1_ref[l], preferred_element_type=f32)
             + fb1_ref[l])
        # TODO(synk): PyTorch nn.GELU default is exact erf; tanh approx used
        # here for the EUP fast path.
        f = jax.nn.gelu(f, approximate=True)
        h2 = h2 + (jnp.dot(f.astype(bf16), fw2_ref[l],
                           preferred_element_type=f32) + fb2_ref[l])

    h2 = ln(h2, flng_ref[...], flnb_ref[...])
    h3 = h2.reshape(bt, S, H)

    # ---------------- hop attention + readout (token 0 = the node) ----------
    node = h3[:, 0, :]                                               # [bt, H]
    neigh = h3[:, 1:, :]                                             # [bt, S-1, H]
    wa = hopw_ref[...]                                               # [1, 2H]
    wa_t = wa[:, :H]
    wa_n = wa[:, H:]
    sh = (jnp.sum(node * wa_t, axis=-1, keepdims=True)
          + jnp.sum(neigh * wa_n[:, None, :], axis=-1))              # [bt, S-1]
    a = softmax_last(sh)
    weighted = neigh * a[:, :, None]
    # TODO(synk): readout placement (raw vs attention-weighted hop tokens) is
    # reconstructed; verify against the real Zoom_aware_Transformer source.
    if readout == "sum":
        pooled = jnp.sum(weighted, axis=1)
    elif readout == "max":
        pooled = jnp.max(weighted, axis=1)
    else:  # mean
        pooled = jnp.mean(weighted, axis=1)                          # [bt, H]

    # lane-dense output slab: [node | pooled]  (one store instead of two)
    slab_ref[...] = jnp.concatenate([node, pooled], axis=-1).astype(slab_ref.dtype)

    # ------------- fused semantic-attention score partial sum ---------------
    # score = w2 . tanh(W1 @ [node ; pooled] + b1); sum over this tile's valid
    # nodes; written at column == metapath id of this tile's (8, M) block.
    w1l = semw1_ref[:H, :]
    w1h = semw1_ref[H:, :]
    t = jnp.tanh(jnp.dot(node.astype(bf16), w1l, preferred_element_type=f32)
                 + jnp.dot(pooled.astype(bf16), w1h, preferred_element_type=f32)
                 + semb1_ref[...])                                   # [bt, SH]
    sc = jnp.sum(t * semw2_ref[...], axis=-1, keepdims=True)         # [bt, 1]
    node_idx = (pl.program_id(1) * bt
                + jax.lax.broadcasted_iota(jnp.int32, (bt, 1), 0))
    sc = jnp.where(node_idx < n_true, sc, 0.0)                       # mask padding
    part = jnp.sum(sc)
    mp_id = pl.program_id(0)
    rows = jax.lax.broadcasted_iota(jnp.int32, (8, n_mp), 0)
    cols = jax.lax.broadcasted_iota(jnp.int32, (8, n_mp), 1)
    score_ref[...] = jnp.where((rows == 0) & (cols == mp_id), part, 0.0)


def fused_encoder(x_pad, ep, *, n_layers, n_heads, hidden, seq, n_true, n_mp,
                  bt, npad, readout, vmem_limit):
    """x_pad: [M, Npad, S, D] metapath-major, node-padded."""
    M, S = n_mp, seq
    D = x_pad.shape[-1]
    H, L = hidden, n_layers
    F = ep["ffn_w1"].shape[-1]
    SH = ep["sem_w1"].shape[-1]
    tiles = npad // bt
    x2d = x_pad.reshape(M * npad * S, D)     # free metadata reshape (host side)

    def cs(shape):
        nd = len(shape)
        return pl.BlockSpec(shape, lambda m, i, _nd=nd: (0,) * _nd)

    kernel = functools.partial(
        _fused_encoder_kernel, n_layers=L, n_heads=n_heads, hidden=H, seq=S,
        bt=bt, n_true=n_true, n_mp=M, readout=readout)

    slab, score = pl.pallas_call(
        kernel,
        out_shape=(jax.ShapeDtypeStruct((M * npad, 2 * H), jnp.float32),
                   jax.ShapeDtypeStruct((M * tiles * 8, M), jnp.float32)),
        grid=(M, tiles),
        in_specs=[
            pl.BlockSpec((bt * S, D), lambda m, i: (m * tiles + i, 0)),
            cs((D, H)), cs((1, H)),
            cs((L, 1, H)), cs((L, 1, H)),
            cs((L, H, 3 * H)), cs((L, 1, 3 * H)),
            cs((L, H, H)), cs((L, 1, H)),
            cs((L, 1, H)), cs((L, 1, H)),
            cs((L, H, F)), cs((L, 1, F)),
            cs((L, F, H)), cs((L, 1, H)),
            cs((1, H)), cs((1, H)),
            cs((1, 2 * H)),
            cs((2 * H, SH)), cs((1, SH)), cs((1, SH)),
        ],
        out_specs=(
            pl.BlockSpec((bt, 2 * H), lambda m, i: (m * tiles + i, 0)),
            pl.BlockSpec((8, M), lambda m, i: (m * tiles + i, 0)),
        ),
        compiler_params=pltpu.CompilerParams(
            dimension_semantics=("parallel", "parallel"),
            vmem_limit_bytes=vmem_limit),
    )(x2d, ep["embed_w"], ep["embed_b"],
      ep["ln1_g"], ep["ln1_b"], ep["wqkv"], ep["bqkv"], ep["wo"], ep["bo"],
      ep["ln2_g"], ep["ln2_b"], ep["ffn_w1"], ep["ffn_b1"],
      ep["ffn_w2"], ep["ffn_b2"],
      ep["final_ln_g"], ep["final_ln_b"], ep["attn_w"],
      ep["sem_w1"], ep["sem_b1"], ep["sem_w2"])
    return slab, score


# ----------------------------------------------------------------------------
# Combine (beta-weighted sum over metapaths) + classification, one kernel.
# ----------------------------------------------------------------------------
def _combine_cls_kernel(beta_ref, slab_ref, cw_ref, cb_ref, out_ref, *, hidden):
    H = hidden
    f32 = jnp.float32
    slab = slab_ref[...]                       # [M, Bn, 2H]
    beta3 = beta_ref[...][:, :, None]          # [M, 1, 1]
    low = slab[..., :H]
    high = slab[..., H:]
    node_emb = jnp.sum(low * beta3, axis=0)    # [Bn, H]
    comm = jnp.sum(high * beta3, axis=0)       # [Bn, H]
    logits = (jnp.dot(node_emb.astype(jnp.bfloat16), cw_ref[...],
                      preferred_element_type=f32) + cb_ref[...])
    out_ref[...] = jnp.concatenate([comm, logits], axis=-1).astype(out_ref.dtype)


def combine_and_classify(slab, beta, cls_w, cls_b, *, n_true, n_mp, npad,
                         hidden, vmem_limit):
    M, H = n_mp, hidden
    C = cls_w.shape[-1]
    slab3 = slab.reshape(M, npad, 2 * H)       # free metadata reshape
    bn = _divisor_tile(npad, 512)              # big streaming tiles (mem-bound)
    grid = (npad // bn,)

    out = pl.pallas_call(
        functools.partial(_combine_cls_kernel, hidden=H),
        out_shape=jax.ShapeDtypeStruct((npad, H + C), jnp.float32),
        grid=grid,
        in_specs=[
            pl.BlockSpec((M, 1), lambda i: (0, 0)),
            pl.BlockSpec((M, bn, 2 * H), lambda i: (0, i, 0)),
            pl.BlockSpec((H, C), lambda i: (0, 0)),
            pl.BlockSpec((1, C), lambda i: (0, 0)),
        ],
        out_specs=pl.BlockSpec((bn, H + C), lambda i: (i, 0)),
        compiler_params=pltpu.CompilerParams(
            dimension_semantics=("parallel",),
            vmem_limit_bytes=vmem_limit),
    )(beta, slab3, cls_w, cls_b)
    comm = out[:n_true, :H]
    logits = out[:n_true, H:H + C]
    return comm, logits


# ----------------------------------------------------------------------------
# model forward (glue only; hot paths are the fused kernels above)
# ----------------------------------------------------------------------------
def model_forward(params, x, *, metapath_num, n_layers, n_heads, hidden,
                  readout):
    N, M, S, D = x.shape
    assert M == metapath_num
    bt, npad = _node_tiling(N)
    # metapath-major layout so every node tile belongs to a single metapath
    xm = jnp.transpose(x, (1, 0, 2, 3))                    # [M, N, S, D]
    if npad != N:
        xm = jnp.pad(xm, ((0, 0), (0, npad - N), (0, 0), (0, 0)))
    vmem_limit = _vmem_limit_bytes()

    slab, score = fused_encoder(
        xm, params["encoder"], n_layers=n_layers, n_heads=n_heads,
        hidden=hidden, seq=S, n_true=N, n_mp=M, bt=bt, npad=npad,
        readout=readout, vmem_limit=vmem_limit)

    # tiny [M]-sized reduction + metapath softmax (beta) stays in plain JAX
    score_sum = jnp.sum(score, axis=0)                     # [M]
    beta = jax.nn.softmax(score_sum / N, axis=-1).reshape(M, 1).astype(jnp.float32)

    community_emb, class_prediction = combine_and_classify(
        slab, beta, params["cls_w"], params["cls_b"], n_true=N, n_mp=M,
        npad=npad, hidden=hidden, vmem_limit=vmem_limit)
    # (shuf_index / losses belong to trainModel, not forward.)
    return community_emb, class_prediction


# ----------------------------------------------------------------------------
# deterministic synthetic parameters (PyTorch nn.Linear-style uniform init)
# ----------------------------------------------------------------------------
def _lin_init(key, fan_in, fan_out):
    kw, kb = jax.random.split(key)
    bound = 1.0 / math.sqrt(fan_in)
    w = jax.random.uniform(kw, (fan_in, fan_out), jnp.float32, -bound, bound)
    b = jax.random.uniform(kb, (fan_out,), jnp.float32, -bound, bound)
    return w, b


def init_params(key, *, input_dim, hidden, ffn, n_layers, class_num,
                sem_hidden):
    bf16 = jnp.bfloat16
    keys = iter(jax.random.split(key, 6 * n_layers + 16))
    enc = {}
    ew, eb = _lin_init(next(keys), input_dim, hidden)
    enc["embed_w"] = ew.astype(bf16)
    enc["embed_b"] = eb.reshape(1, hidden)

    ln1g, ln1b, wqkv, bqkv, wo, bo = [], [], [], [], [], []
    ln2g, ln2b, fw1, fb1, fw2, fb2 = [], [], [], [], [], []
    for _ in range(n_layers):
        ln1g.append(jnp.ones((1, hidden), jnp.float32))
        ln1b.append(jnp.zeros((1, hidden), jnp.float32))
        wq, bq = _lin_init(next(keys), hidden, hidden)
        wk, bk = _lin_init(next(keys), hidden, hidden)
        wv, bv = _lin_init(next(keys), hidden, hidden)
        wqkv.append(jnp.concatenate([wq, wk, wv], axis=1))
        bqkv.append(jnp.concatenate([bq, bk, bv]).reshape(1, 3 * hidden))
        w_o, b_o = _lin_init(next(keys), hidden, hidden)
        wo.append(w_o)
        bo.append(b_o.reshape(1, hidden))
        ln2g.append(jnp.ones((1, hidden), jnp.float32))
        ln2b.append(jnp.zeros((1, hidden), jnp.float32))
        w1, b1 = _lin_init(next(keys), hidden, ffn)
        w2, b2 = _lin_init(next(keys), ffn, hidden)
        fw1.append(w1); fb1.append(b1.reshape(1, ffn))
        fw2.append(w2); fb2.append(b2.reshape(1, hidden))

    enc["ln1_g"] = jnp.stack(ln1g); enc["ln1_b"] = jnp.stack(ln1b)
    enc["wqkv"] = jnp.stack(wqkv).astype(bf16)
    enc["bqkv"] = jnp.stack(bqkv)
    enc["wo"] = jnp.stack(wo).astype(bf16)
    enc["bo"] = jnp.stack(bo)
    enc["ln2_g"] = jnp.stack(ln2g); enc["ln2_b"] = jnp.stack(ln2b)
    enc["ffn_w1"] = jnp.stack(fw1).astype(bf16); enc["ffn_b1"] = jnp.stack(fb1)
    enc["ffn_w2"] = jnp.stack(fw2).astype(bf16); enc["ffn_b2"] = jnp.stack(fb2)
    enc["final_ln_g"] = jnp.ones((1, hidden), jnp.float32)
    enc["final_ln_b"] = jnp.zeros((1, hidden), jnp.float32)
    wa, _ = _lin_init(next(keys), 2 * hidden, 1)
    enc["attn_w"] = wa.reshape(1, 2 * hidden)

    sw1, sb1 = _lin_init(next(keys), 2 * hidden, sem_hidden)
    enc["sem_w1"] = sw1.astype(bf16)
    enc["sem_b1"] = sb1.reshape(1, sem_hidden)
    sw2, _ = _lin_init(next(keys), sem_hidden, 1)
    enc["sem_w2"] = sw2.reshape(1, sem_hidden)              # bias=False

    params = {"encoder": enc}
    cw, cb = _lin_init(next(keys), hidden, class_num)
    params["cls_w"] = cw.astype(bf16)
    params["cls_b"] = cb.reshape(1, class_num)
    return params


# ----------------------------------------------------------------------------
if __name__ == "__main__":
    # small config consistent with the module's forward
    hops = 7               # -> seq len S = hops + 1 = 8
    n_layers = 2
    n_heads = 4
    hidden = 32
    ffn = 32
    class_num = 4
    sem_hidden = 64
    readout = "mean"
    metapath_num = 3
    input_dim = 16
    n_nodes = 8
    seq = hops + 1

    key = jax.random.PRNGKey(0)
    kp, kx = jax.random.split(key)
    params = init_params(kp, input_dim=input_dim, hidden=hidden, ffn=ffn,
                         n_layers=n_layers, class_num=class_num,
                         sem_hidden=sem_hidden)
    # layout: [N, M, S, D]
    x = jax.random.normal(kx, (n_nodes, metapath_num, seq, input_dim),
                          jnp.float32)

    fwd = jax.jit(functools.partial(
        model_forward, metapath_num=metapath_num, n_layers=n_layers,
        n_heads=n_heads, hidden=hidden, readout=readout))

    community_emb, class_prediction = fwd(params, x)
    jax.block_until_ready((community_emb, class_prediction))

    assert community_emb.shape == (n_nodes, hidden)
    assert class_prediction.shape == (n_nodes, class_num)
    print("KERNEL_OK")
</pallas_src>

<mosaic_0001>
module attributes {stable_mosaic.version = 11 : i64} {
  func.func @_fused_encoder_kernel(%arg0: i32, %arg1: i32, %arg2: memref<64x16xf32, #tpu.memory_space<vmem>>, %arg3: memref<16x32xbf16, #tpu.memory_space<vmem>>, %arg4: memref<1x32xf32, #tpu.memory_space<vmem>>, %arg5: memref<2x1x32xf32, #tpu.memory_space<vmem>>, %arg6: memref<2x1x32xf32, #tpu.memory_space<vmem>>, %arg7: memref<2x32x96xbf16, #tpu.memory_space<vmem>>, %arg8: memref<2x1x96xf32, #tpu.memory_space<vmem>>, %arg9: memref<2x32x32xbf16, #tpu.memory_space<vmem>>, %arg10: memref<2x1x32xf32, #tpu.memory_space<vmem>>, %arg11: memref<2x1x32xf32, #tpu.memory_space<vmem>>, %arg12: memref<2x1x32xf32, #tpu.memory_space<vmem>>, %arg13: memref<2x32x32xbf16, #tpu.memory_space<vmem>>, %arg14: memref<2x1x32xf32, #tpu.memory_space<vmem>>, %arg15: memref<2x32x32xbf16, #tpu.memory_space<vmem>>, %arg16: memref<2x1x32xf32, #tpu.memory_space<vmem>>, %arg17: memref<1x32xf32, #tpu.memory_space<vmem>>, %arg18: memref<1x32xf32, #tpu.memory_space<vmem>>, %arg19: memref<1x64xf32, #tpu.memory_space<vmem>>, %arg20: memref<64x64xbf16, #tpu.memory_space<vmem>>, %arg21: memref<1x64xf32, #tpu.memory_space<vmem>>, %arg22: memref<1x64xf32, #tpu.memory_space<vmem>>, %arg23: memref<8x64xf32, #tpu.memory_space<vmem>>, %arg24: memref<8x3xf32, #tpu.memory_space<vmem>>) attributes {dimension_semantics = [#tpu.dimension_semantics<parallel>, #tpu.dimension_semantics<parallel>], iteration_bounds = array<i64: 3, 1>, scalar_prefetch = 0 : i64, scratch_operands = 0 : i64, tpu.core_type = #tpu.core_type<tc>, window_params = [{transform_indices = @transform_0, window_bounds = array<i64: 64, 16>}, {pipeline_mode = #tpu.pipeline_mode<synchronous>, transform_indices = @transform_1, window_bounds = array<i64: 16, 32>}, {pipeline_mode = #tpu.pipeline_mode<synchronous>, transform_indices = @transform_2, window_bounds = array<i64: 1, 32>}, {pipeline_mode = #tpu.pipeline_mode<synchronous>, transform_indices = @transform_3, window_bounds = array<i64: 2, 1, 32>}, {pipeline_mode = #tpu.pipeline_mode<synchronous>, transform_indices = @transform_4, window_bounds = array<i64: 2, 1, 32>}, {pipeline_mode = #tpu.pipeline_mode<synchronous>, transform_indices = @transform_5, window_bounds = array<i64: 2, 32, 96>}, {pipeline_mode = #tpu.pipeline_mode<synchronous>, transform_indices = @transform_6, window_bounds = array<i64: 2, 1, 96>}, {pipeline_mode = #tpu.pipeline_mode<synchronous>, transform_indices = @transform_7, window_bounds = array<i64: 2, 32, 32>}, {pipeline_mode = #tpu.pipeline_mode<synchronous>, transform_indices = @transform_8, window_bounds = array<i64: 2, 1, 32>}, {pipeline_mode = #tpu.pipeline_mode<synchronous>, transform_indices = @transform_9, window_bounds = array<i64: 2, 1, 32>}, {pipeline_mode = #tpu.pipeline_mode<synchronous>, transform_indices = @transform_10, window_bounds = array<i64: 2, 1, 32>}, {pipeline_mode = #tpu.pipeline_mode<synchronous>, transform_indices = @transform_11, window_bounds = array<i64: 2, 32, 32>}, {pipeline_mode = #tpu.pipeline_mode<synchronous>, transform_indices = @transform_12, window_bounds = array<i64: 2, 1, 32>}, {pipeline_mode = #tpu.pipeline_mode<synchronous>, transform_indices = @transform_13, window_bounds = array<i64: 2, 32, 32>}, {pipeline_mode = #tpu.pipeline_mode<synchronous>, transform_indices = @transform_14, window_bounds = array<i64: 2, 1, 32>}, {pipeline_mode = #tpu.pipeline_mode<synchronous>, transform_indices = @transform_15, window_bounds = array<i64: 1, 32>}, {pipeline_mode = #tpu.pipeline_mode<synchronous>, transform_indices = @transform_16, window_bounds = array<i64: 1, 32>}, {pipeline_mode = #tpu.pipeline_mode<synchronous>, transform_indices = @transform_17, window_bounds = array<i64: 1, 64>}, {pipeline_mode = #tpu.pipeline_mode<synchronous>, transform_indices = @transform_18, window_bounds = array<i64: 64, 64>}, {pipeline_mode = #tpu.pipeline_mode<synchronous>, transform_indices = @transform_19, window_bounds = array<i64: 1, 64>}, {pipeline_mode = #tpu.pipeline_mode<synchronous>, transform_indices = @transform_20, window_bounds = array<i64: 1, 64>}, {transform_indices = @transform_21, window_bounds = array<i64: 8, 64>}, {transform_indices = @transform_22, window_bounds = array<i64: 8, 3>}]} {
    %c0 = arith.constant 0 : index
    %c0_0 = arith.constant 0 : index
    %0 = vector.load %arg2[%c0, %c0_0] : memref<64x16xf32, #tpu.memory_space<vmem>>, vector<64x16xf32>
    %1 = arith.truncf %0 : vector<64x16xf32> to vector<64x16xbf16>
    %c0_1 = arith.constant 0 : index
    %c0_2 = arith.constant 0 : index
    %2 = vector.load %arg3[%c0_1, %c0_2] : memref<16x32xbf16, #tpu.memory_space<vmem>>, vector<16x32xbf16>
    %cst = arith.constant dense<0.000000e+00> : vector<64x32xf32>
    %3 = tpu.matmul %1, %2, %cst {dimension_numbers = #tpu.dot_dimension_numbers<[1], [0], [0], [1], [0, 0, 1, 1], [], []>} : vector<64x16xbf16>, vector<16x32xbf16>, vector<64x32xf32> -> vector<64x32xf32>
    %c0_3 = arith.constant 0 : index
    %c0_4 = arith.constant 0 : index
    %4 = vector.load %arg4[%c0_3, %c0_4] : memref<1x32xf32, #tpu.memory_space<vmem>>, vector<1x32xf32>
    %5 = vector.broadcast %4 : vector<1x32xf32> to vector<64x32xf32>
    %6 = arith.addf %3, %5 : vector<64x32xf32>
    %c0_5 = arith.constant 0 : index
    %c0_6 = arith.constant 0 : index
    %c0_7 = arith.constant 0 : index
    %7 = vector.load %arg5[%c0_5, %c0_6, %c0_7] : memref<2x1x32xf32, #tpu.memory_space<vmem>>, vector<1x1x32xf32>
    %8 = vector.shape_cast %7 : vector<1x1x32xf32> to vector<1x32xf32>
    %c0_8 = arith.constant 0 : index
    %c0_9 = arith.constant 0 : index
    %c0_10 = arith.constant 0 : index
    %9 = vector.load %arg6[%c0_8, %c0_9, %c0_10] : memref<2x1x32xf32, #tpu.memory_space<vmem>>, vector<1x1x32xf32>
    %10 = vector.shape_cast %9 : vector<1x1x32xf32> to vector<1x32xf32>
    %cst_11 = arith.constant dense<0.000000e+00> : vector<64xf32>
    %11 = vector.multi_reduction <add>, %6, %cst_11 [1] : vector<64x32xf32> to vector<64xf32>
    %12 = vector.shape_cast %11 : vector<64xf32> to vector<64x1xf32>
    %cst_12 = arith.constant 3.200000e+01 : f32
    %13 = vector.broadcast %cst_12 : f32 to vector<64x1xf32>
    %14 = arith.divf %12, %13 : vector<64x1xf32>
    %15 = arith.mulf %6, %6 : vector<64x32xf32>
    %cst_13 = arith.constant dense<0.000000e+00> : vector<64xf32>
    %16 = vector.multi_reduction <add>, %15, %cst_13 [1] : vector<64x32xf32> to vector<64xf32>
    %17 = vector.shape_cast %16 : vector<64xf32> to vector<64x1xf32>
    %cst_14 = arith.constant 3.200000e+01 : f32
    %18 = vector.broadcast %cst_14 : f32 to vector<64x1xf32>
    %19 = arith.divf %17, %18 : vector<64x1xf32>
    %20 = arith.mulf %14, %14 : vector<64x1xf32>
    %21 = arith.subf %19, %20 : vector<64x1xf32>
    %22 = vector.broadcast %14 : vector<64x1xf32> to vector<64x32xf32>
    %23 = arith.subf %6, %22 : vector<64x32xf32>
    %cst_15 = arith.constant 9.99999974E-6 : f32
    %24 = vector.broadcast %cst_15 : f32 to vector<64x1xf32>
    %25 = arith.addf %21, %24 : vector<64x1xf32>
    %26 = math.rsqrt %25 : vector<64x1xf32>
    %27 = vector.broadcast %26 : vector<64x1xf32> to vector<64x32xf32>
    %28 = arith.mulf %23, %27 : vector<64x32xf32>
    %29 = vector.broadcast %8 : vector<1x32xf32> to vector<64x32xf32>
    %30 = arith.mulf %28, %29 : vector<64x32xf32>
    %31 = vector.broadcast %10 : vector<1x32xf32> to vector<64x32xf32>
    %32 = arith.addf %30, %31 : vector<64x32xf32>
    %33 = arith.truncf %32 : vector<64x32xf32> to vector<64x32xbf16>
    %c0_16 = arith.constant 0 : index
    %c0_17 = arith.constant 0 : index
    %c0_18 = arith.constant 0 : index
    %34 = vector.load %arg7[%c0_16, %c0_17, %c0_18] : memref<2x32x96xbf16, #tpu.memory_space<vmem>>, vector<1x32x96xbf16>
    %35 = vector.shape_cast %34 : vector<1x32x96xbf16> to vector<32x96xbf16>
    %cst_19 = arith.constant dense<0.000000e+00> : vector<64x96xf32>
    %36 = tpu.matmul %33, %35, %cst_19 {dimension_numbers = #tpu.dot_dimension_numbers<[1], [0], [0], [1], [0, 0, 1, 1], [], []>} : vector<64x32xbf16>, vector<32x96xbf16>, vector<64x96xf32> -> vector<64x96xf32>
    %c0_20 = arith.constant 0 : index
    %c0_21 = arith.constant 0 : index
    %c0_22 = arith.constant 0 : index
    %37 = vector.load %arg8[%c0_20, %c0_21, %c0_22] : memref<2x1x96xf32, #tpu.memory_space<vmem>>, vector<1x1x96xf32>
    %38 = vector.shape_cast %37 : vector<1x1x96xf32> to vector<1x96xf32>
    %39 = vector.broadcast %38 : vector<1x96xf32> to vector<64x96xf32>
    %40 = arith.addf %36, %39 : vector<64x96xf32>
    %41 = vector.shape_cast %40 : vector<64x96xf32> to vector<8x8x96xf32>
    %42 = vector.extract_strided_slice %41 {offsets = [0, 0, 0], sizes = [8, 8, 8], strides = [1, 1, 1]} : vector<8x8x96xf32> to vector<8x8x8xf32>
    %43 = vector.extract_strided_slice %41 {offsets = [0, 0, 8], sizes = [8, 8, 8], strides = [1, 1, 1]} : vector<8x8x96xf32> to vector<8x8x8xf32>
    %44 = vector.extract_strided_slice %41 {offsets = [0, 0, 16], sizes = [8, 8, 8], strides = [1, 1, 1]} : vector<8x8x96xf32> to vector<8x8x8xf32>
    %45 = vector.extract_strided_slice %41 {offsets = [0, 0, 24], sizes = [8, 8, 8], strides = [1, 1, 1]} : vector<8x8x96xf32> to vector<8x8x8xf32>
    %46 = tpu.concatenate %42, %43, %44, %45 in 0 : vector<8x8x8xf32>, vector<8x8x8xf32>, vector<8x8x8xf32>, vector<8x8x8xf32> -> vector<32x8x8xf32>
    %47 = vector.extract_strided_slice %41 {offsets = [0, 0, 32], sizes = [8, 8, 8], strides = [1, 1, 1]} : vector<8x8x96xf32> to vector<8x8x8xf32>
    %48 = vector.extract_strided_slice %41 {offsets = [0, 0, 40], sizes = [8, 8, 8], strides = [1, 1, 1]} : vector<8x8x96xf32> to vector<8x8x8xf32>
    %49 = vector.extract_strided_slice %41 {offsets = [0, 0, 48], sizes = [8, 8, 8], strides = [1, 1, 1]} : vector<8x8x96xf32> to vector<8x8x8xf32>
    %50 = vector.extract_strided_slice %41 {offsets = [0, 0, 56], sizes = [8, 8, 8], strides = [1, 1, 1]} : vector<8x8x96xf32> to vector<8x8x8xf32>
    %51 = tpu.concatenate %47, %48, %49, %50 in 0 : vector<8x8x8xf32>, vector<8x8x8xf32>, vector<8x8x8xf32>, vector<8x8x8xf32> -> vector<32x8x8xf32>
    %52 = vector.extract_strided_slice %41 {offsets = [0, 0, 64], sizes = [8, 8, 8], strides = [1, 1, 1]} : vector<8x8x96xf32> to vector<8x8x8xf32>
    %53 = vector.extract_strided_slice %41 {offsets = [0, 0, 72], sizes = [8, 8, 8], strides = [1, 1, 1]} : vector<8x8x96xf32> to vector<8x8x8xf32>
    %54 = vector.extract_strided_slice %41 {offsets = [0, 0, 80], sizes = [8, 8, 8], strides = [1, 1, 1]} : vector<8x8x96xf32> to vector<8x8x8xf32>
    %55 = vector.extract_strided_slice %41 {offsets = [0, 0, 88], sizes = [8, 8, 8], strides = [1, 1, 1]} : vector<8x8x96xf32> to vector<8x8x8xf32>
    %56 = tpu.concatenate %52, %53, %54, %55 in 0 : vector<8x8x8xf32>, vector<8x8x8xf32>, vector<8x8x8xf32>, vector<8x8x8xf32> -> vector<32x8x8xf32>
    %cst_23 = arith.constant 0.353553385 : f32
    %57 = vector.broadcast %cst_23 : f32 to vector<32x8x8xf32>
    %58 = arith.mulf %46, %57 : vector<32x8x8xf32>
    %59 = arith.truncf %58 : vector<32x8x8xf32> to vector<32x8x8xbf16>
    %60 = arith.truncf %51 : vector<32x8x8xf32> to vector<32x8x8xbf16>
    "tpu.trace_start"() <{level = 10 : i32, message = "bqd,bkd->bqk"}> : () -> ()
    %cst_24 = arith.constant dense<0.000000e+00> : vector<32x8x8xf32>
    %61 = tpu.matmul %59, %60, %cst_24 {dimension_numbers = #tpu.dot_dimension_numbers<[2], [2], [1], [1], [0, 0, 0, 1, 1, 1], [0], [0]>} : vector<32x8x8xbf16>, vector<32x8x8xbf16>, vector<32x8x8xf32> -> vector<32x8x8xf32>
    "tpu.trace_stop"() : () -> ()
    %cst_25 = arith.constant dense<0xFF800000> : vector<32x8xf32>
    %62 = vector.multi_reduction <maximumf>, %61, %cst_25 [2] : vector<32x8x8xf32> to vector<32x8xf32>
    %63 = vector.shape_cast %62 : vector<32x8xf32> to vector<32x8x1xf32>
    %64 = vector.broadcast %63 : vector<32x8x1xf32> to vector<32x8x8xf32>
    %65 = arith.subf %61, %64 : vector<32x8x8xf32>
    %66 = math.exp %65 : vector<32x8x8xf32>
    %cst_26 = arith.constant dense<0.000000e+00> : vector<32x8xf32>
    %67 = vector.multi_reduction <add>, %66, %cst_26 [2] : vector<32x8x8xf32> to vector<32x8xf32>
    %68 = vector.shape_cast %67 : vector<32x8xf32> to vector<32x8x1xf32>
    %69 = tpu.reciprocal %68 {approx = true} : vector<32x8x1xf32> -> vector<32x8x1xf32>
    %70 = vector.broadcast %69 : vector<32x8x1xf32> to vector<32x8x8xf32>
    %71 = arith.mulf %66, %70 : vector<32x8x8xf32>
    %72 = arith.truncf %71 : vector<32x8x8xf32> to vector<32x8x8xbf16>
    %73 = arith.truncf %56 : vector<32x8x8xf32> to vector<32x8x8xbf16>
    "tpu.trace_start"() <{level = 10 : i32, message = "bqk,bkd->bqd"}> : () -> ()
    %cst_27 = arith.constant dense<0.000000e+00> : vector<32x8x8xf32>
    %74 = tpu.matmul %72, %73, %cst_27 {dimension_numbers = #tpu.dot_dimension_numbers<[2], [1], [1], [2], [0, 0, 0, 1, 1, 2], [0], [0]>} : vector<32x8x8xbf16>, vector<32x8x8xbf16>, vector<32x8x8xf32> -> vector<32x8x8xf32>
    "tpu.trace_stop"() : () -> ()
    %75 = vector.extract_strided_slice %74 {offsets = [0, 0, 0], sizes = [8, 8, 8], strides = [1, 1, 1]} : vector<32x8x8xf32> to vector<8x8x8xf32>
    %76 = vector.extract_strided_slice %74 {offsets = [8, 0, 0], sizes = [8, 8, 8], strides = [1, 1, 1]} : vector<32x8x8xf32> to vector<8x8x8xf32>
    %77 = vector.extract_strided_slice %74 {offsets = [16, 0, 0], sizes = [8, 8, 8], strides = [1, 1, 1]} : vector<32x8x8xf32> to vector<8x8x8xf32>
    %78 = vector.extract_strided_slice %74 {offsets = [24, 0, 0], sizes = [8, 8, 8], strides = [1, 1, 1]} : vector<32x8x8xf32> to vector<8x8x8xf32>
    %79 = tpu.concatenate %75, %76, %77, %78 in 2 : vector<8x8x8xf32>, vector<8x8x8xf32>, vector<8x8x8xf32>, vector<8x8x8xf32> -> vector<8x8x32xf32>
    %80 = vector.shape_cast %79 : vector<8x8x32xf32> to vector<64x32xf32>
    %81 = arith.truncf %80 : vector<64x32xf32> to vector<64x32xbf16>
    %c0_28 = arith.constant 0 : index
    %c0_29 = arith.constant 0 : index
    %c0_30 = arith.constant 0 : index
    %82 = vector.load %arg9[%c0_28, %c0_29, %c0_30] : memref<2x32x32xbf16, #tpu.memory_space<vmem>>, vector<1x32x32xbf16>
    %83 = vector.shape_cast %82 : vector<1x32x32xbf16> to vector<32x32xbf16>
    %cst_31 = arith.constant dense<0.000000e+00> : vector<64x32xf32>
    %84 = tpu.matmul %81, %83, %cst_31 {dimension_numbers = #tpu.dot_dimension_numbers<[1], [0], [0], [1], [0, 0, 1, 1], [], []>} : vector<64x32xbf16>, vector<32x32xbf16>, vector<64x32xf32> -> vector<64x32xf32>
    %c0_32 = arith.constant 0 : index
    %c0_33 = arith.constant 0 : index
    %c0_34 = arith.constant 0 : index
    %85 = vector.load %arg10[%c0_32, %c0_33, %c0_34] : memref<2x1x32xf32, #tpu.memory_space<vmem>>, vector<1x1x32xf32>
    %86 = vector.shape_cast %85 : vector<1x1x32xf32> to vector<1x32xf32>
    %87 = vector.broadcast %86 : vector<1x32xf32> to vector<64x32xf32>
    %88 = arith.addf %84, %87 : vector<64x32xf32>
    %89 = arith.addf %6, %88 : vector<64x32xf32>
    %c0_35 = arith.constant 0 : index
    %c0_36 = arith.constant 0 : index
    %c0_37 = arith.constant 0 : index
    %90 = vector.load %arg11[%c0_35, %c0_36, %c0_37] : memref<2x1x32xf32, #tpu.memory_space<vmem>>, vector<1x1x32xf32>
    %91 = vector.shape_cast %90 : vector<1x1x32xf32> to vector<1x32xf32>
    %c0_38 = arith.constant 0 : index
    %c0_39 = arith.constant 0 : index
    %c0_40 = arith.constant 0 : index
    %92 = vector.load %arg12[%c0_38, %c0_39, %c0_40] : memref<2x1x32xf32, #tpu.memory_space<vmem>>, vector<1x1x32xf32>
    %93 = vector.shape_cast %92 : vector<1x1x32xf32> to vector<1x32xf32>
    %cst_41 = arith.constant dense<0.000000e+00> : vector<64xf32>
    %94 = vector.multi_reduction <add>, %89, %cst_41 [1] : vector<64x32xf32> to vector<64xf32>
    %95 = vector.shape_cast %94 : vector<64xf32> to vector<64x1xf32>
    %cst_42 = arith.constant 3.200000e+01 : f32
    %96 = vector.broadcast %cst_42 : f32 to vector<64x1xf32>
    %97 = arith.divf %95, %96 : vector<64x1xf32>
    %98 = arith.mulf %89, %89 : vector<64x32xf32>
    %cst_43 = arith.constant dense<0.000000e+00> : vector<64xf32>
    %99 = vector.multi_reduction <add>, %98, %cst_43 [1] : vector<64x32xf32> to vector<64xf32>
    %100 = vector.shape_cast %99 : vector<64xf32> to vector<64x1xf32>
    %cst_44 = arith.constant 3.200000e+01 : f32
    %101 = vector.broadcast %cst_44 : f32 to vector<64x1xf32>
    %102 = arith.divf %100, %101 : vector<64x1xf32>
    %103 = arith.mulf %97, %97 : vector<64x1xf32>
    %104 = arith.subf %102, %103 : vector<64x1xf32>
    %105 = vector.broadcast %97 : vector<64x1xf32> to vector<64x32xf32>
    %106 = arith.subf %89, %105 : vector<64x32xf32>
    %cst_45 = arith.constant 9.99999974E-6 : f32
    %107 = vector.broadcast %cst_45 : f32 to vector<64x1xf32>
    %108 = arith.addf %104, %107 : vector<64x1xf32>
    %109 = math.rsqrt %108 : vector<64x1xf32>
    %110 = vector.broadcast %109 : vector<64x1xf32> to vector<64x32xf32>
    %111 = arith.mulf %106, %110 : vector<64x32xf32>
    %112 = vector.broadcast %91 : vector<1x32xf32> to vector<64x32xf32>
    %113 = arith.mulf %111, %112 : vector<64x32xf32>
    %114 = vector.broadcast %93 : vector<1x32xf32> to vector<64x32xf32>
    %115 = arith.addf %113, %114 : vector<64x32xf32>
    %116 = arith.truncf %115 : vector<64x32xf32> to vector<64x32xbf16>
    %c0_46 = arith.constant 0 : index
    %c0_47 = arith.constant 0 : index
    %c0_48 = arith.constant 0 : index
    %117 = vector.load %arg13[%c0_46, %c0_47, %c0_48] : memref<2x32x32xbf16, #tpu.memory_space<vmem>>, vector<1x32x32xbf16>
    %118 = vector.shape_cast %117 : vector<1x32x32xbf16> to vector<32x32xbf16>
    %cst_49 = arith.constant dense<0.000000e+00> : vector<64x32xf32>
    %119 = tpu.matmul %116, %118, %cst_49 {dimension_numbers = #tpu.dot_dimension_numbers<[1], [0], [0], [1], [0, 0, 1, 1], [], []>} : vector<64x32xbf16>, vector<32x32xbf16>, vector<64x32xf32> -> vector<64x32xf32>
    %c0_50 = arith.constant 0 : index
    %c0_51 = arith.constant 0 : index
    %c0_52 = arith.constant 0 : index
    %120 = vector.load %arg14[%c0_50, %c0_51, %c0_52] : memref<2x1x32xf32, #tpu.memory_space<vmem>>, vector<1x1x32xf32>
    %121 = vector.shape_cast %120 : vector<1x1x32xf32> to vector<1x32xf32>
    %122 = vector.broadcast %121 : vector<1x32xf32> to vector<64x32xf32>
    %123 = arith.addf %119, %122 : vector<64x32xf32>
    %124 = arith.mulf %123, %123 : vector<64x32xf32>
    %125 = arith.mulf %123, %124 : vector<64x32xf32>
    %cst_53 = arith.constant 4.471500e-02 : f32
    %126 = vector.broadcast %cst_53 : f32 to vector<64x32xf32>
    %127 = arith.mulf %126, %125 : vector<64x32xf32>
    %128 = arith.addf %123, %127 : vector<64x32xf32>
    %cst_54 = arith.constant 0.797884583 : f32
    %129 = vector.broadcast %cst_54 : f32 to vector<64x32xf32>
    %130 = arith.mulf %129, %128 : vector<64x32xf32>
    %131 = math.tanh %130 : vector<64x32xf32>
    %cst_55 = arith.constant 1.000000e+00 : f32
    %132 = vector.broadcast %cst_55 : f32 to vector<64x32xf32>
    %133 = arith.addf %132, %131 : vector<64x32xf32>
    %cst_56 = arith.constant 5.000000e-01 : f32
    %134 = vector.broadcast %cst_56 : f32 to vector<64x32xf32>
    %135 = arith.mulf %134, %133 : vector<64x32xf32>
    %136 = arith.mulf %123, %135 : vector<64x32xf32>
    %137 = arith.truncf %136 : vector<64x32xf32> to vector<64x32xbf16>
    %c0_57 = arith.constant 0 : index
    %c0_58 = arith.constant 0 : index
    %c0_59 = arith.constant 0 : index
    %138 = vector.load %arg15[%c0_57, %c0_58, %c0_59] : memref<2x32x32xbf16, #tpu.memory_space<vmem>>, vector<1x32x32xbf16>
    %139 = vector.shape_cast %138 : vector<1x32x32xbf16> to vector<32x32xbf16>
    %cst_60 = arith.constant dense<0.000000e+00> : vector<64x32xf32>
    %140 = tpu.matmul %137, %139, %cst_60 {dimension_numbers = #tpu.dot_dimension_numbers<[1], [0], [0], [1], [0, 0, 1, 1], [], []>} : vector<64x32xbf16>, vector<32x32xbf16>, vector<64x32xf32> -> vector<64x32xf32>
    %c0_61 = arith.constant 0 : index
    %c0_62 = arith.constant 0 : index
    %c0_63 = arith.constant 0 : index
    %141 = vector.load %arg16[%c0_61, %c0_62, %c0_63] : memref<2x1x32xf32, #tpu.memory_space<vmem>>, vector<1x1x32xf32>
    %142 = vector.shape_cast %141 : vector<1x1x32xf32> to vector<1x32xf32>
    %143 = vector.broadcast %142 : vector<1x32xf32> to vector<64x32xf32>
    %144 = arith.addf %140, %143 : vector<64x32xf32>
    %145 = arith.addf %89, %144 : vector<64x32xf32>
    %c1 = arith.constant 1 : index
    %c0_64 = arith.constant 0 : index
    %c0_65 = arith.constant 0 : index
    %146 = vector.load %arg5[%c1, %c0_64, %c0_65] : memref<2x1x32xf32, #tpu.memory_space<vmem>>, vector<1x1x32xf32>
    %147 = vector.shape_cast %146 : vector<1x1x32xf32> to vector<1x32xf32>
    %c1_66 = arith.constant 1 : index
    %c0_67 = arith.constant 0 : index
    %c0_68 = arith.constant 0 : index
    %148 = vector.load %arg6[%c1_66, %c0_67, %c0_68] : memref<2x1x32xf32, #tpu.memory_space<vmem>>, vector<1x1x32xf32>
    %149 = vector.shape_cast %148 : vector<1x1x32xf32> to vector<1x32xf32>
    %cst_69 = arith.constant dense<0.000000e+00> : vector<64xf32>
    %150 = vector.multi_reduction <add>, %145, %cst_69 [1] : vector<64x32xf32> to vector<64xf32>
    %151 = vector.shape_cast %150 : vector<64xf32> to vector<64x1xf32>
    %cst_70 = arith.constant 3.200000e+01 : f32
    %152 = vector.broadcast %cst_70 : f32 to vector<64x1xf32>
    %153 = arith.divf %151, %152 : vector<64x1xf32>
    %154 = arith.mulf %145, %145 : vector<64x32xf32>
    %cst_71 = arith.constant dense<0.000000e+00> : vector<64xf32>
    %155 = vector.multi_reduction <add>, %154, %cst_71 [1] : vector<64x32xf32> to vector<64xf32>
    %156 = vector.shape_cast %155 : vector<64xf32> to vector<64x1xf32>
    %cst_72 = arith.constant 3.200000e+01 : f32
    %157 = vector.broadcast %cst_72 : f32 to vector<64x1xf32>
    %158 = arith.divf %156, %157 : vector<64x1xf32>
    %159 = arith.mulf %153, %153 : vector<64x1xf32>
    %160 = arith.subf %158, %159 : vector<64x1xf32>
    %161 = vector.broadcast %153 : vector<64x1xf32> to vector<64x32xf32>
    %162 = arith.subf %145, %161 : vector<64x32xf32>
    %cst_73 = arith.constant 9.99999974E-6 : f32
    %163 = vector.broadcast %cst_73 : f32 to vector<64x1xf32>
    %164 = arith.addf %160, %163 : vector<64x1xf32>
    %165 = math.rsqrt %164 : vector<64x1xf32>
    %166 = vector.broadcast %165 : vector<64x1xf32> to vector<64x32xf32>
    %167 = arith.mulf %162, %166 : vector<64x32xf32>
    %168 = vector.broadcast %147 : vector<1x32xf32> to vector<64x32xf32>
    %169 = arith.mulf %167, %168 : vector<64x32xf32>
    %170 = vector.broadcast %149 : vector<1x32xf32> to vector<64x32xf32>
    %171 = arith.addf %169, %170 : vector<64x32xf32>
    %172 = arith.truncf %171 : vector<64x32xf32> to vector<64x32xbf16>
    %c1_74 = arith.constant 1 : index
    %c0_75 = arith.constant 0 : index
    %c0_76 = arith.constant 0 : index
    %173 = vector.load %arg7[%c1_74, %c0_75, %c0_76] : memref<2x32x96xbf16, #tpu.memory_space<vmem>>, vector<1x32x96xbf16>
    %174 = vector.shape_cast %173 : vector<1x32x96xbf16> to vector<32x96xbf16>
    %cst_77 = arith.constant dense<0.000000e+00> : vector<64x96xf32>
    %175 = tpu.matmul %172, %174, %cst_77 {dimension_numbers = #tpu.dot_dimension_numbers<[1], [0], [0], [1], [0, 0, 1, 1], [], []>} : vector<64x32xbf16>, vector<32x96xbf16>, vector<64x96xf32> -> vector<64x96xf32>
    %c1_78 = arith.constant 1 : index
    %c0_79 = arith.constant 0 : index
    %c0_80 = arith.constant 0 : index
    %176 = vector.load %arg8[%c1_78, %c0_79, %c0_80] : memref<2x1x96xf32, #tpu.memory_space<vmem>>, vector<1x1x96xf32>
    %177 = vector.shape_cast %176 : vector<1x1x96xf32> to vector<1x96xf32>
    %178 = vector.broadcast %177 : vector<1x96xf32> to vector<64x96xf32>
    %179 = arith.addf %175, %178 : vector<64x96xf32>
    %180 = vector.shape_cast %179 : vector<64x96xf32> to vector<8x8x96xf32>
    %181 = vector.extract_strided_slice %180 {offsets = [0, 0, 0], sizes = [8, 8, 8], strides = [1, 1, 1]} : vector<8x8x96xf32> to vector<8x8x8xf32>
    %182 = vector.extract_strided_slice %180 {offsets = [0, 0, 8], sizes = [8, 8, 8], strides = [1, 1, 1]} : vector<8x8x96xf32> to vector<8x8x8xf32>
    %183 = vector.extract_strided_slice %180 {offsets = [0, 0, 16], sizes = [8, 8, 8], strides = [1, 1, 1]} : vector<8x8x96xf32> to vector<8x8x8xf32>
    %184 = vector.extract_strided_slice %180 {offsets = [0, 0, 24], sizes = [8, 8, 8], strides = [1, 1, 1]} : vector<8x8x96xf32> to vector<8x8x8xf32>
    %185 = tpu.concatenate %181, %182, %183, %184 in 0 : vector<8x8x8xf32>, vector<8x8x8xf32>, vector<8x8x8xf32>, vector<8x8x8xf32> -> vector<32x8x8xf32>
    %186 = vector.extract_strided_slice %180 {offsets = [0, 0, 32], sizes = [8, 8, 8], strides = [1, 1, 1]} : vector<8x8x96xf32> to vector<8x8x8xf32>
    %187 = vector.extract_strided_slice %180 {offsets = [0, 0, 40], sizes = [8, 8, 8], strides = [1, 1, 1]} : vector<8x8x96xf32> to vector<8x8x8xf32>
    %188 = vector.extract_strided_slice %180 {offsets = [0, 0, 48], sizes = [8, 8, 8], strides = [1, 1, 1]} : vector<8x8x96xf32> to vector<8x8x8xf32>
    %189 = vector.extract_strided_slice %180 {offsets = [0, 0, 56], sizes = [8, 8, 8], strides = [1, 1, 1]} : vector<8x8x96xf32> to vector<8x8x8xf32>
    %190 = tpu.concatenate %186, %187, %188, %189 in 0 : vector<8x8x8xf32>, vector<8x8x8xf32>, vector<8x8x8xf32>, vector<8x8x8xf32> -> vector<32x8x8xf32>
    %191 = vector.extract_strided_slice %180 {offsets = [0, 0, 64], sizes = [8, 8, 8], strides = [1, 1, 1]} : vector<8x8x96xf32> to vector<8x8x8xf32>
    %192 = vector.extract_strided_slice %180 {offsets = [0, 0, 72], sizes = [8, 8, 8], strides = [1, 1, 1]} : vector<8x8x96xf32> to vector<8x8x8xf32>
    %193 = vector.extract_strided_slice %180 {offsets = [0, 0, 80], sizes = [8, 8, 8], strides = [1, 1, 1]} : vector<8x8x96xf32> to vector<8x8x8xf32>
    %194 = vector.extract_strided_slice %180 {offsets = [0, 0, 88], sizes = [8, 8, 8], strides = [1, 1, 1]} : vector<8x8x96xf32> to vector<8x8x8xf32>
    %195 = tpu.concatenate %191, %192, %193, %194 in 0 : vector<8x8x8xf32>, vector<8x8x8xf32>, vector<8x8x8xf32>, vector<8x8x8xf32> -> vector<32x8x8xf32>
    %cst_81 = arith.constant 0.353553385 : f32
    %196 = vector.broadcast %cst_81 : f32 to vector<32x8x8xf32>
    %197 = arith.mulf %185, %196 : vector<32x8x8xf32>
    %198 = arith.truncf %197 : vector<32x8x8xf32> to vector<32x8x8xbf16>
    %199 = arith.truncf %190 : vector<32x8x8xf32> to vector<32x8x8xbf16>
    "tpu.trace_start"() <{level = 10 : i32, message = "bqd,bkd->bqk"}> : () -> ()
    %cst_82 = arith.constant dense<0.000000e+00> : vector<32x8x8xf32>
    %200 = tpu.matmul %198, %199, %cst_82 {dimension_numbers = #tpu.dot_dimension_numbers<[2], [2], [1], [1], [0, 0, 0, 1, 1, 1], [0], [0]>} : vector<32x8x8xbf16>, vector<32x8x8xbf16>, vector<32x8x8xf32> -> vector<32x8x8xf32>
    "tpu.trace_stop"() : () -> ()
    %cst_83 = arith.constant dense<0xFF800000> : vector<32x8xf32>
    %201 = vector.multi_reduction <maximumf>, %200, %cst_83 [2] : vector<32x8x8xf32> to vector<32x8xf32>
    %202 = vector.shape_cast %201 : vector<32x8xf32> to vector<32x8x1xf32>
    %203 = vector.broadcast %202 : vector<32x8x1xf32> to vector<32x8x8xf32>
    %204 = arith.subf %200, %203 : vector<32x8x8xf32>
    %205 = math.exp %204 : vector<32x8x8xf32>
    %cst_84 = arith.constant dense<0.000000e+00> : vector<32x8xf32>
    %206 = vector.multi_reduction <add>, %205, %cst_84 [2] : vector<32x8x8xf32> to vector<32x8xf32>
    %207 = vector.shape_cast %206 : vector<32x8xf32> to vector<32x8x1xf32>
    %208 = tpu.reciprocal %207 {approx = true} : vector<32x8x1xf32> -> vector<32x8x1xf32>
    %209 = vector.broadcast %208 : vector<32x8x1xf32> to vector<32x8x8xf32>
    %210 = arith.mulf %205, %209 : vector<32x8x8xf32>
    %211 = arith.truncf %210 : vector<32x8x8xf32> to vector<32x8x8xbf16>
    %212 = arith.truncf %195 : vector<32x8x8xf32> to vector<32x8x8xbf16>
    "tpu.trace_start"() <{level = 10 : i32, message = "bqk,bkd->bqd"}> : () -> ()
    %cst_85 = arith.constant dense<0.000000e+00> : vector<32x8x8xf32>
    %213 = tpu.matmul %211, %212, %cst_85 {dimension_numbers = #tpu.dot_dimension_numbers<[2], [1], [1], [2], [0, 0, 0, 1, 1, 2], [0], [0]>} : vector<32x8x8xbf16>, vector<32x8x8xbf16>, vector<32x8x8xf32> -> vector<32x8x8xf32>
    "tpu.trace_stop"() : () -> ()
    %214 = vector.extract_strided_slice %213 {offsets = [0, 0, 0], sizes = [8, 8, 8], strides = [1, 1, 1]} : vector<32x8x8xf32> to vector<8x8x8xf32>
    %215 = vector.extract_strided_slice %213 {offsets = [8, 0, 0], sizes = [8, 8, 8], strides = [1, 1, 1]} : vector<32x8x8xf32> to vector<8x8x8xf32>
    %216 = vector.extract_strided_slice %213 {offsets = [16, 0, 0], sizes = [8, 8, 8], strides = [1, 1, 1]} : vector<32x8x8xf32> to vector<8x8x8xf32>
    %217 = vector.extract_strided_slice %213 {offsets = [24, 0, 0], sizes = [8, 8, 8], strides = [1, 1, 1]} : vector<32x8x8xf32> to vector<8x8x8xf32>
    %218 = tpu.concatenate %214, %215, %216, %217 in 2 : vector<8x8x8xf32>, vector<8x8x8xf32>, vector<8x8x8xf32>, vector<8x8x8xf32> -> vector<8x8x32xf32>
    %219 = vector.shape_cast %218 : vector<8x8x32xf32> to vector<64x32xf32>
    %220 = arith.truncf %219 : vector<64x32xf32> to vector<64x32xbf16>
    %c1_86 = arith.constant 1 : index
    %c0_87 = arith.constant 0 : index
    %c0_88 = arith.constant 0 : index
    %221 = vector.load %arg9[%c1_86, %c0_87, %c0_88] : memref<2x32x32xbf16, #tpu.memory_space<vmem>>, vector<1x32x32xbf16>
    %222 = vector.shape_cast %221 : vector<1x32x32xbf16> to vector<32x32xbf16>
    %cst_89 = arith.constant dense<0.000000e+00> : vector<64x32xf32>
    %223 = tpu.matmul %220, %222, %cst_89 {dimension_numbers = #tpu.dot_dimension_numbers<[1], [0], [0], [1], [0, 0, 1, 1], [], []>} : vector<64x32xbf16>, vector<32x32xbf16>, vector<64x32xf32> -> vector<64x32xf32>
    %c1_90 = arith.constant 1 : index
    %c0_91 = arith.constant 0 : index
    %c0_92 = arith.constant 0 : index
    %224 = vector.load %arg10[%c1_90, %c0_91, %c0_92] : memref<2x1x32xf32, #tpu.memory_space<vmem>>, vector<1x1x32xf32>
    %225 = vector.shape_cast %224 : vector<1x1x32xf32> to vector<1x32xf32>
    %226 = vector.broadcast %225 : vector<1x32xf32> to vector<64x32xf32>
    %227 = arith.addf %223, %226 : vector<64x32xf32>
    %228 = arith.addf %145, %227 : vector<64x32xf32>
    %c1_93 = arith.constant 1 : index
    %c0_94 = arith.constant 0 : index
    %c0_95 = arith.constant 0 : index
    %229 = vector.load %arg11[%c1_93, %c0_94, %c0_95] : memref<2x1x32xf32, #tpu.memory_space<vmem>>, vector<1x1x32xf32>
    %230 = vector.shape_cast %229 : vector<1x1x32xf32> to vector<1x32xf32>
    %c1_96 = arith.constant 1 : index
    %c0_97 = arith.constant 0 : index
    %c0_98 = arith.constant 0 : index
    %231 = vector.load %arg12[%c1_96, %c0_97, %c0_98] : memref<2x1x32xf32, #tpu.memory_space<vmem>>, vector<1x1x32xf32>
    %232 = vector.shape_cast %231 : vector<1x1x32xf32> to vector<1x32xf32>
    %cst_99 = arith.constant dense<0.000000e+00> : vector<64xf32>
    %233 = vector.multi_reduction <add>, %228, %cst_99 [1] : vector<64x32xf32> to vector<64xf32>
    %234 = vector.shape_cast %233 : vector<64xf32> to vector<64x1xf32>
    %cst_100 = arith.constant 3.200000e+01 : f32
    %235 = vector.broadcast %cst_100 : f32 to vector<64x1xf32>
    %236 = arith.divf %234, %235 : vector<64x1xf32>
    %237 = arith.mulf %228, %228 : vector<64x32xf32>
    %cst_101 = arith.constant dense<0.000000e+00> : vector<64xf32>
    %238 = vector.multi_reduction <add>, %237, %cst_101 [1] : vector<64x32xf32> to vector<64xf32>
    %239 = vector.shape_cast %238 : vector<64xf32> to vector<64x1xf32>
    %cst_102 = arith.constant 3.200000e+01 : f32
    %240 = vector.broadcast %cst_102 : f32 to vector<64x1xf32>
    %241 = arith.divf %239, %240 : vector<64x1xf32>
    %242 = arith.mulf %236, %236 : vector<64x1xf32>
    %243 = arith.subf %241, %242 : vector<64x1xf32>
    %244 = vector.broadcast %236 : vector<64x1xf32> to vector<64x32xf32>
    %245 = arith.subf %228, %244 : vector<64x32xf32>
    %cst_103 = arith.constant 9.99999974E-6 : f32
    %246 = vector.broadcast %cst_103 : f32 to vector<64x1xf32>
    %247 = arith.addf %243, %246 : vector<64x1xf32>
    %248 = math.rsqrt %247 : vector<64x1xf32>
    %249 = vector.broadcast %248 : vector<64x1xf32> to vector<64x32xf32>
    %250 = arith.mulf %245, %249 : vector<64x32xf32>
    %251 = vector.broadcast %230 : vector<1x32xf32> to vector<64x32xf32>
    %252 = arith.mulf %250, %251 : vector<64x32xf32>
    %253 = vector.broadcast %232 : vector<1x32xf32> to vector<64x32xf32>
    %254 = arith.addf %252, %253 : vector<64x32xf32>
    %255 = arith.truncf %254 : vector<64x32xf32> to vector<64x32xbf16>
    %c1_104 = arith.constant 1 : index
    %c0_105 = arith.constant 0 : index
    %c0_106 = arith.constant 0 : index
    %256 = vector.load %arg13[%c1_104, %c0_105, %c0_106] : memref<2x32x32xbf16, #tpu.memory_space<vmem>>, vector<1x32x32xbf16>
    %257 = vector.shape_cast %256 : vector<1x32x32xbf16> to vector<32x32xbf16>
    %cst_107 = arith.constant dense<0.000000e+00> : vector<64x32xf32>
    %258 = tpu.matmul %255, %257, %cst_107 {dimension_numbers = #tpu.dot_dimension_numbers<[1], [0], [0], [1], [0, 0, 1, 1], [], []>} : vector<64x32xbf16>, vector<32x32xbf16>, vector<64x32xf32> -> vector<64x32xf32>
    %c1_108 = arith.constant 1 : index
    %c0_109 = arith.constant 0 : index
    %c0_110 = arith.constant 0 : index
    %259 = vector.load %arg14[%c1_108, %c0_109, %c0_110] : memref<2x1x32xf32, #tpu.memory_space<vmem>>, vector<1x1x32xf32>
    %260 = vector.shape_cast %259 : vector<1x1x32xf32> to vector<1x32xf32>
    %261 = vector.broadcast %260 : vector<1x32xf32> to vector<64x32xf32>
    %262 = arith.addf %258, %261 : vector<64x32xf32>
    %263 = arith.mulf %262, %262 : vector<64x32xf32>
    %264 = arith.mulf %262, %263 : vector<64x32xf32>
    %cst_111 = arith.constant 4.471500e-02 : f32
    %265 = vector.broadcast %cst_111 : f32 to vector<64x32xf32>
    %266 = arith.mulf %265, %264 : vector<64x32xf32>
    %267 = arith.addf %262, %266 : vector<64x32xf32>
    %cst_112 = arith.constant 0.797884583 : f32
    %268 = vector.broadcast %cst_112 : f32 to vector<64x32xf32>
    %269 = arith.mulf %268, %267 : vector<64x32xf32>
    %270 = math.tanh %269 : vector<64x32xf32>
    %cst_113 = arith.constant 1.000000e+00 : f32
    %271 = vector.broadcast %cst_113 : f32 to vector<64x32xf32>
    %272 = arith.addf %271, %270 : vector<64x32xf32>
    %cst_114 = arith.constant 5.000000e-01 : f32
    %273 = vector.broadcast %cst_114 : f32 to vector<64x32xf32>
    %274 = arith.mulf %273, %272 : vector<64x32xf32>
    %275 = arith.mulf %262, %274 : vector<64x32xf32>
    %276 = arith.truncf %275 : vector<64x32xf32> to vector<64x32xbf16>
    %c1_115 = arith.constant 1 : index
    %c0_116 = arith.constant 0 : index
    %c0_117 = arith.constant 0 : index
    %277 = vector.load %arg15[%c1_115, %c0_116, %c0_117] : memref<2x32x32xbf16, #tpu.memory_space<vmem>>, vector<1x32x32xbf16>
    %278 = vector.shape_cast %277 : vector<1x32x32xbf16> to vector<32x32xbf16>
    %cst_118 = arith.constant dense<0.000000e+00> : vector<64x32xf32>
    %279 = tpu.matmul %276, %278, %cst_118 {dimension_numbers = #tpu.dot_dimension_numbers<[1], [0], [0], [1], [0, 0, 1, 1], [], []>} : vector<64x32xbf16>, vector<32x32xbf16>, vector<64x32xf32> -> vector<64x32xf32>
    %c1_119 = arith.constant 1 : index
    %c0_120 = arith.constant 0 : index
    %c0_121 = arith.constant 0 : index
    %280 = vector.load %arg16[%c1_119, %c0_120, %c0_121] : memref<2x1x32xf32, #tpu.memory_space<vmem>>, vector<1x1x32xf32>
    %281 = vector.shape_cast %280 : vector<1x1x32xf32> to vector<1x32xf32>
    %282 = vector.broadcast %281 : vector<1x32xf32> to vector<64x32xf32>
    %283 = arith.addf %279, %282 : vector<64x32xf32>
    %284 = arith.addf %228, %283 : vector<64x32xf32>
    %c0_122 = arith.constant 0 : index
    %c0_123 = arith.constant 0 : index
    %285 = vector.load %arg17[%c0_122, %c0_123] : memref<1x32xf32, #tpu.memory_space<vmem>>, vector<1x32xf32>
    %c0_124 = arith.constant 0 : index
    %c0_125 = arith.constant 0 : index
    %286 = vector.load %arg18[%c0_124, %c0_125] : memref<1x32xf32, #tpu.memory_space<vmem>>, vector<1x32xf32>
    %cst_126 = arith.constant dense<0.000000e+00> : vector<64xf32>
    %287 = vector.multi_reduction <add>, %284, %cst_126 [1] : vector<64x32xf32> to vector<64xf32>
    %288 = vector.shape_cast %287 : vector<64xf32> to vector<64x1xf32>
    %cst_127 = arith.constant 3.200000e+01 : f32
    %289 = vector.broadcast %cst_127 : f32 to vector<64x1xf32>
    %290 = arith.divf %288, %289 : vector<64x1xf32>
    %291 = arith.mulf %284, %284 : vector<64x32xf32>
    %cst_128 = arith.constant dense<0.000000e+00> : vector<64xf32>
    %292 = vector.multi_reduction <add>, %291, %cst_128 [1] : vector<64x32xf32> to vector<64xf32>
    %293 = vector.shape_cast %292 : vector<64xf32> to vector<64x1xf32>
    %cst_129 = arith.constant 3.200000e+01 : f32
    %294 = vector.broadcast %cst_129 : f32 to vector<64x1xf32>
    %295 = arith.divf %293, %294 : vector<64x1xf32>
    %296 = arith.mulf %290, %290 : vector<64x1xf32>
    %297 = arith.subf %295, %296 : vector<64x1xf32>
    %298 = vector.broadcast %290 : vector<64x1xf32> to vector<64x32xf32>
    %299 = arith.subf %284, %298 : vector<64x32xf32>
    %cst_130 = arith.constant 9.99999974E-6 : f32
    %300 = vector.broadcast %cst_130 : f32 to vector<64x1xf32>
    %301 = arith.addf %297, %300 : vector<64x1xf32>
    %302 = math.rsqrt %301 : vector<64x1xf32>
    %303 = vector.broadcast %302 : vector<64x1xf32> to vector<64x32xf32>
    %304 = arith.mulf %299, %303 : vector<64x32xf32>
    %305 = vector.broadcast %285 : vector<1x32xf32> to vector<64x32xf32>
    %306 = arith.mulf %304, %305 : vector<64x32xf32>
    %307 = vector.broadcast %286 : vector<1x32xf32> to vector<64x32xf32>
    %308 = arith.addf %306, %307 : vector<64x32xf32>
    %309 = vector.shape_cast %308 : vector<64x32xf32> to vector<8x8x32xf32>
    %310 = vector.extract_strided_slice %309 {offsets = [0, 0, 0], sizes = [8, 1, 32], strides = [1, 1, 1]} : vector<8x8x32xf32> to vector<8x1x32xf32>
    %311 = vector.shape_cast %310 : vector<8x1x32xf32> to vector<8x32xf32>
    %312 = vector.extract_strided_slice %309 {offsets = [0, 1, 0], sizes = [8, 7, 32], strides = [1, 1, 1]} : vector<8x8x32xf32> to vector<8x7x32xf32>
    %c0_131 = arith.constant 0 : index
    %c0_132 = arith.constant 0 : index
    %313 = vector.load %arg19[%c0_131, %c0_132] : memref<1x64xf32, #tpu.memory_space<vmem>>, vector<1x64xf32>
    %314 = vector.extract_strided_slice %313 {offsets = [0, 0], sizes = [1, 32], strides = [1, 1]} : vector<1x64xf32> to vector<1x32xf32>
    %315 = vector.extract_strided_slice %313 {offsets = [0, 32], sizes = [1, 32], strides = [1, 1]} : vector<1x64xf32> to vector<1x32xf32>
    %316 = vector.broadcast %314 : vector<1x32xf32> to vector<8x32xf32>
    %317 = arith.mulf %311, %316 : vector<8x32xf32>
    %cst_133 = arith.constant dense<0.000000e+00> : vector<8xf32>
    %318 = vector.multi_reduction <add>, %317, %cst_133 [1] : vector<8x32xf32> to vector<8xf32>
    %319 = vector.shape_cast %318 : vector<8xf32> to vector<8x1xf32>
    %320 = vector.shape_cast %315 : vector<1x32xf32> to vector<1x1x32xf32>
    %321 = vector.broadcast %320 : vector<1x1x32xf32> to vector<8x7x32xf32>
    %322 = arith.mulf %312, %321 : vector<8x7x32xf32>
    %cst_134 = arith.constant dense<0.000000e+00> : vector<8x7xf32>
    %323 = vector.multi_reduction <add>, %322, %cst_134 [2] : vector<8x7x32xf32> to vector<8x7xf32>
    %324 = vector.broadcast %319 : vector<8x1xf32> to vector<8x7xf32>
    %325 = arith.addf %324, %323 : vector<8x7xf32>
    %cst_135 = arith.constant dense<0xFF800000> : vector<8xf32>
    %326 = vector.multi_reduction <maximumf>, %325, %cst_135 [1] : vector<8x7xf32> to vector<8xf32>
    %327 = vector.shape_cast %326 : vector<8xf32> to vector<8x1xf32>
    %328 = vector.broadcast %327 : vector<8x1xf32> to vector<8x7xf32>
    %329 = arith.subf %325, %328 : vector<8x7xf32>
    %330 = math.exp %329 : vector<8x7xf32>
    %cst_136 = arith.constant dense<0.000000e+00> : vector<8xf32>
    %331 = vector.multi_reduction <add>, %330, %cst_136 [1] : vector<8x7xf32> to vector<8xf32>
    %332 = vector.shape_cast %331 : vector<8xf32> to vector<8x1xf32>
    %333 = tpu.reciprocal %332 {approx = true} : vector<8x1xf32> -> vector<8x1xf32>
    %334 = vector.broadcast %333 : vector<8x1xf32> to vector<8x7xf32>
    %335 = arith.mulf %330, %334 : vector<8x7xf32>
    %336 = vector.shape_cast %335 : vector<8x7xf32> to vector<8x7x1xf32>
    %337 = vector.broadcast %336 : vector<8x7x1xf32> to vector<8x7x32xf32>
    %338 = arith.mulf %312, %337 : vector<8x7x32xf32>
    %cst_137 = arith.constant dense<0.000000e+00> : vector<8x32xf32>
    %339 = vector.multi_reduction <add>, %338, %cst_137 [1] : vector<8x7x32xf32> to vector<8x32xf32>
    %cst_138 = arith.constant 7.000000e+00 : f32
    %340 = vector.broadcast %cst_138 : f32 to vector<8x32xf32>
    %341 = arith.divf %339, %340 : vector<8x32xf32>
    %342 = tpu.concatenate %311, %341 in 1 : vector<8x32xf32>, vector<8x32xf32> -> vector<8x64xf32>
    %c0_139 = arith.constant 0 : index
    %c0_140 = arith.constant 0 : index
    %343 = vector.load %arg23[%c0_139, %c0_140] : memref<8x64xf32, #tpu.memory_space<vmem>>, vector<8x64xf32>
    tpu.vector_store %arg23[%c0_139, %c0_140], %342 {strides = array<i32>} : memref<8x64xf32, #tpu.memory_space<vmem>>, vector<8x64xf32>,
    %c0_141 = arith.constant 0 : index
    %c0_142 = arith.constant 0 : index
    %344 = vector.load %arg20[%c0_141, %c0_142] : memref<64x64xbf16, #tpu.memory_space<vmem>>, vector<32x64xbf16>
    %c32 = arith.constant 32 : index
    %c0_143 = arith.constant 0 : index
    %345 = vector.load %arg20[%c32, %c0_143] : memref<64x64xbf16, #tpu.memory_space<vmem>>, vector<32x64xbf16>
    %346 = arith.truncf %311 : vector<8x32xf32> to vector<8x32xbf16>
    %cst_144 = arith.constant dense<0.000000e+00> : vector<8x64xf32>
    %347 = tpu.matmul %346, %344, %cst_144 {dimension_numbers = #tpu.dot_dimension_numbers<[1], [0], [0], [1], [0, 0, 1, 1], [], []>} : vector<8x32xbf16>, vector<32x64xbf16>, vector<8x64xf32> -> vector<8x64xf32>
    %348 = arith.truncf %341 : vector<8x32xf32> to vector<8x32xbf16>
    %cst_145 = arith.constant dense<0.000000e+00> : vector<8x64xf32>
    %349 = tpu.matmul %348, %345, %cst_145 {dimension_numbers = #tpu.dot_dimension_numbers<[1], [0], [0], [1], [0, 0, 1, 1], [], []>} : vector<8x32xbf16>, vector<32x64xbf16>, vector<8x64xf32> -> vector<8x64xf32>
    %350 = arith.addf %347, %349 : vector<8x64xf32>
    %c0_146 = arith.constant 0 : index
    %c0_147 = arith.constant 0 : index
    %351 = vector.load %arg21[%c0_146, %c0_147] : memref<1x64xf32, #tpu.memory_space<vmem>>, vector<1x64xf32>
    %352 = vector.broadcast %351 : vector<1x64xf32> to vector<8x64xf32>
    %353 = arith.addf %350, %352 : vector<8x64xf32>
    %354 = math.tanh %353 : vector<8x64xf32>
    %c0_148 = arith.constant 0 : index
    %c0_149 = arith.constant 0 : index
    %355 = vector.load %arg22[%c0_148, %c0_149] : memref<1x64xf32, #tpu.memory_space<vmem>>, vector<1x64xf32>
    %356 = vector.broadcast %355 : vector<1x64xf32> to vector<8x64xf32>
    %357 = arith.mulf %354, %356 : vector<8x64xf32>
    %cst_150 = arith.constant dense<0.000000e+00> : vector<8xf32>
    %358 = vector.multi_reduction <add>, %357, %cst_150 [1] : vector<8x64xf32> to vector<8xf32>
    %359 = vector.shape_cast %358 : vector<8xf32> to vector<8x1xf32>
    %c8_i32 = arith.constant 8 : i32
    %360 = arith.muli %arg1, %c8_i32 : i32
    %361 = tpu.iota {dimensions = array<i32: 0>} : vector<8x1xi32>
    %362 = vector.broadcast %360 : i32 to vector<8x1xi32>
    %363 = arith.addi %362, %361 : vector<8x1xi32>
    %c8_i32_151 = arith.constant 8 : i32
    %364 = vector.broadcast %c8_i32_151 : i32 to vector<8x1xi32>
    %365 = arith.cmpi slt, %363, %364 : vector<8x1xi32>
    %cst_152 = arith.constant 0.000000e+00 : f32
    %366 = vector.broadcast %cst_152 : f32 to vector<8x1xf32>
    %367 = arith.select %365, %359, %366 : vector<8x1xi1>, vector<8x1xf32>
    %368 = vector.shape_cast %367 : vector<8x1xf32> to vector<1x8x1xf32>
    %cst_153 = arith.constant dense<0.000000e+00> : vector<1xf32>
    %369 = vector.multi_reduction <add>, %368, %cst_153 [1, 2] : vector<1x8x1xf32> to vector<1xf32>
    %370 = vector.shape_cast %369 : vector<1xf32> to vector<1x1x1xf32>
    %371 = vector.extract %370[0, 0, 0] : f32 from vector<1x1x1xf32>
    %372 = tpu.iota {dimensions = array<i32: 0>} : vector<8x3xi32>
    %373 = tpu.iota {dimensions = array<i32: 1>} : vector<8x3xi32>
    %c0_i32 = arith.constant 0 : i32
    %374 = vector.broadcast %c0_i32 : i32 to vector<8x3xi32>
    %375 = arith.cmpi eq, %372, %374 : vector<8x3xi32>
    %376 = vector.broadcast %arg0 : i32 to vector<8x3xi32>
    %377 = arith.cmpi eq, %373, %376 : vector<8x3xi32>
    %378 = arith.andi %375, %377 : vector<8x3xi1>
    %cst_154 = arith.constant 0.000000e+00 : f32
    %379 = vector.broadcast %371 : f32 to vector<8x3xf32>
    %380 = vector.broadcast %cst_154 : f32 to vector<8x3xf32>
    %381 = arith.select %378, %379, %380 : vector<8x3xi1>, vector<8x3xf32>
    %c0_155 = arith.constant 0 : index
    %c0_156 = arith.constant 0 : index
    %382 = vector.load %arg24[%c0_155, %c0_156] : memref<8x3xf32, #tpu.memory_space<vmem>>, vector<8x3xf32>
    tpu.vector_store %arg24[%c0_155, %c0_156], %381 {strides = array<i32>} : memref<8x3xf32, #tpu.memory_space<vmem>>, vector<8x3xf32>,
    return
  }
  func.func @transform_0(%arg0: i32, %arg1: i32) -> (i32, i32) {
    %c1_i32 = arith.constant 1 : i32
    %0 = arith.muli %arg0, %c1_i32 : i32
    %1 = arith.addi %0, %arg1 : i32
    %c0_i32 = arith.constant 0 : i32
    %c0_i32_0 = arith.constant 0 : i32
    return %1, %c0_i32 : i32, i32
  }
  func.func @transform_1(%arg0: i32, %arg1: i32) -> (i32, i32) {
    %c0_i32 = arith.constant 0 : i32
    %c0_i32_0 = arith.constant 0 : i32
    %c0_i32_1 = arith.constant 0 : i32
    return %c0_i32, %c0_i32_0 : i32, i32
  }
  func.func @transform_2(%arg0: i32, %arg1: i32) -> (i32, i32) {
    %c0_i32 = arith.constant 0 : i32
    %c0_i32_0 = arith.constant 0 : i32
    %c0_i32_1 = arith.constant 0 : i32
    return %c0_i32, %c0_i32_0 : i32, i32
  }
  func.func @transform_3(%arg0: i32, %arg1: i32) -> (i32, i32, i32) {
    %c0_i32 = arith.constant 0 : i32
    %c0_i32_0 = arith.constant 0 : i32
    %c0_i32_1 = arith.constant 0 : i32
    %c0_i32_2 = arith.constant 0 : i32
    return %c0_i32, %c0_i32_0, %c0_i32_1 : i32, i32, i32
  }
  func.func @transform_4(%arg0: i32, %arg1: i32) -> (i32, i32, i32) {
    %c0_i32 = arith.constant 0 : i32
    %c0_i32_0 = arith.constant 0 : i32
    %c0_i32_1 = arith.constant 0 : i32
    %c0_i32_2 = arith.constant 0 : i32
    return %c0_i32, %c0_i32_0, %c0_i32_1 : i32, i32, i32
  }
  func.func @transform_5(%arg0: i32, %arg1: i32) -> (i32, i32, i32) {
    %c0_i32 = arith.constant 0 : i32
    %c0_i32_0 = arith.constant 0 : i32
    %c0_i32_1 = arith.constant 0 : i32
    %c0_i32_2 = arith.constant 0 : i32
    return %c0_i32, %c0_i32_0, %c0_i32_1 : i32, i32, i32
  }
  func.func @transform_6(%arg0: i32, %arg1: i32) -> (i32, i32, i32) {
    %c0_i32 = arith.constant 0 : i32
    %c0_i32_0 = arith.constant 0 : i32
    %c0_i32_1 = arith.constant 0 : i32
    %c0_i32_2 = arith.constant 0 : i32
    return %c0_i32, %c0_i32_0, %c0_i32_1 : i32, i32, i32
  }
  func.func @transform_7(%arg0: i32, %arg1: i32) -> (i32, i32, i32) {
    %c0_i32 = arith.constant 0 : i32
    %c0_i32_0 = arith.constant 0 : i32
    %c0_i32_1 = arith.constant 0 : i32
    %c0_i32_2 = arith.constant 0 : i32
    return %c0_i32, %c0_i32_0, %c0_i32_1 : i32, i32, i32
  }
  func.func @transform_8(%arg0: i32, %arg1: i32) -> (i32, i32, i32) {
    %c0_i32 = arith.constant 0 : i32
    %c0_i32_0 = arith.constant 0 : i32
    %c0_i32_1 = arith.constant 0 : i32
    %c0_i32_2 = arith.constant 0 : i32
    return %c0_i32, %c0_i32_0, %c0_i32_1 : i32, i32, i32
  }
  func.func @transform_9(%arg0: i32, %arg1: i32) -> (i32, i32, i32) {
    %c0_i32 = arith.constant 0 : i32
    %c0_i32_0 = arith.constant 0 : i32
    %c0_i32_1 = arith.constant 0 : i32
    %c0_i32_2 = arith.constant 0 : i32
    return %c0_i32, %c0_i32_0, %c0_i32_1 : i32, i32, i32
  }
  func.func @transform_10(%arg0: i32, %arg1: i32) -> (i32, i32, i32) {
    %c0_i32 = arith.constant 0 : i32
    %c0_i32_0 = arith.constant 0 : i32
    %c0_i32_1 = arith.constant 0 : i32
    %c0_i32_2 = arith.constant 0 : i32
    return %c0_i32, %c0_i32_0, %c0_i32_1 : i32, i32, i32
  }
  func.func @transform_11(%arg0: i32, %arg1: i32) -> (i32, i32, i32) {
    %c0_i32 = arith.constant 0 : i32
    %c0_i32_0 = arith.constant 0 : i32
    %c0_i32_1 = arith.constant 0 : i32
    %c0_i32_2 = arith.constant 0 : i32
    return %c0_i32, %c0_i32_0, %c0_i32_1 : i32, i32, i32
  }
  func.func @transform_12(%arg0: i32, %arg1: i32) -> (i32, i32, i32) {
    %c0_i32 = arith.constant 0 : i32
    %c0_i32_0 = arith.constant 0 : i32
    %c0_i32_1 = arith.constant 0 : i32
    %c0_i32_2 = arith.constant 0 : i32
    return %c0_i32, %c0_i32_0, %c0_i32_1 : i32, i32, i32
  }
  func.func @transform_13(%arg0: i32, %arg1: i32) -> (i32, i32, i32) {
    %c0_i32 = arith.constant 0 : i32
    %c0_i32_0 = arith.constant 0 : i32
    %c0_i32_1 = arith.constant 0 : i32
    %c0_i32_2 = arith.constant 0 : i32
    return %c0_i32, %c0_i32_0, %c0_i32_1 : i32, i32, i32
  }
  func.func @transform_14(%arg0: i32, %arg1: i32) -> (i32, i32, i32) {
    %c0_i32 = arith.constant 0 : i32
    %c0_i32_0 = arith.constant 0 : i32
    %c0_i32_1 = arith.constant 0 : i32
    %c0_i32_2 = arith.constant 0 : i32
    return %c0_i32, %c0_i32_0, %c0_i32_1 : i32, i32, i32
  }
  func.func @transform_15(%arg0: i32, %arg1: i32) -> (i32, i32) {
    %c0_i32 = arith.constant 0 : i32
    %c0_i32_0 = arith.constant 0 : i32
    %c0_i32_1 = arith.constant 0 : i32
    return %c0_i32, %c0_i32_0 : i32, i32
  }
  func.func @transform_16(%arg0: i32, %arg1: i32) -> (i32, i32) {
    %c0_i32 = arith.constant 0 : i32
    %c0_i32_0 = arith.constant 0 : i32
    %c0_i32_1 = arith.constant 0 : i32
    return %c0_i32, %c0_i32_0 : i32, i32
  }
  func.func @transform_17(%arg0: i32, %arg1: i32) -> (i32, i32) {
    %c0_i32 = arith.constant 0 : i32
    %c0_i32_0 = arith.constant 0 : i32
    %c0_i32_1 = arith.constant 0 : i32
    return %c0_i32, %c0_i32_0 : i32, i32
  }
  func.func @transform_18(%arg0: i32, %arg1: i32) -> (i32, i32) {
    %c0_i32 = arith.constant 0 : i32
    %c0_i32_0 = arith.constant 0 : i32
    %c0_i32_1 = arith.constant 0 : i32
    return %c0_i32, %c0_i32_0 : i32, i32
  }
  func.func @transform_19(%arg0: i32, %arg1: i32) -> (i32, i32) {
    %c0_i32 = arith.constant 0 : i32
    %c0_i32_0 = arith.constant 0 : i32
    %c0_i32_1 = arith.constant 0 : i32
    return %c0_i32, %c0_i32_0 : i32, i32
  }
  func.func @transform_20(%arg0: i32, %arg1: i32) -> (i32, i32) {
    %c0_i32 = arith.constant 0 : i32
    %c0_i32_0 = arith.constant 0 : i32
    %c0_i32_1 = arith.constant 0 : i32
    return %c0_i32, %c0_i32_0 : i32, i32
  }
  func.func @transform_21(%arg0: i32, %arg1: i32) -> (i32, i32) {
    %c1_i32 = arith.constant 1 : i32
    %0 = arith.muli %arg0, %c1_i32 : i32
    %1 = arith.addi %0, %arg1 : i32
    %c0_i32 = arith.constant 0 : i32
    %c0_i32_0 = arith.constant 0 : i32
    return %1, %c0_i32 : i32, i32
  }
  func.func @transform_22(%arg0: i32, %arg1: i32) -> (i32, i32) {
    %c1_i32 = arith.constant 1 : i32
    %0 = arith.muli %arg0, %c1_i32 : i32
    %1 = arith.addi %0, %arg1 : i32
    %c0_i32 = arith.constant 0 : i32
    %c0_i32_0 = arith.constant 0 : i32
    return %1, %c0_i32 : i32, i32
  }
}

module attributes {stable_mosaic.version = 11 : i64} {
  func.func @_combine_cls_kernel(%arg0: i32, %arg1: memref<3x1xf32, #tpu.memory_space<vmem>>, %arg2: memref<3x8x64xf32, #tpu.memory_space<vmem>>, %arg3: memref<32x4xbf16, #tpu.memory_space<vmem>>, %arg4: memref<1x4xf32, #tpu.memory_space<vmem>>, %arg5: memref<8x36xf32, #tpu.memory_space<vmem>>) attributes {dimension_semantics = [#tpu.dimension_semantics<parallel>], iteration_bounds = array<i64: 1>, scalar_prefetch = 0 : i64, scratch_operands = 0 : i64, tpu.core_type = #tpu.core_type<tc>, window_params = [{pipeline_mode = #tpu.pipeline_mode<synchronous>, transform_indices = @transform_0, window_bounds = array<i64: 3, 1>}, {transform_indices = @transform_1, window_bounds = array<i64: 3, 8, 64>}, {pipeline_mode = #tpu.pipeline_mode<synchronous>, transform_indices = @transform_2, window_bounds = array<i64: 32, 4>}, {pipeline_mode = #tpu.pipeline_mode<synchronous>, transform_indices = @transform_3, window_bounds = array<i64: 1, 4>}, {transform_indices = @transform_4, window_bounds = array<i64: 8, 36>}]} {
    %c0 = arith.constant 0 : index
    %c0_0 = arith.constant 0 : index
    %c0_1 = arith.constant 0 : index
    %0 = vector.load %arg2[%c0, %c0_0, %c0_1] : memref<3x8x64xf32, #tpu.memory_space<vmem>>, vector<3x8x64xf32>
    %c0_2 = arith.constant 0 : index
    %c0_3 = arith.constant 0 : index
    %1 = vector.load %arg1[%c0_2, %c0_3] : memref<3x1xf32, #tpu.memory_space<vmem>>, vector<3x1xf32>
    %2 = vector.shape_cast %1 : vector<3x1xf32> to vector<3x1x1xf32>
    %3 = vector.extract_strided_slice %0 {offsets = [0, 0, 0], sizes = [3, 8, 32], strides = [1, 1, 1]} : vector<3x8x64xf32> to vector<3x8x32xf32>
    %4 = vector.extract_strided_slice %0 {offsets = [0, 0, 32], sizes = [3, 8, 32], strides = [1, 1, 1]} : vector<3x8x64xf32> to vector<3x8x32xf32>
    %5 = vector.broadcast %2 : vector<3x1x1xf32> to vector<3x8x32xf32>
    %6 = arith.mulf %3, %5 : vector<3x8x32xf32>
    %cst = arith.constant dense<0.000000e+00> : vector<8x32xf32>
    %7 = vector.multi_reduction <add>, %6, %cst [0] : vector<3x8x32xf32> to vector<8x32xf32>
    %8 = vector.broadcast %2 : vector<3x1x1xf32> to vector<3x8x32xf32>
    %9 = arith.mulf %4, %8 : vector<3x8x32xf32>
    %cst_4 = arith.constant dense<0.000000e+00> : vector<8x32xf32>
    %10 = vector.multi_reduction <add>, %9, %cst_4 [0] : vector<3x8x32xf32> to vector<8x32xf32>
    %11 = arith.truncf %7 : vector<8x32xf32> to vector<8x32xbf16>
    %c0_5 = arith.constant 0 : index
    %c0_6 = arith.constant 0 : index
    %12 = vector.load %arg3[%c0_5, %c0_6] : memref<32x4xbf16, #tpu.memory_space<vmem>>, vector<32x4xbf16>
    %cst_7 = arith.constant dense<0.000000e+00> : vector<8x4xf32>
    %13 = tpu.matmul %11, %12, %cst_7 {dimension_numbers = #tpu.dot_dimension_numbers<[1], [0], [0], [1], [0, 0, 1, 1], [], []>} : vector<8x32xbf16>, vector<32x4xbf16>, vector<8x4xf32> -> vector<8x4xf32>
    %c0_8 = arith.constant 0 : index
    %c0_9 = arith.constant 0 : index
    %14 = vector.load %arg4[%c0_8, %c0_9] : memref<1x4xf32, #tpu.memory_space<vmem>>, vector<1x4xf32>
    %15 = vector.broadcast %14 : vector<1x4xf32> to vector<8x4xf32>
    %16 = arith.addf %13, %15 : vector<8x4xf32>
    %17 = tpu.concatenate %10, %16 in 1 : vector<8x32xf32>, vector<8x4xf32> -> vector<8x36xf32>
    %c0_10 = arith.constant 0 : index
    %c0_11 = arith.constant 0 : index
    %18 = vector.load %arg5[%c0_10, %c0_11] : memref<8x36xf32, #tpu.memory_space<vmem>>, vector<8x36xf32>
    tpu.vector_store %arg5[%c0_10, %c0_11], %17 {strides = array<i32>} : memref<8x36xf32, #tpu.memory_space<vmem>>, vector<8x36xf32>,
    return
  }
  func.func @transform_0(%arg0: i32) -> (i32, i32) {
    %c0_i32 = arith.constant 0 : i32
    %c0_i32_0 = arith.constant 0 : i32
    %c0_i32_1 = arith.constant 0 : i32
    return %c0_i32, %c0_i32_0 : i32, i32
  }
  func.func @transform_1(%arg0: i32) -> (i32, i32, i32) {
    %c0_i32 = arith.constant 0 : i32
    %c0_i32_0 = arith.constant 0 : i32
    %c0_i32_1 = arith.constant 0 : i32
    return %c0_i32, %arg0, %c0_i32_0 : i32, i32, i32
  }
  func.func @transform_2(%arg0: i32) -> (i32, i32) {
    %c0_i32 = arith.constant 0 : i32
    %c0_i32_0 = arith.constant 0 : i32
    %c0_i32_1 = arith.constant 0 : i32
    return %c0_i32, %c0_i32_0 : i32, i32
  }
  func.func @transform_3(%arg0: i32) -> (i32, i32) {
    %c0_i32 = arith.constant 0 : i32
    %c0_i32_0 = arith.constant 0 : i32
    %c0_i32_1 = arith.constant 0 : i32
    return %c0_i32, %c0_i32_0 : i32, i32
  }
  func.func @transform_4(%arg0: i32) -> (i32, i32) {
    %c0_i32 = arith.constant 0 : i32
    %c0_i32_0 = arith.constant 0 : i32
    return %arg0, %c0_i32 : i32, i32
  }
}

</mosaic_0001>

<bundles_post_ra>
// kernel: model_forward.3
= control target key start
LH: loop header
LB: loop body
LE: loop exit
PB: predicated region body
PF: predicated region fallthrough
CT: control target
= control target key end

     0   :  { %v34_v0 = vlaneseq  ;;  %v193_v1 = vmov 0   ;;  %v194_v2 = vmov 1966171168   ;;  %v195_v17 = vmov 0.0   ;;  %s198_s27 = smov 32   ;;  %s253_s0 = inlined_call_operand.vmem [shape: f32[3,1], index: 0, kind: input, shape index: {}]   ;;  %s254_s2 = inlined_call_operand.vmem [shape: bf16[32,4], index: 2, kind: input, shape index: {}]   ;;  %s255_s1 = inlined_call_operand.vmem [shape: f32[3,8,64], index: 1, kind: input, shape index: {}]   ;;  %s256_s3 = inlined_call_operand.vmem [shape: f32[1,4], index: 3, kind: input, shape index: {}]   ;;  %s257_s4 = inlined_call_operand.vmem [shape: f32[8,36], index: 4, kind: output, shape index: {}]  }
   0x1   :  { %189 = vset.pattern.permute.xlu0 %v193_v1  ;;  %v32_v3 = vunpack.c.l.s4 %v194_v2  ;;  %190 = vset.pattern.permute.xlu1 %v193_v1  ;;  %v167_v4 = vld.sshfl [vmem:[%s253_s0] sm:$0x13 pattern:$0x75316420]  ;;  %v191_v16 = vld [vmem:[%s254_s2 + $0x8] sm:$0xff]   ;;  %vm196_vm0 = vmmov 0  }
   0x2   :  { %v35_v5 = vshrl.u32 %v34_v0, 7  ;;  %v30_v7 = vcombine.high %v167_v4, %v167_v4  ;;  %175 = vmatprep.subr.bf16.mxu0 %v195_v17  ;;  %v192_v18 = vld [vmem:[%s254_s2] sm:$0xff]   ;;  %179 = vmatprep.mubr.msk.bf16.mxu0 %vm196_vm0, %v195_v17  ;;  %v20_v21 = vld [vmem:[%s255_s1 + $0x10] sm:$0xff]  ;;  %v19_v23 = vld [vmem:[%s255_s1 + $0x8] sm:$0xff]  ;;  %vm73_vm1 = vcmask 261120   ;;  %vm79_vm2 = vcmask 523520  }
   0x3   :  { %v33_v6 = vunpack.c.0.s8 %v32_v3  ;;  %176 = vmatpush3.bf16.msra.mxu0 %v191_v16  ;;  %v18_v19 = vld [vmem:[%s255_s1] sm:$0xff]  ;;  %s197_s1 = smov 96   ;;  %vm161_vm3 = vcmask 293888  }
   0x4   :  { %v48_v9 = vsub.s32 0, %v35_v5  ;;  %177 = vmatprep.subr.bf16.mxu0 %v195_v17  ;;  %v168_v39 = vld [vmem:[%s256_s3] ss:$0 sm:$0xff] }
   0x5   :  { %v36_v8 = vsub.s32 %v33_v6, %v35_v5 }
   0x7   :  { %v37_v10 = vrot.slane %v167_v4, %v36_v8  ;;  %v44_v11 = vrot.slane %v30_v7, %v36_v8  ;;  %178 = vmatpush3.bf16.msra.mxu0 %v192_v18 }
   0x9   :  { %v49_v12 = vrot.slane %v37_v10, %v48_v9  ;;  %v45_v13 = vcombine.high %v37_v10, %v37_v10  ;;  %v53_v14 = vrot.slane %v44_v11, %v48_v9 }
   0xb   :  { %59 = vperm.xlu0 %189, %v49_v12   ;;  %v57_v15 = vrot.slane %v45_v13, %v48_v9 }
   0xd   :  { %67 = vperm.xlu1 %190, %v57_v15  }
   0xf   :  { %63 = vperm.xlu0 %189, %v53_v14  }
  0x86   :  { %v60_v20 = vpop.permute.xlu0 %59 }
  0x87   :  { %v70_v22 = vmul.f32 %v60_v20, %v18_v19 }
  0x88   :  { %v68_v24 = vpop.permute.xlu1 %67 }
  0x89   :  { %v72_v25 = vmul.f32 %v68_v24, %v20_v21  ;;  %v74_v28 = vsel %vm73_vm1, %v70_v22, 0.0  ;;  %v80_v29 = vsel %vm79_vm2, %v70_v22, 0.0 }
  0x8a   :  { %v64_v26 = vpop.permute.xlu0 %63 }
  0x8b   :  { %v71_v27 = vmul.f32 %v64_v26, %v19_v23  ;;  %v77_v32 = vsel %vm73_vm1, %v72_v25, 0.0  ;;  %v83_v33 = vsel %vm79_vm2, %v72_v25, 0.0 }
  0x8d   :  { %v75_v30 = vsel %vm73_vm1, %v71_v27, 0.0  ;;  %v81_v31 = vsel %vm79_vm2, %v71_v27, 0.0 }
  0x8e   :  { %v76_v34 = vadd.f32 %v75_v30, %v74_v28  ;;  %v82_v35 = vadd.f32 %v81_v31, %v80_v29 }
  0x90   :  { %v78_v36 = vadd.f32 %v77_v32, %v76_v34  ;;  %v84_v37 = vadd.f32 %v83_v33, %v82_v35 }
  0x92   :  { %v85_v38 = vpack.c.bf16 %v78_v36, %v78_v36  ;;  %153 = vrot.lane.b32.xlu1 %v84_v37, %s197_s1 }
  0x94   :  { %180 = vmatmul.mubr.msk.bf16.vlgmr.msra.gmra.mxu0 %vm73_vm1, %v85_v38 }
 0x104   :  { %v154_v45 = vpop.permute.xlu1 %153 }
 0x154   :  { %v146_v40 = vpop.f32.mrf.mxu0 }
 0x155   :  { %v147_v41 = vadd.f32 %v168_v39, %v146_v40 }
 0x156   :  { %v181_v42 = vpop.f32.mrf.mxu0 }
 0x157   :  { %157 = vrot.lane.b32.xlu0 %v147_v41, %s198_s27 }
 0x158   :  { %v149_v43 = vpop.f32.mrf.mxu0 }
 0x15a   :  { %v182_v44 = vpop.f32.mrf.mxu0 }
 0x1c9   :  { %v158_v46 = vpop.permute.xlu0 %157 }
 0x1ca   :  { %v160_v47 = vsel %vm73_vm1, %v154_v45, %v158_v46 }
 0x1cb   :  { %162 = vst.msk [vmem:[%s257_s4] sm:$0xff] %vm161_vm3, %v160_v47 }

// kernel: model_forward.2
= control target key start
LH: loop header
LB: loop body
LE: loop exit
PB: predicated region body
PF: predicated region fallthrough
CT: control target
= control target key end

     0   :  { %s13030_s28 = smov 0   ;;  %s13032_s29 = smov 0   ;;  %s16262_s0 = inlined_call_operand.vmem [shape: f32[192,16], index: 0, kind: input, shape index: {}]   ;;  %s16263_s1 = inlined_call_operand.vmem [shape: bf16[16,32], index: 1, kind: input, shape index: {}]   ;;  %s16264_s2 = inlined_call_operand.vmem [shape: f32[1,32], index: 2, kind: input, shape index: {}]   ;;  %s16265_s3 = inlined_call_operand.vmem [shape: f32[2,1,32], index: 3, kind: input, shape index: {}]   ;;  %s16266_s4 = inlined_call_operand.vmem [shape: f32[2,1,32], index: 4, kind: input, shape index: {}]   ;;  %s16267_s5 = inlined_call_operand.vmem [shape: bf16[2,32,96], index: 5, kind: input, shape index: {}]   ;;  %s16268_s6 = inlined_call_operand.vmem [shape: f32[2,1,96], index: 6, kind: input, shape index: {}]   ;;  %s16269_s7 = inlined_call_operand.vmem [shape: bf16[2,32,32], index: 7, kind: input, shape index: {}]   ;;  %s16270_s8 = inlined_call_operand.vmem [shape: f32[2,1,32], index: 8, kind: input, shape index: {}]   ;;  %s16271_s9 = inlined_call_operand.vmem [shape: f32[2,1,32], index: 9, kind: input, shape index: {}]   ;;  %s16272_s10 = inlined_call_operand.vmem [shape: f32[2,1,32], index: 10, kind: input, shape index: {}]   ;;  %s16273_s11 = inlined_call_operand.vmem [shape: bf16[2,32,32], index: 11, kind: input, shape index: {}]   ;;  %s16274_s12 = inlined_call_operand.vmem [shape: f32[2,1,32], index: 12, kind: input, shape index: {}]   ;;  %s16275_s13 = inlined_call_operand.vmem [shape: bf16[2,32,32], index: 13, kind: input, shape index: {}]   ;;  %s16276_s14 = inlined_call_operand.vmem [shape: f32[2,1,32], index: 14, kind: input, shape index: {}]   ;;  %s16277_s15 = inlined_call_operand.vmem [shape: f32[1,32], index: 15, kind: input, shape index: {}]   ;;  %s16278_s16 = inlined_call_operand.vmem [shape: f32[1,32], index: 16, kind: input, shape index: {}]   ;;  %s16279_s17 = inlined_call_operand.vmem [shape: f32[1,64], index: 17, kind: input, shape index: {}]   ;;  %s16280_s18 = inlined_call_operand.vmem [shape: bf16[64,64], index: 18, kind: input, shape index: {}]   ;;  %s16281_s19 = inlined_call_operand.vmem [shape: f32[1,64], index: 19, kind: input, shape index: {}]   ;;  %s16282_s20 = inlined_call_operand.vmem [shape: f32[1,64], index: 20, kind: input, shape index: {}]   ;;  %s16283_s21 = inlined_call_operand.vmem [shape: f32[24,64], index: 21, kind: output, shape index: {0}]   ;;  %s16284_s22 = inlined_call_operand.vmem [shape: f32[24,3], index: 22, kind: output, shape index: {1}]  }
   0x1   :  { %16324 = sst [smem:[#allocation23_spill]] %s16262_s0 }
   0x2   :  { %16325 = sst [smem:[#allocation24_spill]] %s16263_s1 }
   0x3   :  { %16326 = sst [smem:[#allocation25_spill]] %s16264_s2 }
   0x4   :  { %16327 = sst [smem:[#allocation26_spill]] %s16265_s3  ;;  %s13028_s3 = smov 0  }
   0x5   :  { %16328 = sst [smem:[#allocation27_spill]] %s16266_s4 }
   0x6   :  { %16329 = sst [smem:[#allocation28_spill]] %s16267_s5 }
   0x7   :  { %16330 = sst [smem:[#allocation29_spill]] %s16268_s6 }
   0x8 LB: > { %s45_s30 = sadd.s32 1, %s12896_s28  ;;  %p10881_p0 = scmp.ge.s32.totalorder %s12900_s29, 1  ;;  %s12900_s29 = sphi %s13032_s29, %s33_s29   ;;  %s12896_s28 = sphi %s13030_s28, %s16429_s28   ;;  %s12892_s3 = sphi %s13028_s3, %s16428_s3  }
   0x9   : > { %p47_p1 = scmp.ge.s32.totalorder %s45_s30, 3  ;;  %p636_p2 = scmp.lt.s32.totalorder %s12900_s29, 4 }
   0xb   : > { %s16431_s30 = smov (%p47_p1, %s45_s30), 0  ;;  %p637_p3 = pnand %p10881_p0, %p636_p2 }
   0xd   : > { %640 = sbr.rel (%p637_p3) target bundleno = 6463 (0x193f), region = 104 }
  0x12   : > { %s16331_s23 = sld [smem:[#allocation24_spill]]  ;;  %s10882_s1 = sshll.u32 %s12892_s3, 3  ;;  %vm752_vm0 = vcmask 130048   ;;  %vm832_vm1 = vcmask 261120   ;;  %vm12904_vm2 = vmmov 0   ;;  %vm1265_vm3 = vcmask 64512  }
  0x13   : > { %p706_p4 = scmp.lt.s32.totalorder %s10882_s1, 23  ;;  %s16332_s25 = sld [smem:[#allocation23_spill]]  ;;  %vm3220_vm4 = vcmask 1043456   ;;  %vm4864_vm5 = vcmask 195584   ;;  %vm10232_vm6 = vcmask 261121   ;;  %vm10197_vm7 = vcmask 1041409  }
  0x14   : > { %s16333_s4 = sld [smem:[#allocation25_spill]]  ;;  %s16308_s24 = smov 120   ;;  %vm10200_vm8 = vcmask 1042434   ;;  %vm10203_vm9 = vcmask 1043459   ;;  %vm10206_vm10 = vcmask 1044484   ;;  %vm10209_vm11 = vcmask 1045509  }
  0x15   : > { %s16433_s1 = smov (!%p706_p4, %s10882_s1), 23  ;;  %s16306_s6 = smov 96   ;;  %vm10212_vm12 = vcmask 1046534   ;;  %vm10215_vm13 = vcmask 1047559   ;;  %vm10309_vm14 = vcmask 56320   ;;  %vm10433_vm15 = vcmask 260096  }
  0x16   : > { %s10883_s5 = sshll.u32 %s16433_s1, 3  ;;  %s16342_s1 = sld [smem:[#allocation28_spill]] }
  0x17   : > { %s16302_s2 = smov 104   ;;  %s16300_s27 = smov 64  }
  0x18   : > { %v12483_v0 = vld [vmem:[%s16331_s23] sm:$0xff]   ;;  %s12909_s0 = smov 8   ;;  %s16312_s23 = smov 16  }
  0x19   : > { %11436 = vmatprep.subr.bf16.mxu0 %v12483_v0  ;;  %s709_s26 = scalar_lea.vmem %s16332_s25, %s10883_s5  ;;  %s16345_s5 = sld [smem:[#allocation29_spill]] }
  0x1a   : > { %11437 = vmatpush3.bf16.msra.mxu0 %v12483_v0  ;;  %v725_v1 = vld [vmem:[%s709_s26] sm:$0xff]  ;;  %v726_v2 = vld [vmem:[%s709_s26 + $0x8] sm:$0xff]  ;;  %v727_v3 = vld [vmem:[%s709_s26 + $0x10] sm:$0xff]  ;;  %s16304_s25 = smov 112   ;;  %p713_p5 = scmp.lt.s32.totalorder %s12892_s3, 2 }
  0x1b   : > { %v733_v4 = vpack.c.bf16 %v726_v2, %v725_v1  ;;  %v728_v5 = vld [vmem:[%s709_s26 + $0x18] sm:$0xff]  ;;  %v729_v6 = vld [vmem:[%s709_s26 + $0x20] sm:$0xff]  ;;  %v730_v7 = vld [vmem:[%s709_s26 + $0x28] sm:$0xff] }
  0x1c   : > { %v734_v8 = vpack.c.bf16 %v728_v5, %v727_v3  ;;  %v735_v9 = vpack.c.bf16 %v730_v7, %v729_v6  ;;  %v731_v10 = vld [vmem:[%s709_s26 + $0x30] sm:$0xff]  ;;  %v732_v11 = vld [vmem:[%s709_s26 + $0x38] sm:$0xff]  ;;  %v10886_v13 = vld [vmem:[%s16333_s4] ss:$0 sm:$0xff]  ;;  %s16343_s26 = sld [smem:[#allocation26_spill]] }
  0x1d   : > { %11438 = vmatprep.mubr.msk.bf16.mxu0 %vm752_vm0, %v733_v4  ;;  %v736_v12 = vpack.c.bf16 %v732_v11, %v731_v10  ;;  %v12484_v54 = vld [vmem:[%s16342_s1 + $0x8] sm:$0xff]   ;;  %v12485_v55 = vld [vmem:[%s16342_s1] sm:$0xff]   ;;  %s16344_s4 = sld [smem:[#allocation27_spill]] }
  0x1e   : > { %11439 = vmatmul.mubr.msk.bf16.vlgmr.msra.gmra.mxu0 %vm752_vm0, %v734_v8  ;;  %11446 = vmatprep.subr.bf16.mxu1 %v12484_v54 }
  0x1f   : > { %11442 = vmatprep.mubr.msk.bf16.mxu0 %vm752_vm0, %v735_v9  ;;  %11447 = vmatpush3.bf16.msra.mxu1 %v12484_v54 }
  0x20   : > { %11448 = vmatprep.subr.bf16.mxu1 %v12485_v55 }
  0x23   : > { %11449 = vmatpush3.bf16.msra.mxu1 %v12485_v55 }
  0x26   : > { %11443 = vmatmul.mubr.msk.bf16.gmra.mxu0 %vm752_vm0, %v736_v12 }
  0xde   : > { %v11440_v14 = vpop.f32.mrf.mxu0 }
  0xdf   : > { %v13062_v15 = vadd.f32 %v11440_v14, %v10886_v13 }
  0xe0   : > { %v799_v16 = vpop.f32.mrf.mxu0 }
  0xe1   : > { %16334 = vst [vmem:[#allocation2_spill] sm:$0xff] %v13062_v15  ;;  %v13064_v17 = vadd.f32 %v10886_v13, %v799_v16  ;;  %v839_v18 = vsel %vm832_vm1, %v13062_v15, 0.0  ;;  %v868_v35 = vmul.f32 %v13062_v15, %v13062_v15 }
  0xe2   : > { %840 = vadd.xlane.f32.xlu1 %v839_v18  ;;  %v11441_v19 = vpop.f32.mrf.mxu0 }
  0xe3   : > { %16335 = vst [vmem:[#allocation3_spill] sm:$0xff] %v13064_v17  ;;  %v13068_v20 = vadd.f32 %v11441_v19, %v10886_v13  ;;  %v833_v21 = vsel %vm832_vm1, %v13064_v17, 0.0  ;;  %v866_v22 = vmul.f32 %v13064_v17, %v13064_v17  ;;  %v880_v39 = vsel %vm832_vm1, %v868_v35, 0.0 }
  0xe4   : > { %v802_v23 = vpop.f32.mrf.mxu0  ;;  %834 = vadd.xlane.f32.xlu0 %v833_v21 }
  0xe5   : > { %16336 = vst [vmem:[#allocation4_spill] sm:$0xff] %v13068_v20  ;;  %v13074_v24 = vadd.f32 %v10886_v13, %v802_v23  ;;  %v842_v25 = vsel %vm832_vm1, %v13068_v20, 0.0  ;;  %v874_v27 = vsel %vm832_vm1, %v866_v22, 0.0  ;;  %v869_v31 = vmul.f32 %v13068_v20, %v13068_v20 }
  0xe6   : > { %843 = vadd.xlane.f32.xlu1 %v842_v25  ;;  %v11444_v26 = vpop.f32.mrf.mxu0 }
  0xe7   : > { %16337 = vst [vmem:[#allocation5_spill] sm:$0xff] %v13074_v24  ;;  %v867_v28 = vmul.f32 %v13074_v24, %v13074_v24  ;;  %v836_v33 = vsel %vm832_vm1, %v13074_v24, 0.0  ;;  %v13090_v37 = vadd.f32 %v11444_v26, %v10886_v13  ;;  %v883_v38 = vsel %vm832_vm1, %v869_v31, 0.0 }
  0xe8   : > { %875 = vadd.xlane.f32.xlu0 %v874_v27  ;;  %v815_v29 = vpop.f32.mrf.mxu0 }
  0xe9   : > { %v877_v30 = vsel %vm832_vm1, %v867_v28, 0.0  ;;  %16339 = vst [vmem:[#allocation7_spill] sm:$0xff] %v13090_v37  ;;  %v13098_v42 = vadd.f32 %v10886_v13, %v815_v29  ;;  %v851_v43 = vsel %vm832_vm1, %v13090_v37, 0.0  ;;  %v872_v52 = vmul.f32 %v13090_v37, %v13090_v37 }
  0xea   : > { %878 = vadd.xlane.f32.xlu1 %v877_v30  ;;  %v11445_v32 = vpop.f32.mrf.mxu0 }
  0xeb   : > { %v13086_v34 = vadd.f32 %v11445_v32, %v10886_v13  ;;  %16341 = vst [vmem:[#allocation9_spill] sm:$0xff] %v13098_v42  ;;  %v845_v46 = vsel %vm832_vm1, %v13098_v42, 0.0  ;;  %v870_v47 = vmul.f32 %v13098_v42, %v13098_v42  ;;  %v892_v53 = vsel %vm832_vm1, %v872_v52, 0.0 }
  0xec   : > { %837 = vadd.xlane.f32.xlu0 %v836_v33  ;;  %v818_v36 = vpop.f32.mrf.mxu0 }
  0xed   : > { %16338 = vst [vmem:[#allocation6_spill] sm:$0xff] %v13086_v34  ;;  %v13094_v40 = vadd.f32 %v10886_v13, %v818_v36  ;;  %v854_v41 = vsel %vm832_vm1, %v13086_v34, 0.0  ;;  %v873_v49 = vmul.f32 %v13086_v34, %v13086_v34  ;;  %v886_v50 = vsel %vm832_vm1, %v870_v47, 0.0 }
  0xee   : > { %884 = vadd.xlane.f32.xlu1 %v883_v38 }
  0xef   : > { %16340 = vst [vmem:[#allocation8_spill] sm:$0xff] %v13094_v40  ;;  %v848_v44 = vsel %vm832_vm1, %v13094_v40, 0.0  ;;  %v871_v45 = vmul.f32 %v13094_v40, %v13094_v40  ;;  %v895_v51 = vsel %vm832_vm1, %v873_v49, 0.0 }
  0xf0   : > { %881 = vadd.xlane.f32.xlu0 %v880_v39 }
  0xf1   : > { %v889_v48 = vsel %vm832_vm1, %v871_v45, 0.0 }
  0xf2   : > { %855 = vadd.xlane.f32.xlu1 %v854_v41 }
  0xf4   : > { %852 = vadd.xlane.f32.xlu0 %v851_v43 }
  0xf6   : > { %849 = vadd.xlane.f32.xlu1 %v848_v44 }
  0xf8   : > { %846 = vadd.xlane.f32.xlu0 %v845_v46 }
  0xfa   : > { %890 = vadd.xlane.f32.xlu1 %v889_v48 }
  0xfc   : > { %887 = vadd.xlane.f32.xlu0 %v886_v50 }
  0xfe   : > { %896 = vadd.xlane.f32.xlu1 %v895_v51  ;;  %v10892_v51 = vld [vmem:[%s16343_s26] ss:$0 sm:$0xff] }
 0x100   : > { %893 = vadd.xlane.f32.xlu0 %v892_v53 }
 0x16b   : > { %v841_v56 = vpop.xlane.xlu1 %840 }
 0x16c   : > { %v13126_v3 = vmul.f32 0.03125, %v841_v56 }
 0x16d   : > { %v835_v57 = vpop.xlane.xlu0 %834 }
 0x16e   : > { %v858_v58 = vmul.f32 0.03125, %v835_v57  ;;  %v908_v12 = vmul.f32 %v13126_v3, %v13126_v3 }
 0x16f   : > { %v844_v59 = vpop.xlane.xlu1 %843 }
 0x170   : > { %v906_v61 = vmul.f32 %v858_v58, %v858_v58  ;;  %v13124_v63 = vmul.f32 0.03125, %v844_v59  ;;  %v922_v38 = vsub.f32 %v13064_v17, %v858_v58  ;;  %v924_v59 = vsub.f32 %v13062_v15, %v13126_v3 }
 0x171   : > { %v876_v60 = vpop.xlane.xlu0 %875 }
 0x172   : > { %v898_v62 = vmul.f32 0.03125, %v876_v60  ;;  %v909_v6 = vmul.f32 %v13124_v63, %v13124_v63  ;;  %v925_v60 = vsub.f32 %v13068_v20, %v13124_v63 }
 0x173   : > { %v879_v0 = vpop.xlane.xlu1 %878 }
 0x174   : > { %v914_v1 = vsub.f32 %v898_v62, %v906_v61  ;;  %v899_v8 = vmul.f32 0.03125, %v879_v0 }
 0x175   : > { %v838_v2 = vpop.xlane.xlu0 %837 }
 0x176   : > { %v930_v4 = vadd.f32 1e-05, %v914_v1  ;;  %v859_v5 = vmul.f32 0.03125, %v838_v2 }
 0x177   : > { %v885_v7 = vpop.xlane.xlu1 %884 }
 0x178   : > { %12504 = vrsqrt.f32 %v930_v4  ;;  %v907_v9 = vmul.f32 %v859_v5, %v859_v5  ;;  %v901_v10 = vmul.f32 0.03125, %v885_v7  ;;  %v923_v52 = vsub.f32 %v13074_v24, %v859_v5  ;;  %v10893_v5 = vld [vmem:[%s16344_s4] ss:$0 sm:$0xff] }
 0x179   : > { %v882_v11 = vpop.xlane.xlu0 %881 }
 0x17a   : > { %v915_v13 = vsub.f32 %v899_v8, %v907_v9  ;;  %v917_v14 = vsub.f32 %v901_v10, %v909_v6  ;;  %v900_v16 = vmul.f32 0.03125, %v882_v11 }
 0x17b   : > { %v856_v18 = vpop.xlane.xlu1 %855 }
 0x17c   : > { %v931_v19 = vadd.f32 1e-05, %v915_v13  ;;  %v933_v21 = vadd.f32 1e-05, %v917_v14  ;;  %v916_v22 = vsub.f32 %v900_v16, %v908_v12  ;;  %v865_v32 = vmul.f32 0.03125, %v856_v18 }
 0x17d   : > { %v853_v23 = vpop.xlane.xlu0 %852 }
 0x17e   : > { %12506 = vrsqrt.f32 %v931_v19  ;;  %v932_v25 = vadd.f32 1e-05, %v916_v22  ;;  %v913_v41 = vmul.f32 %v865_v32, %v865_v32  ;;  %v864_v45 = vmul.f32 0.03125, %v853_v23 }
 0x17f   : > { %12508 = vrsqrt.f32 %v933_v21  ;;  %v850_v26 = vpop.xlane.xlu1 %849 }
 0x180   : > { %12510 = vrsqrt.f32 %v932_v25  ;;  %v863_v27 = vmul.f32 0.03125, %v850_v26  ;;  %v912_v53 = vmul.f32 %v864_v45, %v864_v45  ;;  %v929_v25 = vsub.f32 %v13086_v34, %v865_v32 }
 0x181   : > { %v847_v28 = vpop.xlane.xlu0 %846 }
 0x182   : > { %v911_v29 = vmul.f32 %v863_v27, %v863_v27  ;;  %v862_v30 = vmul.f32 0.03125, %v847_v28  ;;  %v927_v18 = vsub.f32 %v13094_v40, %v863_v27 }
 0x183   : > { %v891_v31 = vpop.xlane.xlu1 %890 }
 0x184   : > { %v910_v33 = vmul.f32 %v862_v30, %v862_v30  ;;  %v903_v35 = vmul.f32 0.03125, %v891_v31  ;;  %v926_v21 = vsub.f32 %v13098_v42, %v862_v30  ;;  %v928_v31 = vsub.f32 %v13090_v37, %v864_v45  ;;  %v10894_v45 = vld [vmem:[%s16345_s5] ss:$0 sm:$0xff] }
 0x185   : > { %v12505_v36 = vpop.eup %12504  ;;  %v888_v39 = vpop.xlane.xlu0 %887 }
 0x186   : > { %v919_v43 = vsub.f32 %v903_v35, %v911_v29  ;;  %v902_v44 = vmul.f32 0.03125, %v888_v39  ;;  %v946_v47 = vmul.f32 %v12505_v36, %v922_v38 }
 0x187   : > { %v897_v46 = vpop.xlane.xlu1 %896 }
 0x188   : > { %v935_v48 = vadd.f32 1e-05, %v919_v43  ;;  %v918_v49 = vsub.f32 %v902_v44, %v910_v33  ;;  %v905_v50 = vmul.f32 0.03125, %v897_v46  ;;  %v960_v61 = vmul.f32 %v10892_v51, %v946_v47 }
 0x189   : > { %v894_v54 = vpop.xlane.xlu0 %893 }
 0x18a   : > { %12512 = vrsqrt.f32 %v935_v48  ;;  %v934_v55 = vadd.f32 1e-05, %v918_v49  ;;  %v921_v56 = vsub.f32 %v905_v50, %v913_v41  ;;  %v904_v57 = vmul.f32 0.03125, %v894_v54 }
 0x18b   : > { %v12507_v58 = vpop.eup %12506  ;;  %v974_v10 = vadd.f32 %v10893_v5, %v960_v61 }
 0x18c   : > { %v12509_v62 = vpop.eup %12508  ;;  %v947_v0 = vmul.f32 %v12507_v58, %v923_v52  ;;  %12514 = vrsqrt.f32 %v934_v55  ;;  %v937_v1 = vadd.f32 1e-05, %v921_v56  ;;  %v920_v2 = vsub.f32 %v904_v57, %v912_v53 }
 0x18d   : > { %v12511_v4 = vpop.eup %12510  ;;  %v949_v6 = vmul.f32 %v12509_v62, %v925_v60  ;;  %v16289_v56 = vmov 0.0  }
 0x18e   : > { %12516 = vrsqrt.f32 %v937_v1  ;;  %v936_v7 = vadd.f32 1e-05, %v920_v2  ;;  %v961_v8 = vmul.f32 %v10892_v51, %v947_v0  ;;  %v948_v9 = vmul.f32 %v12511_v4, %v924_v59  ;;  %11458 = vmatprep.subr.bf16.mxu0 %v16289_v56  ;;  %11464 = vmatprep.subr.bf16.mxu1 %v16289_v56 }
 0x18f   : > { %v963_v3 = vmul.f32 %v10892_v51, %v949_v6  ;;  %11460 = vmatprep.mubr.msk.bf16.mxu0 %vm12904_vm2, %v16289_v56 }
 0x190   : > { %12518 = vrsqrt.f32 %v936_v7  ;;  %v975_v63 = vadd.f32 %v10893_v5, %v961_v8  ;;  %v962_v11 = vmul.f32 %v10892_v51, %v948_v9 }
 0x191   : > { %v977_v14 = vadd.f32 %v10893_v5, %v963_v3 }
 0x192   : > { %v982_v12 = vpack.c.bf16 %v975_v63, %v974_v10  ;;  %v976_v13 = vadd.f32 %v10893_v5, %v962_v11 }
 0x194   : > { %11450 = vmatprep.mubr.msk.bf16.mxu1 %vm832_vm1, %v982_v12  ;;  %v983_v16 = vpack.c.bf16 %v977_v14, %v976_v13 }
 0x196   : > { %11451 = vmatmul.mubr.msk.bf16.vlgmr.msra.gmra.mxu1 %vm832_vm1, %v983_v16 }
 0x197   : > { %v12513_v19 = vpop.eup %12512 }
 0x198   : > { %v951_v22 = vmul.f32 %v12513_v19, %v927_v18 }
 0x199   : > { %v12515_v23 = vpop.eup %12514 }
 0x19a   : > { %v950_v26 = vmul.f32 %v12515_v23, %v926_v21  ;;  %v965_v28 = vmul.f32 %v10892_v51, %v951_v22 }
 0x19b   : > { %v12517_v29 = vpop.eup %12516 }
 0x19c   : > { %v964_v33 = vmul.f32 %v10892_v51, %v950_v26  ;;  %v953_v35 = vmul.f32 %v12517_v29, %v929_v25  ;;  %v979_v39 = vadd.f32 %v10893_v5, %v965_v28 }
 0x19d   : > { %v12519_v36 = vpop.eup %12518 }
 0x19e   : > { %v978_v38 = vadd.f32 %v10893_v5, %v964_v33  ;;  %v952_v27 = vmul.f32 %v12519_v36, %v928_v31  ;;  %v967_v41 = vmul.f32 %v10892_v51, %v953_v35 }
 0x1a0   : > { %v984_v43 = vpack.c.bf16 %v979_v39, %v978_v38  ;;  %v966_v44 = vmul.f32 %v10892_v51, %v952_v27  ;;  %v981_v46 = vadd.f32 %v10893_v5, %v967_v41 }
 0x1a2   : > { %11454 = vmatprep.mubr.msk.bf16.mxu1 %vm832_vm1, %v984_v43  ;;  %v980_v30 = vadd.f32 %v10893_v5, %v966_v44 }
 0x1a4   : > { %v985_v47 = vpack.c.bf16 %v981_v46, %v980_v30 }
 0x1a6   : > { %11455 = vmatmul.mubr.msk.bf16.gmra.mxu1 %vm832_vm1, %v985_v47 }
 0x1a7   : > { %11466 = vmatprep.mubr.msk.bf16.mxu1 %vm12904_vm2, %v16289_v56 }
 0x256   : > { %v11452_v32 = vpop.f32.mrf.mxu1 }
 0x257   : > { %v13163_v53 = vadd.f32 %v11452_v32, %v10894_v45 }
 0x258   : > { %v1055_v48 = vpop.f32.mrf.mxu1 }
 0x259   : > { %v13155_v49 = vadd.f32 %v10894_v45, %v1055_v48  ;;  %v13209_v4 = vpack.c.bf16 %v13163_v53, %v13163_v53  ;;  %v1168_v47 = vmul.f32 0.35355338, %v13163_v53 }
 0x25a   : > { %v11453_v50 = vpop.f32.mrf.mxu1 }
 0x25b   : > { %1094 = vrot.lane.b32.xlu0 %v13155_v49, %s16308_s24  ;;  %v13167_v54 = vadd.f32 %v11453_v50, %v10894_v45  ;;  %v13193_v1 = vpack.c.bf16 %v13155_v49, %v13155_v49  ;;  %v1166_v31 = vmul.f32 0.35355338, %v13155_v49 }
 0x25c   : > { %v1058_v51 = vpop.f32.mrf.mxu1 }
 0x25d   : > { %v13159_v52 = vadd.f32 %v10894_v45, %v1058_v51  ;;  %v13217_v5 = vpack.c.bf16 %v13167_v54, %v13167_v54  ;;  %v1198_v39 = vpack.c.bf16 %v1166_v31, %v1166_v31  ;;  %v1200_v51 = vpack.c.bf16 %v1168_v47, %v1168_v47 }
 0x25f   : > { %1096 = vrot.lane.b32.xlu1 %v13159_v52, %s16308_s24  ;;  %v13201_v2 = vpack.c.bf16 %v13159_v52, %v13159_v52  ;;  %v1167_v27 = vmul.f32 0.35355338, %v13159_v52 }
 0x261   : > { %v1199_v46 = vpack.c.bf16 %v1167_v27, %v1167_v27 }
 0x263   : > { %1098 = vrot.lane.b32.xlu1 %v13163_v53, %s16308_s24 }
 0x266   : > { %v11456_v55 = vpop.f32.mrf.mxu1 }
 0x267   : > { %1100 = vrot.lane.b32.xlu1 %v13167_v54, %s16308_s24  ;;  %v13177_v61 = vadd.f32 %v11456_v55, %v10894_v45 }
 0x268   : > { %v1071_v57 = vpop.f32.mrf.mxu1 }
 0x269   : > { %v13173_v58 = vadd.f32 %v10894_v45, %v1071_v57  ;;  %v13241_v8 = vpack.c.bf16 %v13177_v61, %v13177_v61 }
 0x26a   : > { %v11457_v59 = vpop.f32.mrf.mxu1 }
 0x26b   : > { %1102 = vrot.lane.b32.xlu0 %v13173_v58, %s16308_s24  ;;  %v13189_v0 = vadd.f32 %v11457_v59, %v10894_v45  ;;  %v13225_v6 = vpack.c.bf16 %v13173_v58, %v13173_v58 }
 0x26c   : > { %v1074_v60 = vpop.f32.mrf.mxu1 }
 0x26d   : > { %v13179_v62 = vadd.f32 %v10894_v45, %v1074_v60  ;;  %v13249_v9 = vpack.c.bf16 %v13189_v0, %v13189_v0  ;;  %v1170_v60 = vmul.f32 0.35355338, %v13173_v58 }
 0x26f   : > { %1104 = vrot.lane.b32.xlu1 %v13179_v62, %s16308_s24  ;;  %1106 = vrot.lane.b32.xlu0 %v13177_v61, %s16308_s24  ;;  %v13233_v7 = vpack.c.bf16 %v13179_v62, %v13179_v62 }
 0x273   : > { %1108 = vrot.lane.b32.xlu1 %v13189_v0, %s16308_s24  ;;  %1263 = vrot.lane.b32.xlu0 %v13193_v1, %s16306_s6  ;;  %s16310_s24 = smov 24  }
 0x277   : > { %1313 = vrot.lane.b32.xlu1 %v13201_v2, %s16306_s6  ;;  %1118 = vrot.lane.b32.xlu0 %v13155_v49, %s16304_s25 }
 0x27b   : > { %1120 = vrot.lane.b32.xlu1 %v13159_v52, %s16304_s25  ;;  %1362 = vrot.lane.b32.xlu0 %v13209_v4, %s16306_s6 }
 0x27f   : > { %1411 = vrot.lane.b32.xlu1 %v13217_v5, %s16306_s6  ;;  %1122 = vrot.lane.b32.xlu0 %v13163_v53, %s16304_s25 }
 0x283   : > { %1124 = vrot.lane.b32.xlu1 %v13167_v54, %s16304_s25  ;;  %1460 = vrot.lane.b32.xlu0 %v13225_v6, %s16306_s6 }
 0x287   : > { %1509 = vrot.lane.b32.xlu1 %v13233_v7, %s16306_s6  ;;  %1126 = vrot.lane.b32.xlu0 %v13173_v58, %s16304_s25 }
 0x28b   : > { %1128 = vrot.lane.b32.xlu1 %v13179_v62, %s16304_s25  ;;  %1558 = vrot.lane.b32.xlu0 %v13241_v8, %s16306_s6 }
 0x28f   : > { %1607 = vrot.lane.b32.xlu1 %v13249_v9, %s16306_s6  ;;  %1130 = vrot.lane.b32.xlu0 %v13177_v61, %s16304_s25 }
 0x293   : > { %1132 = vrot.lane.b32.xlu1 %v13189_v0, %s16304_s25  ;;  %s16418_s25 = smov 16  }
 0x2cd   : > { %v13257_v3 = vpop.permute.xlu0 %1094 }
 0x2ce   : > { %v13261_v10 = vpack.c.bf16 %v13257_v3, %v13257_v3 }
 0x2d0   : > { %1656 = vrot.lane.b32.xlu0 %v13261_v10, %s16306_s6 }
 0x2d1   : > { %v13265_v63 = vpop.permute.xlu1 %1096 }
 0x2d2   : > { %v13269_v11 = vpack.c.bf16 %v13265_v63, %v13265_v63 }
 0x2d4   : > { %1705 = vrot.lane.b32.xlu1 %v13269_v11, %s16306_s6  ;;  %1142 = vrot.lane.b32.xlu0 %v13155_v49, %s16302_s2 }
 0x2d5   : > { %v13275_v12 = vpop.permute.xlu1 %1098 }
 0x2d6   : > { %v13279_v13 = vpack.c.bf16 %v13275_v12, %v13275_v12 }
 0x2d8   : > { %1144 = vrot.lane.b32.xlu1 %v13159_v52, %s16302_s2  ;;  %1754 = vrot.lane.b32.xlu0 %v13279_v13, %s16306_s6  ;;  %v1169_v52 = vmul.f32 0.35355338, %v13167_v54 }
 0x2d9   : > { %v13285_v14 = vpop.permute.xlu1 %1100 }
 0x2da   : > { %v13289_v16 = vpack.c.bf16 %v13285_v14, %v13285_v14 }
 0x2dc   : > { %1803 = vrot.lane.b32.xlu1 %v13289_v16, %s16306_s6  ;;  %1146 = vrot.lane.b32.xlu0 %v13163_v53, %s16302_s2 }
 0x2dd   : > { %v13295_v18 = vpop.permute.xlu0 %1102 }
 0x2de   : > { %v13299_v19 = vpack.c.bf16 %v13295_v18, %v13295_v18 }
 0x2e0   : > { %1148 = vrot.lane.b32.xlu1 %v13167_v54, %s16302_s2  ;;  %1852 = vrot.lane.b32.xlu0 %v13299_v19, %s16306_s6  ;;  %v1201_v54 = vpack.c.bf16 %v1169_v52, %v1169_v52  ;;  %v1173_v52 = vmul.f32 0.35355338, %v13189_v0 }
 0x2e1   : > { %v13305_v21 = vpop.permute.xlu1 %1104  ;;  %v13307_v22 = vpop.permute.xlu0 %1106 }
 0x2e2   : > { %v13311_v23 = vpack.c.bf16 %v13305_v21, %v13305_v21  ;;  %v13321_v28 = vpack.c.bf16 %v13307_v22, %v13307_v22 }
 0x2e4   : > { %1901 = vrot.lane.b32.xlu1 %v13311_v23, %s16306_s6  ;;  %1150 = vrot.lane.b32.xlu0 %v13173_v58, %s16302_s2  ;;  %v1202_v58 = vpack.c.bf16 %v1170_v60, %v1170_v60 }
 0x2e5   : > { %v13317_v25 = vpop.permute.xlu1 %1108  ;;  %v1264_v26 = vpop.permute.xlu0 %1263 }
 0x2e6   : > { %v1270_v29 = vsel %vm1265_vm3, %v1264_v26, 0  ;;  %v13334_v36 = vpack.c.bf16 %v13317_v25, %v13317_v25 }
 0x2e7   : > { %11459 = vmatpush3.bf16.xpose.msra.mxu0 %v1270_v29 }
 0x2e8   : > { %1152 = vrot.lane.b32.xlu1 %v13179_v62, %s16302_s2  ;;  %1950 = vrot.lane.b32.xlu0 %v13321_v28, %s16306_s6 }
 0x2e9   : > { %v1314_v33 = vpop.permute.xlu1 %1313  ;;  %v13329_v35 = vpop.permute.xlu0 %1118  ;;  %11470 = vmatprep.subr.bf16.mxu0 %v16289_v56 }
 0x2ea   : > { %v1319_v38 = vsel %vm1265_vm3, %v1314_v33, 0  ;;  %v13347_v44 = vpack.c.bf16 %v13329_v35, %v13329_v35 }
 0x2eb   : > { %11465 = vmatpush3.bf16.xpose.msra.mxu1 %v1319_v38  ;;  %v1171_v38 = vmul.f32 0.35355338, %v13179_v62 }
 0x2ec   : > { %1999 = vrot.lane.b32.xlu1 %v13334_v36, %s16306_s6  ;;  %1154 = vrot.lane.b32.xlu0 %v13177_v61, %s16302_s2 }
 0x2ed   : > { %v13342_v41 = vpop.permute.xlu1 %1120  ;;  %v1363_v43 = vpop.permute.xlu0 %1362  ;;  %11476 = vmatprep.subr.bf16.mxu1 %v16289_v56  ;;  %v1203_v62 = vpack.c.bf16 %v1171_v38, %v1171_v38 }
 0x2ee   : > { %v1368_v30 = vsel %vm1265_vm3, %v1363_v43, 0  ;;  %11461 = vmatmul.mubr.msk.bf16.vlgmr.msra.gmra.mxu0 %vm1265_vm3, %v1198_v39  ;;  %v13363_v48 = vpack.c.bf16 %v13342_v41, %v13342_v41 }
 0x2ef   : > { %11471 = vmatpush3.bf16.xpose.msra.mxu0 %v1368_v30  ;;  %11472 = vmatprep.mubr.msk.bf16.mxu0 %vm12904_vm2, %v16289_v56 }
 0x2f0   : > { %1156 = vrot.lane.b32.xlu1 %v13189_v0, %s16302_s2  ;;  %2048 = vrot.lane.b32.xlu0 %v13347_v44, %s16306_s6  ;;  %s16389_s2 = smov 112  }
 0x2f1   : > { %v1412_v32 = vpop.permute.xlu1 %1411  ;;  %v13358_v45 = vpop.permute.xlu0 %1122  ;;  %11482 = vmatprep.subr.bf16.mxu0 %v16289_v56 }
 0x2f2   : > { %v1417_v49 = vsel %vm1265_vm3, %v1412_v32, 0  ;;  %v13368_v50 = vpack.c.bf16 %v13358_v45, %v13358_v45  ;;  %11467 = vmatmul.mubr.msk.bf16.vlgmr.msra.gmra.mxu1 %vm1265_vm3, %v1199_v46  ;;  %v1172_v46 = vmul.f32 0.35355338, %v13177_v61 }
 0x2f3   : > { %11477 = vmatpush3.bf16.xpose.msra.mxu1 %v1417_v49  ;;  %11478 = vmatprep.mubr.msk.bf16.mxu1 %vm12904_vm2, %v16289_v56 }
 0x2f4   : > { %2097 = vrot.lane.b32.xlu1 %v13363_v48, %s16306_s6  ;;  %2146 = vrot.lane.b32.xlu0 %v13368_v50, %s16306_s6  ;;  %v1204_v61 = vpack.c.bf16 %v1172_v46, %v1172_v46 }
 0x2f5   : > { %v13378_v53 = vpop.permute.xlu1 %1124  ;;  %v1461_v55 = vpop.permute.xlu0 %1460  ;;  %11488 = vmatprep.subr.bf16.mxu1 %v16289_v56 }
 0x2f6   : > { %v13383_v57 = vpack.c.bf16 %v13378_v53, %v13378_v53  ;;  %v1466_v59 = vsel %vm1265_vm3, %v1461_v55, 0  ;;  %11473 = vmatmul.mubr.msk.bf16.vlgmr.msra.gmra.mxu0 %vm1265_vm3, %v1200_v51 }
 0x2f7   : > { %11483 = vmatpush3.bf16.xpose.msra.mxu0 %v1466_v59  ;;  %11484 = vmatprep.mubr.msk.bf16.mxu0 %vm12904_vm2, %v16289_v56 }
 0x2f8   : > { %2195 = vrot.lane.b32.xlu1 %v13383_v57, %s16306_s6  ;;  %11494 = vmatprep.subr.bf16.mxu0 %v16289_v56 }
 0x2f9   : > { %v1510_v26 = vpop.permute.xlu1 %1509  ;;  %v13393_v29 = vpop.permute.xlu0 %1126 }
 0x2fa   : > { %v1515_v31 = vsel %vm1265_vm3, %v1510_v26, 0  ;;  %v13398_v33 = vpack.c.bf16 %v13393_v29, %v13393_v29  ;;  %11479 = vmatmul.mubr.msk.bf16.vlgmr.msra.gmra.mxu1 %vm1265_vm3, %v1201_v54  ;;  %v1205_v54 = vpack.c.bf16 %v1173_v52, %v1173_v52  ;;  %v1174_v26 = vmul.f32 0.35355338, %v13257_v3 }
 0x2fb   : > { %11489 = vmatpush3.bf16.xpose.msra.mxu1 %v1515_v31  ;;  %11490 = vmatprep.mubr.msk.bf16.mxu1 %vm12904_vm2, %v16289_v56 }
 0x2fc   : > { %2244 = vrot.lane.b32.xlu0 %v13398_v33, %s16306_s6  ;;  %11500 = vmatprep.subr.bf16.mxu1 %v16289_v56 }
 0x2fd   : > { %v13407_v39 = vpop.permute.xlu1 %1128  ;;  %v1559_v27 = vpop.permute.xlu0 %1558 }
 0x2fe   : > { %v13411_v43 = vpack.c.bf16 %v13407_v39, %v13407_v39  ;;  %v1564_v30 = vsel %vm1265_vm3, %v1559_v27, 0  ;;  %11485 = vmatmul.mubr.msk.bf16.vlgmr.msra.gmra.mxu0 %vm1265_vm3, %v1202_v58 }
 0x2ff   : > { %11495 = vmatpush3.bf16.xpose.msra.mxu0 %v1564_v30  ;;  %11496 = vmatprep.mubr.msk.bf16.mxu0 %vm12904_vm2, %v16289_v56  ;;  %v1206_v30 = vpack.c.bf16 %v1174_v26, %v1174_v26  ;;  %v1177_v26 = vmul.f32 0.35355338, %v13285_v14 }
 0x300   : > { %2293 = vrot.lane.b32.xlu1 %v13411_v43, %s16306_s6  ;;  %11506 = vmatprep.subr.bf16.mxu0 %v16289_v56 }
 0x301   : > { %v1608_v47 = vpop.permute.xlu1 %1607  ;;  %v13421_v32 = vpop.permute.xlu0 %1130  ;;  %v1209_v14 = vpack.c.bf16 %v1177_v26, %v1177_v26 }
 0x302   : > { %v1613_v49 = vsel %vm1265_vm3, %v1608_v47, 0  ;;  %v13426_v51 = vpack.c.bf16 %v13421_v32, %v13421_v32  ;;  %11491 = vmatmul.mubr.msk.bf16.vlgmr.msra.gmra.mxu1 %vm1265_vm3, %v1203_v62  ;;  %v1175_v62 = vmul.f32 0.35355338, %v13265_v63 }
 0x303   : > { %11501 = vmatpush3.bf16.xpose.msra.mxu1 %v1613_v49  ;;  %11502 = vmatprep.mubr.msk.bf16.mxu1 %vm12904_vm2, %v16289_v56 }
 0x304   : > { %2342 = vrot.lane.b32.xlu0 %v13426_v51, %s16306_s6  ;;  %11512 = vmatprep.subr.bf16.mxu1 %v16289_v56  ;;  %v1207_v63 = vpack.c.bf16 %v1175_v62, %v1175_v62 }
 0x305   : > { %v13435_v55 = vpop.permute.xlu1 %1132 }
 0x306   : > { %v13439_v59 = vpack.c.bf16 %v13435_v55, %v13435_v55  ;;  %11497 = vmatmul.mubr.msk.bf16.vlgmr.msra.gmra.mxu0 %vm1265_vm3, %v1204_v61  ;;  %v1176_v61 = vmul.f32 0.35355338, %v13275_v12 }
 0x307   : > { %11508 = vmatprep.mubr.msk.bf16.mxu0 %vm12904_vm2, %v16289_v56 }
 0x308   : > { %2391 = vrot.lane.b32.xlu1 %v13439_v59, %s16306_s6  ;;  %v1208_v12 = vpack.c.bf16 %v1176_v61, %v1176_v61 }
 0x30a   : > { %11503 = vmatmul.mubr.msk.bf16.vlgmr.msra.gmra.mxu1 %vm1265_vm3, %v1205_v54 }
 0x30b   : > { %11514 = vmatprep.mubr.msk.bf16.mxu1 %vm12904_vm2, %v16289_v56 }
 0x342   : > { %v1657_v0 = vpop.permute.xlu0 %1656 }
 0x343   : > { %v1662_v60 = vsel %vm1265_vm3, %v1657_v0, 0 }
 0x344   : > { %11507 = vmatpush3.bf16.xpose.msra.mxu0 %v1662_v60 }
 0x345   : > { %11518 = vmatprep.subr.bf16.mxu0 %v16289_v56 }
 0x346   : > { %v1706_v31 = vpop.permute.xlu1 %1705  ;;  %v13452_v58 = vpop.permute.xlu0 %1142 }
 0x347   : > { %v1711_v38 = vsel %vm1265_vm3, %v1706_v31, 0  ;;  %v13457_v27 = vpack.c.bf16 %v13452_v58, %v13452_v58 }
 0x348   : > { %11513 = vmatpush3.bf16.xpose.msra.mxu1 %v1711_v38 }
 0x349   : > { %2440 = vrot.lane.b32.xlu0 %v13457_v27, %s16306_s6  ;;  %11524 = vmatprep.subr.bf16.mxu1 %v16289_v56 }
 0x34a   : > { %v13463_v3 = vpop.permute.xlu1 %1144  ;;  %v1755_v46 = vpop.permute.xlu0 %1754 }
 0x34b   : > { %v13467_v47 = vpack.c.bf16 %v13463_v3, %v13463_v3  ;;  %v1760_v49 = vsel %vm1265_vm3, %v1755_v46, 0  ;;  %11509 = vmatmul.mubr.msk.bf16.vlgmr.msra.gmra.mxu0 %vm1265_vm3, %v1206_v30  ;;  %v1178_v46 = vmul.f32 0.35355338, %v13295_v18 }
 0x34c   : > { %11519 = vmatpush3.bf16.xpose.msra.mxu0 %v1760_v49  ;;  %11520 = vmatprep.mubr.msk.bf16.mxu0 %vm12904_vm2, %v16289_v56 }
 0x34d   : > { %2489 = vrot.lane.b32.xlu1 %v13467_v47, %s16306_s6  ;;  %11530 = vmatprep.subr.bf16.mxu0 %v16289_v56  ;;  %v1210_v18 = vpack.c.bf16 %v1178_v46, %v1178_v46 }
 0x34e   : > { %v1804_v52 = vpop.permute.xlu1 %1803  ;;  %v13477_v54 = vpop.permute.xlu0 %1146 }
 0x34f   : > { %v1809_v0 = vsel %vm1265_vm3, %v1804_v52, 0  ;;  %v13482_v60 = vpack.c.bf16 %v13477_v54, %v13477_v54  ;;  %11515 = vmatmul.mubr.msk.bf16.vlgmr.msra.gmra.mxu1 %vm1265_vm3, %v1207_v63 }
 0x350   : > { %11525 = vmatpush3.bf16.xpose.msra.mxu1 %v1809_v0  ;;  %11526 = vmatprep.mubr.msk.bf16.mxu1 %vm12904_vm2, %v16289_v56  ;;  %v1179_v0 = vmul.f32 0.35355338, %v13305_v21 }
 0x351   : > { %2538 = vrot.lane.b32.xlu0 %v13482_v60, %s16306_s6  ;;  %11536 = vmatprep.subr.bf16.mxu1 %v16289_v56 }
 0x352   : > { %v13491_v31 = vpop.permute.xlu1 %1148  ;;  %v1853_v38 = vpop.permute.xlu0 %1852  ;;  %v1211_v21 = vpack.c.bf16 %v1179_v0, %v1179_v0  ;;  %v1181_v0 = vmul.f32 0.35355338, %v13317_v25 }
 0x353   : > { %v13495_v30 = vpack.c.bf16 %v13491_v31, %v13491_v31  ;;  %v1858_v62 = vsel %vm1265_vm3, %v1853_v38, 0  ;;  %11521 = vmatmul.mubr.msk.bf16.vlgmr.msra.gmra.mxu0 %vm1265_vm3, %v1208_v12 }
 0x354   : > { %11531 = vmatpush3.bf16.xpose.msra.mxu0 %v1858_v62  ;;  %11532 = vmatprep.mubr.msk.bf16.mxu0 %vm12904_vm2, %v16289_v56  ;;  %v1213_v25 = vpack.c.bf16 %v1181_v0, %v1181_v0  ;;  %v1183_v0 = vmul.f32 0.35355338, %v13342_v41  ;;  %v1184_v41 = vmul.f32 0.35355338, %v13358_v45  ;;  %v1185_v45 = vmul.f32 0.35355338, %v13378_v53 }
 0x355   : > { %2587 = vrot.lane.b32.xlu1 %v13495_v30, %s16306_s6  ;;  %11542 = vmatprep.subr.bf16.mxu0 %v16289_v56  ;;  %v1186_v53 = vmul.f32 0.35355338, %v13393_v29  ;;  %v1187_v29 = vmul.f32 0.35355338, %v13407_v39  ;;  %v1188_v39 = vmul.f32 0.35355338, %v13421_v32 }
 0x356   : > { %v1902_v49 = vpop.permute.xlu1 %1901  ;;  %v13505_v63 = vpop.permute.xlu0 %1150 }
 0x357   : > { %v1907_v61 = vsel %vm1265_vm3, %v1902_v49, 0  ;;  %v13510_v52 = vpack.c.bf16 %v13505_v63, %v13505_v63  ;;  %11527 = vmatmul.mubr.msk.bf16.vlgmr.msra.gmra.mxu1 %vm1265_vm3, %v1209_v14  ;;  %v1180_v14 = vmul.f32 0.35355338, %v13307_v22 }
 0x358   : > { %11537 = vmatpush3.bf16.xpose.msra.mxu1 %v1907_v61  ;;  %11538 = vmatprep.mubr.msk.bf16.mxu1 %vm12904_vm2, %v16289_v56 }
 0x359   : > { %2636 = vrot.lane.b32.xlu0 %v13510_v52, %s16306_s6  ;;  %11548 = vmatprep.subr.bf16.mxu1 %v16289_v56  ;;  %v1212_v22 = vpack.c.bf16 %v1180_v14, %v1180_v14  ;;  %v1182_v14 = vmul.f32 0.35355338, %v13329_v35 }
 0x35a   : > { %v13519_v12 = vpop.permute.xlu1 %1152  ;;  %v1951_v26 = vpop.permute.xlu0 %1950 }
 0x35b   : > { %v13523_v38 = vpack.c.bf16 %v13519_v12, %v13519_v12  ;;  %v1956_v62 = vsel %vm1265_vm3, %v1951_v26, 0  ;;  %11533 = vmatmul.mubr.msk.bf16.vlgmr.msra.gmra.mxu0 %vm1265_vm3, %v1210_v18  ;;  %v1214_v35 = vpack.c.bf16 %v1182_v14, %v1182_v14  ;;  %v1216_v14 = vpack.c.bf16 %v1184_v41, %v1184_v41 }
 0x35c   : > { %11543 = vmatpush3.bf16.xpose.msra.mxu0 %v1956_v62  ;;  %11544 = vmatprep.mubr.msk.bf16.mxu0 %vm12904_vm2, %v16289_v56 }
 0x35d   : > { %2685 = vrot.lane.b32.xlu1 %v13523_v38, %s16306_s6  ;;  %11554 = vmatprep.subr.bf16.mxu0 %v16289_v56 }
 0x35e   : > { %v2000_v46 = vpop.permute.xlu1 %1999  ;;  %v13533_v49 = vpop.permute.xlu0 %1154 }
 0x35f   : > { %v2005_v61 = vsel %vm1265_vm3, %v2000_v46, 0  ;;  %v13538_v18 = vpack.c.bf16 %v13533_v49, %v13533_v49  ;;  %11539 = vmatmul.mubr.msk.bf16.vlgmr.msra.gmra.mxu1 %vm1265_vm3, %v1211_v21 }
 0x360   : > { %11549 = vmatpush3.bf16.xpose.msra.mxu1 %v2005_v61  ;;  %11550 = vmatprep.mubr.msk.bf16.mxu1 %vm12904_vm2, %v16289_v56 }
 0x361   : > { %16346 = vst [vmem:[#allocation10_spill] sm:$0xff] %v13538_v18  ;;  %2734 = vrot.lane.b32.xlu0 %v13538_v18, %s16306_s6  ;;  %11560 = vmatprep.subr.bf16.mxu1 %v16289_v56 }
 0x362   : > { %v13547_v26 = vpop.permute.xlu1 %1156  ;;  %v2049_v62 = vpop.permute.xlu0 %2048 }
 0x363   : > { %v13551_v46 = vpack.c.bf16 %v13547_v26, %v13547_v26  ;;  %v2054_v21 = vsel %vm1265_vm3, %v2049_v62, 0  ;;  %11545 = vmatmul.mubr.msk.bf16.vlgmr.msra.gmra.mxu0 %vm1265_vm3, %v1212_v22 }
 0x364   : > { %11555 = vmatpush3.bf16.xpose.msra.mxu0 %v2054_v21  ;;  %11556 = vmatprep.mubr.msk.bf16.mxu0 %vm12904_vm2, %v16289_v56 }
 0x365   : > { %2783 = vrot.lane.b32.xlu1 %v13551_v46, %s16306_s6  ;;  %3215 = vrot.lane.b32.xlu0 %v13193_v1, %s16300_s27  ;;  %s16393_s6 = smov 64  }
 0x366   : > { %v2098_v61 = vpop.permute.xlu1 %2097  ;;  %11566 = vmatprep.subr.bf16.mxu0 %v16289_v56  ;;  %v2147_v22 = vpop.permute.xlu0 %2146 }
 0x367   : > { %v2103_v62 = vsel %vm1265_vm3, %v2098_v61, 0  ;;  %11551 = vmatmul.mubr.msk.bf16.vlgmr.msra.gmra.mxu1 %vm1265_vm3, %v1213_v25  ;;  %v2152_v1 = vsel %vm1265_vm3, %v2147_v22, 0  ;;  %v1215_v25 = vpack.c.bf16 %v1183_v0, %v1183_v0  ;;  %v1217_v61 = vpack.c.bf16 %v1185_v45, %v1185_v45 }
 0x368   : > { %11561 = vmatpush3.bf16.xpose.msra.mxu1 %v2103_v62  ;;  %11562 = vmatprep.mubr.msk.bf16.mxu1 %vm12904_vm2, %v16289_v56  ;;  %v1218_v62 = vpack.c.bf16 %v1186_v53, %v1186_v53  ;;  %v1219_v22 = vpack.c.bf16 %v1187_v29, %v1187_v29 }
 0x369   : > { %3264 = vrot.lane.b32.xlu1 %v13201_v2, %s16300_s27  ;;  %3312 = vrot.lane.b32.xlu0 %v13209_v4, %s16300_s27 }
 0x36a   : > { %11572 = vmatprep.subr.bf16.mxu1 %v16289_v56  ;;  %v2196_v21 = vpop.permute.xlu1 %2195 }
 0x36b   : > { %11557 = vmatmul.mubr.msk.bf16.vlgmr.msra.gmra.mxu0 %vm1265_vm3, %v1214_v35  ;;  %v2201_v2 = vsel %vm1265_vm3, %v2196_v21, 0  ;;  %v1189_v35 = vmul.f32 0.35355338, %v13435_v55 }
 0x36c   : > { %11567 = vmatpush3.bf16.xpose.msra.mxu0 %v2152_v1  ;;  %11568 = vmatprep.mubr.msk.bf16.mxu0 %vm12904_vm2, %v16289_v56 }
 0x36d   : > { %3360 = vrot.lane.b32.xlu1 %v13217_v5, %s16300_s27  ;;  %3408 = vrot.lane.b32.xlu0 %v13225_v6, %s16300_s27 }
 0x36e   : > { %11578 = vmatprep.subr.bf16.mxu0 %v16289_v56  ;;  %v2245_v4 = vpop.permute.xlu0 %2244 }
 0x36f   : > { %11563 = vmatmul.mubr.msk.bf16.vlgmr.msra.gmra.mxu1 %vm1265_vm3, %v1215_v25  ;;  %v2250_v5 = vsel %vm1265_vm3, %v2245_v4, 0  ;;  %v1190_v4 = vmul.f32 0.35355338, %v13452_v58 }
 0x370   : > { %11573 = vmatpush3.bf16.xpose.msra.mxu1 %v2201_v2  ;;  %11574 = vmatprep.mubr.msk.bf16.mxu1 %vm12904_vm2, %v16289_v56 }
 0x371   : > { %3456 = vrot.lane.b32.xlu1 %v13233_v7, %s16300_s27  ;;  %3504 = vrot.lane.b32.xlu0 %v13241_v8, %s16300_s27 }
 0x372   : > { %11584 = vmatprep.subr.bf16.mxu1 %v16289_v56  ;;  %v2294_v6 = vpop.permute.xlu1 %2293 }
 0x373   : > { %11569 = vmatmul.mubr.msk.bf16.vlgmr.msra.gmra.mxu0 %vm1265_vm3, %v1216_v14  ;;  %v2299_v7 = vsel %vm1265_vm3, %v2294_v6, 0 }
 0x374   : > { %11579 = vmatpush3.bf16.xpose.msra.mxu0 %v2250_v5  ;;  %11580 = vmatprep.mubr.msk.bf16.mxu0 %vm12904_vm2, %v16289_v56 }
 0x375   : > { %3552 = vrot.lane.b32.xlu1 %v13249_v9, %s16300_s27  ;;  %3600 = vrot.lane.b32.xlu0 %v13261_v10, %s16300_s27 }
 0x376   : > { %11590 = vmatprep.subr.bf16.mxu0 %v16289_v56  ;;  %v2343_v8 = vpop.permute.xlu0 %2342 }
 0x377   : > { %11575 = vmatmul.mubr.msk.bf16.vlgmr.msra.gmra.mxu1 %vm1265_vm3, %v1217_v61  ;;  %v2348_v9 = vsel %vm1265_vm3, %v2343_v8, 0  ;;  %v1222_v8 = vpack.c.bf16 %v1190_v4, %v1190_v4 }
 0x378   : > { %11585 = vmatpush3.bf16.xpose.msra.mxu1 %v2299_v7  ;;  %11586 = vmatprep.mubr.msk.bf16.mxu1 %vm12904_vm2, %v16289_v56 }
 0x379   : > { %3648 = vrot.lane.b32.xlu1 %v13269_v11, %s16300_s27  ;;  %3696 = vrot.lane.b32.xlu0 %v13279_v13, %s16300_s27  ;;  %v1220_v13 = vpack.c.bf16 %v1188_v39, %v1188_v39 }
 0x37a   : > { %11596 = vmatprep.subr.bf16.mxu1 %v16289_v56  ;;  %v2392_v10 = vpop.permute.xlu1 %2391 }
 0x37b   : > { %11581 = vmatmul.mubr.msk.bf16.vlgmr.msra.gmra.mxu0 %vm1265_vm3, %v1218_v62  ;;  %v2397_v11 = vsel %vm1265_vm3, %v2392_v10, 0  ;;  %v1191_v62 = vmul.f32 0.35355338, %v13463_v3 }
 0x37c   : > { %11591 = vmatpush3.bf16.xpose.msra.mxu0 %v2348_v9  ;;  %11592 = vmatprep.mubr.msk.bf16.mxu0 %vm12904_vm2, %v16289_v56 }
 0x37d   : > { %3744 = vrot.lane.b32.xlu1 %v13289_v16, %s16300_s27  ;;  %3792 = vrot.lane.b32.xlu0 %v13299_v19, %s16300_s27  ;;  %v1221_v16 = vpack.c.bf16 %v1189_v35, %v1189_v35  ;;  %v1223_v3 = vpack.c.bf16 %v1191_v62, %v1191_v62 }
 0x37e   : > { %11602 = vmatprep.subr.bf16.mxu0 %v16289_v56 }
 0x37f   : > { %11587 = vmatmul.mubr.msk.bf16.vlgmr.msra.gmra.mxu1 %vm1265_vm3, %v1219_v22 }
 0x380   : > { %11597 = vmatpush3.bf16.xpose.msra.mxu1 %v2397_v11  ;;  %11598 = vmatprep.mubr.msk.bf16.mxu1 %vm12904_vm2, %v16289_v56 }
 0x381   : > { %3936 = vrot.lane.b32.xlu1 %v13334_v36, %s16300_s27  ;;  %3888 = vrot.lane.b32.xlu0 %v13321_v28, %s16300_s27 }
 0x382   : > { %11608 = vmatprep.subr.bf16.mxu1 %v16289_v56 }
 0x383   : > { %11593 = vmatmul.mubr.msk.bf16.vlgmr.msra.gmra.mxu0 %vm1265_vm3, %v1220_v13  ;;  %v1192_v13 = vmul.f32 0.35355338, %v13477_v54 }
 0x384   : > { %11604 = vmatprep.mubr.msk.bf16.mxu0 %vm12904_vm2, %v16289_v56 }
 0x385   : > { %4032 = vrot.lane.b32.xlu1 %v13363_v48, %s16300_s27  ;;  %3984 = vrot.lane.b32.xlu0 %v13347_v44, %s16300_s27  ;;  %v1224_v54 = vpack.c.bf16 %v1192_v13, %v1192_v13 }
 0x387   : > { %11599 = vmatmul.mubr.msk.bf16.vlgmr.msra.gmra.mxu1 %vm1265_vm3, %v1221_v16 }
 0x388   : > { %11610 = vmatprep.mubr.msk.bf16.mxu1 %vm12904_vm2, %v16289_v56 }
 0x389   : > { %4128 = vrot.lane.b32.xlu1 %v13383_v57, %s16300_s27  ;;  %4080 = vrot.lane.b32.xlu0 %v13368_v50, %s16300_s27 }
 0x38d   : > { %4320 = vrot.lane.b32.xlu1 %v13439_v59, %s16300_s27  ;;  %4176 = vrot.lane.b32.xlu0 %v13398_v33, %s16300_s27 }
 0x391   : > { %3840 = vrot.lane.b32.xlu1 %v13311_v23, %s16300_s27  ;;  %4272 = vrot.lane.b32.xlu0 %v13426_v51, %s16300_s27 }
 0x395   : > { %4224 = vrot.lane.b32.xlu1 %v13411_v43, %s16300_s27 }
 0x3ae   : > { %v13657_v19 = vpop.f32.mrf.mxu0 }
 0x3af   : > { %v2831_v28 = vsel %vm1265_vm3, %v13657_v19, -inf }
 0x3b0   : > { %v11462_v36 = vpop.f32.mrf.mxu0  ;;  %2832 = vmax.xlane.f32.xlu0 %v2831_v28 }
 0x3b2   : > { %v1309_v44 = vpop.f32.mrf.mxu0  ;;  %v13661_v48 = vpop.f32.mrf.mxu1 }
 0x3b3   : > { %v2834_v55 = vsel %vm1265_vm3, %v13661_v48, -inf }
 0x3b4   : > { %v11463_v50 = vpop.f32.mrf.mxu0  ;;  %v11468_v57 = vpop.f32.mrf.mxu1 }
 0x3b6   : > { %v1358_v33 = vpop.f32.mrf.mxu1  ;;  %v13663_v23 = vpop.f32.mrf.mxu0 }
 0x3b7   : > { %v2837_v32 = vsel %vm1265_vm3, %v13663_v23, -inf  ;;  %v1193_v33 = vmul.f32 0.35355338, %v13491_v31 }
 0x3b8   : > { %v11469_v51 = vpop.f32.mrf.mxu1  ;;  %v11474_v43 = vpop.f32.mrf.mxu0  ;;  %2838 = vmax.xlane.f32.xlu0 %v2837_v32 }
 0x3b9   : > { %2835 = vmax.xlane.f32.xlu1 %v2834_v55  ;;  %v1225_v31 = vpack.c.bf16 %v1193_v33, %v1193_v33 }
 0x3ba   : > { %v1407_v59 = vpop.f32.mrf.mxu0  ;;  %v13669_v0 = vpop.f32.mrf.mxu1 }
 0x3bb   : > { %v2441_v1 = vpop.permute.xlu0 %2440  ;;  %v2840_v21 = vsel %vm1265_vm3, %v13669_v0, -inf }
 0x3bc   : > { %v2446_v25 = vsel %vm1265_vm3, %v2441_v1, 0  ;;  %v11475_v41 = vpop.f32.mrf.mxu0  ;;  %v11480_v2 = vpop.f32.mrf.mxu1  ;;  %2841 = vmax.xlane.f32.xlu0 %v2840_v21 }
 0x3bd   : > { %11603 = vmatpush3.bf16.xpose.msra.mxu0 %v2446_v25  ;;  %v1194_v25 = vmul.f32 0.35355338, %v13505_v63 }
 0x3be   : > { %v1456_v14 = vpop.f32.mrf.mxu1  ;;  %v13675_v45 = vpop.f32.mrf.mxu0  ;;  %11614 = vmatprep.subr.bf16.mxu0 %v16289_v56 }
 0x3bf   : > { %v2490_v5 = vpop.permute.xlu1 %2489  ;;  %v2843_v6 = vsel %vm1265_vm3, %v13675_v45, -inf }
 0x3c0   : > { %v2495_v61 = vsel %vm1265_vm3, %v2490_v5, 0  ;;  %v11481_v53 = vpop.f32.mrf.mxu1  ;;  %v11486_v7 = vpop.f32.mrf.mxu0  ;;  %2844 = vmax.xlane.f32.xlu0 %v2843_v6  ;;  %v1226_v5 = vpack.c.bf16 %v1194_v25, %v1194_v25  ;;  %v1195_v6 = vmul.f32 0.35355338, %v13519_v12 }
 0x3c1   : > { %11609 = vmatpush3.bf16.xpose.msra.mxu1 %v2495_v61  ;;  %v1196_v7 = vmul.f32 0.35355338, %v13533_v49 }
 0x3c2   : > { %v1505_v29 = vpop.f32.mrf.mxu0  ;;  %v13682_v58 = vpop.f32.mrf.mxu1  ;;  %11620 = vmatprep.subr.bf16.mxu1 %v16289_v56  ;;  %v1227_v53 = vpack.c.bf16 %v1195_v6, %v1195_v6 }
 0x3c3   : > { %v2539_v9 = vpop.permute.xlu0 %2538  ;;  %v2846_v10 = vsel %vm1265_vm3, %v13682_v58, -inf  ;;  %v1228_v29 = vpack.c.bf16 %v1196_v7, %v1196_v7 }
 0x3c4   : > { %v2544_v22 = vsel %vm1265_vm3, %v2539_v9, 0  ;;  %2847 = vmax.xlane.f32.xlu1 %v2846_v10  ;;  %v11487_v39 = vpop.f32.mrf.mxu0  ;;  %v11492_v11 = vpop.f32.mrf.mxu1  ;;  %11605 = vmatmul.mubr.msk.bf16.vlgmr.msra.gmra.mxu0 %vm1265_vm3, %v1222_v8  ;;  %v1197_v9 = vmul.f32 0.35355338, %v13547_v26 }
 0x3c5   : > { %11615 = vmatpush3.bf16.xpose.msra.mxu0 %v2544_v22  ;;  %11616 = vmatprep.mubr.msk.bf16.mxu0 %vm12904_vm2, %v16289_v56 }
 0x3c6   : > { %v1554_v35 = vpop.f32.mrf.mxu1  ;;  %v13692_v16 = vpop.f32.mrf.mxu0  ;;  %11626 = vmatprep.subr.bf16.mxu0 %v16289_v56  ;;  %v1229_v22 = vpack.c.bf16 %v1197_v9, %v1197_v9 }
 0x3c7   : > { %v2588_v28 = vpop.permute.xlu1 %2587  ;;  %v2849_v36 = vsel %vm1265_vm3, %v13692_v16, -inf }
 0x3c8   : > { %v2593_v44 = vsel %vm1265_vm3, %v2588_v28, 0  ;;  %v11493_v50 = vpop.f32.mrf.mxu1  ;;  %v11498_v57 = vpop.f32.mrf.mxu0  ;;  %11611 = vmatmul.mubr.msk.bf16.vlgmr.msra.gmra.mxu1 %vm1265_vm3, %v1223_v3  ;;  %2850 = vmax.xlane.f32.xlu0 %v2849_v36 }
 0x3c9   : > { %11621 = vmatpush3.bf16.xpose.msra.mxu1 %v2593_v44  ;;  %11622 = vmatprep.mubr.msk.bf16.mxu1 %vm12904_vm2, %v16289_v56 }
 0x3ca   : > { %v1603_v32 = vpop.f32.mrf.mxu0  ;;  %v13702_v51 = vpop.f32.mrf.mxu1  ;;  %11632 = vmatprep.subr.bf16.mxu1 %v16289_v56 }
 0x3cb   : > { %v2637_v43 = vpop.permute.xlu0 %2636  ;;  %v2852_v55 = vsel %vm1265_vm3, %v13702_v51, -inf }
 0x3cc   : > { %v2642_v59 = vsel %vm1265_vm3, %v2637_v43, 0  ;;  %2853 = vmax.xlane.f32.xlu1 %v2852_v55  ;;  %v11499_v1 = vpop.f32.mrf.mxu0  ;;  %v11504_v21 = vpop.f32.mrf.mxu1  ;;  %11617 = vmatmul.mubr.msk.bf16.vlgmr.msra.gmra.mxu0 %vm1265_vm3, %v1224_v54 }
 0x3cd   : > { %11627 = vmatpush3.bf16.xpose.msra.mxu0 %v2642_v59  ;;  %11628 = vmatprep.mubr.msk.bf16.mxu0 %vm12904_vm2, %v16289_v56 }
 0x3ce   : > { %v1652_v41 = vpop.f32.mrf.mxu1  ;;  %11638 = vmatprep.subr.bf16.mxu0 %v16289_v56 }
 0x3cf   : > { %v2686_v2 = vpop.permute.xlu1 %2685 }
 0x3d0   : > { %v2691_v4 = vsel %vm1265_vm3, %v2686_v2, 0  ;;  %v11505_v14 = vpop.f32.mrf.mxu1  ;;  %11623 = vmatmul.mubr.msk.bf16.vlgmr.msra.gmra.mxu1 %vm1265_vm3, %v1225_v31 }
 0x3d1   : > { %11633 = vmatpush3.bf16.xpose.msra.mxu1 %v2691_v4  ;;  %11634 = vmatprep.mubr.msk.bf16.mxu1 %vm12904_vm2, %v16289_v56 }
 0x3d2   : > { %11644 = vmatprep.subr.bf16.mxu1 %v16289_v56 }
 0x3d3   : > { %v2735_v61 = vpop.permute.xlu0 %2734 }
 0x3d4   : > { %v2740_v63 = vsel %vm1265_vm3, %v2735_v61, 0  ;;  %11629 = vmatmul.mubr.msk.bf16.vlgmr.msra.gmra.mxu0 %vm1265_vm3, %v1226_v5 }
 0x3d5   : > { %11639 = vmatpush3.bf16.xpose.msra.mxu0 %v2740_v63  ;;  %11640 = vmatprep.mubr.msk.bf16.mxu0 %vm12904_vm2, %v16289_v56 }
 0x3d6   : > { %11650 = vmatprep.subr.bf16.mxu0 %v16289_v56 }
 0x3d7   : > { %v2784_v8 = vpop.permute.xlu1 %2783  ;;  %v3216_v12 = vpop.permute.xlu0 %3215 }
 0x3d8   : > { %v2789_v62 = vsel %vm1265_vm3, %v2784_v8, 0  ;;  %11635 = vmatmul.mubr.msk.bf16.vlgmr.msra.gmra.mxu1 %vm1265_vm3, %v1227_v53  ;;  %v3222_v49 = vsel %vm3220_vm4, %v3216_v12, 0 }
 0x3d9   : > { %11645 = vmatpush3.bf16.xpose.msra.mxu1 %v2789_v62  ;;  %11646 = vmatprep.mubr.msk.bf16.mxu1 %vm12904_vm2, %v16289_v56 }
 0x3da   : > { %11656 = vmatprep.subr.bf16.mxu1 %v16289_v56 }
 0x3db   : > { %v3265_v10 = vpop.permute.xlu1 %3264  ;;  %v13741_v26 = vpop.permute.xlu0 %3312 }
 0x3dc   : > { %11641 = vmatmul.mubr.msk.bf16.vlgmr.msra.gmra.mxu0 %vm1265_vm3, %v1228_v29  ;;  %v3270_v39 = vsel %vm3220_vm4, %v3265_v10, 0 }
 0x3dd   : > { %11651 = vmatpush3.bf16.msra.mxu0 %v3222_v49  ;;  %11652 = vmatprep.mubr.msk.bf16.mxu0 %vm12904_vm2, %v16289_v56 }
 0x3de   : > { %11662 = vmatprep.subr.bf16.mxu0 %v16289_v56 }
 0x3df   : > { %v13745_v3 = vpop.permute.xlu0 %3408  ;;  %v13749_v28 = vpop.permute.xlu1 %3360 }
 0x3e0   : > { %11647 = vmatmul.mubr.msk.bf16.vlgmr.msra.gmra.mxu1 %vm1265_vm3, %v1229_v22 }
 0x3e1   : > { %11657 = vmatpush3.bf16.msra.mxu1 %v3270_v39  ;;  %11658 = vmatprep.mubr.msk.bf16.mxu1 %vm12904_vm2, %v16289_v56 }
 0x3e2   : > { %11668 = vmatprep.subr.bf16.mxu1 %v16289_v56 }
 0x3e3   : > { %v13755_v33 = vpop.permute.xlu0 %3504  ;;  %v13759_v55 = vpop.permute.xlu1 %3456 }
 0x3e7   : > { %v13765_v41 = vpop.permute.xlu0 %3600  ;;  %v13769_v5 = vpop.permute.xlu1 %3552 }
 0x3eb   : > { %v13775_v8 = vpop.permute.xlu0 %3696  ;;  %v13779_v29 = vpop.permute.xlu1 %3648 }
 0x40b   : > { %v13743_v11 = vpop.f32.mrf.mxu0 }
 0x40c   : > { %v2855_v13 = vsel %vm1265_vm3, %v13743_v11, -inf }
 0x40d   : > { %v11510_v35 = vpop.f32.mrf.mxu0  ;;  %2856 = vmax.xlane.f32.xlu0 %v2855_v13  ;;  %v13785_v13 = vpop.permute.xlu0 %3792 }
 0x40f   : > { %v1701_v36 = vpop.f32.mrf.mxu0  ;;  %v13751_v44 = vpop.f32.mrf.mxu1 }
 0x410   : > { %v2858_v50 = vsel %vm1265_vm3, %v13751_v44, -inf }
 0x411   : > { %2859 = vmax.xlane.f32.xlu1 %v2858_v50  ;;  %v11511_v57 = vpop.f32.mrf.mxu0  ;;  %v11516_v54 = vpop.f32.mrf.mxu1 }
 0x412   : > { %v13789_v57 = vpop.permute.xlu1 %3744 }
 0x413   : > { %v1750_v32 = vpop.f32.mrf.mxu1  ;;  %v13757_v43 = vpop.f32.mrf.mxu0 }
 0x414   : > { %v2861_v59 = vsel %vm1265_vm3, %v13757_v43, -inf }
 0x415   : > { %v11517_v1 = vpop.f32.mrf.mxu1  ;;  %v11522_v21 = vpop.f32.mrf.mxu0  ;;  %2862 = vmax.xlane.f32.xlu0 %v2861_v59 }
 0x416   : > { %v13793_v21 = vpop.permute.xlu0 %3888 }
 0x417   : > { %v1799_v31 = vpop.f32.mrf.mxu0  ;;  %v13763_v25 = vpop.f32.mrf.mxu1 }
 0x418   : > { %v2864_v2 = vsel %vm1265_vm3, %v13763_v25, -inf }
 0x419   : > { %2865 = vmax.xlane.f32.xlu1 %v2864_v2  ;;  %v11523_v4 = vpop.f32.mrf.mxu0  ;;  %v11528_v14 = vpop.f32.mrf.mxu1 }
 0x41a   : > { %v13797_v4 = vpop.permute.xlu1 %3936 }
 0x41b   : > { %v1848_v6 = vpop.f32.mrf.mxu1  ;;  %v13771_v61 = vpop.f32.mrf.mxu0 }
 0x41c   : > { %v2867_v63 = vsel %vm1265_vm3, %v13771_v61, -inf }
 0x41d   : > { %v11529_v53 = vpop.f32.mrf.mxu1  ;;  %v11534_v7 = vpop.f32.mrf.mxu0  ;;  %2868 = vmax.xlane.f32.xlu0 %v2867_v63 }
 0x41e   : > { %v13801_v7 = vpop.permute.xlu0 %3984 }
 0x41f   : > { %v1897_v62 = vpop.f32.mrf.mxu0  ;;  %v13777_v12 = vpop.f32.mrf.mxu1 }
 0x420   : > { %v2870_v9 = vsel %vm1265_vm3, %v13777_v12, -inf }
 0x421   : > { %2871 = vmax.xlane.f32.xlu1 %v2870_v9  ;;  %v11535_v49 = vpop.f32.mrf.mxu0  ;;  %v11540_v10 = vpop.f32.mrf.mxu1 }
 0x422   : > { %v13803_v49 = vpop.permute.xlu1 %4032 }
 0x423   : > { %v1946_v22 = vpop.f32.mrf.mxu1  ;;  %v13783_v39 = vpop.f32.mrf.mxu0  ;;  %16347 = vst [vmem:[#allocation11_spill] sm:$0xff] %v13803_v49 }
 0x424   : > { %v2873_v35 = vsel %vm1265_vm3, %v13783_v39, -inf }
 0x425   : > { %v11541_v36 = vpop.f32.mrf.mxu1  ;;  %v11546_v50 = vpop.f32.mrf.mxu0  ;;  %2874 = vmax.xlane.f32.xlu0 %v2873_v35 }
 0x426   : > { %v13809_v50 = vpop.permute.xlu0 %4080 }
 0x427   : > { %v1995_v54 = vpop.f32.mrf.mxu0  ;;  %v13791_v32 = vpop.f32.mrf.mxu1  ;;  %16348 = vst [vmem:[#allocation12_spill] sm:$0xff] %v13809_v50 }
 0x429   : > { %v11547_v59 = vpop.f32.mrf.mxu0  ;;  %v11552_v1 = vpop.f32.mrf.mxu1 }
 0x42a   : > { %v13815_v1 = vpop.permute.xlu1 %4128 }
 0x42b   : > { %v2044_v31 = vpop.f32.mrf.mxu1  ;;  %v13795_v2 = vpop.f32.mrf.mxu0  ;;  %16349 = vst [vmem:[#allocation13_spill] sm:$0xff] %v13815_v1 }
 0x42d   : > { %v11553_v14 = vpop.f32.mrf.mxu1  ;;  %v11558_v6 = vpop.f32.mrf.mxu0 }
 0x42f   : > { %v2093_v63 = vpop.f32.mrf.mxu0  ;;  %v13799_v53 = vpop.f32.mrf.mxu1 }
 0x430   : > { %v13823_v63 = vpop.permute.xlu0 %4176 }
 0x431   : > { %v11559_v62 = vpop.f32.mrf.mxu0  ;;  %v11564_v9 = vpop.f32.mrf.mxu1  ;;  %16350 = vst [vmem:[#allocation14_spill] sm:$0xff] %v13823_v63 }
 0x432   : > { %4416 = vrot.lane.b32.xlu1 %v13467_v47, %s16300_s27  ;;  %v13825_v9 = vpop.permute.xlu1 %4320 }
 0x433   : > { %v2142_v10 = vpop.f32.mrf.mxu1  ;;  %v13807_v22 = vpop.f32.mrf.mxu0  ;;  %16351 = vst [vmem:[#allocation15_spill] sm:$0xff] %v13825_v9 }
 0x435   : > { %v11565_v35 = vpop.f32.mrf.mxu1  ;;  %v11570_v36 = vpop.f32.mrf.mxu0 }
 0x436   : > { %4464 = vrot.lane.b32.xlu1 %v13482_v60, %s16300_s27 }
 0x437   : > { %v2191_v54 = vpop.f32.mrf.mxu0  ;;  %v13813_v59 = vpop.f32.mrf.mxu1 }
 0x439   : > { %v11571_v31 = vpop.f32.mrf.mxu0  ;;  %v11576_v14 = vpop.f32.mrf.mxu1 }
 0x43a   : > { %4512 = vrot.lane.b32.xlu1 %v13495_v30, %s16300_s27  ;;  %v13829_v31 = vpop.permute.xlu0 %4272 }
 0x43b   : > { %v2240_v47 = vpop.f32.mrf.mxu1  ;;  %4368 = vrot.lane.b32.xlu0 %v13457_v27, %s16300_s27  ;;  %v13821_v6 = vpop.f32.mrf.mxu0  ;;  %16352 = vst [vmem:[#allocation16_spill] sm:$0xff] %v13829_v31 }
 0x43c   : > { %v13833_v47 = vpop.permute.xlu1 %3840 }
 0x43d   : > { %v11577_v62 = vpop.f32.mrf.mxu1  ;;  %v11582_v60 = vpop.f32.mrf.mxu0 }
 0x43e   : > { %v2833_v40 = vpop.xlane.xlu0 %2832 }
 0x43f   : > { %v2289_v10 = vpop.f32.mrf.mxu0  ;;  %v13827_v35 = vpop.f32.mrf.mxu1  ;;  %v2927_v60 = vsub.f32 %v13657_v19, %v2833_v40  ;;  %v2879_v19 = vsel %vm1265_vm3, %v13795_v2, -inf }
 0x440   : > { %v13838_v37 = vpop.permute.xlu1 %4224 }
 0x441   : > { %v11583_v36 = vpop.f32.mrf.mxu0  ;;  %v11588_v54 = vpop.f32.mrf.mxu1  ;;  %16353 = vst [vmem:[#allocation17_spill] sm:$0xff] %v13838_v37  ;;  %v2959_v24 = vmul.f32 1.442695, %v2927_v60 }
 0x442   : > { %v2839_v36 = vpop.xlane.xlu0 %2838 }
 0x443   : > { %v2338_v30 = vpop.f32.mrf.mxu1  ;;  %v13831_v14 = vpop.f32.mrf.mxu0  ;;  %v2929_v17 = vsub.f32 %v13663_v23, %v2839_v36  ;;  %12520 = vpow2.f32 %v2959_v24  ;;  %v2876_v24 = vsel %vm1265_vm3, %v13791_v32, -inf  ;;  %v2882_v23 = vsel %vm1265_vm3, %v13799_v53, -inf }
 0x444   : > { %v2836_v20 = vpop.xlane.xlu1 %2835  ;;  %v2888_v36 = vsel %vm1265_vm3, %v13813_v59, -inf }
 0x445   : > { %v11589_v27 = vpop.f32.mrf.mxu1  ;;  %v11594_v56 = vpop.f32.mrf.mxu0 }
 0x446   : > { %v2842_v15 = vpop.xlane.xlu0 %2841  ;;  %v2928_v56 = vsub.f32 %v13661_v48, %v2836_v20 }
 0x447   : > { %v2387_v34 = vpop.f32.mrf.mxu0  ;;  %v13835_v62 = vpop.f32.mrf.mxu1  ;;  %v2930_v40 = vsub.f32 %v13669_v0, %v2842_v15 }
 0x448   : > { %v2963_v34 = vmul.f32 1.442695, %v2929_v17  ;;  %v2961_v27 = vmul.f32 1.442695, %v2928_v56  ;;  %v2885_v17 = vsel %vm1265_vm3, %v13807_v22, -inf }
 0x449   : > { %v11595_v10 = vpop.f32.mrf.mxu0  ;;  %v11600_v42 = vpop.f32.mrf.mxu1  ;;  %v2965_v60 = vmul.f32 1.442695, %v2930_v40  ;;  %v2897_v40 = vsel %vm1265_vm3, %v13831_v14, -inf }
 0x44a   : > { %v2845_v9 = vpop.xlane.xlu0 %2844  ;;  %12522 = vpow2.f32 %v2963_v34 }
 0x44b   : > { %v2436_v54 = vpop.f32.mrf.mxu1  ;;  %12524 = vpow2.f32 %v2961_v27  ;;  %v2931_v42 = vsub.f32 %v13675_v45, %v2845_v9  ;;  %v2894_v27 = vsel %vm1265_vm3, %v13827_v35, -inf }
 0x44c   : > { %12526 = vpow2.f32 %v2965_v60  ;;  %v2891_v54 = vsel %vm1265_vm3, %v13821_v6, -inf }
 0x44d   : > { %v11601_v30 = vpop.f32.mrf.mxu1  ;;  %v2967_v10 = vmul.f32 1.442695, %v2931_v42  ;;  %v2848_v48 = vpop.xlane.xlu1 %2847 }
 0x44e   : > { %v2932_v15 = vsub.f32 %v13682_v58, %v2848_v48 }
 0x44f   : > { %12528 = vpow2.f32 %v2967_v10 }
 0x450   : > { %v13850_v20 = vpop.eup %12520  ;;  %v2969_v9 = vmul.f32 1.442695, %v2932_v15 }
 0x451   : > { %v3023_v0 = vsel %vm1265_vm3, %v13850_v20, 0.0 }
 0x452   : > { %12530 = vpow2.f32 %v2969_v9 }
 0x457   : > { %v13857_v45 = vpop.eup %12522 }
 0x458   : > { %v13863_v30 = vpop.eup %12524  ;;  %v3029_v56 = vsel %vm1265_vm3, %v13857_v45, 0.0 }
 0x459   : > { %v3026_v58 = vsel %vm1265_vm3, %v13863_v30, 0.0  ;;  %v13869_v34 = vpop.eup %12526 }
 0x45a   : > { %2880 = vmax.xlane.f32.xlu0 %v2879_v19  ;;  %v2851_v19 = vpop.xlane.xlu0 %2850  ;;  %v3032_v10 = vsel %vm1265_vm3, %v13869_v34, 0.0 }
 0x45b   : > { %v2933_v60 = vsub.f32 %v13692_v16, %v2851_v19 }
 0x45c   : > { %v13875_v42 = vpop.eup %12528 }
 0x45d   : > { %v2971_v48 = vmul.f32 1.442695, %v2933_v60 }
 0x45e   : > { %2877 = vmax.xlane.f32.xlu1 %v2876_v24  ;;  %2886 = vmax.xlane.f32.xlu0 %v2885_v17  ;;  %v3035_v24 = vsel %vm1265_vm3, %v13875_v42, 0.0  ;;  %v2854_v17 = vpop.xlane.xlu1 %2853 }
 0x45f   : > { %v2934_v15 = vsub.f32 %v13702_v51, %v2854_v17  ;;  %12532 = vpow2.f32 %v2971_v48 }
 0x461   : > { %v2973_v16 = vmul.f32 1.442695, %v2934_v15 }
 0x462   : > { %2883 = vmax.xlane.f32.xlu1 %v2882_v23  ;;  %3024 = vadd.xlane.f32.xlu0 %v3023_v0  ;;  %v2900_v23 = vsel %vm1265_vm3, %v13835_v62, -inf  ;;  %v13885_v0 = vpop.eup %12530 }
 0x463   : > { %v3038_v9 = vsel %vm1265_vm3, %v13885_v0, 0.0  ;;  %12534 = vpow2.f32 %v2973_v16 }
 0x466   : > { %2889 = vmax.xlane.f32.xlu1 %v2888_v36  ;;  %2892 = vmax.xlane.f32.xlu0 %v2891_v54 }
 0x46a   : > { %3027 = vadd.xlane.f32.xlu1 %v3026_v58  ;;  %3030 = vadd.xlane.f32.xlu0 %v3029_v56 }
 0x46c   : > { %v13893_v58 = vpop.eup %12532 }
 0x46d   : > { %v3041_v19 = vsel %vm1265_vm3, %v13893_v58, 0.0 }
 0x46e   : > { %2895 = vmax.xlane.f32.xlu1 %v2894_v27  ;;  %2898 = vmax.xlane.f32.xlu0 %v2897_v40 }
 0x470   : > { %v13901_v60 = vpop.eup %12534 }
 0x471   : > { %v3044_v15 = vsel %vm1265_vm3, %v13901_v60, 0.0 }
 0x472   : > { %3033 = vadd.xlane.f32.xlu1 %v3032_v10  ;;  %3036 = vadd.xlane.f32.xlu0 %v3035_v24 }
 0x476   : > { %2901 = vmax.xlane.f32.xlu1 %v2900_v23 }
 0x47a   : > { %3039 = vadd.xlane.f32.xlu1 %v3038_v9 }
 0x484   : > { %v13889_v36 = vpop.f32.mrf.mxu0 }
 0x485   : > { %v2903_v54 = vsel %vm1265_vm3, %v13889_v36, -inf }
 0x486   : > { %v11606_v51 = vpop.f32.mrf.mxu0  ;;  %2904 = vmax.xlane.f32.xlu0 %v2903_v54 }
 0x488   : > { %v2485_v56 = vpop.f32.mrf.mxu0  ;;  %v13895_v27 = vpop.f32.mrf.mxu1 }
 0x489   : > { %v2906_v40 = vsel %vm1265_vm3, %v13895_v27, -inf }
 0x48a   : > { %v11607_v10 = vpop.f32.mrf.mxu0  ;;  %v11612_v24 = vpop.f32.mrf.mxu1  ;;  %2907 = vmax.xlane.f32.xlu1 %v2906_v40  ;;  %3042 = vadd.xlane.f32.xlu0 %v3041_v19 }
 0x48c   : > { %v2534_v17 = vpop.f32.mrf.mxu1  ;;  %v13903_v48 = vpop.f32.mrf.mxu0 }
 0x48d   : > { %v2909_v23 = vsel %vm1265_vm3, %v13903_v48, -inf }
 0x48e   : > { %v11613_v16 = vpop.f32.mrf.mxu1  ;;  %v11618_v9 = vpop.f32.mrf.mxu0  ;;  %3045 = vadd.xlane.f32.xlu1 %v3044_v15  ;;  %2910 = vmax.xlane.f32.xlu0 %v2909_v23 }
 0x490   : > { %v2583_v54 = vpop.f32.mrf.mxu0  ;;  %v13909_v51 = vpop.f32.mrf.mxu1 }
 0x491   : > { %v2912_v56 = vsel %vm1265_vm3, %v13909_v51, -inf }
 0x492   : > { %v11619_v40 = vpop.f32.mrf.mxu0  ;;  %v11624_v19 = vpop.f32.mrf.mxu1  ;;  %2913 = vmax.xlane.f32.xlu1 %v2912_v56 }
 0x494   : > { %v2632_v10 = vpop.f32.mrf.mxu1  ;;  %v13913_v24 = vpop.f32.mrf.mxu0 }
 0x495   : > { %v2915_v17 = vsel %vm1265_vm3, %v13913_v24, -inf }
 0x496   : > { %v11625_v37 = vpop.f32.mrf.mxu1  ;;  %v11630_v16 = vpop.f32.mrf.mxu0  ;;  %2916 = vmax.xlane.f32.xlu0 %v2915_v17 }
 0x497   : > { %v2857_v15 = vpop.xlane.xlu0 %2856 }
 0x498   : > { %v2935_v23 = vsub.f32 %v13743_v11, %v2857_v15  ;;  %v2681_v9 = vpop.f32.mrf.mxu0  ;;  %v13918_v54 = vpop.f32.mrf.mxu1 }
 0x499   : > { %v2918_v40 = vsel %vm1265_vm3, %v13918_v54, -inf }
 0x49a   : > { %v2975_v19 = vmul.f32 1.442695, %v2935_v23  ;;  %v2860_v56 = vpop.xlane.xlu1 %2859  ;;  %v11631_v10 = vpop.f32.mrf.mxu0  ;;  %2919 = vmax.xlane.f32.xlu1 %v2918_v40 }
 0x49b   : > { %v2936_v31 = vsub.f32 %v13751_v44, %v2860_v56  ;;  %v11636_v1 = vpop.f32.mrf.mxu1 }
 0x49c   : > { %12536 = vpow2.f32 %v2975_v19  ;;  %v13923_v37 = vpop.f32.mrf.mxu0 }
 0x49d   : > { %v2977_v17 = vmul.f32 1.442695, %v2936_v31  ;;  %v2730_v16 = vpop.f32.mrf.mxu1  ;;  %v2921_v11 = vsel %vm1265_vm3, %v13923_v37, -inf }
 0x49e   : > { %v11642_v15 = vpop.f32.mrf.mxu0  ;;  %2922 = vmax.xlane.f32.xlu1 %v2921_v11  ;;  %v2863_v9 = vpop.xlane.xlu0 %2862 }
 0x49f   : > { %12538 = vpow2.f32 %v2977_v17  ;;  %v11637_v63 = vpop.f32.mrf.mxu1  ;;  %v2937_v23 = vsub.f32 %v13757_v43, %v2863_v9 }
 0x4a0   : > { %v2779_v10 = vpop.f32.mrf.mxu0 }
 0x4a1   : > { %v2979_v40 = vmul.f32 1.442695, %v2937_v23  ;;  %v13928_v49 = vpop.f32.mrf.mxu1 }
 0x4a2   : > { %v2866_v44 = vpop.xlane.xlu1 %2865  ;;  %v11643_v1 = vpop.f32.mrf.mxu0  ;;  %v2924_v31 = vsel %vm1265_vm3, %v13928_v49, -inf }
 0x4a3   : > { %12540 = vpow2.f32 %v2979_v40  ;;  %v2938_v19 = vsub.f32 %v13763_v25, %v2866_v44  ;;  %v11648_v56 = vpop.f32.mrf.mxu1  ;;  %2925 = vmax.xlane.f32.xlu0 %v2924_v31 }
 0x4a5   : > { %v2981_v16 = vmul.f32 1.442695, %v2938_v19  ;;  %v2828_v11 = vpop.f32.mrf.mxu1 }
 0x4a6   : > { %v2869_v17 = vpop.xlane.xlu0 %2868 }
 0x4a7   : > { %12542 = vpow2.f32 %v2981_v16  ;;  %v11649_v63 = vpop.f32.mrf.mxu1  ;;  %v2939_v43 = vsub.f32 %v13771_v61, %v2869_v17 }
 0x4a9   : > { %v13934_v15 = vpop.eup %12536  ;;  %v2983_v9 = vmul.f32 1.442695, %v2939_v43 }
 0x4aa   : > { %v2872_v23 = vpop.xlane.xlu1 %2871  ;;  %v3047_v10 = vsel %vm1265_vm3, %v13934_v15, 0.0 }
 0x4ab   : > { %12544 = vpow2.f32 %v2983_v9  ;;  %v2940_v40 = vsub.f32 %v13777_v12, %v2872_v23  ;;  %3048 = vadd.xlane.f32.xlu0 %v3047_v10 }
 0x4ac   : > { %v13939_v25 = vpop.eup %12538 }
 0x4ad   : > { %v2985_v44 = vmul.f32 1.442695, %v2940_v40  ;;  %v3050_v1 = vsel %vm1265_vm3, %v13939_v25, 0.0 }
 0x4ae   : > { %3051 = vadd.xlane.f32.xlu1 %v3050_v1  ;;  %v2875_v31 = vpop.xlane.xlu0 %2874  ;;  %v13964_v10 = vpop.permute.xlu1 %4416 }
 0x4af   : > { %12546 = vpow2.f32 %v2985_v44  ;;  %v2941_v61 = vsub.f32 %v13783_v39, %v2875_v31  ;;  %16354 = vst [vmem:[#allocation18_spill] sm:$0xff] %v13964_v10 }
 0x4b0   : > { %v13944_v19 = vpop.eup %12540 }
 0x4b1   : > { %v2987_v56 = vmul.f32 1.442695, %v2941_v61  ;;  %v3053_v16 = vsel %vm1265_vm3, %v13944_v19, 0.0 }
 0x4b2   : > { %3054 = vadd.xlane.f32.xlu1 %v3053_v16  ;;  %v13966_v40 = vpop.permute.xlu1 %4464  ;;  %v13968_v44 = vpop.permute.xlu0 %4368 }
 0x4b3   : > { %12548 = vpow2.f32 %v2987_v56  ;;  %16355 = vst [vmem:[#allocation19_spill] sm:$0xff] %v13966_v40  ;;  %16356 = vst [vmem:[#allocation20_spill] sm:$0xff] %v13968_v44 }
 0x4b4   : > { %v13948_v12 = vpop.eup %12542 }
 0x4b5   : > { %v3056_v11 = vsel %vm1265_vm3, %v13948_v12, 0.0 }
 0x4b6   : > { %3057 = vadd.xlane.f32.xlu0 %v3056_v11  ;;  %v13970_v1 = vpop.permute.xlu1 %4512 }
 0x4b7   : > { %16357 = vst [vmem:[#allocation21_spill] sm:$0xff] %v13970_v1 }
 0x4b8   : > { %v13952_v17 = vpop.eup %12544 }
 0x4b9   : > { %v3059_v63 = vsel %vm1265_vm3, %v13952_v17, 0.0 }
 0x4ba   : > { %3060 = vadd.xlane.f32.xlu1 %v3059_v63 }
 0x4bc   : > { %v13956_v39 = vpop.eup %12546 }
 0x4bd   : > { %v3062_v43 = vsel %vm1265_vm3, %v13956_v39, 0.0 }
 0x4be   : > { %3063 = vadd.xlane.f32.xlu0 %v3062_v43 }
 0x4c0   : > { %v13960_v9 = vpop.eup %12548 }
 0x4c1   : > { %v3065_v23 = vsel %vm1265_vm3, %v13960_v9, 0.0 }
 0x4c2   : > { %3066 = vadd.xlane.f32.xlu1 %v3065_v23 }
 0x4e3   : > { %v2881_v31 = vpop.xlane.xlu0 %2880 }
 0x4e4   : > { %v2943_v61 = vsub.f32 %v13795_v2, %v2881_v31 }
 0x4e6   : > { %v2991_v56 = vmul.f32 1.442695, %v2943_v61 }
 0x4e7   : > { %v2878_v16 = vpop.xlane.xlu1 %2877  ;;  %v2887_v11 = vpop.xlane.xlu0 %2886 }
 0x4e8   : > { %12550 = vpow2.f32 %v2991_v56  ;;  %v2942_v63 = vsub.f32 %v13791_v32, %v2878_v16  ;;  %v2945_v43 = vsub.f32 %v13807_v22, %v2887_v11 }
 0x4ea   : > { %v2989_v23 = vmul.f32 1.442695, %v2942_v63  ;;  %v2995_v50 = vmul.f32 1.442695, %v2945_v43 }
 0x4eb   : > { %v2884_v10 = vpop.xlane.xlu1 %2883  ;;  %v3025_v18 = vpop.xlane.xlu0 %3024 }
 0x4ec   : > { %12552 = vpow2.f32 %v2989_v23  ;;  %v2944_v40 = vsub.f32 %v13799_v53, %v2884_v10 }
 0x4ed   : > { %12554 = vpow2.f32 %v2995_v50 }
 0x4ee   : > { %v2993_v1 = vmul.f32 1.442695, %v2944_v40  ;;  %12556 = vrcp.f32 %v3025_v18 }
 0x4ef   : > { %v2890_v44 = vpop.xlane.xlu1 %2889  ;;  %v2893_v2 = vpop.xlane.xlu0 %2892 }
 0x4f0   : > { %12558 = vpow2.f32 %v2993_v1  ;;  %v2946_v31 = vsub.f32 %v13813_v59, %v2890_v44  ;;  %v2947_v61 = vsub.f32 %v13821_v6, %v2893_v2 }
 0x4f2   : > { %v2997_v32 = vmul.f32 1.442695, %v2946_v31  ;;  %v2999_v56 = vmul.f32 1.442695, %v2947_v61 }
 0x4f3   : > { %v3028_v22 = vpop.xlane.xlu1 %3027  ;;  %v3031_v16 = vpop.xlane.xlu0 %3030 }
 0x4f4   : > { %12560 = vpow2.f32 %v2997_v32 }
 0x4f5   : > { %v13978_v11 = vpop.eup %12550  ;;  %12562 = vpow2.f32 %v2999_v56 }
 0x4f6   : > { %12564 = vrcp.f32 %v3028_v22  ;;  %v3071_v53 = vsel %vm1265_vm3, %v13978_v11, 0.0  ;;  %v3318_v22 = vsel %vm3220_vm4, %v13741_v26, 0 }
 0x4f7   : > { %12566 = vrcp.f32 %v3031_v16  ;;  %v2896_v18 = vpop.xlane.xlu1 %2895  ;;  %3072 = vadd.xlane.f32.xlu1 %v3071_v53  ;;  %v2899_v50 = vpop.xlane.xlu0 %2898 }
 0x4f8   : > { %v2948_v59 = vsub.f32 %v13827_v35, %v2896_v18  ;;  %v2949_v6 = vsub.f32 %v13831_v14, %v2899_v50 }
 0x4f9   : > { %v13984_v10 = vpop.eup %12552 }
 0x4fa   : > { %v13986_v40 = vpop.eup %12554  ;;  %v3001_v44 = vmul.f32 1.442695, %v2948_v59  ;;  %v3003_v1 = vmul.f32 1.442695, %v2949_v6  ;;  %v3068_v63 = vsel %vm1265_vm3, %v13984_v10, 0.0 }
 0x4fb   : > { %v12557_v43 = vpop.eup %12556  ;;  %v3034_v23 = vpop.xlane.xlu1 %3033  ;;  %3069 = vadd.xlane.f32.xlu0 %v3068_v63  ;;  %v3077_v2 = vsel %vm1265_vm3, %v13986_v40, 0.0 }
 0x4fc   : > { %12568 = vpow2.f32 %v3001_v44  ;;  %3078 = vadd.xlane.f32.xlu1 %v3077_v2  ;;  %v3037_v35 = vpop.xlane.xlu0 %3036  ;;  %v3151_v14 = vmul.f32 %v12557_v43, %v13850_v20  ;;  %v16358_v20 = vmov 0.0   ;;  %v3366_v2 = vsel %vm3220_vm4, %v13749_v28, 0 }
 0x4fd   : > { %v13993_v31 = vpop.eup %12558  ;;  %12570 = vpow2.f32 %v3003_v1 }
 0x4fe   : > { %12572 = vrcp.f32 %v3034_v23  ;;  %v3183_v61 = vpack.c.bf16 %v3151_v14, %v3151_v14  ;;  %v3074_v32 = vsel %vm1265_vm3, %v13993_v31, 0.0  ;;  %v3414_v14 = vsel %vm3220_vm4, %v13745_v3, 0 }
 0x4ff   : > { %12574 = vrcp.f32 %v3037_v35  ;;  %v2902_v56 = vpop.xlane.xlu1 %2901  ;;  %3075 = vadd.xlane.f32.xlu0 %v3074_v32 }
 0x500   : > { %11653 = vmatmul.mubr.msk.bf16.vlgmr.msra.gmra.mxu0 %vm1265_vm3, %v3183_v61  ;;  %v2950_v16 = vsub.f32 %v13835_v62, %v2902_v56 }
 0x501   : > { %v14001_v53 = vpop.eup %12560  ;;  %11663 = vmatpush3.bf16.msra.mxu0 %v3318_v22  ;;  %11664 = vmatprep.mubr.msk.bf16.mxu0 %vm12904_vm2, %v16358_v20 }
 0x502   : > { %v14005_v18 = vpop.eup %12562  ;;  %v3005_v50 = vmul.f32 1.442695, %v2950_v16  ;;  %v3080_v59 = vsel %vm1265_vm3, %v14001_v53, 0.0  ;;  %11674 = vmatprep.subr.bf16.mxu0 %v16358_v20 }
 0x503   : > { %v12565_v6 = vpop.eup %12564  ;;  %v3040_v26 = vpop.xlane.xlu1 %3039  ;;  %3081 = vadd.xlane.f32.xlu0 %v3080_v59  ;;  %v3083_v62 = vsel %vm1265_vm3, %v14005_v18, 0.0  ;;  %v3462_v59 = vsel %vm3220_vm4, %v13759_v55, 0 }
 0x504   : > { %v12567_v44 = vpop.eup %12566  ;;  %12576 = vpow2.f32 %v3005_v50  ;;  %3084 = vadd.xlane.f32.xlu1 %v3083_v62  ;;  %v3152_v1 = vmul.f32 %v12565_v6, %v13863_v30  ;;  %v3510_v62 = vsel %vm3220_vm4, %v13755_v33, 0 }
 0x505   : > { %12578 = vrcp.f32 %v3040_v26  ;;  %v3153_v63 = vmul.f32 %v12567_v44, %v13857_v45 }
 0x506   : > { %v3184_v43 = vpack.c.bf16 %v3152_v1, %v3152_v1 }
 0x507   : > { %v3185_v23 = vpack.c.bf16 %v3153_v63, %v3153_v63 }
 0x508   : > { %11659 = vmatmul.mubr.msk.bf16.vlgmr.msra.gmra.mxu1 %vm1265_vm3, %v3184_v43 }
 0x509   : > { %v14017_v35 = vpop.eup %12568  ;;  %11665 = vmatmul.mubr.msk.bf16.vlgmr.msra.gmra.mxu0 %vm1265_vm3, %v3185_v23  ;;  %11669 = vmatpush3.bf16.msra.mxu1 %v3366_v2 }
 0x50a   : > { %v14022_v61 = vpop.eup %12570  ;;  %11675 = vmatpush3.bf16.msra.mxu0 %v3414_v14  ;;  %v3086_v45 = vsel %vm1265_vm3, %v14017_v35, 0.0  ;;  %11670 = vmatprep.mubr.msk.bf16.mxu1 %vm12904_vm2, %v16358_v20  ;;  %v3558_v14 = vsel %vm3220_vm4, %v13769_v5, 0 }
 0x50b   : > { %v12573_v28 = vpop.eup %12572  ;;  %3087 = vadd.xlane.f32.xlu0 %v3086_v45  ;;  %v3089_v30 = vsel %vm1265_vm3, %v14022_v61, 0.0  ;;  %11676 = vmatprep.mubr.msk.bf16.mxu0 %vm12904_vm2, %v16358_v20 }
 0x50c   : > { %v12575_v3 = vpop.eup %12574  ;;  %3090 = vadd.xlane.f32.xlu1 %v3089_v30  ;;  %11680 = vmatprep.subr.bf16.mxu1 %v16358_v20  ;;  %v3154_v32 = vmul.f32 %v12573_v28, %v13869_v34 }
 0x50d   : > { %11686 = vmatprep.subr.bf16.mxu0 %v16358_v20  ;;  %v3155_v56 = vmul.f32 %v12575_v3, %v13875_v42 }
 0x50e   : > { %v3186_v22 = vpack.c.bf16 %v3154_v32, %v3154_v32 }
 0x50f   : > { %v3187_v16 = vpack.c.bf16 %v3155_v56, %v3155_v56  ;;  %v2905_v50 = vpop.xlane.xlu0 %2904 }
 0x510   : > { %11671 = vmatmul.mubr.msk.bf16.vlgmr.msra.gmra.mxu1 %vm1265_vm3, %v3186_v22  ;;  %v2951_v6 = vsub.f32 %v13889_v36, %v2905_v50 }
 0x511   : > { %v14040_v26 = vpop.eup %12576  ;;  %11677 = vmatmul.mubr.msk.bf16.vlgmr.msra.gmra.mxu0 %vm1265_vm3, %v3187_v16  ;;  %11681 = vmatpush3.bf16.msra.mxu1 %v3462_v59 }
 0x512   : > { %v12579_v34 = vpop.eup %12578  ;;  %11687 = vmatpush3.bf16.msra.mxu0 %v3510_v62  ;;  %v3007_v42 = vmul.f32 1.442695, %v2951_v6  ;;  %v3092_v44 = vsel %vm1265_vm3, %v14040_v26, 0.0  ;;  %11682 = vmatprep.mubr.msk.bf16.mxu1 %vm12904_vm2, %v16358_v20 }
 0x513   : > { %v2908_v55 = vpop.xlane.xlu1 %2907  ;;  %3093 = vadd.xlane.f32.xlu0 %v3092_v44  ;;  %v3043_v36 = vpop.xlane.xlu0 %3042  ;;  %11692 = vmatprep.subr.bf16.mxu1 %v16358_v20  ;;  %v3156_v1 = vmul.f32 %v12579_v34, %v13885_v0 }
 0x514   : > { %12580 = vpow2.f32 %v3007_v42  ;;  %v2952_v33 = vsub.f32 %v13895_v27, %v2908_v55  ;;  %11688 = vmatprep.mubr.msk.bf16.mxu0 %vm12904_vm2, %v16358_v20  ;;  %11698 = vmatprep.subr.bf16.mxu0 %v16358_v20 }
 0x515   : > { %12582 = vrcp.f32 %v3043_v36  ;;  %v3188_v63 = vpack.c.bf16 %v3156_v1, %v3156_v1 }
 0x516   : > { %v3009_v43 = vmul.f32 1.442695, %v2952_v33 }
 0x517   : > { %v3046_v23 = vpop.xlane.xlu1 %3045  ;;  %v2911_v2 = vpop.xlane.xlu0 %2910 }
 0x518   : > { %12584 = vpow2.f32 %v3009_v43  ;;  %11683 = vmatmul.mubr.msk.bf16.vlgmr.msra.gmra.mxu1 %vm1265_vm3, %v3188_v63  ;;  %v2953_v0 = vsub.f32 %v13903_v48, %v2911_v2 }
 0x519   : > { %11693 = vmatpush3.bf16.msra.mxu1 %v3558_v14  ;;  %12586 = vrcp.f32 %v3046_v23  ;;  %11694 = vmatprep.mubr.msk.bf16.mxu1 %vm12904_vm2, %v16358_v20 }
 0x51a   : > { %v3011_v27 = vmul.f32 1.442695, %v2953_v0  ;;  %11704 = vmatprep.subr.bf16.mxu1 %v16358_v20 }
 0x51b   : > { %v2914_v45 = vpop.xlane.xlu1 %2913 }
 0x51c   : > { %12588 = vpow2.f32 %v3011_v27  ;;  %v2954_v28 = vsub.f32 %v13909_v51, %v2914_v45  ;;  %v3606_v51 = vsel %vm3220_vm4, %v13765_v41, 0  ;;  %v3654_v41 = vsel %vm3220_vm4, %v13779_v29, 0 }
 0x51d   : > { %v3702_v45 = vsel %vm3220_vm4, %v13775_v8, 0 }
 0x51e   : > { %v3013_v30 = vmul.f32 1.442695, %v2954_v28 }
 0x51f   : > { %v2917_v34 = vpop.xlane.xlu0 %2916 }
 0x520   : > { %12590 = vpow2.f32 %v3013_v30  ;;  %v2955_v28 = vsub.f32 %v13913_v24, %v2917_v34  ;;  %v3942_v34 = vsel %vm3220_vm4, %v13797_v4, 0 }
 0x521   : > { %v14063_v5 = vpop.eup %12580 }
 0x522   : > { %v12583_v3 = vpop.eup %12582  ;;  %v3095_v48 = vsel %vm1265_vm3, %v14063_v5, 0.0  ;;  %v3015_v24 = vmul.f32 1.442695, %v2955_v28 }
 0x523   : > { %3096 = vadd.xlane.f32.xlu1 %v3095_v48  ;;  %v3157_v32 = vmul.f32 %v12583_v3, %v13893_v58  ;;  %v2920_v42 = vpop.xlane.xlu1 %2919 }
 0x525   : > { %v14068_v56 = vpop.eup %12584  ;;  %v3189_v22 = vpack.c.bf16 %v3157_v32, %v3157_v32 }
 0x526   : > { %v12587_v16 = vpop.eup %12586  ;;  %v3098_v50 = vsel %vm1265_vm3, %v14068_v56, 0.0 }
 0x527   : > { %11689 = vmatmul.mubr.msk.bf16.vlgmr.msra.gmra.mxu0 %vm1265_vm3, %v3189_v22  ;;  %3099 = vadd.xlane.f32.xlu0 %v3098_v50  ;;  %v3158_v59 = vmul.f32 %v12587_v16, %v13901_v60  ;;  %v2923_v36 = vpop.xlane.xlu1 %2922  ;;  %v3798_v16 = vsel %vm3220_vm4, %v13785_v13, 0 }
 0x528   : > { %11699 = vmatpush3.bf16.msra.mxu0 %v3606_v51  ;;  %11700 = vmatprep.mubr.msk.bf16.mxu0 %vm12904_vm2, %v16358_v20  ;;  %v2957_v3 = vsub.f32 %v13923_v37, %v2923_v36 }
 0x529   : > { %v14078_v58 = vpop.eup %12588  ;;  %v3190_v6 = vpack.c.bf16 %v3158_v59, %v3158_v59  ;;  %11710 = vmatprep.subr.bf16.mxu0 %v16358_v20 }
 0x52a   : > { %v3101_v62 = vsel %vm1265_vm3, %v14078_v58, 0.0 }
 0x52b   : > { %11695 = vmatmul.mubr.msk.bf16.vlgmr.msra.gmra.mxu1 %vm1265_vm3, %v3190_v6  ;;  %3102 = vadd.xlane.f32.xlu1 %v3101_v62 }
 0x52c   : > { %11705 = vmatpush3.bf16.msra.mxu1 %v3654_v41  ;;  %11706 = vmatprep.mubr.msk.bf16.mxu1 %vm12904_vm2, %v16358_v20  ;;  %v2926_v55 = vpop.xlane.xlu0 %2925 }
 0x52d   : > { %v14088_v60 = vpop.eup %12590  ;;  %11716 = vmatprep.subr.bf16.mxu1 %v16358_v20  ;;  %v2958_v37 = vsub.f32 %v13928_v49, %v2926_v55  ;;  %v3990_v55 = vsel %vm3220_vm4, %v13801_v7, 0 }
 0x52e   : > { %v3104_v44 = vsel %vm1265_vm3, %v14088_v60, 0.0 }
 0x52f   : > { %3105 = vadd.xlane.f32.xlu0 %v3104_v44  ;;  %v3021_v49 = vmul.f32 1.442695, %v2958_v37 }
 0x534   : > { %v3049_v29 = vpop.xlane.xlu0 %3048 }
 0x535   : > { %12592 = vrcp.f32 %v3049_v29 }
 0x537   : > { %v3052_v1 = vpop.xlane.xlu1 %3051 }
 0x538   : > { %12594 = vrcp.f32 %v3052_v1 }
 0x53b   : > { %v3055_v33 = vpop.xlane.xlu1 %3054 }
 0x53c   : > { %12596 = vrcp.f32 %v3055_v33  ;;  %4608 = vrot.lane.b32.xlu1 %v13523_v38, %s16300_s27  ;;  %v16359_v33 = vld [vmem:[#allocation10_spill] sm:$0xff] }
 0x53f   : > { %v3058_v63 = vpop.xlane.xlu0 %3057 }
 0x540   : > { %12598 = vrcp.f32 %v3058_v63 }
 0x542   : > { %v12593_v43 = vpop.eup %12592 }
 0x543   : > { %v3061_v23 = vpop.xlane.xlu1 %3060  ;;  %v3159_v2 = vmul.f32 %v12593_v43, %v13934_v15 }
 0x544   : > { %12600 = vrcp.f32 %v3061_v23 }
 0x545   : > { %v12595_v14 = vpop.eup %12594  ;;  %4560 = vrot.lane.b32.xlu0 %v13510_v52, %s16300_s27  ;;  %v3191_v0 = vpack.c.bf16 %v3159_v2, %v3159_v2  ;;  %v3750_v52 = vsel %vm3220_vm4, %v13789_v57, 0 }
 0x546   : > { %v3160_v27 = vmul.f32 %v12595_v14, %v13939_v25  ;;  %v2956_v25 = vsub.f32 %v13918_v54, %v2920_v42 }
 0x547   : > { %11701 = vmatmul.mubr.msk.bf16.vlgmr.msra.gmra.mxu0 %vm1265_vm3, %v3191_v0  ;;  %v3064_v38 = vpop.xlane.xlu0 %3063 }
 0x548   : > { %11711 = vmatpush3.bf16.msra.mxu0 %v3702_v45  ;;  %12602 = vrcp.f32 %v3064_v38  ;;  %v3192_v30 = vpack.c.bf16 %v3160_v27, %v3160_v27  ;;  %11712 = vmatprep.mubr.msk.bf16.mxu0 %vm12904_vm2, %v16358_v20  ;;  %v3017_v57 = vmul.f32 1.442695, %v2956_v25 }
 0x549   : > { %v12597_v15 = vpop.eup %12596  ;;  %11722 = vmatprep.subr.bf16.mxu0 %v16358_v20 }
 0x54a   : > { %11707 = vmatmul.mubr.msk.bf16.vlgmr.msra.gmra.mxu1 %vm1265_vm3, %v3192_v30  ;;  %v3161_v8 = vmul.f32 %v12597_v15, %v13944_v19  ;;  %v3019_v19 = vmul.f32 1.442695, %v2957_v3  ;;  %v16360_v30 = vld [vmem:[#allocation12_spill] sm:$0xff] }
 0x54b   : > { %11717 = vmatpush3.bf16.msra.mxu1 %v3750_v52  ;;  %v3067_v48 = vpop.xlane.xlu1 %3066  ;;  %11718 = vmatprep.mubr.msk.bf16.mxu1 %vm12904_vm2, %v16358_v20  ;;  %v4086_v15 = vsel %vm3220_vm4, %v16360_v30, 0 }
 0x54c   : > { %12604 = vrcp.f32 %v3067_v48  ;;  %v3193_v32 = vpack.c.bf16 %v3161_v8, %v3161_v8  ;;  %11728 = vmatprep.subr.bf16.mxu1 %v16358_v20  ;;  %v16361_v48 = vld [vmem:[#allocation11_spill] sm:$0xff] }
 0x54d   : > { %v12599_v22 = vpop.eup %12598  ;;  %12606 = vpow2.f32 %v3015_v24 }
 0x54e   : > { %v3162_v54 = vmul.f32 %v12599_v22, %v13948_v12  ;;  %v3846_v12 = vsel %vm3220_vm4, %v13833_v47, 0  ;;  %12608 = vpow2.f32 %v3017_v57  ;;  %v3894_v47 = vsel %vm3220_vm4, %v13793_v21, 0 }
 0x54f   : > { %11713 = vmatmul.mubr.msk.bf16.vlgmr.msra.gmra.mxu0 %vm1265_vm3, %v3193_v32  ;;  %12610 = vpow2.f32 %v3019_v19  ;;  %v4038_v32 = vsel %vm3220_vm4, %v16361_v48, 0 }
 0x550   : > { %11723 = vmatpush3.bf16.msra.mxu0 %v3798_v16  ;;  %v3194_v50 = vpack.c.bf16 %v3162_v54, %v3162_v54  ;;  %11724 = vmatprep.mubr.msk.bf16.mxu0 %vm12904_vm2, %v16358_v20  ;;  %12612 = vpow2.f32 %v3021_v49  ;;  %v16364_v49 = vld [vmem:[#allocation16_spill] sm:$0xff] }
 0x551   : > { %v12601_v51 = vpop.eup %12600  ;;  %11734 = vmatprep.subr.bf16.mxu0 %v16358_v20 }
 0x552   : > { %11719 = vmatmul.mubr.msk.bf16.vlgmr.msra.gmra.mxu1 %vm1265_vm3, %v3194_v50  ;;  %v3163_v13 = vmul.f32 %v12601_v51, %v13952_v17  ;;  %v16363_v51 = vld [vmem:[#allocation13_spill] sm:$0xff] }
 0x553   : > { %11729 = vmatpush3.bf16.msra.mxu1 %v3846_v12  ;;  %11730 = vmatprep.mubr.msk.bf16.mxu1 %vm12904_vm2, %v16358_v20 }
 0x554   : > { %v3195_v59 = vpack.c.bf16 %v3163_v13, %v3163_v13  ;;  %11740 = vmatprep.subr.bf16.mxu1 %v16358_v20 }
 0x555   : > { %v12603_v6 = vpop.eup %12602 }
 0x556   : > { %v3164_v62 = vmul.f32 %v12603_v6, %v13956_v39 }
 0x557   : > { %11725 = vmatmul.mubr.msk.bf16.vlgmr.msra.gmra.mxu0 %vm1265_vm3, %v3195_v59  ;;  %v4278_v59 = vsel %vm3220_vm4, %v16364_v49, 0 }
 0x558   : > { %11735 = vmatpush3.bf16.msra.mxu0 %v3894_v47  ;;  %v3196_v17 = vpack.c.bf16 %v3164_v62, %v3164_v62  ;;  %11736 = vmatprep.mubr.msk.bf16.mxu0 %vm12904_vm2, %v16358_v20 }
 0x559   : > { %v12605_v41 = vpop.eup %12604  ;;  %11746 = vmatprep.subr.bf16.mxu0 %v16358_v20 }
 0x55a   : > { %11731 = vmatmul.mubr.msk.bf16.vlgmr.msra.gmra.mxu1 %vm1265_vm3, %v3196_v17  ;;  %v3165_v39 = vmul.f32 %v12605_v41, %v13960_v9  ;;  %v14143_v21 = vpop.eup %12606  ;;  %v16365_v17 = vld [vmem:[#allocation17_spill] sm:$0xff] }
 0x55b   : > { %11741 = vmatpush3.bf16.msra.mxu1 %v3942_v34  ;;  %11742 = vmatprep.mubr.msk.bf16.mxu1 %vm12904_vm2, %v16358_v20  ;;  %v14146_v44 = vpop.eup %12608  ;;  %v3107_v4 = vsel %vm1265_vm3, %v14143_v21, 0.0  ;;  %v4230_v41 = vsel %vm3220_vm4, %v16365_v17, 0 }
 0x55c   : > { %v3197_v42 = vpack.c.bf16 %v3165_v39, %v3165_v39  ;;  %11752 = vmatprep.subr.bf16.mxu1 %v16358_v20  ;;  %v14153_v9 = vpop.eup %12610  ;;  %v3110_v36 = vsel %vm1265_vm3, %v14146_v44, 0.0  ;;  %v16366_v39 = vld [vmem:[#allocation20_spill] sm:$0xff] }
 0x55d   : > { %v3113_v7 = vsel %vm1265_vm3, %v14153_v9, 0.0  ;;  %v14162_v29 = vpop.eup %12612 }
 0x55e   : > { %v3116_v1 = vsel %vm1265_vm3, %v14162_v29, 0.0 }
 0x55f   : > { %11737 = vmatmul.mubr.msk.bf16.vlgmr.msra.gmra.mxu0 %vm1265_vm3, %v3197_v42 }
 0x560   : > { %11747 = vmatpush3.bf16.msra.mxu0 %v3990_v55  ;;  %3108 = vadd.xlane.f32.xlu1 %v3107_v4 }
 0x561   : > { %11748 = vmatprep.mubr.msk.bf16.mxu0 %vm12904_vm2, %v16358_v20  ;;  %11758 = vmatprep.subr.bf16.mxu0 %v16358_v20 }
 0x564   : > { %3111 = vadd.xlane.f32.xlu0 %v3110_v36  ;;  %3114 = vadd.xlane.f32.xlu1 %v3113_v7  ;;  %v16367_v36 = vld [vmem:[#allocation15_spill] sm:$0xff] }
 0x568   : > { %3117 = vadd.xlane.f32.xlu0 %v3116_v1 }
 0x575   : > { %4704 = vrot.lane.b32.xlu1 %v13551_v46, %s16300_s27 }
 0x57e   : > { %4656 = vrot.lane.b32.xlu0 %v16359_v33, %s16300_s27  ;;  %s16390_s27 = smov 104  }
 0x580   : > { %v3073_v63 = vpop.xlane.xlu1 %3072 }
 0x581   : > { %12614 = vrcp.f32 %v3073_v63 }
 0x584   : > { %v3070_v43 = vpop.xlane.xlu0 %3069 }
 0x585   : > { %v3079_v23 = vpop.xlane.xlu1 %3078  ;;  %12616 = vrcp.f32 %v3070_v43  ;;  %v16368_v43 = vld [vmem:[#allocation18_spill] sm:$0xff] }
 0x586   : > { %12618 = vrcp.f32 %v3079_v23  ;;  %v4422_v23 = vsel %vm3220_vm4, %v16368_v43, 0 }
 0x588   : > { %v3076_v2 = vpop.xlane.xlu0 %3075 }
 0x589   : > { %12620 = vrcp.f32 %v3076_v2 }
 0x58c   : > { %v3082_v27 = vpop.xlane.xlu0 %3081 }
 0x58d   : > { %v3085_v14 = vpop.xlane.xlu1 %3084 }
 0x58e   : > { %v12615_v0 = vpop.eup %12614  ;;  %12622 = vrcp.f32 %v3085_v14 }
 0x58f   : > { %v3167_v45 = vmul.f32 %v12615_v0, %v13978_v11  ;;  %12624 = vrcp.f32 %v3082_v27 }
 0x591   : > { %v3199_v28 = vpack.c.bf16 %v3167_v45, %v3167_v45  ;;  %v16369_v45 = vld [vmem:[#allocation19_spill] sm:$0xff] }
 0x592   : > { %v12617_v46 = vpop.eup %12616 }
 0x593   : > { %v12619_v38 = vpop.eup %12618  ;;  %11749 = vmatmul.mubr.msk.bf16.vlgmr.msra.gmra.mxu0 %vm1265_vm3, %v3199_v28  ;;  %v3166_v52 = vmul.f32 %v12617_v46, %v13984_v10  ;;  %v4470_v28 = vsel %vm3220_vm4, %v16369_v45, 0 }
 0x594   : > { %11759 = vmatpush3.bf16.msra.mxu0 %v4086_v15  ;;  %11760 = vmatprep.mubr.msk.bf16.mxu0 %vm12904_vm2, %v16358_v20  ;;  %v3169_v11 = vmul.f32 %v12619_v38, %v13986_v40  ;;  %v3088_v3 = vpop.xlane.xlu0 %3087  ;;  %v16362_v40 = vld [vmem:[#allocation14_spill] sm:$0xff] }
 0x595   : > { %v3091_v25 = vpop.xlane.xlu1 %3090  ;;  %v3198_v8 = vpack.c.bf16 %v3166_v52, %v3166_v52  ;;  %11770 = vmatprep.subr.bf16.mxu0 %v16358_v20  ;;  %v4182_v54 = vsel %vm3220_vm4, %v16362_v40, 0  ;;  %v16370_v52 = vld [vmem:[#allocation21_spill] sm:$0xff] }
 0x596   : > { %v12621_v24 = vpop.eup %12620  ;;  %12626 = vrcp.f32 %v3091_v25  ;;  %v3201_v10 = vpack.c.bf16 %v3169_v11, %v3169_v11  ;;  %v4518_v25 = vsel %vm3220_vm4, %v16370_v52, 0 }
 0x597   : > { %11743 = vmatmul.mubr.msk.bf16.vlgmr.msra.gmra.mxu1 %vm1265_vm3, %v3198_v8  ;;  %12628 = vrcp.f32 %v3088_v3  ;;  %v3168_v22 = vmul.f32 %v12621_v24, %v13993_v31  ;;  %v4134_v31 = vsel %vm3220_vm4, %v16363_v51, 0 }
 0x598   : > { %11753 = vmatpush3.bf16.msra.mxu1 %v4038_v32  ;;  %11754 = vmatprep.mubr.msk.bf16.mxu1 %vm12904_vm2, %v16358_v20 }
 0x599   : > { %11764 = vmatprep.subr.bf16.mxu1 %v16358_v20  ;;  %v3200_v19 = vpack.c.bf16 %v3168_v22, %v3168_v22 }
 0x59b   : > { %v12623_v57 = vpop.eup %12622  ;;  %11761 = vmatmul.mubr.msk.bf16.vlgmr.msra.gmra.mxu0 %vm1265_vm3, %v3201_v10 }
 0x59c   : > { %11771 = vmatpush3.bf16.msra.mxu0 %v4182_v54  ;;  %11772 = vmatprep.mubr.msk.bf16.mxu0 %vm12904_vm2, %v16358_v20  ;;  %v3171_v16 = vmul.f32 %v12623_v57, %v14005_v18  ;;  %v12625_v37 = vpop.eup %12624  ;;  %v3094_v50 = vpop.xlane.xlu0 %3093 }
 0x59d   : > { %11782 = vmatprep.subr.bf16.mxu0 %v16358_v20  ;;  %12630 = vrcp.f32 %v3094_v50  ;;  %v3170_v18 = vmul.f32 %v12625_v37, %v14001_v53 }
 0x59e   : > { %v3203_v12 = vpack.c.bf16 %v3171_v16, %v3171_v16 }
 0x59f   : > { %11755 = vmatmul.mubr.msk.bf16.vlgmr.msra.gmra.mxu1 %vm1265_vm3, %v3200_v19  ;;  %v3202_v62 = vpack.c.bf16 %v3170_v18, %v3170_v18 }
 0x5a0   : > { %11765 = vmatpush3.bf16.msra.mxu1 %v4134_v31  ;;  %11766 = vmatprep.mubr.msk.bf16.mxu1 %vm12904_vm2, %v16358_v20 }
 0x5a1   : > { %11776 = vmatprep.subr.bf16.mxu1 %v16358_v20 }
 0x5a3   : > { %v12627_v13 = vpop.eup %12626  ;;  %11773 = vmatmul.mubr.msk.bf16.vlgmr.msra.gmra.mxu0 %vm1265_vm3, %v3203_v12 }
 0x5a4   : > { %11783 = vmatpush3.bf16.msra.mxu0 %v4278_v59  ;;  %11784 = vmatprep.mubr.msk.bf16.mxu0 %vm12904_vm2, %v16358_v20  ;;  %v3173_v6 = vmul.f32 %v12627_v13, %v14022_v61  ;;  %v12629_v47 = vpop.eup %12628  ;;  %v4374_v61 = vsel %vm3220_vm4, %v16366_v39, 0 }
 0x5a5   : > { %11794 = vmatprep.subr.bf16.mxu0 %v16358_v20  ;;  %v3172_v34 = vmul.f32 %v12629_v47, %v14017_v35  ;;  %v4326_v35 = vsel %vm3220_vm4, %v16367_v36, 0 }
 0x5a6   : > { %v3205_v53 = vpack.c.bf16 %v3173_v6, %v3173_v6 }
 0x5a7   : > { %11767 = vmatmul.mubr.msk.bf16.vlgmr.msra.gmra.mxu1 %vm1265_vm3, %v3202_v62  ;;  %v3204_v55 = vpack.c.bf16 %v3172_v34, %v3172_v34 }
 0x5a8   : > { %11777 = vmatpush3.bf16.msra.mxu1 %v4230_v41  ;;  %11778 = vmatprep.mubr.msk.bf16.mxu1 %vm12904_vm2, %v16358_v20 }
 0x5a9   : > { %11788 = vmatprep.subr.bf16.mxu1 %v16358_v20 }
 0x5aa   : > { %v12631_v4 = vpop.eup %12630 }
 0x5ab   : > { %11785 = vmatmul.mubr.msk.bf16.vlgmr.msra.gmra.mxu0 %vm1265_vm3, %v3205_v53  ;;  %v3174_v1 = vmul.f32 %v12631_v4, %v14040_v26 }
 0x5ac   : > { %11795 = vmatpush3.bf16.msra.mxu0 %v4374_v61  ;;  %v3097_v42 = vpop.xlane.xlu1 %3096  ;;  %11796 = vmatprep.mubr.msk.bf16.mxu0 %vm12904_vm2, %v16358_v20 }
 0x5ad   : > { %12632 = vrcp.f32 %v3097_v42  ;;  %11806 = vmatprep.subr.bf16.mxu0 %v16358_v20  ;;  %v3206_v63 = vpack.c.bf16 %v3174_v1, %v3174_v1 }
 0x5af   : > { %11779 = vmatmul.mubr.msk.bf16.vlgmr.msra.gmra.mxu1 %vm1265_vm3, %v3204_v55 }
 0x5b0   : > { %11789 = vmatpush3.bf16.msra.mxu1 %v4326_v35  ;;  %v3100_v7 = vpop.xlane.xlu0 %3099  ;;  %11790 = vmatprep.mubr.msk.bf16.mxu1 %vm12904_vm2, %v16358_v20 }
 0x5b1   : > { %12634 = vrcp.f32 %v3100_v7  ;;  %11800 = vmatprep.subr.bf16.mxu1 %v16358_v20 }
 0x5b4   : > { %v3103_v33 = vpop.xlane.xlu1 %3102 }
 0x5b5   : > { %12636 = vrcp.f32 %v3103_v33 }
 0x5b7   : > { %11791 = vmatmul.mubr.msk.bf16.vlgmr.msra.gmra.mxu1 %vm1265_vm3, %v3206_v63 }
 0x5b8   : > { %11801 = vmatpush3.bf16.msra.mxu1 %v4422_v23  ;;  %v3106_v2 = vpop.xlane.xlu0 %3105  ;;  %11802 = vmatprep.mubr.msk.bf16.mxu1 %vm12904_vm2, %v16358_v20 }
 0x5b9   : > { %12638 = vrcp.f32 %v3106_v2  ;;  %11812 = vmatprep.subr.bf16.mxu1 %v16358_v20 }
 0x5ba   : > { %v12633_v26 = vpop.eup %12632 }
 0x5bb   : > { %v3175_v14 = vmul.f32 %v12633_v26, %v14063_v5 }
 0x5bd   : > { %v3207_v0 = vpack.c.bf16 %v3175_v14, %v3175_v14 }
 0x5be   : > { %v12635_v27 = vpop.eup %12634 }
 0x5bf   : > { %v3176_v46 = vmul.f32 %v12635_v27, %v14068_v56  ;;  %11797 = vmatmul.mubr.msk.bf16.vlgmr.msra.gmra.mxu0 %vm1265_vm3, %v3207_v0  ;;  %v4561_v56 = vpop.permute.xlu0 %4560 }
 0x5c0   : > { %v14238_v38 = vpop.f32.mrf.mxu0  ;;  %11807 = vmatpush3.bf16.msra.mxu0 %v4470_v28  ;;  %11808 = vmatprep.mubr.msk.bf16.mxu0 %vm12904_vm2, %v16358_v20  ;;  %v4566_v10 = vsel %vm3220_vm4, %v4561_v56, 0 }
 0x5c1   : > { %v3208_v30 = vpack.c.bf16 %v3176_v46, %v3176_v46  ;;  %11818 = vmatprep.subr.bf16.mxu0 %v16358_v20 }
 0x5c2   : > { %v12637_v15 = vpop.eup %12636  ;;  %v11654_v5 = vpop.f32.mrf.mxu0 }
 0x5c3   : > { %v3177_v8 = vmul.f32 %v12637_v15, %v14078_v58  ;;  %11803 = vmatmul.mubr.msk.bf16.vlgmr.msra.gmra.mxu1 %vm1265_vm3, %v3208_v30  ;;  %v4609_v58 = vpop.permute.xlu1 %4608 }
 0x5c4   : > { %v3261_v11 = vpop.f32.mrf.mxu0  ;;  %11813 = vmatpush3.bf16.msra.mxu1 %v4518_v25  ;;  %11814 = vmatprep.mubr.msk.bf16.mxu1 %vm12904_vm2, %v16358_v20  ;;  %v4614_v16 = vsel %vm3220_vm4, %v4609_v58, 0 }
 0x5c5   : > { %v3209_v24 = vpack.c.bf16 %v3177_v8, %v3177_v8  ;;  %11824 = vmatprep.subr.bf16.mxu1 %v16358_v20 }
 0x5c6   : > { %v12639_v3 = vpop.eup %12638  ;;  %v11655_v48 = vpop.f32.mrf.mxu0 }
 0x5c7   : > { %v3178_v32 = vmul.f32 %v12639_v3, %v14088_v60  ;;  %11809 = vmatmul.mubr.msk.bf16.vlgmr.msra.gmra.mxu0 %vm1265_vm3, %v3209_v24 }
 0x5c8   : > { %v14253_v22 = vpop.f32.mrf.mxu1  ;;  %11819 = vmatpush3.bf16.msra.mxu0 %v4566_v10  ;;  %11820 = vmatprep.mubr.msk.bf16.mxu0 %vm12904_vm2, %v16358_v20 }
 0x5c9   : > { %v3210_v57 = vpack.c.bf16 %v3178_v32, %v3178_v32  ;;  %v14257_v40 = vpop.f32.mrf.mxu0  ;;  %11830 = vmatprep.subr.bf16.mxu0 %v16358_v20 }
 0x5ca   : > { %v11660_v54 = vpop.f32.mrf.mxu1 }
 0x5cb   : > { %v11666_v60 = vpop.f32.mrf.mxu0  ;;  %11815 = vmatmul.mubr.msk.bf16.vlgmr.msra.gmra.mxu1 %vm1265_vm3, %v3210_v57 }
 0x5cc   : > { %v3309_v19 = vpop.f32.mrf.mxu1  ;;  %11825 = vmatpush3.bf16.msra.mxu1 %v4614_v16  ;;  %11826 = vmatprep.mubr.msk.bf16.mxu1 %vm12904_vm2, %v16358_v20 }
 0x5cd   : > { %v3357_v37 = vpop.f32.mrf.mxu0  ;;  %11836 = vmatprep.subr.bf16.mxu1 %v16358_v20 }
 0x5ce   : > { %v11661_v50 = vpop.f32.mrf.mxu1 }
 0x5cf   : > { %v11667_v51 = vpop.f32.mrf.mxu0 }
 0x5d0   : > { %v14265_v31 = vpop.f32.mrf.mxu1 }
 0x5d1   : > { %v14267_v12 = vpop.f32.mrf.mxu0 }
 0x5d2   : > { %v11672_v18 = vpop.f32.mrf.mxu1 }
 0x5d3   : > { %v11678_v13 = vpop.f32.mrf.mxu0 }
 0x5d4   : > { %v3405_v49 = vpop.f32.mrf.mxu1 }
 0x5d5   : > { %v3453_v59 = vpop.f32.mrf.mxu0 }
 0x5d6   : > { %v11673_v6 = vpop.f32.mrf.mxu1 }
 0x5d7   : > { %v11679_v62 = vpop.f32.mrf.mxu0 }
 0x5d8   : > { %v14269_v47 = vpop.f32.mrf.mxu1 }
 0x5da   : > { %v11684_v17 = vpop.f32.mrf.mxu1 }
 0x5dc   : > { %v3501_v41 = vpop.f32.mrf.mxu1 }
 0x5de   : > { %v11685_v53 = vpop.f32.mrf.mxu1 }
 0x5e7   : > { %v14271_v34 = vpop.f32.mrf.mxu0 }
 0x5e9   : > { %v11690_v39 = vpop.f32.mrf.mxu0  ;;  %v3109_v61 = vpop.xlane.xlu1 %3108 }
 0x5ea   : > { %12640 = vrcp.f32 %v3109_v61 }
 0x5eb   : > { %v3549_v42 = vpop.f32.mrf.mxu0  ;;  %v14273_v55 = vpop.f32.mrf.mxu1 }
 0x5ed   : > { %v11691_v4 = vpop.f32.mrf.mxu0  ;;  %v11696_v36 = vpop.f32.mrf.mxu1 }
 0x5ee   : > { %v3115_v35 = vpop.xlane.xlu1 %3114  ;;  %v3112_v7 = vpop.xlane.xlu0 %3111 }
 0x5ef   : > { %12642 = vrcp.f32 %v3115_v35  ;;  %v3597_v1 = vpop.f32.mrf.mxu1 }
 0x5f0   : > { %12644 = vrcp.f32 %v3112_v7 }
 0x5f1   : > { %v11697_v33 = vpop.f32.mrf.mxu1 }
 0x5f2   : > { %v3118_v63 = vpop.xlane.xlu0 %3117  ;;  %v4705_v46 = vpop.permute.xlu1 %4704 }
 0x5f3   : > { %12646 = vrcp.f32 %v3118_v63  ;;  %v4710_v5 = vsel %vm3220_vm4, %v4705_v46, 0 }
 0x5f6   : > { %v4657_v2 = vpop.permute.xlu0 %4656 }
 0x5f7   : > { %v12641_v43 = vpop.eup %12640  ;;  %v4662_v0 = vsel %vm3220_vm4, %v4657_v2, 0 }
 0x5f8   : > { %v3179_v23 = vmul.f32 %v12641_v43, %v14143_v21 }
 0x5fa   : > { %v3211_v26 = vpack.c.bf16 %v3179_v23, %v3179_v23 }
 0x5fc   : > { %v12643_v14 = vpop.eup %12642  ;;  %11821 = vmatmul.mubr.msk.bf16.vlgmr.msra.gmra.mxu0 %vm1265_vm3, %v3211_v26 }
 0x5fd   : > { %v12645_v27 = vpop.eup %12644  ;;  %11831 = vmatpush3.bf16.msra.mxu0 %v4662_v0  ;;  %11832 = vmatprep.mubr.msk.bf16.mxu0 %vm12904_vm2, %v16358_v20  ;;  %v3181_v45 = vmul.f32 %v12643_v14, %v14153_v9 }
 0x5fe   : > { %v3180_v28 = vmul.f32 %v12645_v27, %v14146_v44 }
 0x5ff   : > { %v3213_v21 = vpack.c.bf16 %v3181_v45, %v3181_v45 }
 0x600   : > { %v3212_v30 = vpack.c.bf16 %v3180_v28, %v3180_v28  ;;  %v12647_v15 = vpop.eup %12646 }
 0x601   : > { %v3182_v52 = vmul.f32 %v12647_v15, %v14162_v29 }
 0x602   : > { %11827 = vmatmul.mubr.msk.bf16.vlgmr.msra.gmra.mxu1 %vm1265_vm3, %v3212_v30 }
 0x603   : > { %11837 = vmatpush3.bf16.msra.mxu1 %v4710_v5  ;;  %11838 = vmatprep.mubr.msk.bf16.mxu1 %vm12904_vm2, %v16358_v20  ;;  %v3214_v9 = vpack.c.bf16 %v3182_v52, %v3182_v52 }
 0x604   : > { %11833 = vmatmul.mubr.msk.bf16.vlgmr.msra.gmra.mxu0 %vm1265_vm3, %v3213_v21 }
 0x607   : > { %v3642_v25 = vpop.f32.mrf.mxu0 }
 0x609   : > { %v11702_v8 = vpop.f32.mrf.mxu0 }
 0x60a   : > { %11839 = vmatmul.mubr.msk.bf16.vlgmr.msra.gmra.mxu1 %vm1265_vm3, %v3214_v9  ;;  %v3690_v44 = vpop.f32.mrf.mxu1 }
 0x60b   : > { %v3645_v56 = vpop.f32.mrf.mxu0  ;;  %v12363_v11 = vpack.i.bf16 %v3690_v44, %v3642_v25 }
 0x60c   : > { %v11708_v24 = vpop.f32.mrf.mxu1 }
 0x60d   : > { %v11703_v3 = vpop.f32.mrf.mxu0  ;;  %12364 = vrot.lane.b32.xlu0 %v12363_v11, %s12909_s0 }
 0x60e   : > { %v3693_v48 = vpop.f32.mrf.mxu1 }
 0x60f   : > { %v3738_v32 = vpop.f32.mrf.mxu0 }
 0x610   : > { %v11709_v10 = vpop.f32.mrf.mxu1 }
 0x611   : > { %v11714_v58 = vpop.f32.mrf.mxu0 }
 0x612   : > { %v3786_v29 = vpop.f32.mrf.mxu1 }
 0x613   : > { %v3741_v57 = vpop.f32.mrf.mxu0  ;;  %v12368_v54 = vpack.i.bf16 %v3786_v29, %v3738_v32 }
 0x614   : > { %v11720_v16 = vpop.f32.mrf.mxu1 }
 0x615   : > { %v11715_v60 = vpop.f32.mrf.mxu0  ;;  %12369 = vrot.lane.b32.xlu1 %v12368_v54, %s12909_s0 }
 0x616   : > { %v3789_v19 = vpop.f32.mrf.mxu1  ;;  %v12486_v60 = vld [vmem:[%s16269_s7 + $0x8] sm:$0xff]  }
 0x617   : > { %v14291_v37 = vpop.f32.mrf.mxu0  ;;  %11842 = vmatprep.subr.bf16.mxu0 %v12486_v60 }
 0x618   : > { %v11721_v50 = vpop.f32.mrf.mxu1  ;;  %11843 = vmatpush3.bf16.msra.mxu0 %v12486_v60 }
 0x619   : > { %v11726_v51 = vpop.f32.mrf.mxu0 }
 0x61a   : > { %v14293_v18 = vpop.f32.mrf.mxu1 }
 0x61b   : > { %v3837_v13 = vpop.f32.mrf.mxu0  ;;  %v12393_v49 = vpack.i.bf16 %v14293_v18, %v14291_v37 }
 0x61c   : > { %v11732_v59 = vpop.f32.mrf.mxu1 }
 0x61d   : > { %v11727_v6 = vpop.f32.mrf.mxu0  ;;  %v12487_v59 = vld [vmem:[%s16269_s7] sm:$0xff]  }
 0x61e   : > { %v3885_v62 = vpop.f32.mrf.mxu1  ;;  %11844 = vmatprep.subr.bf16.mxu0 %v12487_v59 }
 0x61f   : > { %v14297_v17 = vpop.f32.mrf.mxu0  ;;  %11845 = vmatpush3.bf16.msra.mxu0 %v12487_v59 }
 0x620   : > { %v11733_v41 = vpop.f32.mrf.mxu1 }
 0x621   : > { %v11738_v53 = vpop.f32.mrf.mxu0 }
 0x623   : > { %v3933_v39 = vpop.f32.mrf.mxu0 }
 0x625   : > { %v11739_v61 = vpop.f32.mrf.mxu0 }
 0x653   : > { %v4026_v42 = vpop.f32.mrf.mxu0 }
 0x655   : > { %v11750_v4 = vpop.f32.mrf.mxu0 }
 0x657   : > { %v14299_v36 = vpop.f32.mrf.mxu1  ;;  %v4029_v35 = vpop.f32.mrf.mxu0 }
 0x659   : > { %v11744_v7 = vpop.f32.mrf.mxu1  ;;  %v11751_v1 = vpop.f32.mrf.mxu0 }
 0x65b   : > { %v3981_v33 = vpop.f32.mrf.mxu1  ;;  %v4122_v63 = vpop.f32.mrf.mxu0 }
 0x65d   : > { %v11745_v43 = vpop.f32.mrf.mxu1  ;;  %v11762_v23 = vpop.f32.mrf.mxu0 }
 0x65e   : > { %v12398_v43 = vpack.i.bf16 %v14299_v36, %v14297_v17 }
 0x65f   : > { %v4074_v2 = vpop.f32.mrf.mxu1  ;;  %v4125_v26 = vpop.f32.mrf.mxu0 }
 0x660   : > { %v12373_v14 = vpack.i.bf16 %v4074_v2, %v4026_v42 }
 0x661   : > { %v11756_v0 = vpop.f32.mrf.mxu1  ;;  %v11763_v27 = vpop.f32.mrf.mxu0 }
 0x662   : > { %12374 = vrot.lane.b32.xlu0 %v12373_v14, %s16312_s23 }
 0x663   : > { %v4077_v45 = vpop.f32.mrf.mxu1  ;;  %v4218_v28 = vpop.f32.mrf.mxu0 }
 0x665   : > { %v11757_v46 = vpop.f32.mrf.mxu1  ;;  %v11774_v30 = vpop.f32.mrf.mxu0 }
 0x667   : > { %v4170_v15 = vpop.f32.mrf.mxu1  ;;  %v4221_v21 = vpop.f32.mrf.mxu0 }
 0x668   : > { %v12378_v5 = vpack.i.bf16 %v4170_v15, %v4122_v63 }
 0x669   : > { %v11768_v52 = vpop.f32.mrf.mxu1  ;;  %v11775_v25 = vpop.f32.mrf.mxu0 }
 0x66a   : > { %12379 = vrot.lane.b32.xlu1 %v12378_v5, %s16312_s23 }
 0x66b   : > { %v4173_v9 = vpop.f32.mrf.mxu1  ;;  %v4314_v8 = vpop.f32.mrf.mxu0 }
 0x66d   : > { %v11769_v44 = vpop.f32.mrf.mxu1  ;;  %v11786_v56 = vpop.f32.mrf.mxu0 }
 0x66f   : > { %v4266_v11 = vpop.f32.mrf.mxu1  ;;  %v4317_v24 = vpop.f32.mrf.mxu0 }
 0x670   : > { %v12403_v4 = vpack.i.bf16 %v4266_v11, %v4218_v28 }
 0x671   : > { %v11780_v3 = vpop.f32.mrf.mxu1  ;;  %v11787_v48 = vpop.f32.mrf.mxu0 }
 0x673   : > { %v4269_v32 = vpop.f32.mrf.mxu1 }
 0x675   : > { %v11781_v10 = vpop.f32.mrf.mxu1 }
 0x677   : > { %v4362_v58 = vpop.f32.mrf.mxu1 }
 0x678   : > { %v12408_v2 = vpack.i.bf16 %v4362_v58, %v4314_v8 }
 0x679   : > { %v11792_v29 = vpop.f32.mrf.mxu1 }
 0x67b   : > { %v4365_v57 = vpop.f32.mrf.mxu1 }
 0x67d   : > { %v11793_v54 = vpop.f32.mrf.mxu1 }
 0x67f   : > { %v4410_v16 = vpop.f32.mrf.mxu0  ;;  %v12365_v9 = vpop.permute.xlu0 %12364 }
 0x680   : > { %v12367_v44 = vunpack.i.h.bf16 %v12365_v9  ;;  %v12366_v56 = vunpack.i.l.bf16 %v12365_v9 }
 0x681   : > { %v11798_v19 = vpop.f32.mrf.mxu0 }
 0x682   : > { %v4849_v32 = vsel %vm1265_vm3, %v14253_v22, %v12367_v44  ;;  %v4848_v10 = vsel %vm1265_vm3, %v14238_v38, %v12366_v56 }
 0x683   : > { %v4413_v50 = vpop.f32.mrf.mxu0  ;;  %v4458_v51 = vpop.f32.mrf.mxu1 }
 0x684   : > { %v12383_v13 = vpack.i.bf16 %v4458_v51, %v4410_v16 }
 0x685   : > { %v11799_v6 = vpop.f32.mrf.mxu0  ;;  %v11804_v62 = vpop.f32.mrf.mxu1 }
 0x686   : > { %12384 = vrot.lane.b32.xlu0 %v12383_v13, %s16310_s24 }
 0x687   : > { %v4506_v41 = vpop.f32.mrf.mxu0  ;;  %v4461_v53 = vpop.f32.mrf.mxu1 }
 0x688   : > { %v12370_v3 = vpop.permute.xlu1 %12369 }
 0x689   : > { %v11810_v39 = vpop.f32.mrf.mxu0  ;;  %v11805_v61 = vpop.f32.mrf.mxu1  ;;  %v12372_v51 = vunpack.i.h.bf16 %v12370_v3  ;;  %v12371_v13 = vunpack.i.l.bf16 %v12370_v3 }
 0x68a   : > { %12394 = vrot.lane.b32.xlu0 %v12393_v49, %s12909_s0 }
 0x68b   : > { %v4509_v42 = vpop.f32.mrf.mxu0  ;;  %v4554_v35 = vpop.f32.mrf.mxu1  ;;  %v4851_v38 = vsel %vm1265_vm3, %v14265_v31, %v12372_v51  ;;  %v4850_v62 = vsel %vm1265_vm3, %v14257_v40, %v12371_v13 }
 0x68c   : > { %v12388_v7 = vpack.i.bf16 %v4554_v35, %v4506_v41 }
 0x68d   : > { %v11811_v1 = vpop.f32.mrf.mxu0  ;;  %v11816_v33 = vpop.f32.mrf.mxu1 }
 0x68e   : > { %12404 = vrot.lane.b32.xlu0 %v12403_v4, %s16312_s23  ;;  %12389 = vrot.lane.b32.xlu1 %v12388_v7, %s16310_s24 }
 0x68f   : > { %v4557_v63 = vpop.f32.mrf.mxu1 }
 0x691   : > { %v11817_v23 = vpop.f32.mrf.mxu1 }
 0x692   : > { %12399 = vrot.lane.b32.xlu1 %v12398_v43, %s12909_s0 }
 0x696   : > { %12409 = vrot.lane.b32.xlu1 %v12408_v2, %s16312_s23  ;;  %s16388_s23 = smov 96  }
 0x6bc   : > { %v4602_v37 = vpop.f32.mrf.mxu0 }
 0x6be   : > { %v11822_v18 = vpop.f32.mrf.mxu0 }
 0x6c0   : > { %v4605_v49 = vpop.f32.mrf.mxu0 }
 0x6c2   : > { %v4650_v26 = vpop.f32.mrf.mxu1  ;;  %v11823_v14 = vpop.f32.mrf.mxu0 }
 0x6c3   : > { %v12413_v0 = vpack.i.bf16 %v4650_v26, %v4602_v37 }
 0x6c4   : > { %v11828_v27 = vpop.f32.mrf.mxu1  ;;  %v4698_v45 = vpop.f32.mrf.mxu0 }
 0x6c5   : > { %12414 = vrot.lane.b32.xlu0 %v12413_v0, %s16310_s24 }
 0x6c6   : > { %v4653_v28 = vpop.f32.mrf.mxu1  ;;  %v11834_v46 = vpop.f32.mrf.mxu0 }
 0x6c8   : > { %v11829_v30 = vpop.f32.mrf.mxu1  ;;  %v4701_v17 = vpop.f32.mrf.mxu0 }
 0x6ca   : > { %v4746_v36 = vpop.f32.mrf.mxu1  ;;  %v11835_v15 = vpop.f32.mrf.mxu0 }
 0x6cb   : > { %v12418_v21 = vpack.i.bf16 %v4746_v36, %v4698_v45 }
 0x6cc   : > { %v11840_v5 = vpop.f32.mrf.mxu1 }
 0x6cd   : > { %12419 = vrot.lane.b32.xlu1 %v12418_v21, %s16310_s24  ;;  %s16387_s24 = smov 120  }
 0x6ce   : > { %v4749_v52 = vpop.f32.mrf.mxu1 }
 0x6d0   : > { %v11841_v25 = vpop.f32.mrf.mxu1 }
 0x6d4   : > { %v12375_v8 = vpop.permute.xlu0 %12374 }
 0x6d5   : > { %v12377_v11 = vunpack.i.h.bf16 %v12375_v8  ;;  %v12376_v24 = vunpack.i.l.bf16 %v12375_v8 }
 0x6d7   : > { %v4856_v57 = vsel %vm752_vm0, %v4848_v10, %v12376_v24  ;;  %v4857_v54 = vsel %vm752_vm0, %v4849_v32, %v12377_v11  ;;  %v16371_v24 = vld [vmem:[#allocation2_spill] sm:$0xff]  ;;  %v16372_v10 = vld [vmem:[#allocation3_spill] sm:$0xff] }
 0x6dc   : > { %v12380_v19 = vpop.permute.xlu1 %12379 }
 0x6dd   : > { %v12382_v22 = vunpack.i.h.bf16 %v12380_v19  ;;  %v12381_v59 = vunpack.i.l.bf16 %v12380_v19 }
 0x6df   : > { %v4859_v39 = vsel %vm752_vm0, %v4851_v38, %v12382_v22  ;;  %v4858_v61 = vsel %vm752_vm0, %v4850_v62, %v12381_v59 }
 0x6f8   : > { %v12385_v48 = vpop.permute.xlu0 %12384 }
 0x6f9   : > { %v12387_v58 = vunpack.i.h.bf16 %v12385_v48  ;;  %v12386_v29 = vunpack.i.l.bf16 %v12385_v48 }
 0x6fb   : > { %v4865_v16 = vsel %vm4864_vm5, %v4856_v57, %v12386_v29  ;;  %v4866_v60 = vsel %vm4864_vm5, %v4857_v54, %v12387_v58 }
 0x6fc   : > { %v4873_v50 = vpack.c.bf16 %v4866_v60, %v4865_v16  ;;  %v12395_v7 = vpop.permute.xlu0 %12394  ;;  %v16373_v60 = vld [vmem:[#allocation4_spill] sm:$0xff] }
 0x6fd   : > { %v12397_v33 = vunpack.i.h.bf16 %v12395_v7  ;;  %v12396_v31 = vunpack.i.l.bf16 %v12395_v7 }
 0x6fe   : > { %11846 = vmatprep.mubr.msk.bf16.mxu0 %vm832_vm1, %v4873_v50  ;;  %v16374_v50 = vld [vmem:[#allocation5_spill] sm:$0xff] }
 0x6ff   : > { %v4853_v2 = vsel %vm1265_vm3, %v14269_v47, %v12397_v33  ;;  %v4852_v37 = vsel %vm1265_vm3, %v14267_v12, %v12396_v31  ;;  %v16375_v31 = vld [vmem:[#allocation7_spill] sm:$0xff] }
 0x700   : > { %v12390_v6 = vpop.permute.xlu1 %12389  ;;  %v12405_v1 = vpop.permute.xlu0 %12404 }
 0x701   : > { %v12392_v41 = vunpack.i.h.bf16 %v12390_v6  ;;  %v12391_v53 = vunpack.i.l.bf16 %v12390_v6  ;;  %v12407_v43 = vunpack.i.h.bf16 %v12405_v1  ;;  %v12406_v40 = vunpack.i.l.bf16 %v12405_v1 }
 0x703   : > { %v4868_v42 = vsel %vm4864_vm5, %v4859_v39, %v12392_v41  ;;  %v4867_v4 = vsel %vm4864_vm5, %v4858_v61, %v12391_v53  ;;  %v4860_v26 = vsel %vm752_vm0, %v4852_v37, %v12406_v40  ;;  %v4861_v14 = vsel %vm752_vm0, %v4853_v2, %v12407_v43 }
 0x704   : > { %v4874_v35 = vpack.c.bf16 %v4868_v42, %v4867_v4  ;;  %v12400_v63 = vpop.permute.xlu1 %12399  ;;  %v12488_v4 = vld [vmem:[%s16273_s11 + $0x8] sm:$0xff]  }
 0x705   : > { %v12402_v46 = vunpack.i.h.bf16 %v12400_v63  ;;  %v12401_v30 = vunpack.i.l.bf16 %v12400_v63  ;;  %11854 = vmatprep.subr.bf16.mxu1 %v12488_v4 }
 0x706   : > { %11847 = vmatmul.mubr.msk.bf16.vlgmr.msra.gmra.mxu0 %vm832_vm1, %v4874_v35  ;;  %v12489_v35 = vld [vmem:[%s16273_s11] sm:$0xff]   ;;  %11855 = vmatpush3.bf16.msra.mxu1 %v12488_v4 }
 0x707   : > { %v4855_v12 = vsel %vm1265_vm3, %v14273_v55, %v12402_v46  ;;  %v4854_v15 = vsel %vm1265_vm3, %v14271_v34, %v12401_v30  ;;  %v10965_v55 = vld [vmem:[%s16270_s8] ss:$0 sm:$0xff]  ;;  %11856 = vmatprep.subr.bf16.mxu1 %v12489_v35 }
 0x708   : > { %v12410_v0 = vpop.permute.xlu1 %12409 }
 0x709   : > { %v12412_v17 = vunpack.i.h.bf16 %v12410_v0  ;;  %v12411_v36 = vunpack.i.l.bf16 %v12410_v0 }
 0x70a   : > { %11857 = vmatpush3.bf16.msra.mxu1 %v12489_v35  ;;  %v14435_v35 = vld [vmem:[%s16271_s9] ss:$0 sm:$0xff] }
 0x70b   : > { %v4862_v52 = vsel %vm752_vm0, %v4854_v15, %v12411_v36  ;;  %v4863_v25 = vsel %vm752_vm0, %v4855_v12, %v12412_v17 }
 0x737   : > { %v12415_v23 = vpop.permute.xlu0 %12414 }
 0x738   : > { %v12417_v18 = vunpack.i.h.bf16 %v12415_v23  ;;  %v12416_v49 = vunpack.i.l.bf16 %v12415_v23  ;;  %v16376_v23 = vld [vmem:[#allocation9_spill] sm:$0xff] }
 0x73a   : > { %v4869_v27 = vsel %vm4864_vm5, %v4860_v26, %v12416_v49  ;;  %v4870_v45 = vsel %vm4864_vm5, %v4861_v14, %v12417_v18  ;;  %v16377_v26 = vld [vmem:[#allocation6_spill] sm:$0xff] }
 0x73b   : > { %v4875_v28 = vpack.c.bf16 %v4870_v45, %v4869_v27  ;;  %v16378_v27 = vld [vmem:[#allocation8_spill] sm:$0xff] }
 0x73d   : > { %11850 = vmatprep.mubr.msk.bf16.mxu0 %vm832_vm1, %v4875_v28 }
 0x73f   : > { %v12420_v47 = vpop.permute.xlu1 %12419 }
 0x740   : > { %v12422_v21 = vunpack.i.h.bf16 %v12420_v47  ;;  %v12421_v5 = vunpack.i.l.bf16 %v12420_v47 }
 0x742   : > { %v4872_v9 = vsel %vm4864_vm5, %v4863_v25, %v12422_v21  ;;  %v4871_v8 = vsel %vm4864_vm5, %v4862_v52, %v12421_v5 }
 0x743   : > { %v4876_v44 = vpack.c.bf16 %v4872_v9, %v4871_v8 }
 0x745   : > { %11851 = vmatmul.mubr.msk.bf16.gmra.mxu0 %vm832_vm1, %v4876_v44 }
 0x7c6   : > { %v11848_v56 = vpop.f32.mrf.mxu0 }
 0x7c7   : > { %v4955_v11 = vadd.f32 %v11848_v56, %v10965_v55 }
 0x7c8   : > { %v4946_v34 = vpop.f32.mrf.mxu0 }
 0x7c9   : > { %v14362_v3 = vadd.f32 %v4955_v11, %v16371_v24  ;;  %v4947_v48 = vadd.f32 %v10965_v55, %v4946_v34 }
 0x7ca   : > { %v11849_v32 = vpop.f32.mrf.mxu0 }
 0x7cb   : > { %v14365_v58 = vadd.f32 %v4947_v48, %v16372_v10  ;;  %v4958_v29 = vadd.f32 %v11849_v32, %v10965_v55  ;;  %v4993_v57 = vsel %vm832_vm1, %v14362_v3, 0.0  ;;  %v5021_v39 = vmul.f32 %v14362_v3, %v14362_v3 }
 0x7cc   : > { %4994 = vadd.xlane.f32.xlu0 %v4993_v57  ;;  %v4949_v54 = vpop.f32.mrf.mxu0 }
 0x7cd   : > { %v4950_v16 = vadd.f32 %v10965_v55, %v4949_v54  ;;  %v14370_v19 = vadd.f32 %v4958_v29, %v16373_v60  ;;  %v4987_v13 = vsel %vm832_vm1, %v14365_v58, 0.0  ;;  %v5019_v38 = vmul.f32 %v14365_v58, %v14365_v58 }
 0x7ce   : > { %v5033_v42 = vsel %vm832_vm1, %v5021_v39, 0.0 }
 0x7cf   : > { %v14373_v51 = vadd.f32 %v4950_v16, %v16374_v50  ;;  %v4996_v6 = vsel %vm832_vm1, %v14370_v19, 0.0  ;;  %v5022_v41 = vmul.f32 %v14370_v19, %v14370_v19  ;;  %v5027_v53 = vsel %vm832_vm1, %v5019_v38, 0.0 }
 0x7d0   : > { %4988 = vadd.xlane.f32.xlu0 %v4987_v13 }
 0x7d1   : > { %v4990_v22 = vsel %vm832_vm1, %v14373_v51, 0.0  ;;  %v5020_v59 = vmul.f32 %v14373_v51, %v14373_v51  ;;  %v5036_v61 = vsel %vm832_vm1, %v5022_v41, 0.0 }
 0x7d2   : > { %4991 = vadd.xlane.f32.xlu1 %v4990_v22 }
 0x7d3   : > { %v5030_v62 = vsel %vm832_vm1, %v5020_v59, 0.0 }
 0x7d4   : > { %4997 = vadd.xlane.f32.xlu0 %v4996_v6 }
 0x7d6   : > { %5031 = vadd.xlane.f32.xlu1 %v5030_v62 }
 0x7d8   : > { %5028 = vadd.xlane.f32.xlu0 %v5027_v53 }
 0x7da   : > { %5037 = vadd.xlane.f32.xlu1 %v5036_v61 }
 0x7dc   : > { %5034 = vadd.xlane.f32.xlu0 %v5033_v42 }
 0x805   : > { %v11852_v7 = vpop.f32.mrf.mxu0 }
 0x806   : > { %v4971_v1 = vadd.f32 %v11852_v7, %v10965_v55 }
 0x807   : > { %v4962_v33 = vpop.f32.mrf.mxu0 }
 0x808   : > { %v14400_v63 = vadd.f32 %v4971_v1, %v16375_v31  ;;  %v4963_v43 = vadd.f32 %v10965_v55, %v4962_v33 }
 0x809   : > { %v11853_v40 = vpop.f32.mrf.mxu0 }
 0x80a   : > { %v14403_v2 = vadd.f32 %v4963_v43, %v16376_v23  ;;  %v4974_v37 = vadd.f32 %v11853_v40, %v10965_v55  ;;  %v5005_v18 = vsel %vm832_vm1, %v14400_v63, 0.0  ;;  %v5025_v12 = vmul.f32 %v14400_v63, %v14400_v63 }
 0x80b   : > { %v4965_v49 = vpop.f32.mrf.mxu0  ;;  %5006 = vadd.xlane.f32.xlu0 %v5005_v18 }
 0x80c   : > { %v14408_v14 = vadd.f32 %v4974_v37, %v16377_v26  ;;  %v4966_v0 = vadd.f32 %v10965_v55, %v4965_v49  ;;  %v4999_v46 = vsel %vm832_vm1, %v14403_v2, 0.0  ;;  %v5023_v30 = vmul.f32 %v14403_v2, %v14403_v2  ;;  %v14443_v37 = vld [vmem:[%s16272_s10] ss:$0 sm:$0xff] }
 0x80d   : > { %v5045_v21 = vsel %vm832_vm1, %v5025_v12, 0.0 }
 0x80e   : > { %v14411_v45 = vadd.f32 %v4966_v0, %v16378_v27  ;;  %v5008_v28 = vsel %vm832_vm1, %v14408_v14, 0.0  ;;  %v5039_v36 = vsel %vm832_vm1, %v5023_v30, 0.0  ;;  %v5026_v5 = vmul.f32 %v14408_v14, %v14408_v14 }
 0x80f   : > { %5009 = vadd.xlane.f32.xlu1 %v5008_v28  ;;  %5000 = vadd.xlane.f32.xlu0 %v4999_v46 }
 0x810   : > { %v5002_v17 = vsel %vm832_vm1, %v14411_v45, 0.0  ;;  %v5024_v47 = vmul.f32 %v14411_v45, %v14411_v45  ;;  %v5048_v52 = vsel %vm832_vm1, %v5026_v5, 0.0 }
 0x812   : > { %v5042_v15 = vsel %vm832_vm1, %v5024_v47, 0.0 }
 0x813   : > { %5003 = vadd.xlane.f32.xlu1 %v5002_v17  ;;  %5040 = vadd.xlane.f32.xlu0 %v5039_v36 }
 0x817   : > { %5043 = vadd.xlane.f32.xlu1 %v5042_v15  ;;  %5046 = vadd.xlane.f32.xlu0 %v5045_v21 }
 0x81b   : > { %5049 = vadd.xlane.f32.xlu1 %v5048_v52 }
 0x855   : > { %v4995_v25 = vpop.xlane.xlu0 %4994 }
 0x856   : > { %v5013_v32 = vmul.f32 0.03125, %v4995_v25 }
 0x858   : > { %v5061_v59 = vmul.f32 %v5013_v32, %v5013_v32  ;;  %v5077_v18 = vsub.f32 %v14362_v3, %v5013_v32 }
 0x859   : > { %v4989_v9 = vpop.xlane.xlu0 %4988 }
 0x85a   : > { %v5011_v56 = vmul.f32 0.03125, %v4989_v9 }
 0x85b   : > { %v4992_v8 = vpop.xlane.xlu1 %4991 }
 0x85c   : > { %v5012_v44 = vmul.f32 0.03125, %v4992_v8  ;;  %v5059_v29 = vmul.f32 %v5011_v56, %v5011_v56  ;;  %v5075_v7 = vsub.f32 %v14365_v58, %v5011_v56 }
 0x85d   : > { %v4998_v55 = vpop.xlane.xlu0 %4997 }
 0x85e   : > { %v5060_v34 = vmul.f32 %v5012_v44, %v5012_v44  ;;  %v5014_v24 = vmul.f32 0.03125, %v4998_v55  ;;  %v5076_v42 = vsub.f32 %v14373_v51, %v5012_v44 }
 0x85f   : > { %v5032_v11 = vpop.xlane.xlu1 %5031 }
 0x860   : > { %v5052_v48 = vmul.f32 0.03125, %v5032_v11  ;;  %v5062_v60 = vmul.f32 %v5014_v24, %v5014_v24  ;;  %v5078_v31 = vsub.f32 %v14370_v19, %v5014_v24 }
 0x861   : > { %v5029_v10 = vpop.xlane.xlu0 %5028 }
 0x862   : > { %v5068_v57 = vsub.f32 %v5052_v48, %v5060_v34  ;;  %v5051_v54 = vmul.f32 0.03125, %v5029_v10 }
 0x863   : > { %v5038_v16 = vpop.xlane.xlu1 %5037 }
 0x864   : > { %v5084_v50 = vadd.f32 1e-05, %v5068_v57  ;;  %v5067_v13 = vsub.f32 %v5051_v54, %v5059_v29  ;;  %v5054_v22 = vmul.f32 0.03125, %v5038_v16 }
 0x865   : > { %v5035_v6 = vpop.xlane.xlu0 %5034 }
 0x866   : > { %12648 = vrsqrt.f32 %v5084_v50  ;;  %v5083_v38 = vadd.f32 1e-05, %v5067_v13  ;;  %v5070_v62 = vsub.f32 %v5054_v22, %v5062_v60  ;;  %v5053_v41 = vmul.f32 0.03125, %v5035_v6 }
 0x868   : > { %12650 = vrsqrt.f32 %v5083_v38  ;;  %v5086_v53 = vadd.f32 1e-05, %v5070_v62  ;;  %v5069_v39 = vsub.f32 %v5053_v41, %v5061_v59 }
 0x86a   : > { %12652 = vrsqrt.f32 %v5086_v53  ;;  %v5085_v61 = vadd.f32 1e-05, %v5069_v39 }
 0x86c   : > { %12654 = vrsqrt.f32 %v5085_v61 }
 0x873   : > { %v12649_v4 = vpop.eup %12648 }
 0x874   : > { %v5100_v1 = vmul.f32 %v12649_v4, %v5076_v42 }
 0x875   : > { %v12651_v33 = vpop.eup %12650 }
 0x876   : > { %v5099_v43 = vmul.f32 %v12651_v33, %v5075_v7  ;;  %v5114_v40 = vmul.f32 %v14435_v35, %v5100_v1 }
 0x877   : > { %v12653_v23 = vpop.eup %12652 }
 0x878   : > { %v5102_v49 = vmul.f32 %v12653_v23, %v5078_v31  ;;  %v5113_v26 = vmul.f32 %v14435_v35, %v5099_v43  ;;  %v5128_v30 = vadd.f32 %v14443_v37, %v5114_v40 }
 0x879   : > { %v12655_v0 = vpop.eup %12654 }
 0x87a   : > { %v5116_v27 = vmul.f32 %v14435_v35, %v5102_v49  ;;  %v5101_v28 = vmul.f32 %v12655_v0, %v5077_v18  ;;  %v5127_v46 = vadd.f32 %v14443_v37, %v5113_v26 }
 0x87c   : > { %v5115_v17 = vmul.f32 %v14435_v35, %v5101_v28  ;;  %v5135_v36 = vpack.c.bf16 %v5128_v30, %v5127_v46  ;;  %v5130_v12 = vadd.f32 %v14443_v37, %v5116_v27 }
 0x87e   : > { %11858 = vmatprep.mubr.msk.bf16.mxu1 %vm832_vm1, %v5135_v36  ;;  %v5129_v47 = vadd.f32 %v14443_v37, %v5115_v17 }
 0x880   : > { %v5136_v15 = vpack.c.bf16 %v5130_v12, %v5129_v47  ;;  %v12490_v47 = vld [vmem:[%s16275_s13 + $0x8] sm:$0xff]   ;;  %v12491_v12 = vld [vmem:[%s16275_s13] sm:$0xff]  }
 0x881   : > { %11866 = vmatprep.subr.bf16.mxu0 %v12490_v47 }
 0x882   : > { %11859 = vmatmul.mubr.msk.bf16.vlgmr.msra.gmra.mxu1 %vm832_vm1, %v5136_v15  ;;  %11867 = vmatpush3.bf16.msra.mxu0 %v12490_v47 }
 0x883   : > { %11868 = vmatprep.subr.bf16.mxu0 %v12491_v12 }
 0x886   : > { %11869 = vmatpush3.bf16.msra.mxu0 %v12491_v12 }
 0x887   : > { %11890 = vmatprep.subr.bf16.mxu0 %v16358_v20 }
 0x894   : > { %v5007_v21 = vpop.xlane.xlu0 %5006 }
 0x895   : > { %v5017_v9 = vmul.f32 0.03125, %v5007_v21 }
 0x897   : > { %v5065_v24 = vmul.f32 %v5017_v9, %v5017_v9  ;;  %v5081_v7 = vsub.f32 %v14400_v63, %v5017_v9 }
 0x898   : > { %v5010_v5 = vpop.xlane.xlu1 %5009  ;;  %v5001_v52 = vpop.xlane.xlu0 %5000 }
 0x899   : > { %v5015_v25 = vmul.f32 0.03125, %v5001_v52  ;;  %v5018_v48 = vmul.f32 0.03125, %v5010_v5 }
 0x89b   : > { %v5063_v55 = vmul.f32 %v5015_v25, %v5015_v25  ;;  %v5066_v22 = vmul.f32 %v5018_v48, %v5018_v48  ;;  %v5079_v53 = vsub.f32 %v14403_v2, %v5015_v25  ;;  %v5082_v40 = vsub.f32 %v14408_v14, %v5018_v48 }
 0x89c   : > { %v5004_v8 = vpop.xlane.xlu1 %5003  ;;  %v5041_v44 = vpop.xlane.xlu0 %5040 }
 0x89d   : > { %v5016_v56 = vmul.f32 0.03125, %v5004_v8  ;;  %v5055_v11 = vmul.f32 0.03125, %v5041_v44 }
 0x89f   : > { %v5071_v34 = vsub.f32 %v5055_v11, %v5063_v55  ;;  %v5064_v29 = vmul.f32 %v5016_v56, %v5016_v56  ;;  %v5080_v42 = vsub.f32 %v14411_v45, %v5016_v56 }
 0x8a0   : > { %v5044_v32 = vpop.xlane.xlu1 %5043  ;;  %v5047_v10 = vpop.xlane.xlu0 %5046 }
 0x8a1   : > { %v5087_v57 = vadd.f32 1e-05, %v5071_v34  ;;  %v5056_v54 = vmul.f32 0.03125, %v5044_v32  ;;  %v5057_v16 = vmul.f32 0.03125, %v5047_v10 }
 0x8a3   : > { %12656 = vrsqrt.f32 %v5087_v57  ;;  %v5072_v60 = vsub.f32 %v5056_v54, %v5064_v29  ;;  %v5073_v50 = vsub.f32 %v5057_v16, %v5065_v24 }
 0x8a4   : > { %v5050_v13 = vpop.xlane.xlu1 %5049 }
 0x8a5   : > { %v5088_v59 = vadd.f32 1e-05, %v5072_v60  ;;  %v5089_v6 = vadd.f32 1e-05, %v5073_v50  ;;  %v5058_v38 = vmul.f32 0.03125, %v5050_v13 }
 0x8a7   : > { %12658 = vrsqrt.f32 %v5088_v59  ;;  %v5074_v62 = vsub.f32 %v5058_v38, %v5066_v22 }
 0x8a8   : > { %12660 = vrsqrt.f32 %v5089_v6 }
 0x8a9   : > { %v5090_v41 = vadd.f32 1e-05, %v5074_v62 }
 0x8ab   : > { %12662 = vrsqrt.f32 %v5090_v41 }
 0x8b0   : > { %v12657_v39 = vpop.eup %12656 }
 0x8b1   : > { %v5103_v61 = vmul.f32 %v12657_v39, %v5079_v53 }
 0x8b3   : > { %v5117_v31 = vmul.f32 %v14435_v35, %v5103_v61 }
 0x8b4   : > { %v12659_v4 = vpop.eup %12658 }
 0x8b5   : > { %v12661_v1 = vpop.eup %12660  ;;  %v5104_v33 = vmul.f32 %v12659_v4, %v5080_v42  ;;  %v5131_v49 = vadd.f32 %v14443_v37, %v5117_v31 }
 0x8b6   : > { %v5105_v43 = vmul.f32 %v12661_v1, %v5081_v7 }
 0x8b7   : > { %v5118_v23 = vmul.f32 %v14435_v35, %v5104_v33 }
 0x8b8   : > { %v12663_v18 = vpop.eup %12662  ;;  %v5119_v27 = vmul.f32 %v14435_v35, %v5105_v43 }
 0x8b9   : > { %v5132_v26 = vadd.f32 %v14443_v37, %v5118_v23  ;;  %v5106_v0 = vmul.f32 %v12663_v18, %v5082_v40 }
 0x8ba   : > { %v5133_v30 = vadd.f32 %v14443_v37, %v5119_v27 }
 0x8bb   : > { %v5137_v28 = vpack.c.bf16 %v5132_v26, %v5131_v49  ;;  %v5120_v46 = vmul.f32 %v14435_v35, %v5106_v0  ;;  %v14479_v35 = vld [vmem:[%s16274_s12] ss:$0 sm:$0xff] }
 0x8bd   : > { %11862 = vmatprep.mubr.msk.bf16.mxu1 %vm832_vm1, %v5137_v28  ;;  %v5134_v17 = vadd.f32 %v14443_v37, %v5120_v46 }
 0x8bf   : > { %v5138_v36 = vpack.c.bf16 %v5134_v17, %v5133_v30 }
 0x8c1   : > { %11863 = vmatmul.mubr.msk.bf16.gmra.mxu1 %vm832_vm1, %v5138_v36 }
 0x942   : > { %v11860_v37 = vpop.f32.mrf.mxu1 }
 0x943   : > { %v5217_v15 = vadd.f32 %v11860_v37, %v14479_v35 }
 0x944   : > { %v5208_v21 = vpop.f32.mrf.mxu1 }
 0x945   : > { %v5241_v5 = vmul.f32 %v5217_v15, %v5217_v15  ;;  %v5209_v52 = vadd.f32 %v14479_v35, %v5208_v21 }
 0x946   : > { %v11861_v25 = vpop.f32.mrf.mxu1 }
 0x947   : > { %v5249_v9 = vmul.f32 %v5241_v5, %v5217_v15  ;;  %v5239_v8 = vmul.f32 %v5209_v52, %v5209_v52  ;;  %v5220_v44 = vadd.f32 %v11861_v25, %v14479_v35 }
 0x948   : > { %v5211_v55 = vpop.f32.mrf.mxu1 }
 0x949   : > { %v5257_v56 = vmul.f32 0.044715, %v5249_v9  ;;  %v5247_v11 = vmul.f32 %v5239_v8, %v5209_v52  ;;  %v5242_v34 = vmul.f32 %v5220_v44, %v5220_v44  ;;  %v5212_v24 = vadd.f32 %v14479_v35, %v5211_v55 }
 0x94b   : > { %v5265_v48 = vadd.f32 %v5257_v56, %v5217_v15  ;;  %v5255_v32 = vmul.f32 0.044715, %v5247_v11  ;;  %v5250_v10 = vmul.f32 %v5242_v34, %v5220_v44  ;;  %v5240_v29 = vmul.f32 %v5212_v24, %v5212_v24 }
 0x94d   : > { %v5273_v57 = vmul.f32 0.7978846, %v5265_v48  ;;  %v5263_v54 = vadd.f32 %v5255_v32, %v5209_v52  ;;  %v5258_v16 = vmul.f32 0.044715, %v5250_v10  ;;  %v5248_v60 = vmul.f32 %v5240_v29, %v5212_v24 }
 0x94f   : > { %v5271_v50 = vmul.f32 0.7978846, %v5263_v54  ;;  %v5266_v13 = vadd.f32 %v5258_v16, %v5220_v44  ;;  %v5256_v22 = vmul.f32 0.044715, %v5248_v60  ;;  %12664 = vtanh.f32 %v5273_v57 }
 0x951   : > { %12666 = vtanh.f32 %v5271_v50  ;;  %v5274_v59 = vmul.f32 0.7978846, %v5266_v13  ;;  %v5264_v6 = vadd.f32 %v5256_v22, %v5212_v24 }
 0x953   : > { %12668 = vtanh.f32 %v5274_v59  ;;  %v5272_v38 = vmul.f32 0.7978846, %v5264_v6 }
 0x955   : > { %12670 = vtanh.f32 %v5272_v38 }
 0x95c   : > { %v12665_v62 = vpop.eup %12664 }
 0x95d   : > { %v5289_v61 = vadd.f32 1.0, %v12665_v62 }
 0x95e   : > { %v12667_v41 = vpop.eup %12666 }
 0x95f   : > { %v5287_v53 = vadd.f32 1.0, %v12667_v41  ;;  %v5297_v31 = vmul.f32 0.5, %v5289_v61 }
 0x960   : > { %v12669_v39 = vpop.eup %12668 }
 0x961   : > { %v5290_v42 = vadd.f32 1.0, %v12669_v39  ;;  %v5295_v7 = vmul.f32 0.5, %v5287_v53  ;;  %v5305_v49 = vmul.f32 %v5297_v31, %v5217_v15 }
 0x962   : > { %v12671_v4 = vpop.eup %12670 }
 0x963   : > { %v5298_v1 = vmul.f32 0.5, %v5290_v42  ;;  %v5288_v33 = vadd.f32 1.0, %v12671_v4  ;;  %v5303_v23 = vmul.f32 %v5295_v7, %v5209_v52 }
 0x965   : > { %v5296_v43 = vmul.f32 0.5, %v5288_v33  ;;  %v5306_v40 = vmul.f32 %v5298_v1, %v5220_v44  ;;  %v10981_v33 = vld [vmem:[%s16276_s14] ss:$0 sm:$0xff] }
 0x967   : > { %v5304_v18 = vmul.f32 %v5296_v43, %v5212_v24  ;;  %v5312_v0 = vpack.c.bf16 %v5306_v40, %v5305_v49 }
 0x969   : > { %v5311_v26 = vpack.c.bf16 %v5304_v18, %v5303_v23 }
 0x96b   : > { %11870 = vmatprep.mubr.msk.bf16.mxu0 %vm832_vm1, %v5311_v26 }
 0x96c   : > { %11871 = vmatmul.mubr.msk.bf16.vlgmr.msra.gmra.mxu0 %vm832_vm1, %v5312_v0 }
 0x981   : > { %v11864_v27 = vpop.f32.mrf.mxu1 }
 0x982   : > { %v5233_v28 = vadd.f32 %v11864_v27, %v14479_v35 }
 0x983   : > { %v5224_v46 = vpop.f32.mrf.mxu1 }
 0x984   : > { %v5245_v30 = vmul.f32 %v5233_v28, %v5233_v28  ;;  %v5225_v17 = vadd.f32 %v14479_v35, %v5224_v46 }
 0x985   : > { %v11865_v36 = vpop.f32.mrf.mxu1 }
 0x986   : > { %v5253_v47 = vmul.f32 %v5245_v30, %v5233_v28  ;;  %v5243_v12 = vmul.f32 %v5225_v17, %v5225_v17  ;;  %v5236_v37 = vadd.f32 %v11865_v36, %v14479_v35 }
 0x987   : > { %v5227_v21 = vpop.f32.mrf.mxu1 }
 0x988   : > { %v5261_v15 = vmul.f32 0.044715, %v5253_v47  ;;  %v5251_v5 = vmul.f32 %v5243_v12, %v5225_v17  ;;  %v5246_v52 = vmul.f32 %v5236_v37, %v5236_v37  ;;  %v5228_v25 = vadd.f32 %v14479_v35, %v5227_v21 }
 0x98a   : > { %v5269_v9 = vadd.f32 %v5261_v15, %v5233_v28  ;;  %v5259_v8 = vmul.f32 0.044715, %v5251_v5  ;;  %v5254_v44 = vmul.f32 %v5246_v52, %v5236_v37  ;;  %v5244_v55 = vmul.f32 %v5228_v25, %v5228_v25  ;;  %v12492_v52 = vld [vmem:[%s16342_s1 + $0x18] sm:$0xff]  }
 0x98b   : > { %11878 = vmatprep.subr.bf16.mxu1 %v12492_v52 }
 0x98c   : > { %v5277_v56 = vmul.f32 0.7978846, %v5269_v9  ;;  %v5267_v11 = vadd.f32 %v5259_v8, %v5225_v17  ;;  %v5262_v34 = vmul.f32 0.044715, %v5254_v44  ;;  %v5252_v24 = vmul.f32 %v5244_v55, %v5228_v25  ;;  %11879 = vmatpush3.bf16.msra.mxu1 %v12492_v52 }
 0x98e   : > { %v5275_v48 = vmul.f32 0.7978846, %v5267_v11  ;;  %v5270_v32 = vadd.f32 %v5262_v34, %v5236_v37  ;;  %v5260_v10 = vmul.f32 0.044715, %v5252_v24  ;;  %12672 = vtanh.f32 %v5277_v56 }
 0x990   : > { %12674 = vtanh.f32 %v5275_v48  ;;  %v5278_v29 = vmul.f32 0.7978846, %v5270_v32  ;;  %v5268_v57 = vadd.f32 %v5260_v10, %v5228_v25 }
 0x992   : > { %12676 = vtanh.f32 %v5278_v29  ;;  %v5276_v54 = vmul.f32 0.7978846, %v5268_v57 }
 0x994   : > { %12678 = vtanh.f32 %v5276_v54 }
 0x99b   : > { %v12673_v16 = vpop.eup %12672 }
 0x99c   : > { %v5293_v13 = vadd.f32 1.0, %v12673_v16 }
 0x99d   : > { %v12675_v35 = vpop.eup %12674 }
 0x99e   : > { %v5291_v60 = vadd.f32 1.0, %v12675_v35  ;;  %v5301_v41 = vmul.f32 0.5, %v5293_v13 }
 0x99f   : > { %v12677_v50 = vpop.eup %12676 }
 0x9a0   : > { %v5294_v22 = vadd.f32 1.0, %v12677_v50  ;;  %v5299_v6 = vmul.f32 0.5, %v5291_v60  ;;  %v5309_v4 = vmul.f32 %v5301_v41, %v5233_v28 }
 0x9a1   : > { %v12679_v59 = vpop.eup %12678 }
 0x9a2   : > { %v5302_v38 = vmul.f32 0.5, %v5294_v22  ;;  %v5292_v62 = vadd.f32 1.0, %v12679_v59  ;;  %v5307_v61 = vmul.f32 %v5299_v6, %v5225_v17 }
 0x9a4   : > { %v5300_v53 = vmul.f32 0.5, %v5292_v62  ;;  %v5310_v39 = vmul.f32 %v5302_v38, %v5236_v37 }
 0x9a6   : > { %v5308_v42 = vmul.f32 %v5300_v53, %v5228_v25  ;;  %v5314_v1 = vpack.c.bf16 %v5310_v39, %v5309_v4  ;;  %v12493_v25 = vld [vmem:[%s16342_s1 + $0x10] sm:$0xff]  }
 0x9a7   : > { %11880 = vmatprep.subr.bf16.mxu1 %v12493_v25 }
 0x9a8   : > { %v5313_v7 = vpack.c.bf16 %v5308_v42, %v5307_v61  ;;  %11881 = vmatpush3.bf16.msra.mxu1 %v12493_v25 }
 0x9a9   : > { %11896 = vmatprep.subr.bf16.mxu1 %v16358_v20 }
 0x9aa   : > { %11874 = vmatprep.mubr.msk.bf16.mxu0 %vm832_vm1, %v5313_v7 }
 0x9ab   : > { %11875 = vmatmul.mubr.msk.bf16.gmra.mxu0 %vm832_vm1, %v5314_v1 }
 0x9ac   : > { %11892 = vmatprep.mubr.msk.bf16.mxu0 %vm12904_vm2, %v16358_v20 }
 0xa2c   : > { %v11872_v31 = vpop.f32.mrf.mxu0 }
 0xa2d   : > { %v5393_v43 = vadd.f32 %v11872_v31, %v10981_v33 }
 0xa2e   : > { %v5384_v40 = vpop.f32.mrf.mxu0 }
 0xa2f   : > { %v14499_v23 = vadd.f32 %v5393_v43, %v14362_v3  ;;  %v5385_v18 = vadd.f32 %v10981_v33, %v5384_v40 }
 0xa30   : > { %v11873_v49 = vpop.f32.mrf.mxu0 }
 0xa31   : > { %16379 = vst [vmem:[#allocation10_spill] sm:$0xff] %v14499_v23  ;;  %v14502_v26 = vadd.f32 %v5385_v18, %v14365_v58  ;;  %v5396_v0 = vadd.f32 %v11873_v49, %v10981_v33  ;;  %v5433_v27 = vsel %vm832_vm1, %v14499_v23, 0.0  ;;  %v5461_v12 = vmul.f32 %v14499_v23, %v14499_v23 }
 0xa32   : > { %5434 = vadd.xlane.f32.xlu0 %v5433_v27  ;;  %v5387_v28 = vpop.f32.mrf.mxu0 }
 0xa33   : > { %16380 = vst [vmem:[#allocation12_spill] sm:$0xff] %v14502_v26  ;;  %v14507_v46 = vadd.f32 %v5396_v0, %v14370_v19  ;;  %v5388_v30 = vadd.f32 %v10981_v33, %v5387_v28  ;;  %v5427_v58 = vsel %vm832_vm1, %v14502_v26, 0.0  ;;  %v5459_v36 = vmul.f32 %v14502_v26, %v14502_v26 }
 0xa34   : > { %v5473_v21 = vsel %vm832_vm1, %v5461_v12, 0.0 }
 0xa35   : > { %16381 = vst [vmem:[#allocation11_spill] sm:$0xff] %v14507_v46  ;;  %v14510_v17 = vadd.f32 %v5388_v30, %v14373_v51  ;;  %v5436_v3 = vsel %vm832_vm1, %v14507_v46, 0.0  ;;  %v5467_v19 = vsel %vm832_vm1, %v5459_v36, 0.0  ;;  %v5462_v15 = vmul.f32 %v14507_v46, %v14507_v46 }
 0xa36   : > { %5437 = vadd.xlane.f32.xlu1 %v5436_v3  ;;  %5428 = vadd.xlane.f32.xlu0 %v5427_v58 }
 0xa37   : > { %16382 = vst [vmem:[#allocation14_spill] sm:$0xff] %v14510_v17  ;;  %v5430_v47 = vsel %vm832_vm1, %v14510_v17, 0.0  ;;  %v5460_v51 = vmul.f32 %v14510_v17, %v14510_v17  ;;  %v5476_v5 = vsel %vm832_vm1, %v5462_v15, 0.0  ;;  %v14573_v15 = vld [vmem:[%s16343_s26 + $0x1] ss:$0 sm:$0xff] }
 0xa39   : > { %v5470_v37 = vsel %vm832_vm1, %v5460_v51, 0.0 }
 0xa3a   : > { %5431 = vadd.xlane.f32.xlu1 %v5430_v47  ;;  %5468 = vadd.xlane.f32.xlu0 %v5467_v19 }
 0xa3e   : > { %5471 = vadd.xlane.f32.xlu1 %v5470_v37  ;;  %5474 = vadd.xlane.f32.xlu0 %v5473_v21 }
 0xa42   : > { %5477 = vadd.xlane.f32.xlu1 %v5476_v5 }
 0xa6b   : > { %v11876_v9 = vpop.f32.mrf.mxu0 }
 0xa6c   : > { %v5409_v8 = vadd.f32 %v11876_v9, %v10981_v33 }
 0xa6d   : > { %v5400_v44 = vpop.f32.mrf.mxu0 }
 0xa6e   : > { %v14538_v55 = vadd.f32 %v5409_v8, %v14400_v63  ;;  %v5401_v56 = vadd.f32 %v10981_v33, %v5400_v44 }
 0xa6f   : > { %v11877_v11 = vpop.f32.mrf.mxu0 }
 0xa70   : > { %16383 = vst [vmem:[#allocation13_spill] sm:$0xff] %v14538_v55  ;;  %v14541_v34 = vadd.f32 %v5401_v56, %v14403_v2  ;;  %v5412_v24 = vadd.f32 %v11877_v11, %v10981_v33  ;;  %v5445_v48 = vsel %vm832_vm1, %v14538_v55, 0.0  ;;  %v5465_v35 = vmul.f32 %v14538_v55, %v14538_v55  ;;  %v14581_v56 = vld [vmem:[%s16344_s4 + $0x1] ss:$0 sm:$0xff] }
 0xa71   : > { %5446 = vadd.xlane.f32.xlu0 %v5445_v48  ;;  %v5403_v32 = vpop.f32.mrf.mxu0 }
 0xa72   : > { %16384 = vst [vmem:[#allocation16_spill] sm:$0xff] %v14541_v34  ;;  %v14546_v10 = vadd.f32 %v5412_v24, %v14408_v14  ;;  %v5404_v29 = vadd.f32 %v10981_v33, %v5403_v32  ;;  %v5439_v2 = vsel %vm832_vm1, %v14541_v34, 0.0  ;;  %v5463_v54 = vmul.f32 %v14541_v34, %v14541_v34 }
 0xa73   : > { %v5485_v50 = vsel %vm832_vm1, %v5465_v35, 0.0 }
 0xa74   : > { %16385 = vst [vmem:[#allocation17_spill] sm:$0xff] %v14546_v10  ;;  %v14549_v57 = vadd.f32 %v5404_v29, %v14411_v45  ;;  %v5448_v63 = vsel %vm832_vm1, %v14546_v10, 0.0  ;;  %v5479_v14 = vsel %vm832_vm1, %v5463_v54, 0.0  ;;  %v5466_v13 = vmul.f32 %v14546_v10, %v14546_v10 }
 0xa75   : > { %5449 = vadd.xlane.f32.xlu1 %v5448_v63  ;;  %5440 = vadd.xlane.f32.xlu0 %v5439_v2 }
 0xa76   : > { %16386 = vst [vmem:[#allocation20_spill] sm:$0xff] %v14549_v57  ;;  %v5442_v16 = vsel %vm832_vm1, %v14549_v57, 0.0  ;;  %v5464_v45 = vmul.f32 %v14549_v57, %v14549_v57  ;;  %v5488_v22 = vsel %vm832_vm1, %v5466_v13, 0.0 }
 0xa78   : > { %v5482_v60 = vsel %vm832_vm1, %v5464_v45, 0.0 }
 0xa79   : > { %5443 = vadd.xlane.f32.xlu1 %v5442_v16  ;;  %5480 = vadd.xlane.f32.xlu0 %v5479_v14 }
 0xa7d   : > { %5483 = vadd.xlane.f32.xlu1 %v5482_v60  ;;  %5486 = vadd.xlane.f32.xlu0 %v5485_v50 }
 0xa81   : > { %5489 = vadd.xlane.f32.xlu1 %v5488_v22 }
 0xabb   : > { %v5435_v59 = vpop.xlane.xlu0 %5434 }
 0xabc   : > { %v5453_v41 = vmul.f32 0.03125, %v5435_v59 }
 0xabe   : > { %v5501_v1 = vmul.f32 %v5453_v41, %v5453_v41  ;;  %v5517_v25 = vsub.f32 %v14499_v23, %v5453_v41 }
 0xabf   : > { %v5438_v6 = vpop.xlane.xlu1 %5437  ;;  %v5429_v38 = vpop.xlane.xlu0 %5428 }
 0xac0   : > { %v5451_v62 = vmul.f32 0.03125, %v5429_v38  ;;  %v5454_v33 = vmul.f32 0.03125, %v5438_v6 }
 0xac2   : > { %v5499_v61 = vmul.f32 %v5451_v62, %v5451_v62  ;;  %v5502_v3 = vmul.f32 %v5454_v33, %v5454_v33  ;;  %v5515_v12 = vsub.f32 %v14502_v26, %v5451_v62  ;;  %v5518_v24 = vsub.f32 %v14507_v46, %v5454_v33 }
 0xac3   : > { %v5432_v53 = vpop.xlane.xlu1 %5431  ;;  %v5469_v39 = vpop.xlane.xlu0 %5468 }
 0xac4   : > { %v5452_v42 = vmul.f32 0.03125, %v5432_v53  ;;  %v5491_v4 = vmul.f32 0.03125, %v5469_v39 }
 0xac6   : > { %v5507_v7 = vsub.f32 %v5491_v4, %v5499_v61  ;;  %v5500_v40 = vmul.f32 %v5452_v42, %v5452_v42  ;;  %v5516_v5 = vsub.f32 %v14510_v17, %v5452_v42 }
 0xac7   : > { %v5472_v31 = vpop.xlane.xlu1 %5471  ;;  %v5475_v43 = vpop.xlane.xlu0 %5474 }
 0xac8   : > { %v5523_v18 = vadd.f32 1e-05, %v5507_v7  ;;  %v5492_v49 = vmul.f32 0.03125, %v5472_v31  ;;  %v5493_v0 = vmul.f32 0.03125, %v5475_v43 }
 0xaca   : > { %12680 = vrsqrt.f32 %v5523_v18  ;;  %v5508_v27 = vsub.f32 %v5492_v49, %v5500_v40  ;;  %v5509_v28 = vsub.f32 %v5493_v0, %v5501_v1 }
 0xacb   : > { %v5478_v30 = vpop.xlane.xlu1 %5477 }
 0xacc   : > { %v5524_v58 = vadd.f32 1e-05, %v5508_v27  ;;  %v5525_v36 = vadd.f32 1e-05, %v5509_v28  ;;  %v5494_v47 = vmul.f32 0.03125, %v5478_v30 }
 0xace   : > { %12682 = vrsqrt.f32 %v5524_v58  ;;  %v5510_v19 = vsub.f32 %v5494_v47, %v5502_v3 }
 0xacf   : > { %12684 = vrsqrt.f32 %v5525_v36 }
 0xad0   : > { %v5526_v51 = vadd.f32 1e-05, %v5510_v19 }
 0xad2   : > { %12686 = vrsqrt.f32 %v5526_v51 }
 0xad7   : > { %v12681_v37 = vpop.eup %12680 }
 0xad8   : > { %v5539_v21 = vmul.f32 %v12681_v37, %v5515_v12 }
 0xada   : > { %v5553_v44 = vmul.f32 %v14573_v15, %v5539_v21 }
 0xadb   : > { %v12683_v52 = vpop.eup %12682 }
 0xadc   : > { %v12685_v9 = vpop.eup %12684  ;;  %v5540_v8 = vmul.f32 %v12683_v52, %v5516_v5  ;;  %v5567_v2 = vadd.f32 %v14581_v56, %v5553_v44 }
 0xadd   : > { %v5541_v11 = vmul.f32 %v12685_v9, %v5517_v25 }
 0xade   : > { %v5554_v48 = vmul.f32 %v14573_v15, %v5540_v8 }
 0xadf   : > { %v12687_v32 = vpop.eup %12686  ;;  %v5555_v29 = vmul.f32 %v14573_v15, %v5541_v11 }
 0xae0   : > { %v5542_v63 = vmul.f32 %v12687_v32, %v5518_v24  ;;  %v5568_v54 = vadd.f32 %v14581_v56, %v5554_v48 }
 0xae1   : > { %v5569_v45 = vadd.f32 %v14581_v56, %v5555_v29 }
 0xae2   : > { %v5556_v16 = vmul.f32 %v14573_v15, %v5542_v63  ;;  %v5575_v14 = vpack.c.bf16 %v5568_v54, %v5567_v2 }
 0xae4   : > { %v5570_v35 = vadd.f32 %v14581_v56, %v5556_v16  ;;  %11882 = vmatprep.mubr.msk.bf16.mxu1 %vm832_vm1, %v5575_v14 }
 0xae6   : > { %v5576_v60 = vpack.c.bf16 %v5570_v35, %v5569_v45  ;;  %v10997_v35 = vld [vmem:[%s16345_s5 + $0x1] ss:$0 sm:$0xff] }
 0xae8   : > { %11883 = vmatmul.mubr.msk.bf16.vlgmr.msra.gmra.mxu1 %vm832_vm1, %v5576_v60 }
 0xafa   : > { %v5447_v50 = vpop.xlane.xlu0 %5446 }
 0xafb   : > { %v5457_v6 = vmul.f32 0.03125, %v5447_v50 }
 0xafd   : > { %v5505_v42 = vmul.f32 %v5457_v6, %v5457_v6  ;;  %v5521_v21 = vsub.f32 %v14538_v55, %v5457_v6 }
 0xafe   : > { %v5450_v13 = vpop.xlane.xlu1 %5449  ;;  %v5441_v22 = vpop.xlane.xlu0 %5440 }
 0xaff   : > { %v5455_v59 = vmul.f32 0.03125, %v5441_v22  ;;  %v5458_v4 = vmul.f32 0.03125, %v5450_v13 }
 0xb01   : > { %v5503_v41 = vmul.f32 %v5455_v59, %v5455_v59  ;;  %v5506_v27 = vmul.f32 %v5458_v4, %v5458_v4  ;;  %v5519_v47 = vsub.f32 %v14541_v34, %v5455_v59  ;;  %v5522_v8 = vsub.f32 %v14546_v10, %v5458_v4 }
 0xb02   : > { %v5444_v38 = vpop.xlane.xlu1 %5443  ;;  %v5481_v62 = vpop.xlane.xlu0 %5480 }
 0xb03   : > { %v5456_v53 = vmul.f32 0.03125, %v5444_v38  ;;  %v5495_v39 = vmul.f32 0.03125, %v5481_v62 }
 0xb05   : > { %v5511_v61 = vsub.f32 %v5495_v39, %v5503_v41  ;;  %v5504_v33 = vmul.f32 %v5456_v53, %v5456_v53  ;;  %v5520_v12 = vsub.f32 %v14549_v57, %v5456_v53 }
 0xb06   : > { %v5484_v7 = vpop.xlane.xlu1 %5483  ;;  %v5487_v1 = vpop.xlane.xlu0 %5486 }
 0xb07   : > { %v5527_v31 = vadd.f32 1e-05, %v5511_v61  ;;  %v5496_v43 = vmul.f32 0.03125, %v5484_v7  ;;  %v5497_v40 = vmul.f32 0.03125, %v5487_v1 }
 0xb09   : > { %12688 = vrsqrt.f32 %v5527_v31  ;;  %v5512_v18 = vsub.f32 %v5496_v43, %v5504_v33  ;;  %v5513_v49 = vsub.f32 %v5497_v40, %v5505_v42 }
 0xb0a   : > { %v5490_v0 = vpop.xlane.xlu1 %5489 }
 0xb0b   : > { %v5528_v28 = vadd.f32 1e-05, %v5512_v18  ;;  %v5529_v30 = vadd.f32 1e-05, %v5513_v49  ;;  %v5498_v3 = vmul.f32 0.03125, %v5490_v0 }
 0xb0d   : > { %12690 = vrsqrt.f32 %v5528_v28  ;;  %v5514_v58 = vsub.f32 %v5498_v3, %v5506_v27 }
 0xb0e   : > { %12692 = vrsqrt.f32 %v5529_v30 }
 0xb0f   : > { %v5530_v36 = vadd.f32 1e-05, %v5514_v58 }
 0xb11   : > { %12694 = vrsqrt.f32 %v5530_v36 }
 0xb16   : > { %v12689_v19 = vpop.eup %12688 }
 0xb17   : > { %v5543_v51 = vmul.f32 %v12689_v19, %v5519_v47 }
 0xb19   : > { %v5557_v25 = vmul.f32 %v14573_v15, %v5543_v51 }
 0xb1a   : > { %v12691_v37 = vpop.eup %12690 }
 0xb1b   : > { %v12693_v5 = vpop.eup %12692  ;;  %v5544_v52 = vmul.f32 %v12691_v37, %v5520_v12  ;;  %v5571_v24 = vadd.f32 %v14581_v56, %v5557_v25 }
 0xb1c   : > { %v5545_v9 = vmul.f32 %v12693_v5, %v5521_v21 }
 0xb1d   : > { %v5558_v44 = vmul.f32 %v14573_v15, %v5544_v52 }
 0xb1e   : > { %v12695_v11 = vpop.eup %12694  ;;  %v5559_v29 = vmul.f32 %v14573_v15, %v5545_v9 }
 0xb1f   : > { %v5572_v48 = vadd.f32 %v14581_v56, %v5558_v44  ;;  %v5546_v32 = vmul.f32 %v12695_v11, %v5522_v8 }
 0xb20   : > { %v5573_v54 = vadd.f32 %v14581_v56, %v5559_v29 }
 0xb21   : > { %v5577_v63 = vpack.c.bf16 %v5572_v48, %v5571_v24  ;;  %v5560_v2 = vmul.f32 %v14573_v15, %v5546_v32 }
 0xb23   : > { %11886 = vmatprep.mubr.msk.bf16.mxu1 %vm832_vm1, %v5577_v63  ;;  %v5574_v16 = vadd.f32 %v14581_v56, %v5560_v2 }
 0xb25   : > { %v5578_v14 = vpack.c.bf16 %v5574_v16, %v5573_v54 }
 0xb27   : > { %11887 = vmatmul.mubr.msk.bf16.gmra.mxu1 %vm832_vm1, %v5578_v14 }
 0xb28   : > { %11898 = vmatprep.mubr.msk.bf16.mxu1 %vm12904_vm2, %v16358_v20 }
 0xba8   : > { %v11884_v45 = vpop.f32.mrf.mxu1 }
 0xba9   : > { %v14620_v22 = vadd.f32 %v11884_v45, %v10997_v35 }
 0xbaa   : > { %v5650_v60 = vpop.f32.mrf.mxu1 }
 0xbab   : > { %v14612_v50 = vadd.f32 %v10997_v35, %v5650_v60  ;;  %v14660_v1 = vpack.c.bf16 %v14620_v22, %v14620_v22  ;;  %v5763_v16 = vmul.f32 0.35355338, %v14620_v22 }
 0xbac   : > { %v11885_v15 = vpop.f32.mrf.mxu1 }
 0xbad   : > { %5689 = vrot.lane.b32.xlu0 %v14612_v50, %s16387_s24  ;;  %v14624_v59 = vadd.f32 %v11885_v15, %v10997_v35  ;;  %v14644_v4 = vpack.c.bf16 %v14612_v50, %v14612_v50  ;;  %v5761_v9 = vmul.f32 0.35355338, %v14612_v50 }
 0xbae   : > { %v5653_v13 = vpop.f32.mrf.mxu1 }
 0xbaf   : > { %v14616_v56 = vadd.f32 %v10997_v35, %v5653_v13  ;;  %v14668_v33 = vpack.c.bf16 %v14624_v59, %v14624_v59  ;;  %v5793_v48 = vpack.c.bf16 %v5761_v9, %v5761_v9  ;;  %v5795_v13 = vpack.c.bf16 %v5763_v16, %v5763_v16 }
 0xbb1   : > { %5691 = vrot.lane.b32.xlu1 %v14616_v56, %s16387_s24  ;;  %v14652_v7 = vpack.c.bf16 %v14616_v56, %v14616_v56  ;;  %v5762_v32 = vmul.f32 0.35355338, %v14616_v56 }
 0xbb3   : > { %v5794_v14 = vpack.c.bf16 %v5762_v32, %v5762_v32 }
 0xbb5   : > { %5693 = vrot.lane.b32.xlu1 %v14620_v22, %s16387_s24 }
 0xbb9   : > { %5695 = vrot.lane.b32.xlu1 %v14624_v59, %s16387_s24 }
 0xbe7   : > { %v11888_v6 = vpop.f32.mrf.mxu1 }
 0xbe8   : > { %v14632_v39 = vadd.f32 %v11888_v6, %v10997_v35 }
 0xbe9   : > { %v5666_v38 = vpop.f32.mrf.mxu1 }
 0xbea   : > { %v14628_v62 = vadd.f32 %v10997_v35, %v5666_v38  ;;  %v14692_v40 = vpack.c.bf16 %v14632_v39, %v14632_v39 }
 0xbeb   : > { %v11889_v41 = vpop.f32.mrf.mxu1 }
 0xbec   : > { %5697 = vrot.lane.b32.xlu0 %v14628_v62, %s16387_s24  ;;  %v14640_v42 = vadd.f32 %v11889_v41, %v10997_v35  ;;  %v14676_v31 = vpack.c.bf16 %v14628_v62, %v14628_v62 }
 0xbed   : > { %v5669_v53 = vpop.f32.mrf.mxu1 }
 0xbee   : > { %v14634_v61 = vadd.f32 %v10997_v35, %v5669_v53  ;;  %v14700_v18 = vpack.c.bf16 %v14640_v42, %v14640_v42  ;;  %v5765_v53 = vmul.f32 0.35355338, %v14628_v62 }
 0xbf0   : > { %5699 = vrot.lane.b32.xlu1 %v14634_v61, %s16387_s24  ;;  %5701 = vrot.lane.b32.xlu0 %v14632_v39, %s16387_s24  ;;  %v14684_v43 = vpack.c.bf16 %v14634_v61, %v14634_v61 }
 0xbf4   : > { %5703 = vrot.lane.b32.xlu1 %v14640_v42, %s16387_s24  ;;  %5858 = vrot.lane.b32.xlu0 %v14644_v4, %s16388_s23 }
 0xbf8   : > { %5907 = vrot.lane.b32.xlu1 %v14652_v7, %s16388_s23  ;;  %5713 = vrot.lane.b32.xlu0 %v14612_v50, %s16389_s2 }
 0xbfc   : > { %5715 = vrot.lane.b32.xlu1 %v14616_v56, %s16389_s2  ;;  %5956 = vrot.lane.b32.xlu0 %v14660_v1, %s16388_s23 }
 0xc00   : > { %6005 = vrot.lane.b32.xlu1 %v14668_v33, %s16388_s23  ;;  %5717 = vrot.lane.b32.xlu0 %v14620_v22, %s16389_s2 }
 0xc04   : > { %5719 = vrot.lane.b32.xlu1 %v14624_v59, %s16389_s2  ;;  %6054 = vrot.lane.b32.xlu0 %v14676_v31, %s16388_s23 }
 0xc08   : > { %6103 = vrot.lane.b32.xlu1 %v14684_v43, %s16388_s23  ;;  %5721 = vrot.lane.b32.xlu0 %v14628_v62, %s16389_s2 }
 0xc0c   : > { %5723 = vrot.lane.b32.xlu1 %v14634_v61, %s16389_s2  ;;  %6152 = vrot.lane.b32.xlu0 %v14692_v40, %s16388_s23 }
 0xc10   : > { %6201 = vrot.lane.b32.xlu1 %v14700_v18, %s16388_s23  ;;  %5725 = vrot.lane.b32.xlu0 %v14632_v39, %s16389_s2 }
 0xc14   : > { %5727 = vrot.lane.b32.xlu1 %v14640_v42, %s16389_s2  ;;  %s12912_s2 = smov 32  }
 0xc1f   : > { %v14708_v49 = vpop.permute.xlu0 %5689 }
 0xc20   : > { %v14712_v0 = vpack.c.bf16 %v14708_v49, %v14708_v49 }
 0xc22   : > { %6250 = vrot.lane.b32.xlu0 %v14712_v0, %s16388_s23 }
 0xc23   : > { %v14716_v27 = vpop.permute.xlu1 %5691 }
 0xc24   : > { %v14720_v28 = vpack.c.bf16 %v14716_v27, %v14716_v27 }
 0xc26   : > { %6299 = vrot.lane.b32.xlu1 %v14720_v28, %s16388_s23  ;;  %5737 = vrot.lane.b32.xlu0 %v14612_v50, %s16390_s27 }
 0xc27   : > { %v14726_v30 = vpop.permute.xlu1 %5693 }
 0xc28   : > { %v14730_v3 = vpack.c.bf16 %v14726_v30, %v14726_v30 }
 0xc2a   : > { %5739 = vrot.lane.b32.xlu1 %v14616_v56, %s16390_s27  ;;  %6348 = vrot.lane.b32.xlu0 %v14730_v3, %s16388_s23  ;;  %v5764_v56 = vmul.f32 0.35355338, %v14624_v59 }
 0xc2b   : > { %v14736_v58 = vpop.permute.xlu1 %5695 }
 0xc2c   : > { %v14740_v36 = vpack.c.bf16 %v14736_v58, %v14736_v58 }
 0xc2e   : > { %6397 = vrot.lane.b32.xlu1 %v14740_v36, %s16388_s23  ;;  %5741 = vrot.lane.b32.xlu0 %v14620_v22, %s16390_s27 }
 0xc32   : > { %5743 = vrot.lane.b32.xlu1 %v14624_v59, %s16390_s27  ;;  %v5796_v59 = vpack.c.bf16 %v5764_v56, %v5764_v56  ;;  %v5768_v56 = vmul.f32 0.35355338, %v14640_v42 }
 0xc5e   : > { %v14748_v47 = vpop.permute.xlu0 %5697 }
 0xc5f   : > { %v14752_v19 = vpack.c.bf16 %v14748_v47, %v14748_v47 }
 0xc61   : > { %6446 = vrot.lane.b32.xlu0 %v14752_v19, %s16388_s23 }
 0xc62   : > { %v14756_v51 = vpop.permute.xlu1 %5699  ;;  %v14758_v12 = vpop.permute.xlu0 %5701 }
 0xc63   : > { %v14762_v37 = vpack.c.bf16 %v14756_v51, %v14756_v51  ;;  %v14772_v52 = vpack.c.bf16 %v14758_v12, %v14758_v12 }
 0xc65   : > { %6495 = vrot.lane.b32.xlu1 %v14762_v37, %s16388_s23  ;;  %5745 = vrot.lane.b32.xlu0 %v14628_v62, %s16390_s27  ;;  %v5797_v62 = vpack.c.bf16 %v5765_v53, %v5765_v53 }
 0xc66   : > { %v14768_v21 = vpop.permute.xlu1 %5703  ;;  %v5859_v5 = vpop.permute.xlu0 %5858 }
 0xc67   : > { %v5864_v25 = vsel %vm1265_vm3, %v5859_v5, 0  ;;  %v14785_v11 = vpack.c.bf16 %v14768_v21, %v14768_v21 }
 0xc68   : > { %11891 = vmatpush3.bf16.xpose.msra.mxu0 %v5864_v25 }
 0xc69   : > { %5747 = vrot.lane.b32.xlu1 %v14634_v61, %s16390_s27  ;;  %6544 = vrot.lane.b32.xlu0 %v14772_v52, %s16388_s23 }
 0xc6a   : > { %v5908_v8 = vpop.permute.xlu1 %5907  ;;  %v14780_v44 = vpop.permute.xlu0 %5713  ;;  %11902 = vmatprep.subr.bf16.mxu0 %v16358_v20 }
 0xc6b   : > { %v5913_v24 = vsel %vm1265_vm3, %v5908_v8, 0  ;;  %v14798_v2 = vpack.c.bf16 %v14780_v44, %v14780_v44 }
 0xc6c   : > { %11897 = vmatpush3.bf16.xpose.msra.mxu1 %v5913_v24  ;;  %v5766_v24 = vmul.f32 0.35355338, %v14634_v61  ;;  %v5767_v61 = vmul.f32 0.35355338, %v14632_v39 }
 0xc6d   : > { %6593 = vrot.lane.b32.xlu1 %v14785_v11, %s16388_s23  ;;  %5749 = vrot.lane.b32.xlu0 %v14632_v39, %s16390_s27 }
 0xc6e   : > { %v14793_v29 = vpop.permute.xlu1 %5715  ;;  %v5957_v63 = vpop.permute.xlu0 %5956  ;;  %11908 = vmatprep.subr.bf16.mxu1 %v16358_v20  ;;  %v5798_v16 = vpack.c.bf16 %v5766_v24, %v5766_v24  ;;  %v5799_v39 = vpack.c.bf16 %v5767_v61, %v5767_v61  ;;  %v5770_v61 = vmul.f32 0.35355338, %v14716_v27 }
 0xc6f   : > { %v5962_v54 = vsel %vm1265_vm3, %v5957_v63, 0  ;;  %11893 = vmatmul.mubr.msk.bf16.vlgmr.msra.gmra.mxu0 %vm1265_vm3, %v5793_v48  ;;  %v14814_v60 = vpack.c.bf16 %v14793_v29, %v14793_v29 }
 0xc70   : > { %11903 = vmatpush3.bf16.xpose.msra.mxu0 %v5962_v54  ;;  %11904 = vmatprep.mubr.msk.bf16.mxu0 %vm12904_vm2, %v16358_v20  ;;  %v5802_v27 = vpack.c.bf16 %v5770_v61, %v5770_v61 }
 0xc71   : > { %5751 = vrot.lane.b32.xlu1 %v14640_v42, %s16390_s27  ;;  %6642 = vrot.lane.b32.xlu0 %v14798_v2, %s16388_s23  ;;  %s714_s27 = scalar_select %p713_p5, %s12892_s3, 2 }
 0xc72   : > { %v6006_v45 = vpop.permute.xlu1 %6005  ;;  %v14809_v35 = vpop.permute.xlu0 %5717  ;;  %11914 = vmatprep.subr.bf16.mxu0 %v16358_v20 }
 0xc73   : > { %v6011_v50 = vsel %vm1265_vm3, %v6006_v45, 0  ;;  %v14819_v15 = vpack.c.bf16 %v14809_v35, %v14809_v35  ;;  %11899 = vmatmul.mubr.msk.bf16.vlgmr.msra.gmra.mxu1 %vm1265_vm3, %v5794_v14 }
 0xc74   : > { %11909 = vmatpush3.bf16.xpose.msra.mxu1 %v6011_v50  ;;  %11910 = vmatprep.mubr.msk.bf16.mxu1 %vm12904_vm2, %v16358_v20 }
 0xc75   : > { %6691 = vrot.lane.b32.xlu1 %v14814_v60, %s16388_s23  ;;  %6740 = vrot.lane.b32.xlu0 %v14819_v15, %s16388_s23 }
 0xc76   : > { %v14829_v22 = vpop.permute.xlu1 %5719  ;;  %v6055_v6 = vpop.permute.xlu0 %6054  ;;  %11920 = vmatprep.subr.bf16.mxu1 %v16358_v20 }
 0xc77   : > { %v14834_v38 = vpack.c.bf16 %v14829_v22, %v14829_v22  ;;  %v6060_v41 = vsel %vm1265_vm3, %v6055_v6, 0  ;;  %11905 = vmatmul.mubr.msk.bf16.vlgmr.msra.gmra.mxu0 %vm1265_vm3, %v5795_v13 }
 0xc78   : > { %11915 = vmatpush3.bf16.xpose.msra.mxu0 %v6060_v41  ;;  %11916 = vmatprep.mubr.msk.bf16.mxu0 %vm12904_vm2, %v16358_v20 }
 0xc79   : > { %6789 = vrot.lane.b32.xlu1 %v14834_v38, %s16388_s23  ;;  %11926 = vmatprep.subr.bf16.mxu0 %v16358_v20 }
 0xc7a   : > { %v6104_v5 = vpop.permute.xlu1 %6103  ;;  %v14844_v25 = vpop.permute.xlu0 %5721 }
 0xc7b   : > { %v6109_v9 = vsel %vm1265_vm3, %v6104_v5, 0  ;;  %v14849_v8 = vpack.c.bf16 %v14844_v25, %v14844_v25  ;;  %11911 = vmatmul.mubr.msk.bf16.vlgmr.msra.gmra.mxu1 %vm1265_vm3, %v5796_v59  ;;  %v5800_v59 = vpack.c.bf16 %v5768_v56, %v5768_v56  ;;  %v5769_v5 = vmul.f32 0.35355338, %v14708_v49 }
 0xc7c   : > { %11921 = vmatpush3.bf16.xpose.msra.mxu1 %v6109_v9  ;;  %11922 = vmatprep.mubr.msk.bf16.mxu1 %vm12904_vm2, %v16358_v20 }
 0xc7d   : > { %6838 = vrot.lane.b32.xlu0 %v14849_v8, %s16388_s23  ;;  %11932 = vmatprep.subr.bf16.mxu1 %v16358_v20 }
 0xc7e   : > { %v14858_v48 = vpop.permute.xlu1 %5723  ;;  %v6153_v32 = vpop.permute.xlu0 %6152 }
 0xc7f   : > { %v14862_v63 = vpack.c.bf16 %v14858_v48, %v14858_v48  ;;  %v6158_v54 = vsel %vm1265_vm3, %v6153_v32, 0  ;;  %11917 = vmatmul.mubr.msk.bf16.vlgmr.msra.gmra.mxu0 %vm1265_vm3, %v5797_v62 }
 0xc80   : > { %11927 = vmatpush3.bf16.xpose.msra.mxu0 %v6158_v54  ;;  %11928 = vmatprep.mubr.msk.bf16.mxu0 %vm12904_vm2, %v16358_v20  ;;  %v5801_v54 = vpack.c.bf16 %v5769_v5, %v5769_v5  ;;  %v5772_v5 = vmul.f32 0.35355338, %v14736_v58 }
 0xc81   : > { %6887 = vrot.lane.b32.xlu1 %v14862_v63, %s16388_s23  ;;  %11938 = vmatprep.subr.bf16.mxu0 %v16358_v20 }
 0xc82   : > { %v6202_v14 = vpop.permute.xlu1 %6201  ;;  %v14872_v45 = vpop.permute.xlu0 %5725 }
 0xc83   : > { %v6207_v50 = vsel %vm1265_vm3, %v6202_v14, 0  ;;  %v14877_v13 = vpack.c.bf16 %v14872_v45, %v14872_v45  ;;  %11923 = vmatmul.mubr.msk.bf16.vlgmr.msra.gmra.mxu1 %vm1265_vm3, %v5798_v16 }
 0xc84   : > { %11933 = vmatpush3.bf16.xpose.msra.mxu1 %v6207_v50  ;;  %11934 = vmatprep.mubr.msk.bf16.mxu1 %vm12904_vm2, %v16358_v20 }
 0xc85   : > { %6936 = vrot.lane.b32.xlu0 %v14877_v13, %s16388_s23  ;;  %11944 = vmatprep.subr.bf16.mxu1 %v16358_v20 }
 0xc86   : > { %v14886_v6 = vpop.permute.xlu1 %5727 }
 0xc87   : > { %v14890_v41 = vpack.c.bf16 %v14886_v6, %v14886_v6  ;;  %11929 = vmatmul.mubr.msk.bf16.vlgmr.msra.gmra.mxu0 %vm1265_vm3, %v5799_v39  ;;  %v5771_v39 = vmul.f32 0.35355338, %v14726_v30 }
 0xc88   : > { %11940 = vmatprep.mubr.msk.bf16.mxu0 %vm12904_vm2, %v16358_v20 }
 0xc89   : > { %6985 = vrot.lane.b32.xlu1 %v14890_v41, %s16388_s23  ;;  %v5803_v30 = vpack.c.bf16 %v5771_v39, %v5771_v39 }
 0xc8b   : > { %11935 = vmatmul.mubr.msk.bf16.vlgmr.msra.gmra.mxu1 %vm1265_vm3, %v5800_v59 }
 0xc8c   : > { %11946 = vmatprep.mubr.msk.bf16.mxu1 %vm12904_vm2, %v16358_v20 }
 0xc94   : > { %v6251_v42 = vpop.permute.xlu0 %6250 }
 0xc95   : > { %v6256_v53 = vsel %vm1265_vm3, %v6251_v42, 0 }
 0xc96   : > { %11939 = vmatpush3.bf16.xpose.msra.mxu0 %v6256_v53 }
 0xc97   : > { %11950 = vmatprep.subr.bf16.mxu0 %v16358_v20 }
 0xc98   : > { %v6300_v9 = vpop.permute.xlu1 %6299  ;;  %v14903_v62 = vpop.permute.xlu0 %5737 }
 0xc99   : > { %v6305_v24 = vsel %vm1265_vm3, %v6300_v9, 0  ;;  %v14908_v32 = vpack.c.bf16 %v14903_v62, %v14903_v62 }
 0xc9a   : > { %11945 = vmatpush3.bf16.xpose.msra.mxu1 %v6305_v24 }
 0xc9b   : > { %7034 = vrot.lane.b32.xlu0 %v14908_v32, %s16388_s23  ;;  %11956 = vmatprep.subr.bf16.mxu1 %v16358_v20 }
 0xc9c   : > { %v14914_v49 = vpop.permute.xlu1 %5739  ;;  %v6349_v16 = vpop.permute.xlu0 %6348 }
 0xc9d   : > { %v14918_v14 = vpack.c.bf16 %v14914_v49, %v14914_v49  ;;  %v6354_v50 = vsel %vm1265_vm3, %v6349_v16, 0  ;;  %11941 = vmatmul.mubr.msk.bf16.vlgmr.msra.gmra.mxu0 %vm1265_vm3, %v5801_v54  ;;  %v5804_v54 = vpack.c.bf16 %v5772_v5, %v5772_v5  ;;  %v5773_v16 = vmul.f32 0.35355338, %v14748_v47 }
 0xc9e   : > { %11951 = vmatpush3.bf16.xpose.msra.mxu0 %v6354_v50  ;;  %11952 = vmatprep.mubr.msk.bf16.mxu0 %vm12904_vm2, %v16358_v20 }
 0xc9f   : > { %7083 = vrot.lane.b32.xlu1 %v14918_v14, %s16388_s23  ;;  %11962 = vmatprep.subr.bf16.mxu0 %v16358_v20 }
 0xca0   : > { %v6398_v56 = vpop.permute.xlu1 %6397  ;;  %v14928_v59 = vpop.permute.xlu0 %5741 }
 0xca1   : > { %v6403_v42 = vsel %vm1265_vm3, %v6398_v56, 0  ;;  %v14933_v53 = vpack.c.bf16 %v14928_v59, %v14928_v59  ;;  %11947 = vmatmul.mubr.msk.bf16.vlgmr.msra.gmra.mxu1 %vm1265_vm3, %v5802_v27 }
 0xca2   : > { %11957 = vmatpush3.bf16.xpose.msra.mxu1 %v6403_v42  ;;  %11958 = vmatprep.mubr.msk.bf16.mxu1 %vm12904_vm2, %v16358_v20  ;;  %v5805_v42 = vpack.c.bf16 %v5773_v16, %v5773_v16 }
 0xca3   : > { %7132 = vrot.lane.b32.xlu0 %v14933_v53, %s16388_s23  ;;  %11968 = vmatprep.subr.bf16.mxu1 %v16358_v20 }
 0xca4   : > { %v14942_v9 = vpop.permute.xlu1 %5743 }
 0xca5   : > { %v14946_v24 = vpack.c.bf16 %v14942_v9, %v14942_v9  ;;  %11953 = vmatmul.mubr.msk.bf16.vlgmr.msra.gmra.mxu0 %vm1265_vm3, %v5803_v30  ;;  %v5774_v30 = vmul.f32 0.35355338, %v14756_v51 }
 0xca6   : > { %11964 = vmatprep.mubr.msk.bf16.mxu0 %vm12904_vm2, %v16358_v20 }
 0xca7   : > { %7181 = vrot.lane.b32.xlu1 %v14946_v24, %s16388_s23  ;;  %v5806_v51 = vpack.c.bf16 %v5774_v30, %v5774_v30  ;;  %v5776_v30 = vmul.f32 0.35355338, %v14768_v21 }
 0xca9   : > { %11959 = vmatmul.mubr.msk.bf16.vlgmr.msra.gmra.mxu1 %vm1265_vm3, %v5804_v54  ;;  %v5808_v21 = vpack.c.bf16 %v5776_v30, %v5776_v30 }
 0xcaa   : > { %11970 = vmatprep.mubr.msk.bf16.mxu1 %vm12904_vm2, %v16358_v20 }
 0xcd3   : > { %v6447_v58 = vpop.permute.xlu0 %6446 }
 0xcd4   : > { %v6452_v61 = vsel %vm1265_vm3, %v6447_v58, 0 }
 0xcd5   : > { %11963 = vmatpush3.bf16.xpose.msra.mxu0 %v6452_v61  ;;  %v5775_v61 = vmul.f32 0.35355338, %v14758_v12 }
 0xcd6   : > { %11974 = vmatprep.subr.bf16.mxu0 %v16358_v20 }
 0xcd7   : > { %v6496_v50 = vpop.permute.xlu1 %6495  ;;  %v14959_v27 = vpop.permute.xlu0 %5745  ;;  %v5807_v12 = vpack.c.bf16 %v5775_v61, %v5775_v61  ;;  %v5777_v61 = vmul.f32 0.35355338, %v14780_v44  ;;  %v5778_v44 = vmul.f32 0.35355338, %v14793_v29  ;;  %v5779_v29 = vmul.f32 0.35355338, %v14809_v35 }
 0xcd8   : > { %v6501_v39 = vsel %vm1265_vm3, %v6496_v50, 0  ;;  %v14964_v56 = vpack.c.bf16 %v14959_v27, %v14959_v27  ;;  %v5780_v35 = vmul.f32 0.35355338, %v14829_v22  ;;  %v5781_v22 = vmul.f32 0.35355338, %v14844_v25 }
 0xcd9   : > { %11969 = vmatpush3.bf16.xpose.msra.mxu1 %v6501_v39  ;;  %v5809_v30 = vpack.c.bf16 %v5777_v61, %v5777_v61  ;;  %v5811_v61 = vpack.c.bf16 %v5779_v29, %v5779_v29  ;;  %v5782_v25 = vmul.f32 0.35355338, %v14858_v48  ;;  %v5783_v48 = vmul.f32 0.35355338, %v14872_v45 }
 0xcda   : > { %7230 = vrot.lane.b32.xlu0 %v14964_v56, %s16388_s23  ;;  %11980 = vmatprep.subr.bf16.mxu1 %v16358_v20 }
 0xcdb   : > { %v14970_v47 = vpop.permute.xlu1 %5747  ;;  %v6545_v5 = vpop.permute.xlu0 %6544 }
 0xcdc   : > { %v14974_v54 = vpack.c.bf16 %v14970_v47, %v14970_v47  ;;  %v6550_v58 = vsel %vm1265_vm3, %v6545_v5, 0  ;;  %11965 = vmatmul.mubr.msk.bf16.vlgmr.msra.gmra.mxu0 %vm1265_vm3, %v5805_v42 }
 0xcdd   : > { %11975 = vmatpush3.bf16.xpose.msra.mxu0 %v6550_v58  ;;  %11976 = vmatprep.mubr.msk.bf16.mxu0 %vm12904_vm2, %v16358_v20 }
 0xcde   : > { %7279 = vrot.lane.b32.xlu1 %v14974_v54, %s16388_s23  ;;  %11986 = vmatprep.subr.bf16.mxu0 %v16358_v20 }
 0xcdf   : > { %v6594_v16 = vpop.permute.xlu1 %6593  ;;  %v14984_v50 = vpop.permute.xlu0 %5749 }
 0xce0   : > { %v6599_v39 = vsel %vm1265_vm3, %v6594_v16, 0  ;;  %v14989_v42 = vpack.c.bf16 %v14984_v50, %v14984_v50  ;;  %11971 = vmatmul.mubr.msk.bf16.vlgmr.msra.gmra.mxu1 %vm1265_vm3, %v5806_v51 }
 0xce1   : > { %11981 = vmatpush3.bf16.xpose.msra.mxu1 %v6599_v39  ;;  %11982 = vmatprep.mubr.msk.bf16.mxu1 %vm12904_vm2, %v16358_v20 }
 0xce2   : > { %16391 = vst [vmem:[#allocation15_spill] sm:$0xff] %v14989_v42  ;;  %7328 = vrot.lane.b32.xlu0 %v14989_v42, %s16388_s23  ;;  %11992 = vmatprep.subr.bf16.mxu1 %v16358_v20 }
 0xce3   : > { %v14998_v5 = vpop.permute.xlu1 %5751  ;;  %v6643_v58 = vpop.permute.xlu0 %6642 }
 0xce4   : > { %v15002_v16 = vpack.c.bf16 %v14998_v5, %v14998_v5  ;;  %v6648_v51 = vsel %vm1265_vm3, %v6643_v58, 0  ;;  %11977 = vmatmul.mubr.msk.bf16.vlgmr.msra.gmra.mxu0 %vm1265_vm3, %v5807_v12 }
 0xce5   : > { %11987 = vmatpush3.bf16.xpose.msra.mxu0 %v6648_v51  ;;  %11988 = vmatprep.mubr.msk.bf16.mxu0 %vm12904_vm2, %v16358_v20 }
 0xce6   : > { %16392 = vst [vmem:[#allocation18_spill] sm:$0xff] %v15002_v16  ;;  %7377 = vrot.lane.b32.xlu1 %v15002_v16, %s16388_s23  ;;  %7809 = vrot.lane.b32.xlu0 %v14644_v4, %s16393_s6 }
 0xce7   : > { %v6692_v39 = vpop.permute.xlu1 %6691  ;;  %11998 = vmatprep.subr.bf16.mxu0 %v16358_v20  ;;  %v6741_v12 = vpop.permute.xlu0 %6740 }
 0xce8   : > { %v6697_v58 = vsel %vm1265_vm3, %v6692_v39, 0  ;;  %11983 = vmatmul.mubr.msk.bf16.vlgmr.msra.gmra.mxu1 %vm1265_vm3, %v5808_v21  ;;  %v6746_v4 = vsel %vm1265_vm3, %v6741_v12, 0  ;;  %v5810_v21 = vpack.c.bf16 %v5778_v44, %v5778_v44  ;;  %v5812_v39 = vpack.c.bf16 %v5780_v35, %v5780_v35 }
 0xce9   : > { %11993 = vmatpush3.bf16.xpose.msra.mxu1 %v6697_v58  ;;  %11994 = vmatprep.mubr.msk.bf16.mxu1 %vm12904_vm2, %v16358_v20  ;;  %v5813_v58 = vpack.c.bf16 %v5781_v22, %v5781_v22  ;;  %v5814_v12 = vpack.c.bf16 %v5782_v25, %v5782_v25 }
 0xcea   : > { %7857 = vrot.lane.b32.xlu1 %v14652_v7, %s16393_s6  ;;  %7905 = vrot.lane.b32.xlu0 %v14660_v1, %s16393_s6 }
 0xceb   : > { %12004 = vmatprep.subr.bf16.mxu1 %v16358_v20  ;;  %v6790_v51 = vpop.permute.xlu1 %6789 }
 0xcec   : > { %11989 = vmatmul.mubr.msk.bf16.vlgmr.msra.gmra.mxu0 %vm1265_vm3, %v5809_v30  ;;  %v6795_v7 = vsel %vm1265_vm3, %v6790_v51, 0  ;;  %v5784_v30 = vmul.f32 0.35355338, %v14886_v6 }
 0xced   : > { %11999 = vmatpush3.bf16.xpose.msra.mxu0 %v6746_v4  ;;  %12000 = vmatprep.mubr.msk.bf16.mxu0 %vm12904_vm2, %v16358_v20 }
 0xcee   : > { %7953 = vrot.lane.b32.xlu1 %v14668_v33, %s16393_s6  ;;  %8001 = vrot.lane.b32.xlu0 %v14676_v31, %s16393_s6 }
 0xcef   : > { %12010 = vmatprep.subr.bf16.mxu0 %v16358_v20  ;;  %v6839_v1 = vpop.permute.xlu0 %6838 }
 0xcf0   : > { %11995 = vmatmul.mubr.msk.bf16.vlgmr.msra.gmra.mxu1 %vm1265_vm3, %v5810_v21  ;;  %v6844_v33 = vsel %vm1265_vm3, %v6839_v1, 0 }
 0xcf1   : > { %12005 = vmatpush3.bf16.xpose.msra.mxu1 %v6795_v7  ;;  %12006 = vmatprep.mubr.msk.bf16.mxu1 %vm12904_vm2, %v16358_v20 }
 0xcf2   : > { %8049 = vrot.lane.b32.xlu1 %v14684_v43, %s16393_s6  ;;  %8097 = vrot.lane.b32.xlu0 %v14692_v40, %s16393_s6 }
 0xcf3   : > { %12016 = vmatprep.subr.bf16.mxu1 %v16358_v20  ;;  %v6888_v31 = vpop.permute.xlu1 %6887 }
 0xcf4   : > { %12001 = vmatmul.mubr.msk.bf16.vlgmr.msra.gmra.mxu0 %vm1265_vm3, %v5811_v61  ;;  %v6893_v43 = vsel %vm1265_vm3, %v6888_v31, 0 }
 0xcf5   : > { %12011 = vmatpush3.bf16.xpose.msra.mxu0 %v6844_v33  ;;  %12012 = vmatprep.mubr.msk.bf16.mxu0 %vm12904_vm2, %v16358_v20 }
 0xcf6   : > { %8145 = vrot.lane.b32.xlu1 %v14700_v18, %s16393_s6  ;;  %8193 = vrot.lane.b32.xlu0 %v14712_v0, %s16393_s6 }
 0xcf7   : > { %12022 = vmatprep.subr.bf16.mxu0 %v16358_v20  ;;  %v6937_v40 = vpop.permute.xlu0 %6936 }
 0xcf8   : > { %12007 = vmatmul.mubr.msk.bf16.vlgmr.msra.gmra.mxu1 %vm1265_vm3, %v5812_v39  ;;  %v6942_v18 = vsel %vm1265_vm3, %v6937_v40, 0 }
 0xcf9   : > { %12017 = vmatpush3.bf16.xpose.msra.mxu1 %v6893_v43  ;;  %12018 = vmatprep.mubr.msk.bf16.mxu1 %vm12904_vm2, %v16358_v20 }
 0xcfa   : > { %8241 = vrot.lane.b32.xlu1 %v14720_v28, %s16393_s6  ;;  %8289 = vrot.lane.b32.xlu0 %v14730_v3, %s16393_s6  ;;  %v5815_v3 = vpack.c.bf16 %v5783_v48, %v5783_v48 }
 0xcfb   : > { %12028 = vmatprep.subr.bf16.mxu1 %v16358_v20  ;;  %v6986_v0 = vpop.permute.xlu1 %6985 }
 0xcfc   : > { %12013 = vmatmul.mubr.msk.bf16.vlgmr.msra.gmra.mxu0 %vm1265_vm3, %v5813_v58  ;;  %v6991_v28 = vsel %vm1265_vm3, %v6986_v0, 0 }
 0xcfd   : > { %12023 = vmatpush3.bf16.xpose.msra.mxu0 %v6942_v18  ;;  %12024 = vmatprep.mubr.msk.bf16.mxu0 %vm12904_vm2, %v16358_v20 }
 0xcfe   : > { %8337 = vrot.lane.b32.xlu1 %v14740_v36, %s16393_s6  ;;  %8385 = vrot.lane.b32.xlu0 %v14752_v19, %s16393_s6  ;;  %v5816_v36 = vpack.c.bf16 %v5784_v30, %v5784_v30 }
 0xcff   : > { %12034 = vmatprep.subr.bf16.mxu0 %v16358_v20 }
 0xd00   : > { %12019 = vmatmul.mubr.msk.bf16.vlgmr.msra.gmra.mxu1 %vm1265_vm3, %v5814_v12 }
 0xd01   : > { %12029 = vmatpush3.bf16.xpose.msra.mxu1 %v6991_v28  ;;  %12030 = vmatprep.mubr.msk.bf16.mxu1 %vm12904_vm2, %v16358_v20 }
 0xd02   : > { %8529 = vrot.lane.b32.xlu1 %v14785_v11, %s16393_s6  ;;  %8481 = vrot.lane.b32.xlu0 %v14772_v52, %s16393_s6  ;;  %v5785_v11 = vmul.f32 0.35355338, %v14903_v62  ;;  %v5788_v62 = vmul.f32 0.35355338, %v14942_v9 }
 0xd03   : > { %12040 = vmatprep.subr.bf16.mxu1 %v16358_v20 }
 0xd04   : > { %12025 = vmatmul.mubr.msk.bf16.vlgmr.msra.gmra.mxu0 %vm1265_vm3, %v5815_v3 }
 0xd05   : > { %12036 = vmatprep.mubr.msk.bf16.mxu0 %vm12904_vm2, %v16358_v20 }
 0xd06   : > { %8625 = vrot.lane.b32.xlu1 %v14814_v60, %s16393_s6  ;;  %8577 = vrot.lane.b32.xlu0 %v14798_v2, %s16393_s6 }
 0xd08   : > { %12031 = vmatmul.mubr.msk.bf16.vlgmr.msra.gmra.mxu1 %vm1265_vm3, %v5816_v36 }
 0xd09   : > { %12042 = vmatprep.mubr.msk.bf16.mxu1 %vm12904_vm2, %v16358_v20 }
 0xd0a   : > { %8721 = vrot.lane.b32.xlu1 %v14834_v38, %s16393_s6  ;;  %8673 = vrot.lane.b32.xlu0 %v14819_v15, %s16393_s6  ;;  %v5817_v15 = vpack.c.bf16 %v5785_v11, %v5785_v11  ;;  %v5786_v38 = vmul.f32 0.35355338, %v14914_v49  ;;  %v5820_v49 = vpack.c.bf16 %v5788_v62, %v5788_v62 }
 0xd0d   : > { %v7035_v19 = vpop.permute.xlu0 %7034 }
 0xd0e   : > { %8913 = vrot.lane.b32.xlu1 %v14890_v41, %s16393_s6  ;;  %8769 = vrot.lane.b32.xlu0 %v14849_v8, %s16393_s6  ;;  %v7040_v52 = vsel %vm1265_vm3, %v7035_v19, 0 }
 0xd0f   : > { %12035 = vmatpush3.bf16.xpose.msra.mxu0 %v7040_v52 }
 0xd10   : > { %12046 = vmatprep.subr.bf16.mxu0 %v16358_v20 }
 0xd11   : > { %v7084_v2 = vpop.permute.xlu1 %7083 }
 0xd12   : > { %8433 = vrot.lane.b32.xlu1 %v14762_v37, %s16393_s6  ;;  %8865 = vrot.lane.b32.xlu0 %v14877_v13, %s16393_s6  ;;  %v7089_v60 = vsel %vm1265_vm3, %v7084_v2, 0  ;;  %v5818_v37 = vpack.c.bf16 %v5786_v38, %v5786_v38  ;;  %v5787_v13 = vmul.f32 0.35355338, %v14928_v59 }
 0xd13   : > { %12041 = vmatpush3.bf16.xpose.msra.mxu1 %v7089_v60 }
 0xd14   : > { %12052 = vmatprep.subr.bf16.mxu1 %v16358_v20 }
 0xd15   : > { %v7133_v8 = vpop.permute.xlu0 %7132 }
 0xd16   : > { %8817 = vrot.lane.b32.xlu1 %v14862_v63, %s16393_s6  ;;  %v7138_v45 = vsel %vm1265_vm3, %v7133_v8, 0  ;;  %12037 = vmatmul.mubr.msk.bf16.vlgmr.msra.gmra.mxu0 %vm1265_vm3, %v5817_v15  ;;  %v5819_v63 = vpack.c.bf16 %v5787_v13, %v5787_v13 }
 0xd17   : > { %12047 = vmatpush3.bf16.xpose.msra.mxu0 %v7138_v45  ;;  %12048 = vmatprep.mubr.msk.bf16.mxu0 %vm12904_vm2, %v16358_v20 }
 0xd18   : > { %12058 = vmatprep.subr.bf16.mxu0 %v16358_v20 }
 0xd19   : > { %v7182_v6 = vpop.permute.xlu1 %7181 }
 0xd1a   : > { %v7187_v41 = vsel %vm1265_vm3, %v7182_v6, 0  ;;  %12043 = vmatmul.mubr.msk.bf16.vlgmr.msra.gmra.mxu1 %vm1265_vm3, %v5818_v37 }
 0xd1b   : > { %12053 = vmatpush3.bf16.xpose.msra.mxu1 %v7187_v41  ;;  %12054 = vmatprep.mubr.msk.bf16.mxu1 %vm12904_vm2, %v16358_v20 }
 0xd1c   : > { %12064 = vmatprep.subr.bf16.mxu1 %v16358_v20 }
 0xd1e   : > { %12049 = vmatmul.mubr.msk.bf16.vlgmr.msra.gmra.mxu0 %vm1265_vm3, %v5819_v63  ;;  %v5789_v63 = vmul.f32 0.35355338, %v14959_v27 }
 0xd1f   : > { %12060 = vmatprep.mubr.msk.bf16.mxu0 %vm12904_vm2, %v16358_v20 }
 0xd22   : > { %12055 = vmatmul.mubr.msk.bf16.vlgmr.msra.gmra.mxu1 %vm1265_vm3, %v5820_v49 }
 0xd23   : > { %12066 = vmatprep.mubr.msk.bf16.mxu1 %vm12904_vm2, %v16358_v20 }
 0xd2f   : > { %v15132_v59 = vpop.f32.mrf.mxu0 }
 0xd30   : > { %v7425_v44 = vsel %vm1265_vm3, %v15132_v59, -inf }
 0xd31   : > { %v11894_v4 = vpop.f32.mrf.mxu0  ;;  %7426 = vmax.xlane.f32.xlu0 %v7425_v44 }
 0xd33   : > { %v5903_v9 = vpop.f32.mrf.mxu0  ;;  %v15136_v51 = vpop.f32.mrf.mxu1 }
 0xd34   : > { %v7428_v31 = vsel %vm1265_vm3, %v15136_v51, -inf  ;;  %v5821_v9 = vpack.c.bf16 %v5789_v63, %v5789_v63 }
 0xd35   : > { %v11895_v21 = vpop.f32.mrf.mxu0  ;;  %v11900_v29 = vpop.f32.mrf.mxu1 }
 0xd36   : > { %v5790_v21 = vmul.f32 0.35355338, %v14970_v47 }
 0xd37   : > { %v5952_v7 = vpop.f32.mrf.mxu1  ;;  %v15138_v1 = vpop.f32.mrf.mxu0 }
 0xd38   : > { %v7431_v61 = vsel %vm1265_vm3, %v15138_v1, -inf  ;;  %v5822_v27 = vpack.c.bf16 %v5790_v21, %v5790_v21 }
 0xd39   : > { %v11901_v35 = vpop.f32.mrf.mxu1  ;;  %v11906_v33 = vpop.f32.mrf.mxu0  ;;  %7432 = vmax.xlane.f32.xlu0 %v7431_v61  ;;  %v5791_v61 = vmul.f32 0.35355338, %v14984_v50 }
 0xd3a   : > { %7429 = vmax.xlane.f32.xlu1 %v7428_v31 }
 0xd3b   : > { %v6001_v39 = vpop.f32.mrf.mxu0  ;;  %v15144_v22 = vpop.f32.mrf.mxu1  ;;  %v5823_v31 = vpack.c.bf16 %v5791_v61, %v5791_v61 }
 0xd3c   : > { %v7434_v43 = vsel %vm1265_vm3, %v15144_v22, -inf  ;;  %v5792_v39 = vmul.f32 0.35355338, %v14998_v5 }
 0xd3d   : > { %v11907_v40 = vpop.f32.mrf.mxu0  ;;  %v11912_v58 = vpop.f32.mrf.mxu1  ;;  %7435 = vmax.xlane.f32.xlu0 %v7434_v43 }
 0xd3e   : > { %v5824_v58 = vpack.c.bf16 %v5792_v39, %v5792_v39 }
 0xd3f   : > { %v6050_v25 = vpop.f32.mrf.mxu1  ;;  %v15148_v18 = vpop.f32.mrf.mxu0 }
 0xd40   : > { %v7437_v0 = vsel %vm1265_vm3, %v15148_v18, -inf }
 0xd41   : > { %v11913_v12 = vpop.f32.mrf.mxu1  ;;  %v11918_v48 = vpop.f32.mrf.mxu0  ;;  %7438 = vmax.xlane.f32.xlu0 %v7437_v0 }
 0xd43   : > { %v6099_v28 = vpop.f32.mrf.mxu0  ;;  %v15152_v3 = vpop.f32.mrf.mxu1 }
 0xd44   : > { %v7440_v30 = vsel %vm1265_vm3, %v15152_v3, -inf }
 0xd45   : > { %7441 = vmax.xlane.f32.xlu1 %v7440_v30  ;;  %v11919_v36 = vpop.f32.mrf.mxu0  ;;  %v11924_v19 = vpop.f32.mrf.mxu1 }
 0xd47   : > { %v6148_v52 = vpop.f32.mrf.mxu1  ;;  %v15156_v11 = vpop.f32.mrf.mxu0 }
 0xd48   : > { %v7443_v2 = vsel %vm1265_vm3, %v15156_v11, -inf }
 0xd49   : > { %v11925_v60 = vpop.f32.mrf.mxu1  ;;  %v11930_v15 = vpop.f32.mrf.mxu0  ;;  %7444 = vmax.xlane.f32.xlu0 %v7443_v2 }
 0xd4b   : > { %v6197_v38 = vpop.f32.mrf.mxu0  ;;  %v15160_v8 = vpop.f32.mrf.mxu1 }
 0xd4c   : > { %v7231_v45 = vpop.permute.xlu0 %7230  ;;  %v7446_v37 = vsel %vm1265_vm3, %v15160_v8, -inf }
 0xd4d   : > { %v7236_v13 = vsel %vm1265_vm3, %v7231_v45, 0  ;;  %7447 = vmax.xlane.f32.xlu1 %v7446_v37  ;;  %v11931_v6 = vpop.f32.mrf.mxu0  ;;  %v11936_v41 = vpop.f32.mrf.mxu1 }
 0xd4e   : > { %12059 = vmatpush3.bf16.xpose.msra.mxu0 %v7236_v13 }
 0xd4f   : > { %v6246_v62 = vpop.f32.mrf.mxu1  ;;  %12070 = vmatprep.subr.bf16.mxu0 %v16358_v20 }
 0xd50   : > { %v7280_v49 = vpop.permute.xlu1 %7279 }
 0xd51   : > { %v7285_v44 = vsel %vm1265_vm3, %v7280_v49, 0  ;;  %v11937_v4 = vpop.f32.mrf.mxu1 }
 0xd52   : > { %12065 = vmatpush3.bf16.xpose.msra.mxu1 %v7285_v44 }
 0xd53   : > { %12076 = vmatprep.subr.bf16.mxu1 %v16358_v20 }
 0xd54   : > { %v7329_v29 = vpop.permute.xlu0 %7328 }
 0xd55   : > { %v7334_v7 = vsel %vm1265_vm3, %v7329_v29, 0  ;;  %12061 = vmatmul.mubr.msk.bf16.vlgmr.msra.gmra.mxu0 %vm1265_vm3, %v5821_v9 }
 0xd56   : > { %12071 = vmatpush3.bf16.xpose.msra.mxu0 %v7334_v7  ;;  %12072 = vmatprep.mubr.msk.bf16.mxu0 %vm12904_vm2, %v16358_v20 }
 0xd57   : > { %12082 = vmatprep.subr.bf16.mxu0 %v16358_v20 }
 0xd58   : > { %v7378_v35 = vpop.permute.xlu1 %7377  ;;  %v7810_v47 = vpop.permute.xlu0 %7809 }
 0xd59   : > { %v7383_v33 = vsel %vm1265_vm3, %v7378_v35, 0  ;;  %12067 = vmatmul.mubr.msk.bf16.vlgmr.msra.gmra.mxu1 %vm1265_vm3, %v5822_v27  ;;  %v7815_v43 = vsel %vm3220_vm4, %v7810_v47, 0 }
 0xd5a   : > { %12077 = vmatpush3.bf16.xpose.msra.mxu1 %v7383_v33  ;;  %12078 = vmatprep.mubr.msk.bf16.mxu1 %vm12904_vm2, %v16358_v20 }
 0xd5b   : > { %12088 = vmatprep.subr.bf16.mxu1 %v16358_v20 }
 0xd5c   : > { %v7858_v50 = vpop.permute.xlu1 %7857  ;;  %v15208_v62 = vpop.permute.xlu0 %7905 }
 0xd5d   : > { %12073 = vmatmul.mubr.msk.bf16.vlgmr.msra.gmra.mxu0 %vm1265_vm3, %v5823_v31  ;;  %v15184_v40 = vpop.f32.mrf.mxu0  ;;  %v7863_v5 = vsel %vm3220_vm4, %v7858_v50, 0 }
 0xd5e   : > { %12083 = vmatpush3.bf16.msra.mxu0 %v7815_v43  ;;  %12084 = vmatprep.mubr.msk.bf16.mxu0 %vm12904_vm2, %v16358_v20  ;;  %v7449_v25 = vsel %vm1265_vm3, %v15184_v40, -inf }
 0xd5f   : > { %12094 = vmatprep.subr.bf16.mxu0 %v16358_v20  ;;  %7450 = vmax.xlane.f32.xlu0 %v7449_v25  ;;  %v11942_v0 = vpop.f32.mrf.mxu0 }
 0xd60   : > { %v15210_v49 = vpop.permute.xlu0 %8001  ;;  %v15212_v44 = vpop.permute.xlu1 %7953 }
 0xd61   : > { %12079 = vmatmul.mubr.msk.bf16.vlgmr.msra.gmra.mxu1 %vm1265_vm3, %v5824_v58  ;;  %v15193_v12 = vpop.f32.mrf.mxu1  ;;  %v6295_v48 = vpop.f32.mrf.mxu0 }
 0xd62   : > { %12089 = vmatpush3.bf16.msra.mxu1 %v7863_v5  ;;  %12090 = vmatprep.mubr.msk.bf16.mxu1 %vm12904_vm2, %v16358_v20  ;;  %v7452_v28 = vsel %vm1265_vm3, %v15193_v12, -inf }
 0xd63   : > { %12100 = vmatprep.subr.bf16.mxu1 %v16358_v20  ;;  %7453 = vmax.xlane.f32.xlu1 %v7452_v28  ;;  %v11943_v30 = vpop.f32.mrf.mxu0  ;;  %v11948_v36 = vpop.f32.mrf.mxu1 }
 0xd64   : > { %v15214_v4 = vpop.permute.xlu0 %8097  ;;  %v15216_v9 = vpop.permute.xlu1 %8049 }
 0xd65   : > { %v6344_v19 = vpop.f32.mrf.mxu1  ;;  %v15200_v52 = vpop.f32.mrf.mxu0 }
 0xd66   : > { %v7455_v2 = vsel %vm1265_vm3, %v15200_v52, -inf }
 0xd67   : > { %v11949_v60 = vpop.f32.mrf.mxu1  ;;  %v11954_v15 = vpop.f32.mrf.mxu0  ;;  %7456 = vmax.xlane.f32.xlu0 %v7455_v2 }
 0xd68   : > { %v15218_v21 = vpop.permute.xlu0 %8193  ;;  %v15220_v29 = vpop.permute.xlu1 %8145 }
 0xd69   : > { %v6393_v38 = vpop.f32.mrf.mxu0  ;;  %v15204_v45 = vpop.f32.mrf.mxu1 }
 0xd6a   : > { %v7458_v37 = vsel %vm1265_vm3, %v15204_v45, -inf }
 0xd6b   : > { %7459 = vmax.xlane.f32.xlu1 %v7458_v37  ;;  %v11955_v13 = vpop.f32.mrf.mxu0  ;;  %v11960_v6 = vpop.f32.mrf.mxu1 }
 0xd6c   : > { %v15226_v35 = vpop.permute.xlu0 %8289  ;;  %v15230_v31 = vpop.permute.xlu1 %8241 }
 0xd6d   : > { %v6442_v41 = vpop.f32.mrf.mxu1 }
 0xd6f   : > { %v11961_v63 = vpop.f32.mrf.mxu1 }
 0xd70   : > { %v15236_v5 = vpop.permute.xlu0 %8385  ;;  %v15240_v30 = vpop.permute.xlu1 %8337 }
 0xd74   : > { %v15244_v15 = vpop.permute.xlu0 %8481  ;;  %v15248_v13 = vpop.permute.xlu1 %8529 }
 0xd9c   : > { %v15222_v7 = vpop.f32.mrf.mxu0 }
 0xd9d   : > { %v7461_v27 = vsel %vm1265_vm3, %v15222_v7, -inf }
 0xd9e   : > { %v11966_v61 = vpop.f32.mrf.mxu0  ;;  %7462 = vmax.xlane.f32.xlu0 %v7461_v27 }
 0xd9f   : > { %v15252_v61 = vpop.permute.xlu0 %8577 }
 0xda0   : > { %v6491_v33 = vpop.f32.mrf.mxu0  ;;  %v15228_v47 = vpop.f32.mrf.mxu1 }
 0xda1   : > { %v7464_v39 = vsel %vm1265_vm3, %v15228_v47, -inf }
 0xda2   : > { %7465 = vmax.xlane.f32.xlu1 %v7464_v39  ;;  %v11967_v43 = vpop.f32.mrf.mxu0  ;;  %v11972_v50 = vpop.f32.mrf.mxu1 }
 0xda3   : > { %v15254_v43 = vpop.permute.xlu1 %8625 }
 0xda4   : > { %v6540_v58 = vpop.f32.mrf.mxu1  ;;  %v15234_v25 = vpop.f32.mrf.mxu0  ;;  %16394 = vst [vmem:[#allocation19_spill] sm:$0xff] %v15254_v43 }
 0xda5   : > { %v7467_v0 = vsel %vm1265_vm3, %v15234_v25, -inf }
 0xda6   : > { %v11973_v48 = vpop.f32.mrf.mxu1  ;;  %v11978_v28 = vpop.f32.mrf.mxu0  ;;  %7468 = vmax.xlane.f32.xlu0 %v7467_v0 }
 0xda7   : > { %v15260_v28 = vpop.permute.xlu0 %8673 }
 0xda8   : > { %v6589_v36 = vpop.f32.mrf.mxu0  ;;  %v15242_v19 = vpop.f32.mrf.mxu1  ;;  %16395 = vst [vmem:[#allocation21_spill] sm:$0xff] %v15260_v28 }
 0xdaa   : > { %v11979_v2 = vpop.f32.mrf.mxu0  ;;  %v11984_v60 = vpop.f32.mrf.mxu1 }
 0xdab   : > { %v15266_v60 = vpop.permute.xlu1 %8721 }
 0xdac   : > { %v6638_v38 = vpop.f32.mrf.mxu1  ;;  %v15246_v37 = vpop.f32.mrf.mxu0  ;;  %16396 = vst [vmem:[#allocation2_spill] sm:$0xff] %v15266_v60 }
 0xdae   : > { %v11985_v6 = vpop.f32.mrf.mxu1  ;;  %v11990_v41 = vpop.f32.mrf.mxu0 }
 0xdb0   : > { %v6687_v63 = vpop.f32.mrf.mxu0  ;;  %v15250_v27 = vpop.f32.mrf.mxu1 }
 0xdb1   : > { %v15274_v63 = vpop.permute.xlu0 %8769 }
 0xdb2   : > { %v11991_v33 = vpop.f32.mrf.mxu0  ;;  %v11996_v39 = vpop.f32.mrf.mxu1  ;;  %16397 = vst [vmem:[#allocation3_spill] sm:$0xff] %v15274_v63 }
 0xdb3   : > { %9009 = vrot.lane.b32.xlu1 %v14918_v14, %s16393_s6  ;;  %v15276_v39 = vpop.permute.xlu1 %8913 }
 0xdb4   : > { %v6736_v50 = vpop.f32.mrf.mxu1  ;;  %v15258_v58 = vpop.f32.mrf.mxu0  ;;  %16398 = vst [vmem:[#allocation4_spill] sm:$0xff] %v15276_v39 }
 0xdb6   : > { %v11997_v0 = vpop.f32.mrf.mxu1  ;;  %v12002_v48 = vpop.f32.mrf.mxu0 }
 0xdb7   : > { %9057 = vrot.lane.b32.xlu1 %v14933_v53, %s16393_s6 }
 0xdb8   : > { %v6785_v36 = vpop.f32.mrf.mxu0  ;;  %v15264_v2 = vpop.f32.mrf.mxu1 }
 0xdba   : > { %v12003_v38 = vpop.f32.mrf.mxu0  ;;  %v12008_v6 = vpop.f32.mrf.mxu1 }
 0xdbb   : > { %9105 = vrot.lane.b32.xlu1 %v14946_v24, %s16393_s6  ;;  %v15280_v38 = vpop.permute.xlu0 %8865 }
 0xdbc   : > { %v6834_v14 = vpop.f32.mrf.mxu1  ;;  %8961 = vrot.lane.b32.xlu0 %v14908_v32, %s16393_s6  ;;  %v15272_v41 = vpop.f32.mrf.mxu0  ;;  %16399 = vst [vmem:[#allocation5_spill] sm:$0xff] %v15280_v38 }
 0xdbd   : > { %v15284_v14 = vpop.permute.xlu1 %8433 }
 0xdbe   : > { %v12009_v33 = vpop.f32.mrf.mxu1  ;;  %v12014_v53 = vpop.f32.mrf.mxu0 }
 0xdbf   : > { %v7427_v10 = vpop.xlane.xlu0 %7426 }
 0xdc0   : > { %v6883_v50 = vpop.f32.mrf.mxu0  ;;  %v15278_v0 = vpop.f32.mrf.mxu1  ;;  %v7521_v53 = vsub.f32 %v15132_v59, %v7427_v10 }
 0xdc1   : > { %v15289_v17 = vpop.permute.xlu1 %8817 }
 0xdc2   : > { %v12015_v48 = vpop.f32.mrf.mxu0  ;;  %v12020_v36 = vpop.f32.mrf.mxu1  ;;  %16400 = vst [vmem:[#allocation7_spill] sm:$0xff] %v15289_v17  ;;  %v7553_v46 = vmul.f32 1.442695, %v7521_v53  ;;  %v7473_v53 = vsel %vm1265_vm3, %v15246_v37, -inf }
 0xdc3   : > { %v7433_v48 = vpop.xlane.xlu0 %7432 }
 0xdc4   : > { %v6932_v24 = vpop.f32.mrf.mxu1  ;;  %v15282_v6 = vpop.f32.mrf.mxu0  ;;  %v7523_v23 = vsub.f32 %v15138_v1, %v7433_v48  ;;  %12696 = vpow2.f32 %v7553_v46 }
 0xdc5   : > { %v7430_v26 = vpop.xlane.xlu1 %7429 }
 0xdc6   : > { %v12021_v32 = vpop.f32.mrf.mxu1  ;;  %v12026_v57 = vpop.f32.mrf.mxu0 }
 0xdc7   : > { %v7436_v39 = vpop.xlane.xlu0 %7435  ;;  %v7522_v57 = vsub.f32 %v15136_v51, %v7430_v26 }
 0xdc8   : > { %v6981_v34 = vpop.f32.mrf.mxu0  ;;  %v15286_v33 = vpop.f32.mrf.mxu1 }
 0xdc9   : > { %v7557_v34 = vmul.f32 1.442695, %v7523_v23  ;;  %v7555_v32 = vmul.f32 1.442695, %v7522_v57 }
 0xdca   : > { %v12027_v50 = vpop.f32.mrf.mxu0  ;;  %v12032_v55 = vpop.f32.mrf.mxu1 }
 0xdcb   : > { %v7439_v38 = vpop.xlane.xlu0 %7438  ;;  %12698 = vpow2.f32 %v7557_v34  ;;  %v7524_v55 = vsub.f32 %v15144_v22, %v7436_v39  ;;  %v7470_v22 = vsel %vm1265_vm3, %v15242_v19, -inf  ;;  %v7479_v39 = vsel %vm1265_vm3, %v15258_v58, -inf }
 0xdcc   : > { %v7030_v36 = vpop.f32.mrf.mxu1  ;;  %12700 = vpow2.f32 %v7555_v32  ;;  %v7525_v59 = vsub.f32 %v15148_v18, %v7439_v38 }
 0xdcd   : > { %v7559_v26 = vmul.f32 1.442695, %v7524_v55 }
 0xdce   : > { %v12033_v24 = vpop.f32.mrf.mxu1  ;;  %v7561_v50 = vmul.f32 1.442695, %v7525_v59  ;;  %v7442_v48 = vpop.xlane.xlu1 %7441 }
 0xdcf   : > { %12702 = vpow2.f32 %v7559_v26  ;;  %v7526_v57 = vsub.f32 %v15152_v3, %v7442_v48 }
 0xdd0   : > { %12704 = vpow2.f32 %v7561_v50  ;;  %v7485_v50 = vsel %vm1265_vm3, %v15272_v41, -inf }
 0xdd1   : > { %v15305_v18 = vpop.eup %12696 }
 0xdd2   : > { %v7445_v36 = vpop.xlane.xlu0 %7444  ;;  %v7617_v59 = vsel %vm1265_vm3, %v15305_v18, 0.0 }
 0xdd3   : > { %v7527_v55 = vsub.f32 %v15156_v11, %v7445_v36  ;;  %v7482_v11 = vsel %vm1265_vm3, %v15264_v2, -inf }
 0xdd5   : > { %v7565_v48 = vmul.f32 1.442695, %v7527_v55 }
 0xdd6   : > { %v15293_v60 = vpop.f32.mrf.mxu0 }
 0xdd8   : > { %v12038_v10 = vpop.f32.mrf.mxu0  ;;  %v15317_v3 = vpop.eup %12698 }
 0xdd9   : > { %v7476_v10 = vsel %vm1265_vm3, %v15250_v27, -inf  ;;  %v15323_v36 = vpop.eup %12700 }
 0xdda   : > { %v7079_v1 = vpop.f32.mrf.mxu0  ;;  %v15299_v46 = vpop.f32.mrf.mxu1 }
 0xddb   : > { %7474 = vmax.xlane.f32.xlu0 %v7473_v53 }
 0xddc   : > { %v12039_v23 = vpop.f32.mrf.mxu0  ;;  %v12044_v51 = vpop.f32.mrf.mxu1 }
 0xddd   : > { %v7563_v23 = vmul.f32 1.442695, %v7526_v57  ;;  %v15330_v55 = vpop.eup %12702 }
 0xdde   : > { %v7128_v38 = vpop.f32.mrf.mxu1  ;;  %v15307_v24 = vpop.f32.mrf.mxu0 }
 0xddf   : > { %7471 = vmax.xlane.f32.xlu1 %v7470_v22  ;;  %7480 = vmax.xlane.f32.xlu0 %v7479_v39  ;;  %v7448_v22 = vpop.xlane.xlu1 %7447  ;;  %12706 = vpow2.f32 %v7563_v23  ;;  %v15336_v23 = vpop.eup %12704 }
 0xde0   : > { %v12045_v34 = vpop.f32.mrf.mxu1  ;;  %v12050_v32 = vpop.f32.mrf.mxu0  ;;  %12708 = vpow2.f32 %v7565_v48  ;;  %v7528_v57 = vsub.f32 %v15160_v8, %v7448_v22  ;;  %v7626_v8 = vsel %vm1265_vm3, %v15330_v55, 0.0  ;;  %v7494_v48 = vsel %vm1265_vm3, %v15286_v33, -inf }
 0xde1   : > { %v7620_v34 = vsel %vm1265_vm3, %v15323_v36, 0.0  ;;  %v7623_v32 = vsel %vm1265_vm3, %v15317_v3, 0.0 }
 0xde2   : > { %v7177_v53 = vpop.f32.mrf.mxu0  ;;  %v15315_v1 = vpop.f32.mrf.mxu1 }
 0xde3   : > { %7477 = vmax.xlane.f32.xlu1 %v7476_v10  ;;  %7618 = vadd.xlane.f32.xlu0 %v7617_v59  ;;  %v7567_v10 = vmul.f32 1.442695, %v7528_v57  ;;  %v7488_v59 = vsel %vm1265_vm3, %v15278_v0, -inf  ;;  %v7491_v53 = vsel %vm1265_vm3, %v15282_v6, -inf  ;;  %v7503_v57 = vsel %vm1265_vm3, %v15307_v24, -inf }
 0xde4   : > { %v12051_v26 = vpop.f32.mrf.mxu0  ;;  %v12056_v51 = vpop.f32.mrf.mxu1 }
 0xde5   : > { %12710 = vpow2.f32 %v7567_v10  ;;  %v7629_v26 = vsel %vm1265_vm3, %v15336_v23, 0.0  ;;  %v7506_v10 = vsel %vm1265_vm3, %v15315_v1, -inf }
 0xde6   : > { %v7226_v39 = vpop.f32.mrf.mxu1 }
 0xde7   : > { %7483 = vmax.xlane.f32.xlu1 %v7482_v11  ;;  %7486 = vmax.xlane.f32.xlu0 %v7485_v50  ;;  %v7497_v11 = vsel %vm1265_vm3, %v15293_v60, -inf }
 0xde8   : > { %v12057_v38 = vpop.f32.mrf.mxu1 }
 0xde9   : > { %v7500_v38 = vsel %vm1265_vm3, %v15299_v46, -inf }
 0xdeb   : > { %7621 = vadd.xlane.f32.xlu1 %v7620_v34  ;;  %7624 = vadd.xlane.f32.xlu0 %v7623_v32 }
 0xdec   : > { %v15342_v51 = vpop.eup %12706 }
 0xded   : > { %v15348_v50 = vpop.eup %12708  ;;  %v7632_v22 = vsel %vm1265_vm3, %v15342_v51, 0.0 }
 0xdee   : > { %v7635_v39 = vsel %vm1265_vm3, %v15348_v50, 0.0 }
 0xdef   : > { %7489 = vmax.xlane.f32.xlu1 %v7488_v59  ;;  %7492 = vmax.xlane.f32.xlu0 %v7491_v53  ;;  %v7451_v59 = vpop.xlane.xlu0 %7450  ;;  %v7454_v53 = vpop.xlane.xlu1 %7453 }
 0xdf2   : > { %v15358_v34 = vpop.eup %12710 }
 0xdf3   : > { %7627 = vadd.xlane.f32.xlu1 %v7626_v8  ;;  %7630 = vadd.xlane.f32.xlu0 %v7629_v26  ;;  %v7638_v32 = vsel %vm1265_vm3, %v15358_v34, 0.0  ;;  %v7530_v8 = vsub.f32 %v15193_v12, %v7454_v53  ;;  %v7457_v26 = vpop.xlane.xlu0 %7456 }
 0xdf7   : > { %7495 = vmax.xlane.f32.xlu1 %v7494_v48  ;;  %7498 = vmax.xlane.f32.xlu0 %v7497_v11  ;;  %v7529_v48 = vsub.f32 %v15184_v40, %v7451_v59  ;;  %v7571_v11 = vmul.f32 1.442695, %v7530_v8 }
 0xdf9   : > { %12712 = vpow2.f32 %v7571_v11 }
 0xdfb   : > { %7633 = vadd.xlane.f32.xlu1 %v7632_v22  ;;  %7636 = vadd.xlane.f32.xlu0 %v7635_v39  ;;  %v7531_v22 = vsub.f32 %v15200_v52, %v7457_v26  ;;  %v7460_v39 = vpop.xlane.xlu1 %7459 }
 0xdff   : > { %7501 = vmax.xlane.f32.xlu1 %v7500_v38  ;;  %7504 = vmax.xlane.f32.xlu0 %v7503_v57  ;;  %v7569_v38 = vmul.f32 1.442695, %v7529_v48  ;;  %v7573_v57 = vmul.f32 1.442695, %v7531_v22 }
 0xe01   : > { %12714 = vpow2.f32 %v7569_v38 }
 0xe02   : > { %12716 = vpow2.f32 %v7573_v57 }
 0xe03   : > { %7639 = vadd.xlane.f32.xlu1 %v7638_v32  ;;  %v7532_v32 = vsub.f32 %v15204_v45, %v7460_v39 }
 0xe05   : > { %v7575_v63 = vmul.f32 1.442695, %v7532_v32 }
 0xe06   : > { %v15380_v11 = vpop.eup %12712 }
 0xe07   : > { %7507 = vmax.xlane.f32.xlu1 %v7506_v10  ;;  %12718 = vpow2.f32 %v7575_v63  ;;  %v7644_v32 = vsel %vm1265_vm3, %v15380_v11, 0.0 }
 0xe0e   : > { %v15384_v63 = vpop.eup %12714 }
 0xe15   : > { %v15368_v17 = vpop.f32.mrf.mxu0 }
 0xe16   : > { %v7509_v12 = vsel %vm1265_vm3, %v15368_v17, -inf }
 0xe17   : > { %v12062_v10 = vpop.f32.mrf.mxu0  ;;  %7510 = vmax.xlane.f32.xlu0 %v7509_v12 }
 0xe18   : > { %v15390_v10 = vpop.eup %12716 }
 0xe19   : > { %v7275_v40 = vpop.f32.mrf.mxu0  ;;  %v15372_v59 = vpop.f32.mrf.mxu1 }
 0xe1a   : > { %v7512_v52 = vsel %vm1265_vm3, %v15372_v59, -inf }
 0xe1b   : > { %v12063_v53 = vpop.f32.mrf.mxu0  ;;  %v12068_v8 = vpop.f32.mrf.mxu1  ;;  %7513 = vmax.xlane.f32.xlu1 %v7512_v52 }
 0xe1c   : > { %v7641_v8 = vsel %vm1265_vm3, %v15384_v63, 0.0 }
 0xe1d   : > { %v7324_v45 = vpop.f32.mrf.mxu1  ;;  %v15376_v26 = vpop.f32.mrf.mxu0 }
 0xe1e   : > { %v7515_v48 = vsel %vm1265_vm3, %v15376_v26, -inf  ;;  %v7647_v45 = vsel %vm1265_vm3, %v15390_v10, 0.0 }
 0xe1f   : > { %v12069_v22 = vpop.f32.mrf.mxu1  ;;  %v12074_v39 = vpop.f32.mrf.mxu0  ;;  %7516 = vmax.xlane.f32.xlu1 %v7515_v48 }
 0xe20   : > { %v15396_v48 = vpop.eup %12718 }
 0xe21   : > { %v7373_v38 = vpop.f32.mrf.mxu0  ;;  %v15382_v57 = vpop.f32.mrf.mxu1 }
 0xe22   : > { %v7518_v12 = vsel %vm1265_vm3, %v15382_v57, -inf }
 0xe23   : > { %v12075_v40 = vpop.f32.mrf.mxu0  ;;  %v12080_v52 = vpop.f32.mrf.mxu1  ;;  %7645 = vadd.xlane.f32.xlu1 %v7644_v32  ;;  %7519 = vmax.xlane.f32.xlu0 %v7518_v12  ;;  %v7650_v32 = vsel %vm1265_vm3, %v15396_v48, 0.0 }
 0xe25   : > { %v7422_v53 = vpop.f32.mrf.mxu1 }
 0xe27   : > { %v12081_v22 = vpop.f32.mrf.mxu1  ;;  %7642 = vadd.xlane.f32.xlu0 %v7641_v8  ;;  %7648 = vadd.xlane.f32.xlu1 %v7647_v45  ;;  %v7463_v39 = vpop.xlane.xlu0 %7462 }
 0xe28   : > { %v7533_v38 = vsub.f32 %v15222_v7, %v7463_v39 }
 0xe2a   : > { %v7577_v43 = vmul.f32 1.442695, %v7533_v38 }
 0xe2b   : > { %v7466_v12 = vpop.xlane.xlu1 %7465  ;;  %7651 = vadd.xlane.f32.xlu0 %v7650_v32 }
 0xe2c   : > { %12720 = vpow2.f32 %v7577_v43  ;;  %v7534_v40 = vsub.f32 %v15228_v47, %v7466_v12 }
 0xe2e   : > { %v7579_v52 = vmul.f32 1.442695, %v7534_v40 }
 0xe2f   : > { %v7469_v53 = vpop.xlane.xlu0 %7468 }
 0xe30   : > { %12722 = vpow2.f32 %v7579_v52  ;;  %v7535_v28 = vsub.f32 %v15234_v25, %v7469_v53  ;;  %v15415_v25 = vpop.permute.xlu1 %9009 }
 0xe31   : > { %16401 = vst [vmem:[#allocation9_spill] sm:$0xff] %v15415_v25 }
 0xe32   : > { %v7581_v22 = vmul.f32 1.442695, %v7535_v28 }
 0xe33   : > { %v15419_v38 = vpop.permute.xlu0 %8961 }
 0xe34   : > { %12724 = vpow2.f32 %v7581_v22  ;;  %v15417_v28 = vpop.permute.xlu1 %9057  ;;  %16403 = vst [vmem:[#allocation8_spill] sm:$0xff] %v15419_v38 }
 0xe35   : > { %16402 = vst [vmem:[#allocation6_spill] sm:$0xff] %v15417_v28 }
 0xe38   : > { %v15421_v32 = vpop.permute.xlu1 %9105 }
 0xe39   : > { %v15403_v8 = vpop.eup %12720  ;;  %16404 = vst [vmem:[#allocation22_spill] sm:$0xff] %v15421_v32 }
 0xe3a   : > { %v7653_v7 = vsel %vm1265_vm3, %v15403_v8, 0.0 }
 0xe3b   : > { %7654 = vadd.xlane.f32.xlu1 %v7653_v7 }
 0xe3d   : > { %v15407_v45 = vpop.eup %12722 }
 0xe3e   : > { %v7656_v43 = vsel %vm1265_vm3, %v15407_v45, 0.0 }
 0xe3f   : > { %7657 = vadd.xlane.f32.xlu0 %v7656_v43 }
 0xe41   : > { %v15411_v47 = vpop.eup %12724 }
 0xe42   : > { %v7659_v39 = vsel %vm1265_vm3, %v15411_v47, 0.0 }
 0xe43   : > { %7660 = vadd.xlane.f32.xlu1 %v7659_v39 }
 0xe64   : > { %v7475_v12 = vpop.xlane.xlu0 %7474 }
 0xe65   : > { %v7537_v40 = vsub.f32 %v15246_v37, %v7475_v12 }
 0xe67   : > { %v7585_v52 = vmul.f32 1.442695, %v7537_v40 }
 0xe68   : > { %v7472_v53 = vpop.xlane.xlu1 %7471  ;;  %v7481_v22 = vpop.xlane.xlu0 %7480 }
 0xe69   : > { %12726 = vpow2.f32 %v7585_v52  ;;  %v7536_v7 = vsub.f32 %v15242_v19, %v7472_v53  ;;  %v7539_v43 = vsub.f32 %v15258_v58, %v7481_v22 }
 0xe6b   : > { %v7583_v39 = vmul.f32 1.442695, %v7536_v7  ;;  %v7589_v42 = vmul.f32 1.442695, %v7539_v43 }
 0xe6c   : > { %v7478_v25 = vpop.xlane.xlu1 %7477  ;;  %v7619_v16 = vpop.xlane.xlu0 %7618 }
 0xe6d   : > { %12728 = vpow2.f32 %v7583_v39  ;;  %v7538_v28 = vsub.f32 %v15250_v27, %v7478_v25 }
 0xe6e   : > { %12730 = vpow2.f32 %v7589_v42 }
 0xe6f   : > { %v7587_v32 = vmul.f32 1.442695, %v7538_v28  ;;  %12732 = vrcp.f32 %v7619_v16 }
 0xe70   : > { %v7484_v38 = vpop.xlane.xlu1 %7483  ;;  %v7487_v37 = vpop.xlane.xlu0 %7486 }
 0xe71   : > { %12734 = vpow2.f32 %v7587_v32  ;;  %v7540_v12 = vsub.f32 %v15264_v2, %v7484_v38  ;;  %v7541_v40 = vsub.f32 %v15272_v41, %v7487_v37 }
 0xe73   : > { %v7591_v19 = vmul.f32 1.442695, %v7540_v12  ;;  %v7593_v52 = vmul.f32 1.442695, %v7541_v40 }
 0xe74   : > { %v7622_v58 = vpop.xlane.xlu1 %7621  ;;  %v7625_v53 = vpop.xlane.xlu0 %7624 }
 0xe75   : > { %12736 = vpow2.f32 %v7591_v19 }
 0xe76   : > { %v15429_v22 = vpop.eup %12726  ;;  %12738 = vpow2.f32 %v7593_v52 }
 0xe77   : > { %12740 = vrcp.f32 %v7622_v58  ;;  %v7665_v42 = vsel %vm1265_vm3, %v15429_v22, 0.0 }
 0xe78   : > { %12742 = vrcp.f32 %v7625_v53  ;;  %v7490_v16 = vpop.xlane.xlu1 %7489  ;;  %7666 = vadd.xlane.f32.xlu1 %v7665_v42  ;;  %v7493_v27 = vpop.xlane.xlu0 %7492  ;;  %v7911_v53 = vsel %vm3220_vm4, %v15208_v62, 0 }
 0xe79   : > { %v7542_v2 = vsub.f32 %v15278_v0, %v7490_v16  ;;  %v7543_v41 = vsub.f32 %v15282_v6, %v7493_v27 }
 0xe7a   : > { %v15435_v25 = vpop.eup %12728 }
 0xe7b   : > { %v15437_v28 = vpop.eup %12730  ;;  %v7595_v38 = vmul.f32 1.442695, %v7542_v2  ;;  %v7597_v32 = vmul.f32 1.442695, %v7543_v41  ;;  %v7662_v7 = vsel %vm1265_vm3, %v15435_v25, 0.0 }
 0xe7c   : > { %v12733_v43 = vpop.eup %12732  ;;  %v7628_v39 = vpop.xlane.xlu1 %7627  ;;  %7663 = vadd.xlane.f32.xlu0 %v7662_v7  ;;  %v7671_v37 = vsel %vm1265_vm3, %v15437_v28, 0.0 }
 0xe7d   : > { %v7631_v12 = vpop.xlane.xlu0 %7630  ;;  %v7745_v0 = vmul.f32 %v12733_v43, %v15305_v18  ;;  %12744 = vpow2.f32 %v7595_v38  ;;  %7672 = vadd.xlane.f32.xlu1 %v7671_v37 }
 0xe7e   : > { %v15444_v6 = vpop.eup %12734  ;;  %12746 = vpow2.f32 %v7597_v32 }
 0xe7f   : > { %v7777_v40 = vpack.c.bf16 %v7745_v0, %v7745_v0  ;;  %12748 = vrcp.f32 %v7628_v39  ;;  %v7668_v19 = vsel %vm1265_vm3, %v15444_v6, 0.0 }
 0xe80   : > { %12750 = vrcp.f32 %v7631_v12  ;;  %v7496_v52 = vpop.xlane.xlu1 %7495  ;;  %7669 = vadd.xlane.f32.xlu0 %v7668_v19  ;;  %v7959_v19 = vsel %vm3220_vm4, %v15212_v44, 0 }
 0xe81   : > { %v7499_v58 = vpop.xlane.xlu0 %7498  ;;  %12085 = vmatmul.mubr.msk.bf16.vlgmr.msra.gmra.mxu0 %vm1265_vm3, %v7777_v40  ;;  %v7544_v18 = vsub.f32 %v15286_v33, %v7496_v52 }
 0xe82   : > { %v7545_v42 = vsub.f32 %v15293_v60, %v7499_v58  ;;  %v15453_v16 = vpop.eup %12736  ;;  %12095 = vmatpush3.bf16.msra.mxu0 %v7911_v53  ;;  %12096 = vmatprep.mubr.msk.bf16.mxu0 %vm12904_vm2, %v16358_v20 }
 0xe83   : > { %v15457_v27 = vpop.eup %12738  ;;  %v7599_v2 = vmul.f32 1.442695, %v7544_v18  ;;  %v7674_v38 = vsel %vm1265_vm3, %v15453_v16, 0.0  ;;  %12106 = vmatprep.subr.bf16.mxu0 %v16358_v20 }
 0xe84   : > { %v7601_v41 = vmul.f32 1.442695, %v7545_v42  ;;  %v12741_v62 = vpop.eup %12740  ;;  %v7634_v32 = vpop.xlane.xlu1 %7633  ;;  %7675 = vadd.xlane.f32.xlu0 %v7674_v38  ;;  %v7677_v60 = vsel %vm1265_vm3, %v15457_v27, 0.0 }
 0xe85   : > { %v7637_v33 = vpop.xlane.xlu0 %7636  ;;  %v12743_v7 = vpop.eup %12742  ;;  %v7746_v43 = vmul.f32 %v12741_v62, %v15323_v36  ;;  %12752 = vpow2.f32 %v7599_v2  ;;  %7678 = vadd.xlane.f32.xlu1 %v7677_v60 }
 0xe86   : > { %v7747_v39 = vmul.f32 %v12743_v7, %v15317_v3  ;;  %12754 = vpow2.f32 %v7601_v41  ;;  %v8007_v3 = vsel %vm3220_vm4, %v15210_v49, 0 }
 0xe87   : > { %v7778_v37 = vpack.c.bf16 %v7746_v43, %v7746_v43  ;;  %12756 = vrcp.f32 %v7634_v32  ;;  %v8103_v43 = vsel %vm3220_vm4, %v15214_v4, 0 }
 0xe88   : > { %v7779_v12 = vpack.c.bf16 %v7747_v39, %v7747_v39  ;;  %12758 = vrcp.f32 %v7637_v33  ;;  %v7502_v0 = vpop.xlane.xlu1 %7501  ;;  %v8055_v33 = vsel %vm3220_vm4, %v15216_v9, 0 }
 0xe89   : > { %v7505_v40 = vpop.xlane.xlu0 %7504  ;;  %12091 = vmatmul.mubr.msk.bf16.vlgmr.msra.gmra.mxu1 %vm1265_vm3, %v7778_v37  ;;  %v7546_v52 = vsub.f32 %v15299_v46, %v7502_v0 }
 0xe8a   : > { %v7547_v36 = vsub.f32 %v15307_v24, %v7505_v40  ;;  %v15471_v58 = vpop.eup %12744  ;;  %12097 = vmatmul.mubr.msk.bf16.vlgmr.msra.gmra.mxu0 %vm1265_vm3, %v7779_v12  ;;  %12101 = vmatpush3.bf16.msra.mxu1 %v7959_v19 }
 0xe8b   : > { %v15476_v53 = vpop.eup %12746  ;;  %12107 = vmatpush3.bf16.msra.mxu0 %v8007_v3  ;;  %v7603_v18 = vmul.f32 1.442695, %v7546_v52  ;;  %v7680_v44 = vsel %vm1265_vm3, %v15471_v58, 0.0  ;;  %12102 = vmatprep.mubr.msk.bf16.mxu1 %vm12904_vm2, %v16358_v20  ;;  %v8151_v52 = vsel %vm3220_vm4, %v15220_v29, 0 }
 0xe8c   : > { %v7605_v42 = vmul.f32 1.442695, %v7547_v36  ;;  %v12749_v46 = vpop.eup %12748  ;;  %v7640_v24 = vpop.xlane.xlu1 %7639  ;;  %7681 = vadd.xlane.f32.xlu0 %v7680_v44  ;;  %v7683_v49 = vsel %vm1265_vm3, %v15476_v53, 0.0  ;;  %12108 = vmatprep.mubr.msk.bf16.mxu0 %vm12904_vm2, %v16358_v20  ;;  %v8247_v44 = vsel %vm3220_vm4, %v15230_v31, 0 }
 0xe8d   : > { %v12751_v2 = vpop.eup %12750  ;;  %v7748_v41 = vmul.f32 %v12749_v46, %v15330_v55  ;;  %12760 = vpow2.f32 %v7603_v18  ;;  %7684 = vadd.xlane.f32.xlu1 %v7683_v49  ;;  %12112 = vmatprep.subr.bf16.mxu1 %v16358_v20 }
 0xe8e   : > { %v7749_v38 = vmul.f32 %v12751_v2, %v15336_v23  ;;  %12762 = vpow2.f32 %v7605_v42  ;;  %12118 = vmatprep.subr.bf16.mxu0 %v16358_v20 }
 0xe8f   : > { %v7780_v62 = vpack.c.bf16 %v7748_v41, %v7748_v41  ;;  %12764 = vrcp.f32 %v7640_v24 }
 0xe90   : > { %v7781_v32 = vpack.c.bf16 %v7749_v38, %v7749_v38  ;;  %v7508_v60 = vpop.xlane.xlu1 %7507 }
 0xe91   : > { %12103 = vmatmul.mubr.msk.bf16.vlgmr.msra.gmra.mxu1 %vm1265_vm3, %v7780_v62  ;;  %v7548_v55 = vsub.f32 %v15315_v1, %v7508_v60 }
 0xe92   : > { %v15494_v7 = vpop.eup %12752  ;;  %12109 = vmatmul.mubr.msk.bf16.vlgmr.msra.gmra.mxu0 %vm1265_vm3, %v7781_v32  ;;  %12113 = vmatpush3.bf16.msra.mxu1 %v8055_v33 }
 0xe93   : > { %v15499_v23 = vpop.eup %12754  ;;  %12119 = vmatpush3.bf16.msra.mxu0 %v8103_v43  ;;  %v7607_v39 = vmul.f32 1.442695, %v7548_v55  ;;  %v7686_v37 = vsel %vm1265_vm3, %v15494_v7, 0.0  ;;  %12114 = vmatprep.mubr.msk.bf16.mxu1 %vm12904_vm2, %v16358_v20 }
 0xe94   : > { %v12757_v9 = vpop.eup %12756  ;;  %7687 = vadd.xlane.f32.xlu0 %v7686_v37  ;;  %v7689_v1 = vsel %vm1265_vm3, %v15499_v23, 0.0  ;;  %12120 = vmatprep.mubr.msk.bf16.mxu0 %vm12904_vm2, %v16358_v20 }
 0xe95   : > { %v12759_v4 = vpop.eup %12758  ;;  %v7750_v12 = vmul.f32 %v12757_v9, %v15342_v51  ;;  %12766 = vpow2.f32 %v7607_v39  ;;  %7690 = vadd.xlane.f32.xlu1 %v7689_v1  ;;  %12124 = vmatprep.subr.bf16.mxu1 %v16358_v20  ;;  %v8199_v51 = vsel %vm3220_vm4, %v15218_v21, 0 }
 0xe96   : > { %v7751_v0 = vmul.f32 %v12759_v4, %v15348_v50  ;;  %12130 = vmatprep.subr.bf16.mxu0 %v16358_v20 }
 0xe97   : > { %v7782_v40 = vpack.c.bf16 %v7750_v12, %v7750_v12 }
 0xe98   : > { %v7783_v19 = vpack.c.bf16 %v7751_v0, %v7751_v0 }
 0xe99   : > { %12115 = vmatmul.mubr.msk.bf16.vlgmr.msra.gmra.mxu1 %vm1265_vm3, %v7782_v40  ;;  %v8295_v40 = vsel %vm3220_vm4, %v15226_v35, 0 }
 0xe9a   : > { %v15516_v36 = vpop.eup %12760  ;;  %12121 = vmatmul.mubr.msk.bf16.vlgmr.msra.gmra.mxu0 %vm1265_vm3, %v7783_v19  ;;  %12125 = vmatpush3.bf16.msra.mxu1 %v8151_v52 }
 0xe9b   : > { %v15521_v3 = vpop.eup %12762  ;;  %12131 = vmatpush3.bf16.msra.mxu0 %v8199_v51  ;;  %v7692_v50 = vsel %vm1265_vm3, %v15516_v36, 0.0  ;;  %12126 = vmatprep.mubr.msk.bf16.mxu1 %vm12904_vm2, %v16358_v20  ;;  %v8391_v51 = vsel %vm3220_vm4, %v15236_v5, 0 }
 0xe9c   : > { %v12765_v29 = vpop.eup %12764  ;;  %7693 = vadd.xlane.f32.xlu0 %v7692_v50  ;;  %v7695_v18 = vsel %vm1265_vm3, %v15521_v3, 0.0  ;;  %12136 = vmatprep.subr.bf16.mxu1 %v16358_v20 }
 0xe9d   : > { %v7752_v21 = vmul.f32 %v12765_v29, %v15358_v34  ;;  %7696 = vadd.xlane.f32.xlu1 %v7695_v18  ;;  %12132 = vmatprep.mubr.msk.bf16.mxu0 %vm12904_vm2, %v16358_v20 }
 0xe9e   : > { %12142 = vmatprep.subr.bf16.mxu0 %v16358_v20 }
 0xe9f   : > { %v7784_v42 = vpack.c.bf16 %v7752_v21, %v7752_v21 }
 0xea0   : > { %v7511_v49 = vpop.xlane.xlu0 %7510 }
 0xea1   : > { %12127 = vmatmul.mubr.msk.bf16.vlgmr.msra.gmra.mxu1 %vm1265_vm3, %v7784_v42  ;;  %v7549_v60 = vsub.f32 %v15368_v17, %v7511_v49 }
 0xea2   : > { %v15537_v46 = vpop.eup %12766  ;;  %12137 = vmatpush3.bf16.msra.mxu1 %v8247_v44  ;;  %12138 = vmatprep.mubr.msk.bf16.mxu1 %vm12904_vm2, %v16358_v20 }
 0xea3   : > { %v7698_v34 = vsel %vm1265_vm3, %v15537_v46, 0.0  ;;  %12148 = vmatprep.subr.bf16.mxu1 %v16358_v20  ;;  %v7609_v39 = vmul.f32 1.442695, %v7549_v60 }
 0xea4   : > { %v7514_v24 = vpop.xlane.xlu1 %7513  ;;  %7699 = vadd.xlane.f32.xlu0 %v7698_v34 }
 0xea5   : > { %v7550_v1 = vsub.f32 %v15372_v59, %v7514_v24  ;;  %v8487_v24 = vsel %vm3220_vm4, %v15244_v15, 0  ;;  %v8535_v15 = vsel %vm3220_vm4, %v15248_v13, 0  ;;  %v16405_v13 = vld [vmem:[#allocation18_spill] sm:$0xff] }
 0xea8   : > { %v7517_v2 = vpop.xlane.xlu1 %7516 }
 0xea9   : > { %v7551_v55 = vsub.f32 %v15376_v26, %v7517_v2 }
 0xeab   : > { %v7613_v4 = vmul.f32 1.442695, %v7551_v55 }
 0xeac   : > { %v7646_v41 = vpop.xlane.xlu1 %7645  ;;  %v7520_v38 = vpop.xlane.xlu0 %7519 }
 0xead   : > { %12768 = vrcp.f32 %v7646_v41  ;;  %v7552_v59 = vsub.f32 %v15382_v57, %v7520_v38 }
 0xeae   : > { %9201 = vrot.lane.b32.xlu1 %v14974_v54, %s16393_s6  ;;  %v8343_v54 = vsel %vm3220_vm4, %v15240_v30, 0  ;;  %v7611_v30 = vmul.f32 1.442695, %v7550_v1 }
 0xeaf   : > { %v7615_v57 = vmul.f32 1.442695, %v7552_v59 }
 0xeb0   : > { %v7643_v31 = vpop.xlane.xlu0 %7642  ;;  %v7649_v62 = vpop.xlane.xlu1 %7648 }
 0xeb1   : > { %12770 = vrcp.f32 %v7643_v31 }
 0xeb4   : > { %v7652_v32 = vpop.xlane.xlu0 %7651 }
 0xeb5   : > { %12772 = vrcp.f32 %v7652_v32  ;;  %v8583_v32 = vsel %vm3220_vm4, %v15252_v61, 0 }
 0xeb6   : > { %12774 = vrcp.f32 %v7649_v62 }
 0xeb7   : > { %12776 = vpow2.f32 %v7609_v39 }
 0xeb8   : > { %12778 = vpow2.f32 %v7613_v4 }
 0xeba   : > { %9153 = vrot.lane.b32.xlu0 %v14964_v56, %s16393_s6  ;;  %v12769_v33 = vpop.eup %12768 }
 0xebb   : > { %v7754_v43 = vmul.f32 %v12769_v33, %v15380_v11 }
 0xebd   : > { %v7786_v37 = vpack.c.bf16 %v7754_v43, %v7754_v43 }
 0xebe   : > { %v12771_v9 = vpop.eup %12770 }
 0xebf   : > { %12139 = vmatmul.mubr.msk.bf16.vlgmr.msra.gmra.mxu1 %vm1265_vm3, %v7786_v37  ;;  %v7753_v17 = vmul.f32 %v12771_v9, %v15384_v63 }
 0xec0   : > { %12149 = vmatpush3.bf16.msra.mxu1 %v8343_v54  ;;  %12150 = vmatprep.mubr.msk.bf16.mxu1 %vm12904_vm2, %v16358_v20 }
 0xec1   : > { %12160 = vmatprep.subr.bf16.mxu1 %v16358_v20  ;;  %v7785_v26 = vpack.c.bf16 %v7753_v17, %v7753_v17  ;;  %v16407_v17 = vld [vmem:[#allocation21_spill] sm:$0xff] }
 0xec2   : > { %v12773_v56 = vpop.eup %12772 }
 0xec3   : > { %v7756_v11 = vmul.f32 %v12773_v56, %v15396_v48  ;;  %v12775_v12 = vpop.eup %12774  ;;  %12133 = vmatmul.mubr.msk.bf16.vlgmr.msra.gmra.mxu0 %vm1265_vm3, %v7785_v26  ;;  %v8439_v48 = vsel %vm3220_vm4, %v15284_v14, 0  ;;  %v8679_v56 = vsel %vm3220_vm4, %v16407_v17, 0 }
 0xec4   : > { %v7655_v0 = vpop.xlane.xlu1 %7654  ;;  %12143 = vmatpush3.bf16.msra.mxu0 %v8295_v40  ;;  %12144 = vmatprep.mubr.msk.bf16.mxu0 %vm12904_vm2, %v16358_v20  ;;  %v7755_v19 = vmul.f32 %v12775_v12, %v15390_v10  ;;  %v15577_v14 = vpop.eup %12776 }
 0xec5   : > { %v7788_v63 = vpack.c.bf16 %v7756_v11, %v7756_v11  ;;  %12780 = vrcp.f32 %v7655_v0  ;;  %12154 = vmatprep.subr.bf16.mxu0 %v16358_v20  ;;  %v15582_v50 = vpop.eup %12778  ;;  %v7701_v29 = vsel %vm1265_vm3, %v15577_v14, 0.0  ;;  %v16408_v0 = vld [vmem:[#allocation19_spill] sm:$0xff] }
 0xec6   : > { %12782 = vpow2.f32 %v7611_v30  ;;  %v7787_v52 = vpack.c.bf16 %v7755_v19, %v7755_v19  ;;  %v7707_v44 = vsel %vm1265_vm3, %v15582_v50, 0.0  ;;  %v8631_v40 = vsel %vm3220_vm4, %v16408_v0, 0  ;;  %v16409_v19 = vld [vmem:[#allocation3_spill] sm:$0xff] }
 0xec7   : > { %12151 = vmatmul.mubr.msk.bf16.vlgmr.msra.gmra.mxu1 %vm1265_vm3, %v7788_v63 }
 0xec8   : > { %v7658_v35 = vpop.xlane.xlu0 %7657  ;;  %12161 = vmatpush3.bf16.msra.mxu1 %v8439_v48  ;;  %12162 = vmatprep.mubr.msk.bf16.mxu1 %vm12904_vm2, %v16358_v20  ;;  %v8775_v48 = vsel %vm3220_vm4, %v16409_v19, 0 }
 0xec9   : > { %12784 = vrcp.f32 %v7658_v35  ;;  %12172 = vmatprep.subr.bf16.mxu1 %v16358_v20 }
 0xeca   : > { %12786 = vpow2.f32 %v7615_v57 }
 0xecb   : > { %12145 = vmatmul.mubr.msk.bf16.vlgmr.msra.gmra.mxu0 %vm1265_vm3, %v7787_v52 }
 0xecc   : > { %v7661_v10 = vpop.xlane.xlu1 %7660  ;;  %12155 = vmatpush3.bf16.msra.mxu0 %v8391_v51  ;;  %12156 = vmatprep.mubr.msk.bf16.mxu0 %vm12904_vm2, %v16358_v20  ;;  %v16410_v51 = vld [vmem:[#allocation2_spill] sm:$0xff] }
 0xecd   : > { %12788 = vrcp.f32 %v7661_v10  ;;  %12166 = vmatprep.subr.bf16.mxu0 %v16358_v20 }
 0xed2   : > { %v12781_v18 = vpop.eup %12780  ;;  %7702 = vadd.xlane.f32.xlu1 %v7701_v29  ;;  %v8727_v29 = vsel %vm3220_vm4, %v16410_v51, 0 }
 0xed3   : > { %v7757_v5 = vmul.f32 %v12781_v18, %v15403_v8  ;;  %v15587_v21 = vpop.eup %12782 }
 0xed4   : > { %v7704_v2 = vsel %vm1265_vm3, %v15587_v21, 0.0 }
 0xed5   : > { %v7789_v42 = vpack.c.bf16 %v7757_v5, %v7757_v5 }
 0xed6   : > { %v12785_v34 = vpop.eup %12784  ;;  %7708 = vadd.xlane.f32.xlu1 %v7707_v44 }
 0xed7   : > { %v7758_v49 = vmul.f32 %v12785_v34, %v15407_v45  ;;  %12157 = vmatmul.mubr.msk.bf16.vlgmr.msra.gmra.mxu0 %vm1265_vm3, %v7789_v42  ;;  %v15599_v8 = vpop.eup %12786  ;;  %v16411_v42 = vld [vmem:[#allocation5_spill] sm:$0xff] }
 0xed8   : > { %12167 = vmatpush3.bf16.msra.mxu0 %v8487_v24  ;;  %12168 = vmatprep.mubr.msk.bf16.mxu0 %vm12904_vm2, %v16358_v20  ;;  %v7710_v31 = vsel %vm1265_vm3, %v15599_v8, 0.0  ;;  %v8871_v44 = vsel %vm3220_vm4, %v16411_v42, 0 }
 0xed9   : > { %v7790_v41 = vpack.c.bf16 %v7758_v49, %v7758_v49  ;;  %7705 = vadd.xlane.f32.xlu0 %v7704_v2  ;;  %12178 = vmatprep.subr.bf16.mxu0 %v16358_v20 }
 0xeda   : > { %v12789_v38 = vpop.eup %12788 }
 0xedb   : > { %v7759_v45 = vmul.f32 %v12789_v38, %v15411_v47  ;;  %12163 = vmatmul.mubr.msk.bf16.vlgmr.msra.gmra.mxu1 %vm1265_vm3, %v7790_v41  ;;  %v16406_v47 = vld [vmem:[#allocation15_spill] sm:$0xff] }
 0xedc   : > { %12173 = vmatpush3.bf16.msra.mxu1 %v8535_v15  ;;  %12174 = vmatprep.mubr.msk.bf16.mxu1 %vm12904_vm2, %v16358_v20  ;;  %v16412_v41 = vld [vmem:[#allocation7_spill] sm:$0xff] }
 0xedd   : > { %v7791_v62 = vpack.c.bf16 %v7759_v45, %v7759_v45  ;;  %7711 = vadd.xlane.f32.xlu0 %v7710_v31  ;;  %12184 = vmatprep.subr.bf16.mxu1 %v16358_v20  ;;  %v8823_v38 = vsel %vm3220_vm4, %v16412_v41, 0  ;;  %v16413_v31 = vld [vmem:[#allocation8_spill] sm:$0xff] }
 0xedf   : > { %12169 = vmatmul.mubr.msk.bf16.vlgmr.msra.gmra.mxu0 %vm1265_vm3, %v7791_v62  ;;  %v8967_v62 = vsel %vm3220_vm4, %v16413_v31, 0 }
 0xee0   : > { %12179 = vmatpush3.bf16.msra.mxu0 %v8583_v32  ;;  %12180 = vmatprep.mubr.msk.bf16.mxu0 %vm12904_vm2, %v16358_v20 }
 0xee1   : > { %12190 = vmatprep.subr.bf16.mxu0 %v16358_v20 }
 0xee7   : > { %9297 = vrot.lane.b32.xlu1 %v16405_v13, %s16393_s6 }
 0xef3   : > { %9249 = vrot.lane.b32.xlu0 %v16406_v47, %s16393_s6  ;;  %s16419_s6 = smov 24  }
 0xf01   : > { %v7667_v60 = vpop.xlane.xlu1 %7666 }
 0xf02   : > { %12790 = vrcp.f32 %v7667_v60  ;;  %v16414_v60 = vld [vmem:[#allocation4_spill] sm:$0xff] }
 0xf05   : > { %v7664_v33 = vpop.xlane.xlu0 %7663 }
 0xf06   : > { %v7673_v55 = vpop.xlane.xlu1 %7672  ;;  %12792 = vrcp.f32 %v7664_v33  ;;  %v8919_v33 = vsel %vm3220_vm4, %v16414_v60, 0 }
 0xf07   : > { %12794 = vrcp.f32 %v7673_v55 }
 0xf09   : > { %v7670_v61 = vpop.xlane.xlu0 %7669 }
 0xf0a   : > { %12796 = vrcp.f32 %v7670_v61 }
 0xf0d   : > { %v7676_v37 = vpop.xlane.xlu0 %7675 }
 0xf0e   : > { %v7679_v43 = vpop.xlane.xlu1 %7678 }
 0xf0f   : > { %v12791_v39 = vpop.eup %12790  ;;  %12798 = vrcp.f32 %v7679_v43  ;;  %v16415_v43 = vld [vmem:[#allocation6_spill] sm:$0xff] }
 0xf10   : > { %v7761_v9 = vmul.f32 %v12791_v39, %v15429_v22  ;;  %12800 = vrcp.f32 %v7676_v37  ;;  %v9063_v39 = vsel %vm3220_vm4, %v16415_v43, 0 }
 0xf12   : > { %v7793_v54 = vpack.c.bf16 %v7761_v9, %v7761_v9 }
 0xf13   : > { %v12793_v1 = vpop.eup %12792 }
 0xf14   : > { %v12795_v4 = vpop.eup %12794  ;;  %v7760_v26 = vmul.f32 %v12793_v1, %v15435_v25  ;;  %12181 = vmatmul.mubr.msk.bf16.vlgmr.msra.gmra.mxu0 %vm1265_vm3, %v7793_v54 }
 0xf15   : > { %12191 = vmatpush3.bf16.msra.mxu0 %v8679_v56  ;;  %12192 = vmatprep.mubr.msk.bf16.mxu0 %vm12904_vm2, %v16358_v20  ;;  %v7763_v11 = vmul.f32 %v12795_v4, %v15437_v28  ;;  %v7682_v59 = vpop.xlane.xlu0 %7681 }
 0xf16   : > { %v7792_v12 = vpack.c.bf16 %v7760_v26, %v7760_v26  ;;  %v7685_v30 = vpop.xlane.xlu1 %7684  ;;  %12202 = vmatprep.subr.bf16.mxu0 %v16358_v20 }
 0xf17   : > { %v12797_v22 = vpop.eup %12796  ;;  %12802 = vrcp.f32 %v7685_v30  ;;  %v7795_v25 = vpack.c.bf16 %v7763_v11, %v7763_v11 }
 0xf18   : > { %12175 = vmatmul.mubr.msk.bf16.vlgmr.msra.gmra.mxu1 %vm1265_vm3, %v7792_v12  ;;  %v7762_v63 = vmul.f32 %v12797_v22, %v15444_v6  ;;  %12804 = vrcp.f32 %v7682_v59  ;;  %v16417_v12 = vld [vmem:[#allocation22_spill] sm:$0xff] }
 0xf19   : > { %12185 = vmatpush3.bf16.msra.mxu1 %v8631_v40  ;;  %12186 = vmatprep.mubr.msk.bf16.mxu1 %vm12904_vm2, %v16358_v20  ;;  %v9111_v30 = vsel %vm3220_vm4, %v16417_v12, 0 }
 0xf1a   : > { %12196 = vmatprep.subr.bf16.mxu1 %v16358_v20  ;;  %v7794_v57 = vpack.c.bf16 %v7762_v63, %v7762_v63 }
 0xf1c   : > { %v12799_v28 = vpop.eup %12798  ;;  %12193 = vmatmul.mubr.msk.bf16.vlgmr.msra.gmra.mxu0 %vm1265_vm3, %v7795_v25 }
 0xf1d   : > { %12203 = vmatpush3.bf16.msra.mxu0 %v8775_v48  ;;  %12204 = vmatprep.mubr.msk.bf16.mxu0 %vm12904_vm2, %v16358_v20  ;;  %v7765_v35 = vmul.f32 %v12799_v28, %v15457_v27  ;;  %v12801_v6 = vpop.eup %12800  ;;  %v7688_v10 = vpop.xlane.xlu0 %7687 }
 0xf1e   : > { %v7691_v52 = vpop.xlane.xlu1 %7690  ;;  %12214 = vmatprep.subr.bf16.mxu0 %v16358_v20  ;;  %v7764_v5 = vmul.f32 %v12801_v6, %v15453_v16 }
 0xf1f   : > { %12806 = vrcp.f32 %v7691_v52  ;;  %v7797_v18 = vpack.c.bf16 %v7765_v35, %v7765_v35 }
 0xf20   : > { %12187 = vmatmul.mubr.msk.bf16.vlgmr.msra.gmra.mxu1 %vm1265_vm3, %v7794_v57  ;;  %12808 = vrcp.f32 %v7688_v10  ;;  %v7796_v34 = vpack.c.bf16 %v7764_v5, %v7764_v5 }
 0xf21   : > { %12197 = vmatpush3.bf16.msra.mxu1 %v8727_v29  ;;  %12198 = vmatprep.mubr.msk.bf16.mxu1 %vm12904_vm2, %v16358_v20 }
 0xf22   : > { %12208 = vmatprep.subr.bf16.mxu1 %v16358_v20 }
 0xf24   : > { %v12803_v27 = vpop.eup %12802  ;;  %12205 = vmatmul.mubr.msk.bf16.vlgmr.msra.gmra.mxu0 %vm1265_vm3, %v7797_v18 }
 0xf25   : > { %12215 = vmatpush3.bf16.msra.mxu0 %v8871_v44  ;;  %12216 = vmatprep.mubr.msk.bf16.mxu0 %vm12904_vm2, %v16358_v20  ;;  %v7767_v24 = vmul.f32 %v12803_v27, %v15476_v53  ;;  %v12805_v16 = vpop.eup %12804  ;;  %v7694_v2 = vpop.xlane.xlu0 %7693 }
 0xf26   : > { %v7697_v49 = vpop.xlane.xlu1 %7696  ;;  %12226 = vmatprep.subr.bf16.mxu0 %v16358_v20  ;;  %v7766_v45 = vmul.f32 %v12805_v16, %v15471_v58 }
 0xf27   : > { %12810 = vrcp.f32 %v7697_v49  ;;  %v7799_v15 = vpack.c.bf16 %v7767_v24, %v7767_v24 }
 0xf28   : > { %12199 = vmatmul.mubr.msk.bf16.vlgmr.msra.gmra.mxu1 %vm1265_vm3, %v7796_v34  ;;  %12812 = vrcp.f32 %v7694_v2  ;;  %v7798_v32 = vpack.c.bf16 %v7766_v45, %v7766_v45 }
 0xf29   : > { %12209 = vmatpush3.bf16.msra.mxu1 %v8823_v38  ;;  %12210 = vmatprep.mubr.msk.bf16.mxu1 %vm12904_vm2, %v16358_v20 }
 0xf2a   : > { %12220 = vmatprep.subr.bf16.mxu1 %v16358_v20  ;;  %v9202_v0 = vpop.permute.xlu1 %9201 }
 0xf2b   : > { %v9207_v28 = vsel %vm3220_vm4, %v9202_v0, 0 }
 0xf2c   : > { %v12807_v53 = vpop.eup %12806  ;;  %12217 = vmatmul.mubr.msk.bf16.vlgmr.msra.gmra.mxu0 %vm1265_vm3, %v7799_v15 }
 0xf2d   : > { %12227 = vmatpush3.bf16.msra.mxu0 %v8967_v62  ;;  %12228 = vmatprep.mubr.msk.bf16.mxu0 %vm12904_vm2, %v16358_v20  ;;  %v7769_v13 = vmul.f32 %v12807_v53, %v15499_v23  ;;  %v12809_v47 = vpop.eup %12808  ;;  %v7700_v58 = vpop.xlane.xlu0 %7699 }
 0xf2e   : > { %12238 = vmatprep.subr.bf16.mxu0 %v16358_v20  ;;  %v7768_v61 = vmul.f32 %v12809_v47, %v15494_v7  ;;  %12814 = vrcp.f32 %v7700_v58  ;;  %v16416_v7 = vld [vmem:[#allocation9_spill] sm:$0xff] }
 0xf2f   : > { %v7801_v55 = vpack.c.bf16 %v7769_v13, %v7769_v13  ;;  %v9015_v1 = vsel %vm3220_vm4, %v16416_v7, 0 }
 0xf30   : > { %12211 = vmatmul.mubr.msk.bf16.vlgmr.msra.gmra.mxu1 %vm1265_vm3, %v7798_v32  ;;  %v7800_v37 = vpack.c.bf16 %v7768_v61, %v7768_v61 }
 0xf31   : > { %12221 = vmatpush3.bf16.msra.mxu1 %v8919_v33  ;;  %12222 = vmatprep.mubr.msk.bf16.mxu1 %vm12904_vm2, %v16358_v20  ;;  %v9154_v4 = vpop.permute.xlu0 %9153 }
 0xf32   : > { %12232 = vmatprep.subr.bf16.mxu1 %v16358_v20 }
 0xf34   : > { %v12811_v23 = vpop.eup %12810  ;;  %12229 = vmatmul.mubr.msk.bf16.vlgmr.msra.gmra.mxu0 %vm1265_vm3, %v7801_v55 }
 0xf35   : > { %12239 = vmatpush3.bf16.msra.mxu0 %v9063_v39  ;;  %12240 = vmatprep.mubr.msk.bf16.mxu0 %vm12904_vm2, %v16358_v20  ;;  %v7771_v9 = vmul.f32 %v12811_v23, %v15521_v3  ;;  %v12813_v54 = vpop.eup %12812  ;;  %v9159_v3 = vsel %vm3220_vm4, %v9154_v4, 0 }
 0xf36   : > { %12250 = vmatprep.subr.bf16.mxu0 %v16358_v20  ;;  %v7770_v56 = vmul.f32 %v12813_v54, %v15516_v36 }
 0xf37   : > { %v7803_v17 = vpack.c.bf16 %v7771_v9, %v7771_v9 }
 0xf38   : > { %12223 = vmatmul.mubr.msk.bf16.vlgmr.msra.gmra.mxu1 %vm1265_vm3, %v7800_v37  ;;  %v7802_v26 = vpack.c.bf16 %v7770_v56, %v7770_v56 }
 0xf39   : > { %12233 = vmatpush3.bf16.msra.mxu1 %v9015_v1  ;;  %12234 = vmatprep.mubr.msk.bf16.mxu1 %vm12904_vm2, %v16358_v20 }
 0xf3a   : > { %12244 = vmatprep.subr.bf16.mxu1 %v16358_v20 }
 0xf3b   : > { %v12815_v11 = vpop.eup %12814 }
 0xf3c   : > { %12241 = vmatmul.mubr.msk.bf16.vlgmr.msra.gmra.mxu0 %vm1265_vm3, %v7803_v17  ;;  %v7772_v22 = vmul.f32 %v12815_v11, %v15537_v46 }
 0xf3d   : > { %12251 = vmatpush3.bf16.msra.mxu0 %v9159_v3  ;;  %12252 = vmatprep.mubr.msk.bf16.mxu0 %vm12904_vm2, %v16358_v20 }
 0xf3e   : > { %12262 = vmatprep.subr.bf16.mxu0 %v16358_v20  ;;  %v7804_v25 = vpack.c.bf16 %v7772_v22, %v7772_v22 }
 0xf40   : > { %12235 = vmatmul.mubr.msk.bf16.vlgmr.msra.gmra.mxu1 %vm1265_vm3, %v7802_v26 }
 0xf41   : > { %v15701_v36 = vpop.f32.mrf.mxu0  ;;  %12245 = vmatpush3.bf16.msra.mxu1 %v9111_v30  ;;  %12246 = vmatprep.mubr.msk.bf16.mxu1 %vm12904_vm2, %v16358_v20 }
 0xf42   : > { %12256 = vmatprep.subr.bf16.mxu1 %v16358_v20 }
 0xf43   : > { %v12086_v59 = vpop.f32.mrf.mxu0 }
 0xf45   : > { %v7854_v40 = vpop.f32.mrf.mxu0 }
 0xf47   : > { %v12087_v63 = vpop.f32.mrf.mxu0 }
 0xf48   : > { %12247 = vmatmul.mubr.msk.bf16.vlgmr.msra.gmra.mxu1 %vm1265_vm3, %v7804_v25 }
 0xf49   : > { %v15709_v19 = vpop.f32.mrf.mxu1  ;;  %12257 = vmatpush3.bf16.msra.mxu1 %v9207_v28  ;;  %12258 = vmatprep.mubr.msk.bf16.mxu1 %vm12904_vm2, %v16358_v20 }
 0xf4a   : > { %v15713_v48 = vpop.f32.mrf.mxu0  ;;  %12268 = vmatprep.subr.bf16.mxu1 %v16358_v20 }
 0xf4b   : > { %v12092_v46 = vpop.f32.mrf.mxu1 }
 0xf4c   : > { %v12098_v57 = vpop.f32.mrf.mxu0 }
 0xf4d   : > { %v7902_v35 = vpop.f32.mrf.mxu1 }
 0xf4e   : > { %v7950_v52 = vpop.f32.mrf.mxu0 }
 0xf4f   : > { %v12093_v6 = vpop.f32.mrf.mxu1 }
 0xf50   : > { %v12099_v10 = vpop.f32.mrf.mxu0 }
 0xf51   : > { %v15716_v51 = vpop.f32.mrf.mxu1 }
 0xf52   : > { %v15718_v29 = vpop.f32.mrf.mxu0 }
 0xf53   : > { %v12104_v18 = vpop.f32.mrf.mxu1 }
 0xf54   : > { %v12110_v5 = vpop.f32.mrf.mxu0 }
 0xf55   : > { %v7998_v27 = vpop.f32.mrf.mxu1 }
 0xf56   : > { %v8046_v42 = vpop.f32.mrf.mxu0 }
 0xf57   : > { %v12105_v44 = vpop.f32.mrf.mxu1 }
 0xf58   : > { %v12111_v34 = vpop.f32.mrf.mxu0 }
 0xf59   : > { %v15720_v24 = vpop.f32.mrf.mxu1 }
 0xf5a   : > { %v15722_v49 = vpop.f32.mrf.mxu0 }
 0xf5b   : > { %v12116_v16 = vpop.f32.mrf.mxu1  ;;  %v7703_v2 = vpop.xlane.xlu1 %7702 }
 0xf5c   : > { %v12122_v41 = vpop.f32.mrf.mxu0  ;;  %12816 = vrcp.f32 %v7703_v2 }
 0xf5d   : > { %v8094_v38 = vpop.f32.mrf.mxu1 }
 0xf5e   : > { %v8142_v15 = vpop.f32.mrf.mxu0 }
 0xf5f   : > { %v12117_v45 = vpop.f32.mrf.mxu1  ;;  %v7709_v53 = vpop.xlane.xlu1 %7708 }
 0xf60   : > { %v12123_v31 = vpop.f32.mrf.mxu0  ;;  %12818 = vrcp.f32 %v7709_v53 }
 0xf61   : > { %v15724_v62 = vpop.f32.mrf.mxu1 }
 0xf62   : > { %v7706_v32 = vpop.xlane.xlu0 %7705 }
 0xf63   : > { %v12128_v13 = vpop.f32.mrf.mxu1  ;;  %12820 = vrcp.f32 %v7706_v32  ;;  %v9298_v7 = vpop.permute.xlu1 %9297 }
 0xf64   : > { %v9303_v17 = vsel %vm3220_vm4, %v9298_v7, 0 }
 0xf65   : > { %v8190_v47 = vpop.f32.mrf.mxu1 }
 0xf66   : > { %v7712_v58 = vpop.xlane.xlu0 %7711 }
 0xf67   : > { %v12129_v60 = vpop.f32.mrf.mxu1  ;;  %12822 = vrcp.f32 %v7712_v58 }
 0xf69   : > { %v12817_v33 = vpop.eup %12816 }
 0xf6a   : > { %v7773_v55 = vmul.f32 %v12817_v33, %v15577_v14  ;;  %v9250_v61 = vpop.permute.xlu0 %9249 }
 0xf6b   : > { %v9255_v43 = vsel %vm3220_vm4, %v9250_v61, 0 }
 0xf6c   : > { %v7805_v23 = vpack.c.bf16 %v7773_v55, %v7773_v55 }
 0xf6d   : > { %v12819_v39 = vpop.eup %12818 }
 0xf6e   : > { %12253 = vmatmul.mubr.msk.bf16.vlgmr.msra.gmra.mxu0 %vm1265_vm3, %v7805_v23  ;;  %v7775_v9 = vmul.f32 %v12819_v39, %v15582_v50 }
 0xf6f   : > { %12263 = vmatpush3.bf16.msra.mxu0 %v9255_v43  ;;  %12264 = vmatprep.mubr.msk.bf16.mxu0 %vm12904_vm2, %v16358_v20 }
 0xf70   : > { %v12821_v37 = vpop.eup %12820  ;;  %v7807_v14 = vpack.c.bf16 %v7775_v9, %v7775_v9 }
 0xf71   : > { %v7774_v54 = vmul.f32 %v12821_v37, %v15587_v21 }
 0xf73   : > { %v7806_v1 = vpack.c.bf16 %v7774_v54, %v7774_v54 }
 0xf74   : > { %v12823_v4 = vpop.eup %12822 }
 0xf75   : > { %12259 = vmatmul.mubr.msk.bf16.vlgmr.msra.gmra.mxu1 %vm1265_vm3, %v7806_v1  ;;  %v7776_v56 = vmul.f32 %v12823_v4, %v15599_v8 }
 0xf76   : > { %12265 = vmatmul.mubr.msk.bf16.vlgmr.msra.gmra.mxu0 %vm1265_vm3, %v7807_v14  ;;  %12269 = vmatpush3.bf16.msra.mxu1 %v9303_v17 }
 0xf77   : > { %12270 = vmatprep.mubr.msk.bf16.mxu1 %vm12904_vm2, %v16358_v20  ;;  %v7808_v3 = vpack.c.bf16 %v7776_v56, %v7776_v56 }
 0xf7d   : > { %12271 = vmatmul.mubr.msk.bf16.vlgmr.msra.gmra.mxu1 %vm1265_vm3, %v7808_v3 }
 0xf7f   : > { %v8283_v50 = vpop.f32.mrf.mxu1 }
 0xf81   : > { %v12140_v21 = vpop.f32.mrf.mxu1 }
 0xf83   : > { %v8286_v26 = vpop.f32.mrf.mxu1  ;;  %v8235_v11 = vpop.f32.mrf.mxu0 }
 0xf84   : > { %v12423_v12 = vpack.i.bf16 %v8283_v50, %v8235_v11 }
 0xf85   : > { %v12141_v30 = vpop.f32.mrf.mxu1  ;;  %v12134_v22 = vpop.f32.mrf.mxu0 }
 0xf86   : > { %12424 = vrot.lane.b32.xlu0 %v12423_v12, %s12909_s0 }
 0xf87   : > { %v8379_v59 = vpop.f32.mrf.mxu1  ;;  %v8238_v0 = vpop.f32.mrf.mxu0 }
 0xf89   : > { %v12152_v40 = vpop.f32.mrf.mxu1  ;;  %v12135_v25 = vpop.f32.mrf.mxu0 }
 0xf8b   : > { %v8382_v8 = vpop.f32.mrf.mxu1  ;;  %v8331_v63 = vpop.f32.mrf.mxu0 }
 0xf8c   : > { %v12428_v28 = vpack.i.bf16 %v8379_v59, %v8331_v63 }
 0xf8d   : > { %v12153_v46 = vpop.f32.mrf.mxu1  ;;  %v12146_v57 = vpop.f32.mrf.mxu0 }
 0xf8e   : > { %12429 = vrot.lane.b32.xlu1 %v12428_v28, %s12909_s0 }
 0xf8f   : > { %v8334_v35 = vpop.f32.mrf.mxu0 }
 0xf91   : > { %v12147_v52 = vpop.f32.mrf.mxu0 }
 0xf97   : > { %v8427_v6 = vpop.f32.mrf.mxu0 }
 0xf99   : > { %v12158_v10 = vpop.f32.mrf.mxu0 }
 0xf9b   : > { %v8430_v18 = vpop.f32.mrf.mxu0  ;;  %v8475_v5 = vpop.f32.mrf.mxu1 }
 0xf9c   : > { %v12433_v27 = vpack.i.bf16 %v8475_v5, %v8427_v6  ;;  %v12494_v6 = vld [vmem:[%s16269_s7 + $0x18] sm:$0xff]  }
 0xf9d   : > { %v12159_v42 = vpop.f32.mrf.mxu0  ;;  %v12164_v44 = vpop.f32.mrf.mxu1  ;;  %12274 = vmatprep.subr.bf16.mxu0 %v12494_v6 }
 0xf9e   : > { %12434 = vrot.lane.b32.xlu0 %v12433_v27, %s12909_s0  ;;  %12275 = vmatpush3.bf16.msra.mxu0 %v12494_v6 }
 0xf9f   : > { %v8478_v34 = vpop.f32.mrf.mxu1  ;;  %v8523_v16 = vpop.f32.mrf.mxu0 }
 0xfa0   : > { %v12495_v34 = vld [vmem:[%s16269_s7 + $0x10] sm:$0xff]  }
 0xfa1   : > { %v12165_v2 = vpop.f32.mrf.mxu1  ;;  %v12170_v41 = vpop.f32.mrf.mxu0  ;;  %12276 = vmatprep.subr.bf16.mxu0 %v12495_v34 }
 0xfa2   : > { %12277 = vmatpush3.bf16.msra.mxu0 %v12495_v34 }
 0xfa3   : > { %v8526_v38 = vpop.f32.mrf.mxu0 }
 0xfa5   : > { %v12171_v15 = vpop.f32.mrf.mxu0 }
 0xfd4   : > { %v8619_v45 = vpop.f32.mrf.mxu0 }
 0xfd6   : > { %v12182_v53 = vpop.f32.mrf.mxu0 }
 0xfd8   : > { %v8571_v31 = vpop.f32.mrf.mxu1  ;;  %v8622_v32 = vpop.f32.mrf.mxu0 }
 0xfd9   : > { %v12438_v13 = vpack.i.bf16 %v8571_v31, %v8523_v16 }
 0xfda   : > { %v12176_v47 = vpop.f32.mrf.mxu1  ;;  %v12183_v58 = vpop.f32.mrf.mxu0 }
 0xfdb   : > { %12439 = vrot.lane.b32.xlu1 %v12438_v13, %s12909_s0 }
 0xfdc   : > { %v8574_v60 = vpop.f32.mrf.mxu1  ;;  %v8715_v33 = vpop.f32.mrf.mxu0 }
 0xfde   : > { %v12177_v55 = vpop.f32.mrf.mxu1  ;;  %v12194_v61 = vpop.f32.mrf.mxu0 }
 0xfe0   : > { %v8667_v23 = vpop.f32.mrf.mxu1  ;;  %v8718_v43 = vpop.f32.mrf.mxu0 }
 0xfe1   : > { %v12443_v39 = vpack.i.bf16 %v8667_v23, %v8619_v45 }
 0xfe2   : > { %v12188_v37 = vpop.f32.mrf.mxu1  ;;  %v12195_v9 = vpop.f32.mrf.mxu0 }
 0xfe3   : > { %12444 = vrot.lane.b32.xlu0 %v12443_v39, %s16418_s25 }
 0xfe4   : > { %v8670_v54 = vpop.f32.mrf.mxu1  ;;  %v8811_v7 = vpop.f32.mrf.mxu0 }
 0xfe6   : > { %v12189_v1 = vpop.f32.mrf.mxu1  ;;  %v12206_v4 = vpop.f32.mrf.mxu0 }
 0xfe8   : > { %v8763_v14 = vpop.f32.mrf.mxu1  ;;  %v8814_v17 = vpop.f32.mrf.mxu0 }
 0xfe9   : > { %v12448_v56 = vpack.i.bf16 %v8763_v14, %v8715_v33 }
 0xfea   : > { %v12200_v3 = vpop.f32.mrf.mxu1  ;;  %v12207_v50 = vpop.f32.mrf.mxu0 }
 0xfeb   : > { %12449 = vrot.lane.b32.xlu1 %v12448_v56, %s16418_s25 }
 0xfec   : > { %v8766_v21 = vpop.f32.mrf.mxu1  ;;  %v8907_v26 = vpop.f32.mrf.mxu0 }
 0xfee   : > { %v12201_v11 = vpop.f32.mrf.mxu1  ;;  %v12218_v12 = vpop.f32.mrf.mxu0 }
 0xff0   : > { %v8859_v30 = vpop.f32.mrf.mxu1  ;;  %v8910_v22 = vpop.f32.mrf.mxu0 }
 0xff1   : > { %v12458_v38 = vpack.i.bf16 %v8859_v30, %v8811_v7 }
 0xff2   : > { %v12212_v59 = vpop.f32.mrf.mxu1  ;;  %v12219_v0 = vpop.f32.mrf.mxu0 }
 0xff4   : > { %v8862_v40 = vpop.f32.mrf.mxu1  ;;  %v9003_v25 = vpop.f32.mrf.mxu0 }
 0xff6   : > { %v12213_v8 = vpop.f32.mrf.mxu1  ;;  %v12230_v63 = vpop.f32.mrf.mxu0 }
 0xff8   : > { %v8955_v28 = vpop.f32.mrf.mxu1  ;;  %v9006_v46 = vpop.f32.mrf.mxu0 }
 0xff9   : > { %v12468_v13 = vpack.i.bf16 %v8955_v28, %v8907_v26  ;;  %v12425_v50 = vpop.permute.xlu0 %12424 }
 0xffa   : > { %v12224_v57 = vpop.f32.mrf.mxu1  ;;  %v12231_v35 = vpop.f32.mrf.mxu0  ;;  %v12427_v12 = vunpack.i.h.bf16 %v12425_v50  ;;  %v12426_v30 = vunpack.i.l.bf16 %v12425_v50 }
 0xffc   : > { %v8958_v52 = vpop.f32.mrf.mxu1  ;;  %v9099_v10 = vpop.f32.mrf.mxu0  ;;  %v9441_v8 = vsel %vm1265_vm3, %v15701_v36, %v12426_v30  ;;  %v16420_v30 = vld [vmem:[#allocation10_spill] sm:$0xff] }
 0xffe   : > { %v12225_v18 = vpop.f32.mrf.mxu1  ;;  %v12242_v5 = vpop.f32.mrf.mxu0 }
0x1000   : > { %v9051_v27 = vpop.f32.mrf.mxu1  ;;  %v9102_v42 = vpop.f32.mrf.mxu0 }
0x1001   : > { %v12453_v44 = vpack.i.bf16 %v9051_v27, %v9003_v25  ;;  %v12430_v26 = vpop.permute.xlu1 %12429  ;;  %v9442_v25 = vsel %vm1265_vm3, %v15709_v19, %v12427_v12 }
0x1002   : > { %v12236_v16 = vpop.f32.mrf.mxu1  ;;  %v12243_v2 = vpop.f32.mrf.mxu0  ;;  %v12432_v18 = vunpack.i.h.bf16 %v12430_v26  ;;  %v12431_v5 = vunpack.i.l.bf16 %v12430_v26 }
0x1003   : > { %12454 = vrot.lane.b32.xlu0 %v12453_v44, %s16419_s6 }
0x1004   : > { %v9054_v41 = vpop.f32.mrf.mxu1  ;;  %v9444_v36 = vsel %vm1265_vm3, %v15716_v51, %v12432_v18  ;;  %v9443_v44 = vsel %vm1265_vm3, %v15713_v48, %v12431_v5 }
0x1006   : > { %v12237_v15 = vpop.f32.mrf.mxu1 }
0x1007   : > { %12459 = vrot.lane.b32.xlu0 %v12458_v38, %s16418_s25 }
0x1008   : > { %v9147_v45 = vpop.f32.mrf.mxu1 }
0x1009   : > { %v12463_v53 = vpack.i.bf16 %v9147_v45, %v9099_v10 }
0x100a   : > { %v12248_v31 = vpop.f32.mrf.mxu1 }
0x100b   : > { %12464 = vrot.lane.b32.xlu1 %v12463_v53, %s16419_s6 }
0x100c   : > { %v9150_v32 = vpop.f32.mrf.mxu1 }
0x100e   : > { %v12249_v47 = vpop.f32.mrf.mxu1 }
0x100f   : > { %12469 = vrot.lane.b32.xlu1 %v12468_v13, %s16418_s25 }
0x1010   : > { %v12435_v21 = vpop.permute.xlu0 %12434 }
0x1011   : > { %v12437_v31 = vunpack.i.h.bf16 %v12435_v21  ;;  %v12436_v32 = vunpack.i.l.bf16 %v12435_v21 }
0x1013   : > { %v9446_v48 = vsel %vm1265_vm3, %v15720_v24, %v12437_v31 }
0x102e   : > { %v9195_v58 = vpop.f32.mrf.mxu0 }
0x1030   : > { %v12254_v60 = vpop.f32.mrf.mxu0 }
0x1032   : > { %v9198_v33 = vpop.f32.mrf.mxu0 }
0x1034   : > { %v12255_v55 = vpop.f32.mrf.mxu0 }
0x1035   : > { %v9243_v61 = vpop.f32.mrf.mxu1 }
0x1036   : > { %v12473_v23 = vpack.i.bf16 %v9243_v61, %v9195_v58  ;;  %v9291_v43 = vpop.f32.mrf.mxu0  ;;  %v9445_v58 = vsel %vm1265_vm3, %v15718_v29, %v12436_v32 }
0x1037   : > { %v12260_v39 = vpop.f32.mrf.mxu1 }
0x1038   : > { %v12266_v37 = vpop.f32.mrf.mxu0  ;;  %12474 = vrot.lane.b32.xlu0 %v12473_v23, %s16419_s6 }
0x1039   : > { %v9246_v9 = vpop.f32.mrf.mxu1 }
0x103a   : > { %v9294_v54 = vpop.f32.mrf.mxu0 }
0x103b   : > { %v12261_v7 = vpop.f32.mrf.mxu1 }
0x103c   : > { %v12267_v1 = vpop.f32.mrf.mxu0 }
0x103d   : > { %v9339_v4 = vpop.f32.mrf.mxu1 }
0x103e   : > { %v12478_v14 = vpack.i.bf16 %v9339_v4, %v9291_v43 }
0x103f   : > { %v12272_v17 = vpop.f32.mrf.mxu1 }
0x1040   : > { %12479 = vrot.lane.b32.xlu1 %v12478_v14, %s16419_s6  ;;  %s10884_s6 = sshll.u32 %s714_s27, 3 }
0x1041   : > { %v9342_v56 = vpop.f32.mrf.mxu1  ;;  %s722_s27 = scalar_lea.vmem %s16284_s22, %s10884_s6 }
0x1043   : > { %v12273_v3 = vpop.f32.mrf.mxu1 }
0x104d   : > { %v12440_v0 = vpop.permute.xlu1 %12439 }
0x104e   : > { %v12442_v9 = vunpack.i.h.bf16 %v12440_v0  ;;  %v12441_v54 = vunpack.i.l.bf16 %v12440_v0 }
0x1050   : > { %v9448_v29 = vsel %vm1265_vm3, %v15724_v62, %v12442_v9  ;;  %v9447_v4 = vsel %vm1265_vm3, %v15722_v49, %v12441_v54  ;;  %v11073_v62 = vld [vmem:[%s16270_s8 + $0x1] ss:$0 sm:$0xff] }
0x1055   : > { %v12445_v11 = vpop.permute.xlu0 %12444 }
0x1056   : > { %v12447_v22 = vunpack.i.h.bf16 %v12445_v11  ;;  %v12446_v59 = vunpack.i.l.bf16 %v12445_v11 }
0x1058   : > { %v9449_v46 = vsel %vm752_vm0, %v9441_v8, %v12446_v59  ;;  %v9450_v57 = vsel %vm752_vm0, %v9442_v25, %v12447_v22 }
0x105d   : > { %v12450_v35 = vpop.permute.xlu1 %12449 }
0x105e   : > { %v12452_v27 = vunpack.i.h.bf16 %v12450_v35  ;;  %v12451_v42 = vunpack.i.l.bf16 %v12450_v35 }
0x1060   : > { %v9452_v2 = vsel %vm752_vm0, %v9444_v36, %v12452_v27  ;;  %v9451_v41 = vsel %vm752_vm0, %v9443_v44, %v12451_v42 }
0x1075   : > { %v12455_v40 = vpop.permute.xlu0 %12454 }
0x1076   : > { %v12457_v63 = vunpack.i.h.bf16 %v12455_v40  ;;  %v12456_v28 = vunpack.i.l.bf16 %v12455_v40  ;;  %v16421_v40 = vld [vmem:[#allocation12_spill] sm:$0xff] }
0x1078   : > { %v9457_v52 = vsel %vm4864_vm5, %v9449_v46, %v12456_v28  ;;  %v9458_v6 = vsel %vm4864_vm5, %v9450_v57, %v12457_v63  ;;  %v16422_v46 = vld [vmem:[#allocation11_spill] sm:$0xff] }
0x1079   : > { %v9465_v10 = vpack.c.bf16 %v9458_v6, %v9457_v52  ;;  %v12460_v53 = vpop.permute.xlu0 %12459  ;;  %v16423_v52 = vld [vmem:[#allocation14_spill] sm:$0xff] }
0x107a   : > { %v12462_v51 = vunpack.i.h.bf16 %v12460_v53  ;;  %v12461_v13 = vunpack.i.l.bf16 %v12460_v53  ;;  %v16424_v53 = vld [vmem:[#allocation13_spill] sm:$0xff] }
0x107b   : > { %12278 = vmatprep.mubr.msk.bf16.mxu0 %vm832_vm1, %v9465_v10 }
0x107c   : > { %v9453_v55 = vsel %vm752_vm0, %v9445_v58, %v12461_v13  ;;  %v9454_v61 = vsel %vm752_vm0, %v9446_v48, %v12462_v51  ;;  %v12497_v51 = vld [vmem:[%s16273_s11 + $0x10] sm:$0xff]  }
0x107d   : > { %v12465_v19 = vpop.permute.xlu1 %12464 }
0x107e   : > { %v12467_v34 = vunpack.i.h.bf16 %v12465_v19  ;;  %v12466_v16 = vunpack.i.l.bf16 %v12465_v19 }
0x1080   : > { %v9460_v38 = vsel %vm4864_vm5, %v9452_v2, %v12467_v34  ;;  %v9459_v15 = vsel %vm4864_vm5, %v9451_v41, %v12466_v16 }
0x1081   : > { %v9466_v45 = vpack.c.bf16 %v9460_v38, %v9459_v15  ;;  %v12470_v23 = vpop.permute.xlu1 %12469 }
0x1082   : > { %v12472_v7 = vunpack.i.h.bf16 %v12470_v23  ;;  %v12471_v1 = vunpack.i.l.bf16 %v12470_v23 }
0x1083   : > { %12279 = vmatmul.mubr.msk.bf16.vlgmr.msra.gmra.mxu0 %vm832_vm1, %v9466_v45  ;;  %v12496_v45 = vld [vmem:[%s16273_s11 + $0x18] sm:$0xff]  }
0x1084   : > { %v9456_v56 = vsel %vm752_vm0, %v9448_v29, %v12472_v7  ;;  %v9455_v3 = vsel %vm752_vm0, %v9447_v4, %v12471_v1  ;;  %12286 = vmatprep.subr.bf16.mxu1 %v12496_v45  ;;  %vm10541_vm0 = vcmask 523264  }
0x1085   : > { %12287 = vmatpush3.bf16.msra.mxu1 %v12496_v45 }
0x1086   : > { %12288 = vmatprep.subr.bf16.mxu1 %v12497_v51 }
0x1089   : > { %12289 = vmatpush3.bf16.msra.mxu1 %v12497_v51 }
0x108a   : > { %12310 = vmatprep.subr.bf16.mxu1 %v16358_v20 }
0x10aa   : > { %v12475_v47 = vpop.permute.xlu0 %12474 }
0x10ab   : > { %v12477_v60 = vunpack.i.h.bf16 %v12475_v47  ;;  %v12476_v33 = vunpack.i.l.bf16 %v12475_v47  ;;  %v16425_v47 = vld [vmem:[#allocation16_spill] sm:$0xff] }
0x10ad   : > { %v9461_v43 = vsel %vm4864_vm5, %v9453_v55, %v12476_v33  ;;  %v9462_v39 = vsel %vm4864_vm5, %v9454_v61, %v12477_v60  ;;  %v16426_v55 = vld [vmem:[#allocation17_spill] sm:$0xff] }
0x10ae   : > { %v9467_v37 = vpack.c.bf16 %v9462_v39, %v9461_v43  ;;  %v16427_v43 = vld [vmem:[#allocation20_spill] sm:$0xff] }
0x10b0   : > { %12282 = vmatprep.mubr.msk.bf16.mxu0 %vm832_vm1, %v9467_v37 }
0x10b2   : > { %v12480_v24 = vpop.permute.xlu1 %12479 }
0x10b3   : > { %v12482_v14 = vunpack.i.h.bf16 %v12480_v24  ;;  %v12481_v17 = vunpack.i.l.bf16 %v12480_v24 }
0x10b5   : > { %v9464_v50 = vsel %vm4864_vm5, %v9456_v56, %v12482_v14  ;;  %v9463_v21 = vsel %vm4864_vm5, %v9455_v3, %v12481_v17 }
0x10b6   : > { %v9468_v26 = vpack.c.bf16 %v9464_v50, %v9463_v21 }
0x10b8   : > { %12283 = vmatmul.mubr.msk.bf16.gmra.mxu0 %vm832_vm1, %v9468_v26 }
0x1143   : > { %v12280_v11 = vpop.f32.mrf.mxu0 }
0x1144   : > { %v9549_v12 = vadd.f32 %v12280_v11, %v11073_v62 }
0x1145   : > { %v9540_v49 = vpop.f32.mrf.mxu0 }
0x1146   : > { %v15798_v22 = vadd.f32 %v9549_v12, %v16420_v30  ;;  %v9541_v59 = vadd.f32 %v11073_v62, %v9540_v49 }
0x1147   : > { %v12281_v0 = vpop.f32.mrf.mxu0 }
0x1148   : > { %v15801_v25 = vadd.f32 %v9541_v59, %v16421_v40  ;;  %v9552_v8 = vadd.f32 %v12281_v0, %v11073_v62  ;;  %v9589_v63 = vsel %vm832_vm1, %v15798_v22, 0.0  ;;  %v9617_v18 = vmul.f32 %v15798_v22, %v15798_v22 }
0x1149   : > { %9590 = vadd.xlane.f32.xlu0 %v9589_v63  ;;  %v9543_v28 = vpop.f32.mrf.mxu0 }
0x114a   : > { %v15806_v57 = vadd.f32 %v9552_v8, %v16422_v46  ;;  %v9544_v35 = vadd.f32 %v11073_v62, %v9543_v28  ;;  %v9583_v10 = vsel %vm832_vm1, %v15801_v25, 0.0  ;;  %v9629_v42 = vsel %vm832_vm1, %v9617_v18, 0.0 }
0x114b   : > { %v9615_v34 = vmul.f32 %v15801_v25, %v15801_v25 }
0x114c   : > { %v15809_v6 = vadd.f32 %v9544_v35, %v16423_v52  ;;  %v9618_v27 = vmul.f32 %v15806_v57, %v15806_v57  ;;  %v9592_v44 = vsel %vm832_vm1, %v15806_v57, 0.0 }
0x114d   : > { %9584 = vadd.xlane.f32.xlu0 %v9583_v10  ;;  %v9623_v2 = vsel %vm832_vm1, %v9615_v34, 0.0 }
0x114e   : > { %v9586_v5 = vsel %vm832_vm1, %v15809_v6, 0.0  ;;  %v9632_v19 = vsel %vm832_vm1, %v9618_v27, 0.0  ;;  %v9616_v36 = vmul.f32 %v15809_v6, %v15809_v6 }
0x114f   : > { %9587 = vadd.xlane.f32.xlu1 %v9586_v5 }
0x1150   : > { %v9626_v16 = vsel %vm832_vm1, %v9616_v36, 0.0 }
0x1151   : > { %9630 = vadd.xlane.f32.xlu0 %v9629_v42 }
0x1153   : > { %9633 = vadd.xlane.f32.xlu1 %v9632_v19 }
0x1155   : > { %9593 = vadd.xlane.f32.xlu0 %v9592_v44 }
0x1157   : > { %9627 = vadd.xlane.f32.xlu1 %v9626_v16 }
0x1159   : > { %9624 = vadd.xlane.f32.xlu0 %v9623_v2 }
0x1178   : > { %v12284_v41 = vpop.f32.mrf.mxu0 }
0x1179   : > { %v9565_v38 = vadd.f32 %v12284_v41, %v11073_v62 }
0x117a   : > { %v9556_v15 = vpop.f32.mrf.mxu0 }
0x117b   : > { %v15833_v31 = vadd.f32 %v9565_v38, %v16424_v53  ;;  %v9557_v32 = vadd.f32 %v11073_v62, %v9556_v15 }
0x117c   : > { %v12285_v13 = vpop.f32.mrf.mxu0 }
0x117d   : > { %v15839_v48 = vadd.f32 %v9557_v32, %v16425_v47  ;;  %v9568_v58 = vadd.f32 %v12285_v13, %v11073_v62  ;;  %v9601_v60 = vsel %vm832_vm1, %v15833_v31, 0.0  ;;  %v9621_v29 = vmul.f32 %v15833_v31, %v15833_v31  ;;  %v15875_v13 = vld [vmem:[%s16271_s9 + $0x1] ss:$0 sm:$0xff] }
0x117e   : > { %v9559_v33 = vpop.f32.mrf.mxu0  ;;  %9602 = vadd.xlane.f32.xlu0 %v9601_v60 }
0x117f   : > { %v15844_v61 = vadd.f32 %v9568_v58, %v16426_v55  ;;  %v9560_v23 = vadd.f32 %v11073_v62, %v9559_v33  ;;  %v9595_v9 = vsel %vm832_vm1, %v15839_v48, 0.0  ;;  %v9619_v54 = vmul.f32 %v15839_v48, %v15839_v48 }
0x1180   : > { %v9641_v14 = vsel %vm832_vm1, %v9621_v29, 0.0 }
0x1181   : > { %v15847_v39 = vadd.f32 %v9560_v23, %v16427_v43  ;;  %v9604_v37 = vsel %vm832_vm1, %v15844_v61, 0.0  ;;  %v9635_v1 = vsel %vm832_vm1, %v9619_v54, 0.0  ;;  %v9622_v17 = vmul.f32 %v15844_v61, %v15844_v61 }
0x1182   : > { %9605 = vadd.xlane.f32.xlu1 %v9604_v37  ;;  %9596 = vadd.xlane.f32.xlu0 %v9595_v9  ;;  %v15883_v37 = vld [vmem:[%s16272_s10 + $0x1] ss:$0 sm:$0xff] }
0x1183   : > { %v9598_v7 = vsel %vm832_vm1, %v15847_v39, 0.0  ;;  %v9620_v24 = vmul.f32 %v15847_v39, %v15847_v39  ;;  %v9644_v56 = vsel %vm832_vm1, %v9622_v17, 0.0 }
0x1185   : > { %v9638_v4 = vsel %vm832_vm1, %v9620_v24, 0.0 }
0x1186   : > { %9599 = vadd.xlane.f32.xlu1 %v9598_v7  ;;  %9636 = vadd.xlane.f32.xlu0 %v9635_v1 }
0x118a   : > { %9639 = vadd.xlane.f32.xlu1 %v9638_v4  ;;  %9642 = vadd.xlane.f32.xlu0 %v9641_v14 }
0x118e   : > { %9645 = vadd.xlane.f32.xlu1 %v9644_v56 }
0x11d2   : > { %v9591_v3 = vpop.xlane.xlu0 %9590 }
0x11d3   : > { %v9609_v21 = vmul.f32 0.03125, %v9591_v3 }
0x11d5   : > { %v9657_v11 = vmul.f32 %v9609_v21, %v9609_v21  ;;  %v9673_v41 = vsub.f32 %v15798_v22, %v9609_v21 }
0x11d6   : > { %v9585_v50 = vpop.xlane.xlu0 %9584 }
0x11d7   : > { %v9607_v40 = vmul.f32 0.03125, %v9585_v50 }
0x11d8   : > { %v9588_v26 = vpop.xlane.xlu1 %9587 }
0x11d9   : > { %v9608_v30 = vmul.f32 0.03125, %v9588_v26  ;;  %v9655_v5 = vmul.f32 %v9607_v40, %v9607_v40  ;;  %v9671_v51 = vsub.f32 %v15801_v25, %v9607_v40 }
0x11da   : > { %v9631_v62 = vpop.xlane.xlu0 %9630 }
0x11db   : > { %v9649_v12 = vmul.f32 0.03125, %v9631_v62  ;;  %v9656_v46 = vmul.f32 %v9608_v30, %v9608_v30  ;;  %v9672_v45 = vsub.f32 %v15809_v6, %v9608_v30 }
0x11dc   : > { %v9634_v49 = vpop.xlane.xlu1 %9633 }
0x11dd   : > { %v9665_v59 = vsub.f32 %v9649_v12, %v9657_v11  ;;  %v9650_v35 = vmul.f32 0.03125, %v9634_v49 }
0x11de   : > { %v9594_v0 = vpop.xlane.xlu0 %9593 }
0x11df   : > { %v9610_v8 = vmul.f32 0.03125, %v9594_v0  ;;  %v9681_v63 = vadd.f32 1e-05, %v9665_v59 }
0x11e0   : > { %v9628_v28 = vpop.xlane.xlu1 %9627 }
0x11e1   : > { %v9658_v52 = vmul.f32 %v9610_v8, %v9610_v8  ;;  %v9648_v10 = vmul.f32 0.03125, %v9628_v28  ;;  %12824 = vrsqrt.f32 %v9681_v63  ;;  %v9674_v38 = vsub.f32 %v15806_v57, %v9610_v8 }
0x11e2   : > { %v9625_v18 = vpop.xlane.xlu0 %9624 }
0x11e3   : > { %v9666_v27 = vsub.f32 %v9650_v35, %v9658_v52  ;;  %v9664_v42 = vsub.f32 %v9648_v10, %v9656_v46  ;;  %v9647_v19 = vmul.f32 0.03125, %v9625_v18 }
0x11e5   : > { %v9682_v36 = vadd.f32 1e-05, %v9666_v27  ;;  %v9680_v44 = vadd.f32 1e-05, %v9664_v42  ;;  %v9663_v34 = vsub.f32 %v9647_v19, %v9655_v5 }
0x11e7   : > { %12826 = vrsqrt.f32 %v9682_v36  ;;  %v9679_v16 = vadd.f32 1e-05, %v9663_v34 }
0x11e8   : > { %12828 = vrsqrt.f32 %v9680_v44 }
0x11e9   : > { %12830 = vrsqrt.f32 %v9679_v16 }
0x11ee   : > { %v12825_v2 = vpop.eup %12824 }
0x11ef   : > { %v9697_v53 = vmul.f32 %v12825_v2, %v9673_v41 }
0x11f1   : > { %v9711_v23 = vmul.f32 %v15875_v13, %v9697_v53 }
0x11f3   : > { %v9725_v24 = vadd.f32 %v15883_v37, %v9711_v23 }
0x11f4   : > { %v12827_v15 = vpop.eup %12826 }
0x11f5   : > { %v12829_v32 = vpop.eup %12828  ;;  %v9698_v47 = vmul.f32 %v12827_v15, %v9674_v38 }
0x11f6   : > { %v12831_v58 = vpop.eup %12830  ;;  %v9696_v60 = vmul.f32 %v12829_v32, %v9672_v45 }
0x11f7   : > { %v9712_v33 = vmul.f32 %v15875_v13, %v9698_v47  ;;  %v9695_v55 = vmul.f32 %v12831_v58, %v9671_v51 }
0x11f8   : > { %v9710_v43 = vmul.f32 %v15875_v13, %v9696_v60 }
0x11f9   : > { %v9709_v9 = vmul.f32 %v15875_v13, %v9695_v55  ;;  %v9726_v54 = vadd.f32 %v15883_v37, %v9712_v33 }
0x11fa   : > { %v9724_v1 = vadd.f32 %v15883_v37, %v9710_v43 }
0x11fb   : > { %v9723_v7 = vadd.f32 %v15883_v37, %v9709_v9  ;;  %v9732_v4 = vpack.c.bf16 %v9726_v54, %v9725_v24  ;;  %v12498_v24 = vld [vmem:[%s16275_s13 + $0x18] sm:$0xff]  }
0x11fc   : > { %12298 = vmatprep.subr.bf16.mxu0 %v12498_v24 }
0x11fd   : > { %v9731_v29 = vpack.c.bf16 %v9724_v1, %v9723_v7  ;;  %12299 = vmatpush3.bf16.msra.mxu0 %v12498_v24 }
0x11ff   : > { %12290 = vmatprep.mubr.msk.bf16.mxu1 %vm832_vm1, %v9731_v29 }
0x1200   : > { %12291 = vmatmul.mubr.msk.bf16.vlgmr.msra.gmra.mxu1 %vm832_vm1, %v9732_v4 }
0x1207   : > { %v9603_v14 = vpop.xlane.xlu0 %9602 }
0x1208   : > { %v9613_v50 = vmul.f32 0.03125, %v9603_v14 }
0x120a   : > { %v9661_v30 = vmul.f32 %v9613_v50, %v9613_v50  ;;  %v9677_v38 = vsub.f32 %v15833_v31, %v9613_v50 }
0x120b   : > { %v9606_v17 = vpop.xlane.xlu1 %9605  ;;  %v9597_v56 = vpop.xlane.xlu0 %9596 }
0x120c   : > { %v9611_v3 = vmul.f32 0.03125, %v9597_v56  ;;  %v9614_v59 = vmul.f32 0.03125, %v9606_v17 }
0x120e   : > { %v9659_v62 = vmul.f32 %v9611_v3, %v9611_v3  ;;  %v9662_v18 = vmul.f32 %v9614_v59, %v9614_v59  ;;  %v9675_v44 = vsub.f32 %v15839_v48, %v9611_v3  ;;  %v9678_v51 = vsub.f32 %v15844_v61, %v9614_v59 }
0x120f   : > { %v9600_v21 = vpop.xlane.xlu1 %9599  ;;  %v9637_v26 = vpop.xlane.xlu0 %9636 }
0x1210   : > { %v9612_v11 = vmul.f32 0.03125, %v9600_v21  ;;  %v9651_v12 = vmul.f32 0.03125, %v9637_v26 }
0x1212   : > { %v9667_v49 = vsub.f32 %v9651_v12, %v9659_v62  ;;  %v9660_v8 = vmul.f32 %v9612_v11, %v9612_v11  ;;  %v9676_v2 = vsub.f32 %v15847_v39, %v9612_v11 }
0x1213   : > { %v9640_v0 = vpop.xlane.xlu1 %9639  ;;  %v9643_v40 = vpop.xlane.xlu0 %9642 }
0x1214   : > { %v9683_v63 = vadd.f32 1e-05, %v9667_v49  ;;  %v9652_v28 = vmul.f32 0.03125, %v9640_v0  ;;  %v9653_v46 = vmul.f32 0.03125, %v9643_v40 }
0x1216   : > { %12832 = vrsqrt.f32 %v9683_v63  ;;  %v9668_v35 = vsub.f32 %v9652_v28, %v9660_v8  ;;  %v9669_v52 = vsub.f32 %v9653_v46, %v9661_v30 }
0x1217   : > { %v9646_v10 = vpop.xlane.xlu1 %9645 }
0x1218   : > { %v9684_v5 = vadd.f32 1e-05, %v9668_v35  ;;  %v9685_v27 = vadd.f32 1e-05, %v9669_v52  ;;  %v9654_v42 = vmul.f32 0.03125, %v9646_v10 }
0x121a   : > { %12834 = vrsqrt.f32 %v9684_v5  ;;  %v9670_v19 = vsub.f32 %v9654_v42, %v9662_v18 }
0x121b   : > { %12836 = vrsqrt.f32 %v9685_v27 }
0x121c   : > { %v9686_v36 = vadd.f32 1e-05, %v9670_v19 }
0x121e   : > { %12838 = vrsqrt.f32 %v9686_v36 }
0x1223   : > { %v12833_v34 = vpop.eup %12832 }
0x1224   : > { %v9699_v16 = vmul.f32 %v12833_v34, %v9675_v44 }
0x1226   : > { %v9713_v53 = vmul.f32 %v15875_v13, %v9699_v16 }
0x1227   : > { %v12835_v41 = vpop.eup %12834 }
0x1228   : > { %v12837_v15 = vpop.eup %12836  ;;  %v9700_v45 = vmul.f32 %v12835_v41, %v9676_v2  ;;  %v9727_v33 = vadd.f32 %v15883_v37, %v9713_v53 }
0x1229   : > { %v9701_v32 = vmul.f32 %v12837_v15, %v9677_v38 }
0x122a   : > { %v9714_v47 = vmul.f32 %v15875_v13, %v9700_v45 }
0x122b   : > { %v12839_v58 = vpop.eup %12838  ;;  %v9715_v23 = vmul.f32 %v15875_v13, %v9701_v32 }
0x122c   : > { %v9702_v60 = vmul.f32 %v12839_v58, %v9678_v51  ;;  %v9728_v55 = vadd.f32 %v15883_v37, %v9714_v47 }
0x122d   : > { %v9729_v54 = vadd.f32 %v15883_v37, %v9715_v23 }
0x122e   : > { %v9733_v43 = vpack.c.bf16 %v9728_v55, %v9727_v33  ;;  %v9716_v9 = vmul.f32 %v15875_v13, %v9702_v60  ;;  %v12499_v13 = vld [vmem:[%s16275_s13 + $0x10] sm:$0xff]  }
0x122f   : > { %12300 = vmatprep.subr.bf16.mxu0 %v12499_v13 }
0x1230   : > { %12294 = vmatprep.mubr.msk.bf16.mxu1 %vm832_vm1, %v9733_v43  ;;  %v9730_v7 = vadd.f32 %v15883_v37, %v9716_v9  ;;  %12301 = vmatpush3.bf16.msra.mxu0 %v12499_v13  ;;  %v15917_v37 = vld [vmem:[%s16274_s12 + $0x1] ss:$0 sm:$0xff] }
0x1232   : > { %v9734_v1 = vpack.c.bf16 %v9730_v7, %v9729_v54 }
0x1234   : > { %12295 = vmatmul.mubr.msk.bf16.gmra.mxu1 %vm832_vm1, %v9734_v1 }
0x1235   : > { %12314 = vmatprep.mubr.msk.bf16.mxu1 %vm12904_vm2, %v16358_v20 }
0x12c0   : > { %v12292_v29 = vpop.f32.mrf.mxu1 }
0x12c1   : > { %v9815_v4 = vadd.f32 %v12292_v29, %v15917_v37 }
0x12c2   : > { %v9806_v14 = vpop.f32.mrf.mxu1 }
0x12c3   : > { %v9839_v17 = vmul.f32 %v9815_v4, %v9815_v4  ;;  %v9807_v56 = vadd.f32 %v15917_v37, %v9806_v14 }
0x12c4   : > { %v12293_v3 = vpop.f32.mrf.mxu1 }
0x12c5   : > { %v9847_v50 = vmul.f32 %v9839_v17, %v9815_v4  ;;  %v9837_v21 = vmul.f32 %v9807_v56, %v9807_v56  ;;  %v9818_v26 = vadd.f32 %v12293_v3, %v15917_v37 }
0x12c6   : > { %v9809_v62 = vpop.f32.mrf.mxu1 }
0x12c7   : > { %v9855_v11 = vmul.f32 0.044715, %v9847_v50  ;;  %v9845_v12 = vmul.f32 %v9837_v21, %v9807_v56  ;;  %v9840_v49 = vmul.f32 %v9818_v26, %v9818_v26  ;;  %v9810_v30 = vadd.f32 %v15917_v37, %v9809_v62 }
0x12c9   : > { %v9863_v59 = vadd.f32 %v9855_v11, %v9815_v4  ;;  %v9853_v0 = vmul.f32 0.044715, %v9845_v12  ;;  %v9848_v40 = vmul.f32 %v9840_v49, %v9818_v26  ;;  %v9838_v8 = vmul.f32 %v9810_v30, %v9810_v30 }
0x12cb   : > { %v9871_v63 = vmul.f32 0.7978846, %v9863_v59  ;;  %v9861_v28 = vadd.f32 %v9853_v0, %v9807_v56  ;;  %v9856_v46 = vmul.f32 0.044715, %v9848_v40  ;;  %v9846_v35 = vmul.f32 %v9838_v8, %v9810_v30 }
0x12cd   : > { %v9869_v52 = vmul.f32 0.7978846, %v9861_v28  ;;  %v9864_v10 = vadd.f32 %v9856_v46, %v9818_v26  ;;  %v9854_v18 = vmul.f32 0.044715, %v9846_v35  ;;  %12840 = vtanh.f32 %v9871_v63 }
0x12cf   : > { %12842 = vtanh.f32 %v9869_v52  ;;  %v9872_v5 = vmul.f32 0.7978846, %v9864_v10  ;;  %v9862_v27 = vadd.f32 %v9854_v18, %v9810_v30 }
0x12d1   : > { %12844 = vtanh.f32 %v9872_v5  ;;  %v9870_v42 = vmul.f32 0.7978846, %v9862_v27 }
0x12d3   : > { %12846 = vtanh.f32 %v9870_v42 }
0x12da   : > { %v12841_v19 = vpop.eup %12840 }
0x12db   : > { %v9887_v16 = vadd.f32 1.0, %v12841_v19 }
0x12dc   : > { %v12843_v36 = vpop.eup %12842 }
0x12dd   : > { %v9885_v44 = vadd.f32 1.0, %v12843_v36  ;;  %v9895_v53 = vmul.f32 0.5, %v9887_v16 }
0x12de   : > { %v12845_v34 = vpop.eup %12844 }
0x12df   : > { %v9888_v2 = vadd.f32 1.0, %v12845_v34  ;;  %v9893_v38 = vmul.f32 0.5, %v9885_v44  ;;  %v9903_v60 = vmul.f32 %v9895_v53, %v9815_v4 }
0x12e0   : > { %v12847_v41 = vpop.eup %12846 }
0x12e1   : > { %v9896_v15 = vmul.f32 0.5, %v9888_v2  ;;  %v9886_v45 = vadd.f32 1.0, %v12847_v41  ;;  %v9901_v47 = vmul.f32 %v9893_v38, %v9807_v56 }
0x12e3   : > { %v9894_v32 = vmul.f32 0.5, %v9886_v45  ;;  %v9904_v51 = vmul.f32 %v9896_v15, %v9818_v26  ;;  %v11101_v45 = vld [vmem:[%s16276_s14 + $0x1] ss:$0 sm:$0xff] }
0x12e5   : > { %v9902_v58 = vmul.f32 %v9894_v32, %v9810_v30  ;;  %v9910_v55 = vpack.c.bf16 %v9904_v51, %v9903_v60 }
0x12e7   : > { %v9909_v33 = vpack.c.bf16 %v9902_v58, %v9901_v47 }
0x12e9   : > { %12302 = vmatprep.mubr.msk.bf16.mxu0 %vm832_vm1, %v9909_v33 }
0x12ea   : > { %12303 = vmatmul.mubr.msk.bf16.vlgmr.msra.gmra.mxu0 %vm832_vm1, %v9910_v55 }
0x12f4   : > { %v12296_v23 = vpop.f32.mrf.mxu1 }
0x12f5   : > { %v9831_v43 = vadd.f32 %v12296_v23, %v15917_v37 }
0x12f6   : > { %v9822_v9 = vpop.f32.mrf.mxu1 }
0x12f7   : > { %v9843_v54 = vmul.f32 %v9831_v43, %v9831_v43  ;;  %v9823_v7 = vadd.f32 %v15917_v37, %v9822_v9 }
0x12f8   : > { %v12297_v1 = vpop.f32.mrf.mxu1 }
0x12f9   : > { %v9851_v24 = vmul.f32 %v9843_v54, %v9831_v43  ;;  %v9841_v13 = vmul.f32 %v9823_v7, %v9823_v7  ;;  %v9834_v29 = vadd.f32 %v12297_v1, %v15917_v37 }
0x12fa   : > { %v9825_v14 = vpop.f32.mrf.mxu1 }
0x12fb   : > { %v9859_v4 = vmul.f32 0.044715, %v9851_v24  ;;  %v9849_v17 = vmul.f32 %v9841_v13, %v9823_v7  ;;  %v9844_v56 = vmul.f32 %v9834_v29, %v9834_v29  ;;  %v9826_v3 = vadd.f32 %v15917_v37, %v9825_v14 }
0x12fd   : > { %v9867_v50 = vadd.f32 %v9859_v4, %v9831_v43  ;;  %v9857_v21 = vmul.f32 0.044715, %v9849_v17  ;;  %v9852_v26 = vmul.f32 %v9844_v56, %v9834_v29  ;;  %v9842_v62 = vmul.f32 %v9826_v3, %v9826_v3 }
0x12ff   : > { %v9875_v11 = vmul.f32 0.7978846, %v9867_v50  ;;  %v9865_v12 = vadd.f32 %v9857_v21, %v9823_v7  ;;  %v9860_v49 = vmul.f32 0.044715, %v9852_v26  ;;  %v9850_v30 = vmul.f32 %v9842_v62, %v9826_v3 }
0x1301   : > { %v9873_v59 = vmul.f32 0.7978846, %v9865_v12  ;;  %v9868_v0 = vadd.f32 %v9860_v49, %v9834_v29  ;;  %v9858_v40 = vmul.f32 0.044715, %v9850_v30  ;;  %12848 = vtanh.f32 %v9875_v11 }
0x1303   : > { %12850 = vtanh.f32 %v9873_v59  ;;  %v9876_v8 = vmul.f32 0.7978846, %v9868_v0  ;;  %v9866_v63 = vadd.f32 %v9858_v40, %v9826_v3 }
0x1305   : > { %12852 = vtanh.f32 %v9876_v8  ;;  %v9874_v28 = vmul.f32 0.7978846, %v9866_v63 }
0x1307   : > { %12854 = vtanh.f32 %v9874_v28 }
0x130e   : > { %v12849_v46 = vpop.eup %12848 }
0x130f   : > { %v9891_v10 = vadd.f32 1.0, %v12849_v46 }
0x1310   : > { %v12851_v37 = vpop.eup %12850 }
0x1311   : > { %v9889_v35 = vadd.f32 1.0, %v12851_v37  ;;  %v9899_v36 = vmul.f32 0.5, %v9891_v10  ;;  %v16001_v10 = vld [vmem:[%s16279_s17] ss:$0 sm:$0xff] }
0x1312   : > { %v12853_v52 = vpop.eup %12852 }
0x1313   : > { %v9892_v18 = vadd.f32 1.0, %v12853_v52  ;;  %v9897_v27 = vmul.f32 0.5, %v9889_v35  ;;  %v9907_v41 = vmul.f32 %v9899_v36, %v9831_v43 }
0x1314   : > { %v12855_v5 = vpop.eup %12854 }
0x1315   : > { %v9900_v42 = vmul.f32 0.5, %v9892_v18  ;;  %v9890_v19 = vadd.f32 1.0, %v12855_v5  ;;  %v9905_v16 = vmul.f32 %v9897_v27, %v9823_v7 }
0x1317   : > { %v9898_v44 = vmul.f32 0.5, %v9890_v19  ;;  %v9908_v34 = vmul.f32 %v9900_v42, %v9834_v29 }
0x1319   : > { %v9906_v2 = vmul.f32 %v9898_v44, %v9826_v3  ;;  %v9912_v15 = vpack.c.bf16 %v9908_v34, %v9907_v41 }
0x131b   : > { %v9911_v38 = vpack.c.bf16 %v9906_v2, %v9905_v16 }
0x131d   : > { %12306 = vmatprep.mubr.msk.bf16.mxu0 %vm832_vm1, %v9911_v38 }
0x131e   : > { %12307 = vmatmul.mubr.msk.bf16.gmra.mxu0 %vm832_vm1, %v9912_v15 }
0x13aa   : > { %v12304_v53 = vpop.f32.mrf.mxu0 }
0x13ab   : > { %v9993_v32 = vadd.f32 %v12304_v53, %v11101_v45 }
0x13ac   : > { %v9984_v51 = vpop.f32.mrf.mxu0 }
0x13ad   : > { %v15935_v47 = vadd.f32 %v9993_v32, %v15798_v22  ;;  %v9985_v58 = vadd.f32 %v11101_v45, %v9984_v51 }
0x13ae   : > { %v12305_v60 = vpop.f32.mrf.mxu0 }
0x13af   : > { %v15938_v33 = vadd.f32 %v9985_v58, %v15801_v25  ;;  %v9996_v55 = vadd.f32 %v12305_v60, %v11101_v45  ;;  %v10031_v23 = vsel %vm832_vm1, %v15935_v47, 0.0  ;;  %v10059_v43 = vmul.f32 %v15935_v47, %v15935_v47 }
0x13b0   : > { %10032 = vadd.xlane.f32.xlu0 %v10031_v23  ;;  %v9987_v9 = vpop.f32.mrf.mxu0 }
0x13b1   : > { %v15945_v54 = vadd.f32 %v9996_v55, %v15806_v57  ;;  %v9988_v7 = vadd.f32 %v11101_v45, %v9987_v9  ;;  %v10071_v22 = vsel %vm832_vm1, %v10059_v43, 0.0  ;;  %v10025_v25 = vsel %vm832_vm1, %v15938_v33, 0.0 }
0x13b2   : > { %10072 = vadd.xlane.f32.xlu1 %v10071_v22  ;;  %v10057_v1 = vmul.f32 %v15938_v33, %v15938_v33 }
0x13b3   : > { %v15953_v24 = vadd.f32 %v9988_v7, %v15809_v6  ;;  %v10034_v13 = vsel %vm832_vm1, %v15945_v54, 0.0  ;;  %v10060_v14 = vmul.f32 %v15945_v54, %v15945_v54 }
0x13b4   : > { %10026 = vadd.xlane.f32.xlu0 %v10025_v25  ;;  %v10065_v57 = vsel %vm832_vm1, %v10057_v1, 0.0 }
0x13b5   : > { %v10028_v29 = vsel %vm832_vm1, %v15953_v24, 0.0  ;;  %v10074_v4 = vsel %vm832_vm1, %v10060_v14, 0.0  ;;  %v10058_v6 = vmul.f32 %v15953_v24, %v15953_v24 }
0x13b6   : > { %10035 = vadd.xlane.f32.xlu1 %v10034_v13 }
0x13b7   : > { %v10068_v17 = vsel %vm832_vm1, %v10058_v6, 0.0 }
0x13b8   : > { %10066 = vadd.xlane.f32.xlu0 %v10065_v57 }
0x13ba   : > { %10029 = vadd.xlane.f32.xlu1 %v10028_v29 }
0x13be   : > { %10075 = vadd.xlane.f32.xlu1 %v10074_v4 }
0x13c2   : > { %10069 = vadd.xlane.f32.xlu1 %v10068_v17 }
0x13de   : > { %v12308_v56 = vpop.f32.mrf.mxu0 }
0x13df   : > { %v10009_v3 = vadd.f32 %v12308_v56, %v11101_v45 }
0x13e0   : > { %v10000_v50 = vpop.f32.mrf.mxu0 }
0x13e1   : > { %v15967_v21 = vadd.f32 %v10009_v3, %v15833_v31  ;;  %v10001_v26 = vadd.f32 %v11101_v45, %v10000_v50 }
0x13e2   : > { %v12309_v62 = vpop.f32.mrf.mxu0 }
0x13e3   : > { %v15970_v11 = vadd.f32 %v10001_v26, %v15839_v48  ;;  %v10012_v12 = vadd.f32 %v12309_v62, %v11101_v45  ;;  %v10043_v49 = vsel %vm832_vm1, %v15967_v21, 0.0  ;;  %v10063_v35 = vmul.f32 %v15967_v21, %v15967_v21 }
0x13e4   : > { %10044 = vadd.xlane.f32.xlu0 %v10043_v49  ;;  %v10003_v30 = vpop.f32.mrf.mxu0 }
0x13e5   : > { %v10004_v59 = vadd.f32 %v11101_v45, %v10003_v30  ;;  %v10061_v0 = vmul.f32 %v15970_v11, %v15970_v11  ;;  %v15977_v40 = vadd.f32 %v10012_v12, %v15844_v61  ;;  %v10037_v48 = vsel %vm832_vm1, %v15970_v11, 0.0 }
0x13e6   : > { %v10083_v52 = vsel %vm832_vm1, %v10063_v35, 0.0 }
0x13e7   : > { %v15980_v31 = vadd.f32 %v10004_v59, %v15847_v39  ;;  %v10077_v8 = vsel %vm832_vm1, %v10061_v0, 0.0  ;;  %v10046_v46 = vsel %vm832_vm1, %v15977_v40, 0.0  ;;  %v10064_v61 = vmul.f32 %v15977_v40, %v15977_v40 }
0x13e8   : > { %10078 = vadd.xlane.f32.xlu1 %v10077_v8  ;;  %10038 = vadd.xlane.f32.xlu0 %v10037_v48 }
0x13e9   : > { %v10062_v63 = vmul.f32 %v15980_v31, %v15980_v31  ;;  %v10086_v39 = vsel %vm832_vm1, %v10064_v61, 0.0  ;;  %v10040_v37 = vsel %vm832_vm1, %v15980_v31, 0.0 }
0x13eb   : > { %v10080_v28 = vsel %vm832_vm1, %v10062_v63, 0.0  ;;  %v16014_v63 = vld [vmem:[%s16277_s15] ss:$0 sm:$0xff] }
0x13ec   : > { %10081 = vadd.xlane.f32.xlu1 %v10080_v28  ;;  %10047 = vadd.xlane.f32.xlu0 %v10046_v46 }
0x13f0   : > { %10087 = vadd.xlane.f32.xlu1 %v10086_v39  ;;  %10041 = vadd.xlane.f32.xlu0 %v10040_v37 }
0x13f4   : > { %10084 = vadd.xlane.f32.xlu0 %v10083_v52 }
0x140a   : > { %10221 = vrot.lane.b32.xlu0 %v16001_v10, %s16388_s23  ;;  %s716_s23 = scalar_lea.vmem %s16283_s21, %s10884_s6 }
0x1439   : > { %v10033_v5 = vpop.xlane.xlu0 %10032 }
0x143a   : > { %v10051_v36 = vmul.f32 0.03125, %v10033_v5 }
0x143b   : > { %v10073_v18 = vpop.xlane.xlu1 %10072 }
0x143c   : > { %v10099_v2 = vmul.f32 %v10051_v36, %v10051_v36  ;;  %v10091_v41 = vmul.f32 0.03125, %v10073_v18  ;;  %v10115_v62 = vsub.f32 %v15935_v47, %v10051_v36  ;;  %v16024_v36 = vld [vmem:[%s16278_s16] ss:$0 sm:$0xff] }
0x143d   : > { %v10027_v42 = vpop.xlane.xlu0 %10026 }
0x143e   : > { %v10049_v16 = vmul.f32 0.03125, %v10027_v42  ;;  %v10107_v53 = vsub.f32 %v10091_v41, %v10099_v2 }
0x143f   : > { %v10036_v27 = vpop.xlane.xlu1 %10035 }
0x1440   : > { %v10097_v15 = vmul.f32 %v10049_v16, %v10049_v16  ;;  %v10052_v45 = vmul.f32 0.03125, %v10036_v27  ;;  %v10123_v43 = vadd.f32 1e-05, %v10107_v53  ;;  %v10113_v30 = vsub.f32 %v15938_v33, %v10049_v16 }
0x1441   : > { %v10067_v44 = vpop.xlane.xlu0 %10066 }
0x1442   : > { %v10089_v38 = vmul.f32 0.03125, %v10067_v44  ;;  %v10100_v55 = vmul.f32 %v10052_v45, %v10052_v45  ;;  %12856 = vrsqrt.f32 %v10123_v43  ;;  %v10116_v33 = vsub.f32 %v15945_v54, %v10052_v45 }
0x1443   : > { %v10030_v19 = vpop.xlane.xlu1 %10029 }
0x1444   : > { %v10105_v51 = vsub.f32 %v10089_v38, %v10097_v15  ;;  %v10050_v58 = vmul.f32 0.03125, %v10030_v19 }
0x1446   : > { %v10121_v9 = vadd.f32 1e-05, %v10105_v51  ;;  %v10098_v7 = vmul.f32 %v10050_v58, %v10050_v58  ;;  %v10114_v42 = vsub.f32 %v15953_v24, %v10050_v58 }
0x1447   : > { %v10076_v34 = vpop.xlane.xlu1 %10075 }
0x1448   : > { %v10092_v60 = vmul.f32 0.03125, %v10076_v34  ;;  %12858 = vrsqrt.f32 %v10121_v9 }
0x144a   : > { %v10108_v22 = vsub.f32 %v10092_v60, %v10100_v55 }
0x144b   : > { %v10070_v32 = vpop.xlane.xlu1 %10069 }
0x144c   : > { %v10090_v23 = vmul.f32 0.03125, %v10070_v32  ;;  %v10124_v1 = vadd.f32 1e-05, %v10108_v22 }
0x144e   : > { %v10106_v25 = vsub.f32 %v10090_v23, %v10098_v7  ;;  %12860 = vrsqrt.f32 %v10124_v1 }
0x144f   : > { %v12857_v56 = vpop.eup %12856 }
0x1450   : > { %v10122_v13 = vadd.f32 1e-05, %v10106_v25  ;;  %v10139_v59 = vmul.f32 %v12857_v56, %v10115_v62 }
0x1452   : > { %12862 = vrsqrt.f32 %v10122_v13  ;;  %v10153_v27 = vmul.f32 %v16014_v63, %v10139_v59 }
0x1454   : > { %v16030_v24 = vadd.f32 %v16024_v36, %v10153_v27 }
0x1455   : > { %v12859_v26 = vpop.eup %12858 }
0x1456   : > { %v10137_v8 = vmul.f32 %v12859_v26, %v10113_v30 }
0x1458   : > { %v10151_v34 = vmul.f32 %v16014_v63, %v10137_v8 }
0x145a   : > { %v16035_v32 = vadd.f32 %v16024_v36, %v10151_v34 }
0x145b   : > { %v12861_v61 = vpop.eup %12860 }
0x145c   : > { %v10140_v19 = vmul.f32 %v12861_v61, %v10116_v33 }
0x145e   : > { %v10154_v60 = vmul.f32 %v16014_v63, %v10140_v19 }
0x145f   : > { %v12863_v35 = vpop.eup %12862 }
0x1460   : > { %v10138_v38 = vmul.f32 %v12863_v35, %v10114_v42  ;;  %v16046_v7 = vadd.f32 %v16024_v36, %v10154_v60 }
0x1462   : > { %v10152_v55 = vmul.f32 %v16014_v63, %v10138_v38  ;;  %v10183_v61 = vmul.f32 %v16001_v10, %v16046_v7 }
0x1464   : > { %v16049_v25 = vadd.f32 %v16024_v36, %v10152_v55  ;;  %v10265_v55 = vlaneseq }
0x146d   : > { %v10045_v57 = vpop.xlane.xlu0 %10044 }
0x146e   : > { %v16009_v48 = vmul.f32 0.03125, %v10045_v57 }
0x1470   : > { %v10103_v54 = vmul.f32 %v16009_v48, %v16009_v48  ;;  %v10119_v62 = vsub.f32 %v15967_v21, %v16009_v48 }
0x1471   : > { %v10079_v29 = vpop.xlane.xlu1 %10078  ;;  %v10039_v14 = vpop.xlane.xlu0 %10038 }
0x1472   : > { %v10053_v4 = vmul.f32 0.03125, %v10039_v14  ;;  %v10093_v6 = vmul.f32 0.03125, %v10079_v29  ;;  %v10181_v14 = vmul.f32 %v16001_v10, %v16049_v25 }
0x1474   : > { %v10101_v17 = vmul.f32 %v10053_v4, %v10053_v4  ;;  %v10117_v9 = vsub.f32 %v15970_v11, %v10053_v4  ;;  %v10196_v30 = vrot.slane %v10181_v14, 7 }
0x1475   : > { %v10082_v3 = vpop.xlane.xlu1 %10081  ;;  %v10048_v50 = vpop.xlane.xlu0 %10047 }
0x1476   : > { %v10109_v12 = vsub.f32 %v10093_v6, %v10101_v17  ;;  %v16006_v49 = vmul.f32 0.03125, %v10048_v50  ;;  %v10094_v52 = vmul.f32 0.03125, %v10082_v3 }
0x1478   : > { %v10125_v0 = vadd.f32 1e-05, %v10109_v12  ;;  %v10104_v47 = vmul.f32 %v16006_v49, %v16006_v49  ;;  %v10120_v4 = vsub.f32 %v15977_v40, %v16006_v49  ;;  %v10182_v12 = vmul.f32 %v16001_v10, %v16030_v24 }
0x1479   : > { %v10088_v28 = vpop.xlane.xlu1 %10087  ;;  %v10042_v46 = vpop.xlane.xlu0 %10041 }
0x147a   : > { %12864 = vrsqrt.f32 %v10125_v0  ;;  %v10096_v39 = vmul.f32 0.03125, %v10088_v28  ;;  %v10054_v37 = vmul.f32 0.03125, %v10042_v46  ;;  %v10199_v35 = vrot.slane %v10182_v12, 6 }
0x147c   : > { %v10112_v18 = vsub.f32 %v10096_v39, %v10104_v47  ;;  %v10102_v5 = vmul.f32 %v10054_v37, %v10054_v37  ;;  %v10118_v50 = vsub.f32 %v15980_v31, %v10054_v37  ;;  %v10180_v31 = vmul.f32 %v16001_v10, %v16035_v32 }
0x147d   : > { %v10085_v44 = vpop.xlane.xlu0 %10084 }
0x147e   : > { %v10128_v16 = vadd.f32 1e-05, %v10112_v18  ;;  %v10110_v2 = vsub.f32 %v10094_v52, %v10102_v5  ;;  %v10095_v41 = vmul.f32 0.03125, %v10085_v44  ;;  %v10198_v47 = vsel %vm10197_vm7, %v10196_v30, %v10180_v31 }
0x147f   : > { %v10201_v5 = vsel %vm10200_vm8, %v10199_v35, %v10198_v47  ;;  %v10202_v44 = vrot.slane %v10183_v61, 5 }
0x1480   : > { %12866 = vrsqrt.f32 %v10128_v16  ;;  %v10126_v15 = vadd.f32 1e-05, %v10110_v2  ;;  %v10111_v45 = vsub.f32 %v10095_v41, %v10103_v54 }
0x1481   : > { %v16032_v53 = vpop.permute.xlu0 %10221  ;;  %v10204_v16 = vsel %vm10203_vm9, %v10202_v44, %v10201_v5 }
0x1482   : > { %12868 = vrsqrt.f32 %v10126_v15  ;;  %v10127_v51 = vadd.f32 1e-05, %v10111_v45  ;;  %v10226_v58 = vmul.f32 %v16032_v53, %v16030_v24  ;;  %v10224_v43 = vmul.f32 %v16032_v53, %v16035_v32 }
0x1483   : > { %v10227_v57 = vmul.f32 %v16032_v53, %v16046_v7  ;;  %v10225_v17 = vmul.f32 %v16032_v53, %v16049_v25 }
0x1484   : > { %12870 = vrsqrt.f32 %v10127_v51  ;;  %v10239_v23 = vsel %vm10232_vm6, %v10226_v58, 0.0  ;;  %v10233_v13 = vsel %vm10232_vm6, %v10224_v43, 0.0  ;;  %v16115_v43 = vand.u32 127, %v10265_v55 }
0x1485   : > { %10240 = vadd.xlane.f32.xlu1 %v10239_v23  ;;  %v10242_v6 = vsel %vm10232_vm6, %v10227_v57, 0.0  ;;  %v10236_v40 = vsel %vm10232_vm6, %v10225_v17, 0.0 }
0x1487   : > { %v12865_v22 = vpop.eup %12864 }
0x1488   : > { %v10141_v1 = vmul.f32 %v12865_v22, %v10117_v9  ;;  %v10267_v22 = vadd.s32 1, %v16115_v43 }
0x1489   : > { %10234 = vadd.xlane.f32.xlu1 %v10233_v13 }
0x148a   : > { %v10155_v29 = vmul.f32 %v16014_v63, %v10141_v1  ;;  %v16118_v1 = vshrl.u32 %v10265_v55, 7  ;;  %v12500_v55 = vld [vmem:[%s16280_s18 + $0x18] sm:$0xff]  }
0x148b   : > { %12311 = vmatpush3.bf16.msra.mxu1 %v12500_v55 }
0x148c   : > { %v16058_v11 = vadd.f32 %v16024_v36, %v10155_v29  ;;  %v10270_v57 = vsub.s32 %v10267_v22, %v16118_v1  ;;  %12312 = vmatprep.subr.bf16.mxu1 %v16358_v20  ;;  %vm10770_vm3 = vcmp.eq.s32.totalorder %v16118_v1, 0 }
0x148d   : > { %v12867_v56 = vpop.eup %12866  ;;  %10243 = vadd.xlane.f32.xlu1 %v10242_v6 }
0x148e   : > { %v10144_v3 = vmul.f32 %v12867_v56, %v10120_v4  ;;  %v10228_v49 = vmul.f32 %v16032_v53, %v16058_v11  ;;  %v10184_v48 = vmul.f32 %v16001_v10, %v16058_v11 }
0x148f   : > { %v12869_v26 = vpop.eup %12868 }
0x1490   : > { %v10142_v59 = vmul.f32 %v12869_v26, %v10118_v50  ;;  %v10158_v0 = vmul.f32 %v16014_v63, %v10144_v3  ;;  %v10245_v37 = vsel %vm10232_vm6, %v10228_v49, 0.0  ;;  %v10205_v27 = vrot.slane %v10184_v48, 4 }
0x1491   : > { %v12871_v8 = vpop.eup %12870  ;;  %10237 = vadd.xlane.f32.xlu1 %v10236_v40 }
0x1492   : > { %v10156_v28 = vmul.f32 %v16014_v63, %v10142_v59  ;;  %v10143_v21 = vmul.f32 %v12871_v8, %v10119_v62  ;;  %v16080_v46 = vadd.f32 %v16024_v36, %v10158_v0  ;;  %v10207_v38 = vsel %vm10206_vm10, %v10205_v27, %v10204_v16 }
0x1493   : > { %v10337_v16 = vsub.s32 2, %v16118_v1 }
0x1494   : > { %v16086_v39 = vadd.f32 %v16024_v36, %v10156_v28  ;;  %v10157_v33 = vmul.f32 %v16014_v63, %v10143_v21  ;;  %v10187_v19 = vmul.f32 %v16001_v10, %v16080_v46 }
0x1495   : > { %10246 = vadd.xlane.f32.xlu1 %v10245_v37 }
0x1496   : > { %v10229_v52 = vmul.f32 %v16032_v53, %v16086_v39  ;;  %v16093_v18 = vadd.f32 %v16024_v36, %v10157_v33  ;;  %v10185_v42 = vmul.f32 %v16001_v10, %v16086_v39  ;;  %v10231_v36 = vmul.f32 %v16032_v53, %v16080_v46 }
0x1497   : > { %v10214_v51 = vrot.slane %v10187_v19, 1  ;;  %v10323_v19 = vsub.s32 0, %v16118_v1 }
0x1498   : > { %v10248_v63 = vsel %vm10232_vm6, %v10229_v52, 0.0  ;;  %v10230_v34 = vmul.f32 %v16032_v53, %v16093_v18  ;;  %v10186_v54 = vmul.f32 %v16001_v10, %v16093_v18  ;;  %v10208_v2 = vrot.slane %v10185_v42, 3 }
0x1499   : > { %10249 = vadd.xlane.f32.xlu1 %v10248_v63  ;;  %v10254_v53 = vsel %vm10232_vm6, %v10231_v36, 0.0  ;;  %v10330_v42 = vsub.s32 1, %v16118_v1 }
0x149a   : > { %v10251_v41 = vsel %vm10232_vm6, %v10230_v34, 0.0  ;;  %v10211_v15 = vrot.slane %v10186_v54, 2  ;;  %v10210_v45 = vsel %vm10209_vm11, %v10208_v2, %v10207_v38  ;;  %v10372_v54 = vsub.s32 7, %v16118_v1 }
0x149b   : > { %10252 = vadd.xlane.f32.xlu0 %v10251_v41  ;;  %v10344_v38 = vsub.s32 3, %v16118_v1  ;;  %vm10776_vm6 = vcmask 23552  }
0x149c   : > { %v10213_v10 = vsel %vm10212_vm12, %v10211_v15, %v10210_v45  ;;  %v10351_v45 = vsub.s32 4, %v16118_v1 }
0x149d   : > { %10255 = vadd.xlane.f32.xlu1 %v10254_v53  ;;  %v10216_v58 = vsel %vm10215_vm13, %v10214_v51, %v10213_v10  ;;  %v10358_v53 = vsub.s32 5, %v16118_v1 }
0x149e   : > { %v10218_v60 = vsel %vm832_vm1, %v10216_v58, 0.0  ;;  %v10365_v58 = vsub.s32 6, %v16118_v1 }
0x14a1   : > { %10219 = vadd.xlane.f32.xlu1 %v10218_v60 }
0x150e   : > { %v10241_v23 = vpop.xlane.xlu1 %10240 }
0x150f   : > { %v10279_v6 = vrot.slane %v10241_v23, %v10270_v57  ;;  %v12501_v23 = vld [vmem:[%s16280_s18 + $0x10] sm:$0xff]  }
0x1510   : > { %12313 = vmatpush3.bf16.msra.mxu1 %v12501_v23 }
0x1511   : > { %12318 = vmatprep.subr.bf16.mxu1 %v16358_v20 }
0x1512   : > { %v10235_v9 = vpop.xlane.xlu1 %10234 }
0x1513   : > { %v10271_v14 = vrot.slane %v10235_v9, %v10270_v57 }
0x1516   : > { %v10244_v13 = vpop.xlane.xlu1 %10243 }
0x1517   : > { %v10283_v50 = vrot.slane %v10244_v13, %v10270_v57 }
0x151a   : > { %v10238_v29 = vpop.xlane.xlu1 %10237 }
0x151b   : > { %v10275_v4 = vrot.slane %v10238_v29, %v10270_v57 }
0x151d   : > { %v10300_v17 = vsel %vm10197_vm7, %v10275_v4, %v10271_v14 }
0x151e   : > { %v10301_v56 = vsel %vm10200_vm8, %v10279_v6, %v10300_v17  ;;  %v10247_v3 = vpop.xlane.xlu1 %10246 }
0x151f   : > { %v10287_v26 = vrot.slane %v10247_v3, %v10270_v57  ;;  %v10302_v62 = vsel %vm10203_vm9, %v10283_v50, %v10301_v56 }
0x1521   : > { %v10303_v59 = vsel %vm10206_vm10, %v10287_v26, %v10302_v62 }
0x1522   : > { %v10250_v12 = vpop.xlane.xlu1 %10249 }
0x1523   : > { %v10291_v30 = vrot.slane %v10250_v12, %v10270_v57 }
0x1524   : > { %v10253_v40 = vpop.xlane.xlu0 %10252 }
0x1525   : > { %v10304_v49 = vsel %vm10209_vm11, %v10291_v30, %v10303_v59  ;;  %v10295_v0 = vrot.slane %v10253_v40, %v10270_v57 }
0x1526   : > { %v10256_v8 = vpop.xlane.xlu1 %10255 }
0x1527   : > { %v10299_v31 = vrot.slane %v10256_v8, %v10270_v57  ;;  %v10305_v28 = vsel %vm10212_vm12, %v10295_v0, %v10304_v49 }
0x1529   : > { %v10306_v21 = vsel %vm10215_vm13, %v10299_v31, %v10305_v28 }
0x152a   : > { %v10220_v48 = vpop.xlane.xlu1 %10219 }
0x152b   : > { %v10308_v61 = vadd.f32 %v10306_v21, %v10220_v48 }
0x152d   : > { %v10310_v47 = vsel %vm10309_vm14, %v10308_v61, -inf }
0x152e   : > { %10311 = vmax.xlane.f32.xlu1 %v10310_v47 }
0x15b7   : > { %v10312_v37 = vpop.xlane.xlu1 %10311 }
0x15b8   : > { %v10313_v33 = vsub.f32 %v10308_v61, %v10312_v37 }
0x15ba   : > { %v10314_v35 = vmul.f32 1.442695, %v10313_v33 }
0x15bc   : > { %12872 = vpow2.f32 %v10314_v35 }
0x15c9   : > { %v12873_v52 = vpop.eup %12872 }
0x15ca   : > { %v10316_v5 = vsel %vm10309_vm14, %v12873_v52, 0.0 }
0x15cb   : > { %10317 = vadd.xlane.f32.xlu1 %v10316_v5 }
0x1654   : > { %v10318_v27 = vpop.xlane.xlu1 %10317 }
0x1655   : > { %12874 = vrcp.f32 %v10318_v27 }
0x1662   : > { %v12875_v44 = vpop.eup %12874 }
0x1663   : > { %v10320_v63 = vmul.f32 %v12875_v44, %v12873_v52 }
0x1665   : > { %v10331_v34 = vrot.slane %v10320_v63, %v10330_v42  ;;  %v10324_v36 = vrot.slane %v10320_v63, %v10323_v19  ;;  %v10373_v2 = vrot.slane %v10320_v63, %v10372_v54  ;;  %v10338_v41 = vrot.slane %v10320_v63, %v10337_v16 }
0x1666   : > { %v10345_v15 = vrot.slane %v10320_v63, %v10344_v38  ;;  %v10352_v51 = vrot.slane %v10320_v63, %v10351_v45  ;;  %v10359_v10 = vrot.slane %v10320_v63, %v10358_v53  ;;  %v10366_v60 = vrot.slane %v10320_v63, %v10365_v58 }
0x1667   : > { %10333 = vbcast.lane.b32.xlu0 %v10331_v34, 256  ;;  %10326 = vbcast.lane.b32.xlu1 %v10324_v36, 256 }
0x166b   : > { %10375 = vbcast.lane.b32.xlu0 %v10373_v2, 256  ;;  %10340 = vbcast.lane.b32.xlu1 %v10338_v41, 256 }
0x166f   : > { %10347 = vbcast.lane.b32.xlu1 %v10345_v15, 256 }
0x1673   : > { %10354 = vbcast.lane.b32.xlu1 %v10352_v51, 256 }
0x1677   : > { %10361 = vbcast.lane.b32.xlu1 %v10359_v10, 256 }
0x167b   : > { %10368 = vbcast.lane.b32.xlu1 %v10366_v60, 256 }
0x16d9   : > { %v10334_v9 = vpop.permute.xlu0 %10333  ;;  %v10327_v22 = vpop.permute.xlu1 %10326 }
0x16da   : > { %v10386_v13 = vrot.slane %v10334_v9, 7  ;;  %v10385_v57 = vrot.slane %v10327_v22, 7 }
0x16dc   : > { %v10402_v29 = vmul.f32 %v10386_v13, %v16049_v25  ;;  %v10401_v14 = vmul.f32 %v10385_v57, %v16035_v32 }
0x16dd   : > { %v10376_v4 = vpop.permute.xlu0 %10375  ;;  %v10341_v6 = vpop.permute.xlu1 %10340 }
0x16de   : > { %v10418_v17 = vrot.slane %v10402_v29, 1  ;;  %v10417_v56 = vrot.slane %v10401_v14, 1  ;;  %v10392_v3 = vrot.slane %v10376_v4, 7  ;;  %v10387_v50 = vrot.slane %v10341_v6, 7 }
0x16e0   : > { %v10441_v26 = vsel %vm10433_vm15, %v10418_v17, 0.0  ;;  %v10434_v62 = vsel %vm10433_vm15, %v10417_v56, 0.0  ;;  %v10408_v12 = vmul.f32 %v10392_v3, %v16080_v46  ;;  %v10403_v30 = vmul.f32 %v10387_v50, %v16030_v24 }
0x16e1   : > { %v10442_v59 = vrot.slane %v10441_v26, 4  ;;  %v10435_v40 = vrot.slane %v10434_v62, 4  ;;  %v10348_v49 = vpop.permute.xlu1 %10347 }
0x16e2   : > { %v10424_v0 = vrot.slane %v10408_v12, 1  ;;  %v10419_v8 = vrot.slane %v10403_v30, 1  ;;  %v10388_v31 = vrot.slane %v10348_v49, 7  ;;  %v10552_v12 = vpack.c.bf16 %v16049_v25, %v16049_v25 }
0x16e3   : > { %v10443_v28 = vadd.f32 %v10442_v59, %v10441_v26  ;;  %v10436_v21 = vadd.f32 %v10435_v40, %v10434_v62 }
0x16e4   : > { %v10483_v48 = vsel %vm10433_vm15, %v10424_v0, 0.0  ;;  %v10448_v61 = vsel %vm10433_vm15, %v10419_v8, 0.0  ;;  %v10404_v47 = vmul.f32 %v10388_v31, %v16046_v7 }
0x16e5   : > { %v10444_v37 = vrot.slane %v10443_v28, 2  ;;  %v10437_v33 = vrot.slane %v10436_v21, 2  ;;  %v10449_v35 = vrot.slane %v10448_v61, 4  ;;  %v10355_v52 = vpop.permute.xlu1 %10354  ;;  %v10484_v44 = vrot.slane %v10483_v48, 4 }
0x16e6   : > { %v10420_v5 = vrot.slane %v10404_v47, 1  ;;  %v10389_v27 = vrot.slane %v10355_v52, 7 }
0x16e7   : > { %v10445_v42 = vadd.f32 %v10444_v37, %v10443_v28  ;;  %v10438_v19 = vadd.f32 %v10437_v33, %v10436_v21  ;;  %v10450_v63 = vadd.f32 %v10449_v35, %v10448_v61  ;;  %v10485_v10 = vadd.f32 %v10484_v44, %v10483_v48 }
0x16e8   : > { %v10455_v34 = vsel %vm10433_vm15, %v10420_v5, 0.0  ;;  %v10405_v36 = vmul.f32 %v10389_v27, %v16058_v11  ;;  %v10655_v37 = vunpack.c.l.b16 %v10552_v12  ;;  %v10551_v5 = vpack.c.bf16 %v16035_v32, %v16035_v32 }
0x16e9   : > { %v10446_v54 = vrot.slane %v10445_v42, 1  ;;  %v10439_v16 = vrot.slane %v10438_v19, 1  ;;  %v10451_v2 = vrot.slane %v10450_v63, 2  ;;  %v10362_v41 = vpop.permute.xlu1 %10361  ;;  %v10456_v38 = vrot.slane %v10455_v34, 4 }
0x16ea   : > { %v10421_v15 = vrot.slane %v10405_v36, 1  ;;  %v10390_v45 = vrot.slane %v10362_v41, 7  ;;  %v10486_v56 = vrot.slane %v10485_v10, 2 }
0x16eb   : > { %v10447_v51 = vadd.f32 %v10446_v54, %v10445_v42  ;;  %v10440_v53 = vadd.f32 %v10439_v16, %v10438_v19  ;;  %v10452_v58 = vadd.f32 %v10451_v2, %v10450_v63  ;;  %v10457_v60 = vadd.f32 %v10456_v38, %v10455_v34 }
0x16ec   : > { %v10462_v55 = vsel %vm10433_vm15, %v10421_v15, 0.0  ;;  %v10406_v23 = vmul.f32 %v10390_v45, %v16086_v39  ;;  %v10487_v31 = vadd.f32 %v10486_v56, %v10485_v10  ;;  %v10553_v34 = vpack.c.bf16 %v16030_v24, %v16030_v24 }
0x16ed   : > { %v16157_v9 = vmul.f32 0.14285715, %v10447_v51  ;;  %v16159_v22 = vmul.f32 0.14285715, %v10440_v53  ;;  %v10453_v13 = vrot.slane %v10452_v58, 1  ;;  %v10369_v57 = vpop.permute.xlu1 %10368  ;;  %v10458_v29 = vrot.slane %v10457_v60, 2 }
0x16ee   : > { %v10463_v14 = vrot.slane %v10462_v55, 4  ;;  %v10422_v4 = vrot.slane %v10406_v23, 1  ;;  %v10391_v6 = vrot.slane %v10369_v57, 7  ;;  %v10488_v19 = vrot.slane %v10487_v31, 1 }
0x16ef   : > { %v10530_v17 = vsel %vm10197_vm7, %v16157_v9, %v16159_v22  ;;  %v10454_v3 = vadd.f32 %v10453_v13, %v10452_v58  ;;  %v10459_v50 = vadd.f32 %v10458_v29, %v10457_v60  ;;  %v10554_v16 = vpack.c.bf16 %v16046_v7, %v16046_v7 }
0x16f0   : > { %v10464_v26 = vadd.f32 %v10463_v14, %v10462_v55  ;;  %v10469_v62 = vsel %vm10433_vm15, %v10422_v4, 0.0  ;;  %v10407_v0 = vmul.f32 %v10391_v6, %v16093_v18  ;;  %v10662_v2 = vrot.slane %v10655_v37, 7 }
0x16f1   : > { %v10470_v30 = vrot.slane %v10469_v62, 4  ;;  %v10493_v59 = vmul.f32 0.14285715, %v10454_v3  ;;  %v10460_v40 = vrot.slane %v10459_v50, 1  ;;  %v10555_v38 = vpack.c.bf16 %v16058_v11, %v16058_v11 }
0x16f2   : > { %v10465_v49 = vrot.slane %v10464_v26, 2  ;;  %v10423_v48 = vrot.slane %v10407_v0, 1  ;;  %v10654_v15 = vunpack.c.l.b16 %v10551_v5  ;;  %v10560_v53 = vpack.c.bf16 %v16157_v9, %v16157_v9 }
0x16f3   : > { %v10471_v8 = vadd.f32 %v10470_v30, %v10469_v62  ;;  %v10461_v28 = vadd.f32 %v10460_v40, %v10459_v50  ;;  %v10531_v47 = vsel %vm10200_vm8, %v10493_v59, %v10530_v17  ;;  %v10559_v10 = vpack.c.bf16 %v16159_v22, %v16159_v22 }
0x16f4   : > { %v10466_v21 = vadd.f32 %v10465_v49, %v10464_v26  ;;  %v10476_v52 = vsel %vm10433_vm15, %v10423_v48, 0.0  ;;  %v10489_v58 = vadd.f32 %v10488_v19, %v10487_v31  ;;  %v10656_v55 = vunpack.c.l.b16 %v10553_v34 }
0x16f5   : > { %v10472_v61 = vrot.slane %v10471_v8, 2  ;;  %v10494_v33 = vmul.f32 0.14285715, %v10461_v28  ;;  %v10477_v42 = vrot.slane %v10476_v52, 4  ;;  %v10561_v23 = vpack.c.bf16 %v10493_v59, %v10493_v59 }
0x16f6   : > { %v10467_v35 = vrot.slane %v10466_v21, 1  ;;  %v10556_v29 = vpack.c.bf16 %v16086_v39, %v16086_v39  ;;  %v10657_v14 = vunpack.c.l.b16 %v10554_v16  ;;  %v10663_v6 = vsel %vm10197_vm7, %v10662_v2, %v10654_v15 }
0x16f7   : > { %v10473_v27 = vadd.f32 %v10472_v61, %v10471_v8  ;;  %v10532_v63 = vsel %vm10203_vm9, %v10494_v33, %v10531_v47  ;;  %v10478_v54 = vadd.f32 %v10477_v42, %v10476_v52  ;;  %v10562_v4 = vpack.c.bf16 %v10494_v33, %v10494_v33 }
0x16f8   : > { %v10468_v44 = vadd.f32 %v10467_v35, %v10466_v21  ;;  %v10658_v17 = vunpack.c.l.b16 %v10555_v38  ;;  %v10576_v22 = vunpack.c.l.b16 %v10560_v53  ;;  %v10575_v50 = vunpack.c.l.b16 %v10559_v10 }
0x16f9   : > { %v10474_v36 = vrot.slane %v10473_v27, 1  ;;  %v10479_v51 = vrot.slane %v10478_v54, 2  ;;  %v10498_v26 = vmul.f32 0.14285715, %v10489_v58  ;;  %v10664_v12 = vrot.slane %v10656_v55, 6 }
0x16fa   : > { %v10495_v41 = vmul.f32 0.14285715, %v10468_v44  ;;  %v10577_v30 = vunpack.c.l.b16 %v10561_v23  ;;  %v10557_v40 = vpack.c.bf16 %v16093_v18, %v16093_v18  ;;  %v10659_v49 = vunpack.c.l.b16 %v10556_v29 }
0x16fb   : > { %v10475_v45 = vadd.f32 %v10474_v36, %v10473_v27  ;;  %v10480_v57 = vadd.f32 %v10479_v51, %v10478_v54  ;;  %v10578_v0 = vunpack.c.l.b16 %v10562_v4  ;;  %v10666_v8 = vrot.slane %v10657_v14, 5 }
0x16fc   : > { %v10533_v60 = vsel %vm10206_vm10, %v10495_v41, %v10532_v63  ;;  %v10563_v56 = vpack.c.bf16 %v10495_v41, %v10495_v41  ;;  %v10665_v21 = vsel %vm10200_vm8, %v10664_v12, %v10663_v6  ;;  %v10668_v48 = vrot.slane %v10658_v17, 4  ;;  %v11117_v17 = vld [vmem:[%s16281_s19] ss:$0 sm:$0xff] }
0x16fd   : > { %v10496_v13 = vmul.f32 0.14285715, %v10475_v45  ;;  %v10481_v9 = vrot.slane %v10480_v57, 1  ;;  %v10583_v61 = vsel %vm10197_vm7, %v10576_v22, %v10575_v50  ;;  %v10566_v47 = vpack.c.bf16 %v10498_v26, %v10498_v26  ;;  %v12502_v45 = vld [vmem:[%s16280_s18 + $0x8] sm:$0xff]   ;;  %v11118_v50 = vld [vmem:[%s16282_s20] ss:$0 sm:$0xff] }
0x16fe   : > { %v10579_v31 = vunpack.c.l.b16 %v10563_v56  ;;  %v10584_v33 = vsel %vm10200_vm8, %v10577_v30, %v10583_v61  ;;  %v10660_v52 = vunpack.c.l.b16 %v10557_v40  ;;  %v10670_v27 = vrot.slane %v10659_v49, 3 }
0x16ff   : > { %v10534_v3 = vsel %vm10209_vm11, %v10496_v13, %v10533_v60  ;;  %v10564_v62 = vpack.c.bf16 %v10496_v13, %v10496_v13  ;;  %v10482_v59 = vadd.f32 %v10481_v9, %v10480_v57  ;;  %v10585_v42 = vsel %vm10203_vm9, %v10578_v0, %v10584_v33  ;;  %v12503_v60 = vld [vmem:[%s16280_s18] sm:$0xff]  }
0x1700   : > { %v10558_v19 = vpack.c.bf16 %v16080_v46, %v16080_v46  ;;  %v10586_v63 = vsel %vm10206_vm10, %v10579_v31, %v10585_v42  ;;  %v10582_v36 = vunpack.c.l.b16 %v10566_v47  ;;  %v10667_v16 = vsel %vm10203_vm9, %v10666_v8, %v10665_v21 }
0x1701   : > { %v10497_v28 = vmul.f32 0.14285715, %v10482_v59  ;;  %v10580_v37 = vunpack.c.l.b16 %v10564_v62  ;;  %v10669_v41 = vsel %vm10206_vm10, %v10668_v48, %v10667_v16  ;;  %v10672_v38 = vrot.slane %v10660_v52, 2 }
0x1702   : > { %v10661_v51 = vunpack.c.l.b16 %v10558_v19  ;;  %v10671_v53 = vsel %vm10209_vm11, %v10670_v27, %v10669_v41  ;;  %v10507_v40 = vrot.slane %v16049_v25, 7  ;;  %v10509_v0 = vrot.slane %v16030_v24, 6 }
0x1703   : > { %v10565_v35 = vpack.c.bf16 %v10497_v28, %v10497_v28  ;;  %v10535_v5 = vsel %vm10212_vm12, %v10497_v28, %v10534_v3  ;;  %v10587_v54 = vsel %vm10209_vm11, %v10580_v37, %v10586_v63  ;;  %v10673_v58 = vsel %vm10212_vm12, %v10672_v38, %v10671_v53 }
0x1704   : > { %v10536_v44 = vsel %vm10215_vm13, %v10498_v26, %v10535_v5  ;;  %v10674_v55 = vrot.slane %v10661_v51, 1  ;;  %v10508_v49 = vsel %vm10197_vm7, %v10507_v40, %v16035_v32  ;;  %v10513_v31 = vrot.slane %v16058_v11, 4 }
0x1705   : > { %v10581_v34 = vunpack.c.l.b16 %v10565_v35  ;;  %v10510_v8 = vsel %vm10200_vm8, %v10509_v0, %v10508_v49  ;;  %v10511_v28 = vrot.slane %v16046_v7, 5  ;;  %v10515_v21 = vrot.slane %v16086_v39, 3 }
0x1706   : > { %v10675_v23 = vsel %vm10215_vm13, %v10674_v55, %v10673_v58  ;;  %v10517_v25 = vrot.slane %v16093_v18, 2  ;;  %v10519_v11 = vrot.slane %v16080_v46, 1  ;;  %v10771_v42 = vstv %s12892_s3 }
0x1707   : > { %v10588_v2 = vsel %vm10212_vm12, %v10581_v34, %v10587_v54  ;;  %v10676_v13 = vpack.c.b16 %v10675_v23, %v10675_v23  ;;  %v10512_v48 = vsel %vm10203_vm9, %v10511_v28, %v10510_v8  ;;  %vm10772_vm4 = vcmp.eq.s32.totalorder %v16115_v43, %v10771_v42 }
0x1708   : > { %v10589_v15 = vsel %vm10215_vm13, %v10582_v36, %v10588_v2  ;;  %v10514_v61 = vsel %vm10206_vm10, %v10513_v31, %v10512_v48  ;;  %vm10773_vm5 = vmand %vm10770_vm3, %vm10772_vm4 }
0x1709   : > { %v10590_v10 = vpack.c.b16 %v10589_v15, %v10589_v15  ;;  %v10516_v32 = vsel %vm10209_vm11, %v10515_v21, %v10514_v61 }
0x170a   : > { %v10518_v37 = vsel %vm10212_vm12, %v10517_v25, %v10516_v32 }
0x170b   : > { %12315 = vmatmul.mubr.msk.bf16.vlgmr.msra.gmra.mxu1 %vm832_vm1, %v10590_v10  ;;  %v10520_v39 = vsel %vm10215_vm13, %v10519_v11, %v10518_v37 }
0x170c   : > { %12319 = vmatpush3.bf16.msra.mxu1 %v12502_v45  ;;  %12322 = vmatprep.mubr.msk.bf16.mxu1 %vm12904_vm2, %v16358_v20  ;;  %vm10759_vm2 = vcmask 7168  }
0x170d   : > { %12320 = vmatprep.subr.bf16.mxu1 %v16358_v20 }
0x1710   : > { %12321 = vmatpush3.bf16.msra.mxu1 %v12503_v60 }
0x1713   : > { %12323 = vmatmul.mubr.msk.bf16.vlgmr.msra.gmra.mxu1 %vm832_vm1, %v10676_v13 }
0x17cb   : > { %v10640_v57 = vpop.f32.mrf.mxu1 }
0x17cd   : > { %v12316_v29 = vpop.f32.mrf.mxu1 }
0x17cf   : > { %v10643_v14 = vpop.f32.mrf.mxu1 }
0x17d1   : > { %v12317_v4 = vpop.f32.mrf.mxu1 }
0x17d3   : > { %v10726_v6 = vpop.f32.mrf.mxu1 }
0x17d4   : > { %v10727_v56 = vadd.f32 %v10726_v6, %v10640_v57 }
0x17d5   : > { %v12324_v9 = vpop.f32.mrf.mxu1 }
0x17d6   : > { %v10739_v3 = vadd.f32 %v11117_v17, %v10727_v56 }
0x17d7   : > { %v10729_v22 = vpop.f32.mrf.mxu1 }
0x17d8   : > { %12876 = vtanh.f32 %v10739_v3 }
0x17d9   : > { %v12325_v20 = vpop.f32.mrf.mxu1 }
0x17e5   : > { %v12877_v26 = vpop.eup %12876 }
0x17e6   : > { %v10748_v62 = vmul.f32 %v12877_v26, %v11118_v50 }
0x17e8   : > { %v10749_v12 = vsel %vm10541_vm0, %v10748_v62, 0.0 }
0x17e9   : > { %10750 = vadd.xlane.f32.xlu1 %v10749_v12 }
0x1872   : > { %v10751_v30 = vpop.xlane.xlu1 %10750 }
0x1873   : > { %v10760_v59 = vsel %vm10759_vm2, %v10751_v30, 0.0 }
0x1874   : > { %10761 = vadd.xlane.f32.xlu0 %v10760_v59 }
0x188a   : > { %10537 = vrot.lane.b32.xlu0 %v10536_v44, %s12912_s2 }
0x18fd   : > { %v10762_v47 = vpop.xlane.xlu0 %10761 }
0x18fe   : > { %v10763_v24 = vrot.slane %v10762_v47, 4 }
0x1900   : > { %v10764_v7 = vadd.f32 %v10763_v24, %v10762_v47 }
0x1901   : > { %v10538_v33 = vpop.permute.xlu0 %10537 }
0x1902   : > { %v10765_v35 = vrot.slane %v10764_v7, 2  ;;  %v10540_v18 = vsel %vm832_vm1, %v10520_v39, %v10538_v33 }
0x1903   : > { %10542 = vst.msk [vmem:[%s716_s23] sm:$0xff] %vm10541_vm0, %v10540_v18 }
0x1904   : > { %v10766_v52 = vadd.f32 %v10765_v35, %v10764_v7 }
0x1906   : > { %v10767_v5 = vrot.slane %v10766_v52, 1 }
0x1908   : > { %v10768_v27 = vadd.f32 %v10767_v5, %v10766_v52 }
0x190a   : > { %12326 = vpush %v10768_v27 }
0x193b   : > { %s12327_s25 = spop %12326 }
0x193c   : > { %v10774_v46 = vstv %s12327_s25 }
0x193d   : > { %v10775_v19 = vsel %vm10773_vm5, %v10774_v46, 0.0 }
0x193e   : > { %10777 = vst.msk [vmem:[%s722_s27] sm:$0xff] %vm10776_vm6, %v10775_v19 }
0x193f PF: > { %s33_s29 = sadd.s32 1, %s12900_s29   ;;  %s16428_s3 = smov %s12896_s28 }
0x1940   : > { %p30_p6 = scmp.ge.s32.totalorder %s33_s29, 5   ;;  %s16429_s28 = smov %s16431_s30 }
0x1942   :  { %32 = sbr.rel (!%p30_p6) target bundleno = 8 (0x8), region = 158 }

</bundles_post_ra>
